<compile_context>
chip_gen: v5e
topology: v5e:2x2
jax: 0.10.0
libtpu: 0.0.40
codegen_flags: <defaults>
</compile_context>

<pallas_src>
import math

import jax
import jax.numpy as jnp
from jax import lax
from jax.experimental import pallas as pl
from jax.experimental.pallas import tpu as pltpu


NCORES = 2  # leading "parallel" grid axis -> shards channel tiles across the
            # two v7x TensorCores; runs sequentially on single-core v5e/v6e.


# -----------------------------------------------------------------------------
# Fused GCN-head kernel.
# Grid: (core, k) where k tiles the 2048 backbone channels (tn per step).
# Per grid step:
#   feat_t = max over H*W of the feature-map channel slice     (MaxPool2d(14,14))
#   u     += feat_t @ W2[:, tile]^T                            (fed as W2^T tile)
# At k == 0 (per core): adjacency normalization, gc1 (inp @ W1, adj, LeakyReLU),
#                       z = adj @ x1  (gc2's adjacency folded in once).
# At k == last:         out_core = (u @ z^T) @ Wlin            (bias added outside)
# -----------------------------------------------------------------------------
def _gcn_head_kernel(fm_ref, A_ref, inp_ref, w1_ref, w2t_ref, lw_ref,
                     out_ref, z_ref, u_ref):
    k = pl.program_id(1)

    @pl.when(k == 0)
    def _init():
        # gen_adj: D = diag(A.sum(1) ** -0.5);  adj[i, j] = d[i] * A[j, i] * d[j]
        A = A_ref[...]                                        # (Cp, Cp) f32
        d = lax.rsqrt(jnp.maximum(jnp.sum(A, axis=1, keepdims=True), 1e-12))
        m1 = d * A                                            # m1[j, i] = d[j]*A[j, i]
        # gc1: support = inp @ W1 ; x1 = LeakyReLU(adj @ support, 0.2)
        s1 = jnp.dot(inp_ref[...], w1_ref[...],
                     preferred_element_type=jnp.float32)      # (Cp, hid)
        x1 = d * lax.dot_general(m1, s1, (((0,), (0,)), ((), ())),
                                 preferred_element_type=jnp.float32)
        x1 = jnp.where(x1 >= 0.0, x1, 0.2 * x1)
        # Fold gc2's adjacency in once:  adj @ (x1 @ W2) == (adj @ x1) @ W2
        z_ref[...] = d * lax.dot_general(m1, x1, (((0,), (0,)), ((), ())),
                                         preferred_element_type=jnp.float32)
        u_ref[...] = jnp.zeros_like(u_ref)

    # ---- every tile ---------------------------------------------------------
    # MaxPool2d(14, 14).view(B, -1) restricted to this channel slice.
    feat_t = jnp.max(fm_ref[...], axis=-1).astype(jnp.bfloat16)   # (B, tn)
    # y = feat @ W2^T @ z^T : accumulate the cheap (B, hid) factor per tile.
    u_ref[...] += jnp.dot(feat_t, w2t_ref[...],
                          preferred_element_type=jnp.float32)     # (B, hid)

    @pl.when(k == pl.num_programs(1) - 1)
    def _fin():
        y = lax.dot_general(u_ref[...], z_ref[...], (((1,), (1,)), ((), ())),
                            preferred_element_type=jnp.float32)   # (B, Cp)
        # nn.Linear(20, 5) weight (padded to (Cp, 5)); bias is added outside
        # once over the per-core partial sums.
        out_ref[...] = jnp.dot(y, lw_ref[...],
                               preferred_element_type=jnp.float32)


def gcn_head(fm, A_p, inp0, w1, w2t, lw, *, tn=1024, ncores=NCORES):
    """fm: (B, Cf, HW) f32; A_p: (Cp, Cp) f32; inp0/w1 bf16; w2t: (Cf, hid) bf16;
    lw: (Cp, n_out) f32.  Returns per-core partial logits (ncores, B, n_out)."""
    B, Cf, HW = fm.shape
    Cp = A_p.shape[0]
    in_ch = inp0.shape[1]
    hid = w1.shape[1]
    n_out = lw.shape[1]
    assert w2t.shape == (Cf, hid)
    assert Cf % (ncores * tn) == 0
    nk = Cf // (ncores * tn)

    flops = (2 * B * Cf * hid                                   # u accumulation
             + ncores * (2 * Cp * in_ch * hid                   # gc1 matmul
                         + 4 * Cp * Cp * hid                    # two adj applications
                         + 2 * B * hid * Cp + 2 * B * Cp * n_out))
    bytes_accessed = (fm.size * fm.dtype.itemsize + w2t.size * 2
                      + ncores * (A_p.size * 4 + inp0.size * 2 + w1.size * 2
                                  + lw.size * 4 + B * n_out * 4))

    return pl.pallas_call(
        _gcn_head_kernel,
        out_shape=jax.ShapeDtypeStruct((ncores, B, n_out), jnp.float32),
        grid=(ncores, nk),
        in_specs=[
            pl.BlockSpec((B, tn, HW), lambda c, k: (0, c * nk + k, 0)),  # fm slice
            pl.BlockSpec((Cp, Cp), lambda c, k: (0, 0)),                 # A
            pl.BlockSpec((Cp, in_ch), lambda c, k: (0, 0)),              # inp[0] bf16
            pl.BlockSpec((in_ch, hid), lambda c, k: (0, 0)),             # W1     bf16
            pl.BlockSpec((tn, hid), lambda c, k: (c * nk + k, 0)),       # W2^T   bf16
            pl.BlockSpec((Cp, n_out), lambda c, k: (0, 0)),              # linear W^T
        ],
        out_specs=pl.BlockSpec((None, B, n_out), lambda c, k: (c, 0, 0)),
        scratch_shapes=[
            pltpu.VMEM((Cp, hid), jnp.float32),    # z = adj @ x1
            pltpu.VMEM((B, hid), jnp.float32),     # u = feat @ W2^T accumulator
        ],
        compiler_params=pltpu.CompilerParams(
            dimension_semantics=("parallel", "arbitrary")),
        cost_estimate=pl.CostEstimate(flops=int(flops),
                                      transcendentals=int(ncores * Cp),
                                      bytes_accessed=int(bytes_accessed)),
    )(fm, A_p, inp0, w1, w2t, lw)


# -----------------------------------------------------------------------------
# One-time parameter preparation (hoisted out of the forward path).
# -----------------------------------------------------------------------------
def prepare_params(A, inp, w1, w2, lw_t, lb, *, c_pad=32):
    """Pad num_classes -> 32, cast weights to bf16, pre-transpose W2.  Done once."""
    nc = A.shape[0]
    assert c_pad >= nc and c_pad % 8 == 0
    pad = c_pad - nc
    # Identity rows keep rsqrt(rowsum) finite; zero inp / linear rows make the
    # padded classes contribute exactly 0.
    A_p = jnp.eye(c_pad, dtype=jnp.float32).at[:nc, :nc].set(A.astype(jnp.float32))
    inp0 = jnp.pad(inp[0], ((0, pad), (0, 0))).astype(jnp.bfloat16)
    w1_b = w1.astype(jnp.bfloat16)
    w2t = jnp.transpose(w2).astype(jnp.bfloat16)          # (2048, 1024), once
    lw_p = jnp.pad(lw_t, ((0, pad), (0, 0))).astype(jnp.float32)
    lb_f = lb.astype(jnp.float32)
    return (A_p, inp0, w1_b, w2t, lw_p, lb_f)


# -----------------------------------------------------------------------------
# Forward: free reshape + single pallas_call + tiny partial-sum / bias add.
# -----------------------------------------------------------------------------
@jax.jit
def gcn_resnet_forward(feature_nchw, params):
    A_p, inp0, w1_b, w2t, lw_p, lb = params
    B, Cf, H, W = feature_nchw.shape
    # (B, C, H, W) -> (B, C, H*W): contiguous collapse, no transpose pass.
    fm = feature_nchw.reshape(B, Cf, H * W)
    parts = gcn_head(fm, A_p, inp0, w1_b, w2t, lw_p)       # (ncores, B, n_out)
    return jnp.sum(parts, axis=0) + lb                     # (B, n_out)


# Pure-JAX reference mirroring the PyTorch forward (original association order;
# same bf16 quantization points as the kernel so the comparison isolates real
# errors / re-association effects).
def reference_forward(feature_nchw, inp, A, w1, w2, lw_t, lb):
    B, Cf, H, W = feature_nchw.shape
    f32, bf16 = jnp.float32, jnp.bfloat16
    feat = jnp.max(feature_nchw.reshape(B, Cf, H * W), axis=-1)     # MaxPool2d(14,14)
    feat = feat.astype(bf16).astype(f32)
    d = lax.rsqrt(jnp.maximum(jnp.sum(A, axis=1), 1e-12))
    adj = (A * d[None, :]).T * d[None, :]                           # gen_adj(A)
    x = jnp.dot(inp[0].astype(bf16).astype(f32), w1.astype(bf16).astype(f32))
    x = adj @ x
    x = jnp.where(x >= 0, x, 0.2 * x)                               # LeakyReLU(0.2)
    x = adj @ jnp.dot(x, w2.astype(bf16).astype(f32))
    y = feat @ x.T
    return y @ lw_t + lb


if __name__ == "__main__":
    num_classes = 20        # fixed by nn.Linear(20, 5)
    in_channel = 128
    feat_channels = 2048    # ResNet backbone output / gc2 output width
    B, H, W = 2, 14, 14

    key = jax.random.PRNGKey(0)
    kf, ki, ka, k1, k2, klw, klb = jax.random.split(key, 7)

    # Backbone output feature map (stand-in for self.features(x)), NCHW.
    feature_nchw = jax.random.normal(kf, (B, feat_channels, H, W), jnp.float32)
    # Word-embedding input: forward uses inp[0], so inp is (1, num_classes, in_channel).
    inp = jax.random.normal(ki, (1, num_classes, in_channel), jnp.float32)

    # self.A = Parameter(gen_A(...)) -- synthetic deterministic positive adjacency.
    A = (jnp.eye(num_classes, dtype=jnp.float32)
         + 0.25 * jax.random.uniform(ka, (num_classes, num_classes), jnp.float32))

    # GraphConvolution weights: uniform(-stdv, stdv), stdv = 1/sqrt(out_features)
    std1 = 1.0 / math.sqrt(1024)
    w1 = jax.random.uniform(k1, (in_channel, 1024), jnp.float32, -std1, std1)
    std2 = 1.0 / math.sqrt(2048)
    w2 = jax.random.uniform(k2, (1024, 2048), jnp.float32, -std2, std2)

    # nn.Linear(20, 5): pass W^T (20, 5) and bias (1, 5)
    stdl = 1.0 / math.sqrt(20)
    lw_t = jax.random.uniform(klw, (20, 5), jnp.float32, -stdl, stdl)
    lb = jax.random.uniform(klb, (1, 5), jnp.float32, -stdl, stdl)

    # One-time init: padding / bf16 casts / W2 transpose, cached for every call.
    params = jax.block_until_ready(prepare_params(A, inp, w1, w2, lw_t, lb))

    out = gcn_resnet_forward(feature_nchw, params)
    out = jax.block_until_ready(out)

    ref = reference_forward(feature_nchw, inp, A, w1, w2, lw_t, lb)
    assert out.shape == (B, 5), out.shape
    assert jnp.allclose(out, ref, rtol=2e-3, atol=2e-3), "mismatch vs reference"

    print("KERNEL_OK")
</pallas_src>

<mosaic_0001>
module attributes {stable_mosaic.version = 11 : i64} {
  func.func @_gcn_head_kernel(%arg0: i32, %arg1: i32, %arg2: memref<2x1024x196xf32, #tpu.memory_space<vmem>>, %arg3: memref<32x32xf32, #tpu.memory_space<vmem>>, %arg4: memref<32x128xbf16, #tpu.memory_space<vmem>>, %arg5: memref<128x1024xbf16, #tpu.memory_space<vmem>>, %arg6: memref<1024x1024xbf16, #tpu.memory_space<vmem>>, %arg7: memref<32x5xf32, #tpu.memory_space<vmem>>, %arg8: memref<1x2x5xf32, #tpu.memory_space<vmem>>, %arg9: memref<32x1024xf32, #tpu.memory_space<vmem>>, %arg10: memref<2x1024xf32, #tpu.memory_space<vmem>>) attributes {dimension_semantics = [#tpu.dimension_semantics<parallel>, #tpu.dimension_semantics<arbitrary>], iteration_bounds = array<i64: 2, 1>, scalar_prefetch = 0 : i64, scratch_operands = 2 : i64, tpu.core_type = #tpu.core_type<tc>, window_params = [{transform_indices = @transform_0, window_bounds = array<i64: 2, 1024, 196>}, {pipeline_mode = #tpu.pipeline_mode<synchronous>, transform_indices = @transform_1, window_bounds = array<i64: 32, 32>}, {pipeline_mode = #tpu.pipeline_mode<synchronous>, transform_indices = @transform_2, window_bounds = array<i64: 32, 128>}, {pipeline_mode = #tpu.pipeline_mode<synchronous>, transform_indices = @transform_3, window_bounds = array<i64: 128, 1024>}, {transform_indices = @transform_4, window_bounds = array<i64: 1024, 1024>}, {pipeline_mode = #tpu.pipeline_mode<synchronous>, transform_indices = @transform_5, window_bounds = array<i64: 32, 5>}, {transform_indices = @transform_6, window_bounds = array<i64: 1, 2, 5>}]} {
    %c0_i32 = arith.constant 0 : i32
    %0 = arith.cmpi eq, %arg1, %c0_i32 : i32
    %1 = arith.extui %0 : i1 to i32
    %c0_i32_0 = arith.constant 0 : i32
    %2 = arith.cmpi ne, %1, %c0_i32_0 : i32
    scf.if %2 {
      %c0_12 = arith.constant 0 : index
      %c0_13 = arith.constant 0 : index
      %14 = vector.load %arg3[%c0_12, %c0_13] : memref<32x32xf32, #tpu.memory_space<vmem>>, vector<32x32xf32>
      %cst_14 = arith.constant dense<0.000000e+00> : vector<32xf32>
      %15 = vector.multi_reduction <add>, %14, %cst_14 [1] : vector<32x32xf32> to vector<32xf32>
      %16 = vector.shape_cast %15 : vector<32xf32> to vector<32x1xf32>
      %cst_15 = arith.constant 9.99999996E-13 : f32
      %17 = vector.broadcast %cst_15 : f32 to vector<32x1xf32>
      %18 = arith.maximumf %16, %17 : vector<32x1xf32>
      %19 = math.rsqrt %18 : vector<32x1xf32>
      %20 = vector.broadcast %19 : vector<32x1xf32> to vector<32x32xf32>
      %21 = arith.mulf %20, %14 : vector<32x32xf32>
      %c0_16 = arith.constant 0 : index
      %c0_17 = arith.constant 0 : index
      %22 = vector.load %arg4[%c0_16, %c0_17] : memref<32x128xbf16, #tpu.memory_space<vmem>>, vector<32x128xbf16>
      %c0_18 = arith.constant 0 : index
      %c0_19 = arith.constant 0 : index
      %23 = vector.load %arg5[%c0_18, %c0_19] : memref<128x1024xbf16, #tpu.memory_space<vmem>>, vector<128x1024xbf16>
      %cst_20 = arith.constant dense<0.000000e+00> : vector<32x1024xf32>
      %24 = tpu.matmul %22, %23, %cst_20 {dimension_numbers = #tpu.dot_dimension_numbers<[1], [0], [0], [1], [0, 0, 1, 1], [], []>} : vector<32x128xbf16>, vector<128x1024xbf16>, vector<32x1024xf32> -> vector<32x1024xf32>
      %cst_21 = arith.constant dense<0.000000e+00> : vector<32x1024xf32>
      %25 = tpu.matmul %21, %24, %cst_21 {dimension_numbers = #tpu.dot_dimension_numbers<[0], [0], [1], [1], [0, 1, 1, 1], [], []>} : vector<32x32xf32>, vector<32x1024xf32>, vector<32x1024xf32> -> vector<32x1024xf32>
      %26 = vector.broadcast %19 : vector<32x1xf32> to vector<32x1024xf32>
      %27 = arith.mulf %26, %25 : vector<32x1024xf32>
      %cst_22 = arith.constant 0.000000e+00 : f32
      %28 = vector.broadcast %cst_22 : f32 to vector<32x1024xf32>
      %29 = arith.cmpf oge, %27, %28 : vector<32x1024xf32>
      %cst_23 = arith.constant 2.000000e-01 : f32
      %30 = vector.broadcast %cst_23 : f32 to vector<32x1024xf32>
      %31 = arith.mulf %30, %27 : vector<32x1024xf32>
      %32 = arith.select %29, %27, %31 : vector<32x1024xi1>, vector<32x1024xf32>
      %cst_24 = arith.constant dense<0.000000e+00> : vector<32x1024xf32>
      %33 = tpu.matmul %21, %32, %cst_24 {dimension_numbers = #tpu.dot_dimension_numbers<[0], [0], [1], [1], [0, 1, 1, 1], [], []>} : vector<32x32xf32>, vector<32x1024xf32>, vector<32x1024xf32> -> vector<32x1024xf32>
      %34 = vector.broadcast %19 : vector<32x1xf32> to vector<32x1024xf32>
      %35 = arith.mulf %34, %33 : vector<32x1024xf32>
      %c0_25 = arith.constant 0 : index
      %c0_26 = arith.constant 0 : index
      %36 = vector.load %arg9[%c0_25, %c0_26] : memref<32x1024xf32, #tpu.memory_space<vmem>>, vector<32x1024xf32>
      tpu.vector_store %arg9[%c0_25, %c0_26], %35 {strides = array<i32>} : memref<32x1024xf32, #tpu.memory_space<vmem>>, vector<32x1024xf32>,
      %cst_27 = arith.constant 0.000000e+00 : f32
      %37 = vector.broadcast %cst_27 : f32 to vector<2x1024xf32>
      %c0_28 = arith.constant 0 : index
      %c0_29 = arith.constant 0 : index
      %38 = vector.load %arg10[%c0_28, %c0_29] : memref<2x1024xf32, #tpu.memory_space<vmem>>, vector<2x1024xf32>
      tpu.vector_store %arg10[%c0_28, %c0_29], %37 {strides = array<i32>} : memref<2x1024xf32, #tpu.memory_space<vmem>>, vector<2x1024xf32>,
    } else {
    }
    %c0 = arith.constant 0 : index
    %c0_1 = arith.constant 0 : index
    %c0_2 = arith.constant 0 : index
    %3 = vector.load %arg2[%c0, %c0_1, %c0_2] : memref<2x1024x196xf32, #tpu.memory_space<vmem>>, vector<2x1024x196xf32>
    %cst = arith.constant dense<0xFF800000> : vector<2x1024xf32>
    %4 = vector.multi_reduction <maximumf>, %3, %cst [2] : vector<2x1024x196xf32> to vector<2x1024xf32>
    %5 = arith.truncf %4 : vector<2x1024xf32> to vector<2x1024xbf16>
    %c0_3 = arith.constant 0 : index
    %c0_4 = arith.constant 0 : index
    %6 = vector.load %arg10[%c0_3, %c0_4] : memref<2x1024xf32, #tpu.memory_space<vmem>>, vector<2x1024xf32>
    %c0_5 = arith.constant 0 : index
    %c0_6 = arith.constant 0 : index
    %7 = vector.load %arg6[%c0_5, %c0_6] : memref<1024x1024xbf16, #tpu.memory_space<vmem>>, vector<1024x1024xbf16>
    %cst_7 = arith.constant dense<0.000000e+00> : vector<2x1024xf32>
    %8 = tpu.matmul %5, %7, %cst_7 {dimension_numbers = #tpu.dot_dimension_numbers<[1], [0], [0], [1], [0, 0, 1, 1], [], []>} : vector<2x1024xbf16>, vector<1024x1024xbf16>, vector<2x1024xf32> -> vector<2x1024xf32>
    %9 = arith.addf %6, %8 : vector<2x1024xf32>
    %c0_8 = arith.constant 0 : index
    %c0_9 = arith.constant 0 : index
    %10 = vector.load %arg10[%c0_8, %c0_9] : memref<2x1024xf32, #tpu.memory_space<vmem>>, vector<2x1024xf32>
    tpu.vector_store %arg10[%c0_8, %c0_9], %9 {strides = array<i32>} : memref<2x1024xf32, #tpu.memory_space<vmem>>, vector<2x1024xf32>,
    %c0_i32_10 = arith.constant 0 : i32
    %11 = arith.cmpi eq, %arg1, %c0_i32_10 : i32
    %12 = arith.extui %11 : i1 to i32
    %c0_i32_11 = arith.constant 0 : i32
    %13 = arith.cmpi ne, %12, %c0_i32_11 : i32
    scf.if %13 {
      %c0_12 = arith.constant 0 : index
      %c0_13 = arith.constant 0 : index
      %14 = vector.load %arg10[%c0_12, %c0_13] : memref<2x1024xf32, #tpu.memory_space<vmem>>, vector<2x1024xf32>
      %c0_14 = arith.constant 0 : index
      %c0_15 = arith.constant 0 : index
      %15 = vector.load %arg9[%c0_14, %c0_15] : memref<32x1024xf32, #tpu.memory_space<vmem>>, vector<32x1024xf32>
      %cst_16 = arith.constant dense<0.000000e+00> : vector<2x32xf32>
      %16 = tpu.matmul %14, %15, %cst_16 {dimension_numbers = #tpu.dot_dimension_numbers<[1], [1], [0], [0], [0, 0, 1, 0], [], []>} : vector<2x1024xf32>, vector<32x1024xf32>, vector<2x32xf32> -> vector<2x32xf32>
      %c0_17 = arith.constant 0 : index
      %c0_18 = arith.constant 0 : index
      %17 = vector.load %arg7[%c0_17, %c0_18] : memref<32x5xf32, #tpu.memory_space<vmem>>, vector<32x5xf32>
      %cst_19 = arith.constant dense<0.000000e+00> : vector<2x5xf32>
      %18 = tpu.matmul %16, %17, %cst_19 {dimension_numbers = #tpu.dot_dimension_numbers<[1], [0], [0], [1], [0, 0, 1, 1], [], []>} : vector<2x32xf32>, vector<32x5xf32>, vector<2x5xf32> -> vector<2x5xf32>
      %c0_20 = arith.constant 0 : index
      %c0_21 = arith.constant 0 : index
      %c0_22 = arith.constant 0 : index
      %19 = vector.load %arg8[%c0_20, %c0_21, %c0_22] : memref<1x2x5xf32, #tpu.memory_space<vmem>>, vector<1x2x5xf32>
      %20 = vector.shape_cast %19 : vector<1x2x5xf32> to vector<2x5xf32>
      %21 = vector.shape_cast %18 : vector<2x5xf32> to vector<1x2x5xf32>
      tpu.vector_store %arg8[%c0_20, %c0_21, %c0_22], %21 {strides = array<i32>} : memref<1x2x5xf32, #tpu.memory_space<vmem>>, vector<1x2x5xf32>,
    } else {
    }
    return
  }
  func.func @transform_0(%arg0: i32, %arg1: i32) -> (i32, i32, i32) {
    %c1_i32 = arith.constant 1 : i32
    %0 = arith.muli %arg0, %c1_i32 : i32
    %1 = arith.addi %0, %arg1 : i32
    %c0_i32 = arith.constant 0 : i32
    %c0_i32_0 = arith.constant 0 : i32
    %c0_i32_1 = arith.constant 0 : i32
    return %c0_i32, %1, %c0_i32_0 : i32, i32, i32
  }
  func.func @transform_1(%arg0: i32, %arg1: i32) -> (i32, i32) {
    %c0_i32 = arith.constant 0 : i32
    %c0_i32_0 = arith.constant 0 : i32
    %c0_i32_1 = arith.constant 0 : i32
    return %c0_i32, %c0_i32_0 : i32, i32
  }
  func.func @transform_2(%arg0: i32, %arg1: i32) -> (i32, i32) {
    %c0_i32 = arith.constant 0 : i32
    %c0_i32_0 = arith.constant 0 : i32
    %c0_i32_1 = arith.constant 0 : i32
    return %c0_i32, %c0_i32_0 : i32, i32
  }
  func.func @transform_3(%arg0: i32, %arg1: i32) -> (i32, i32) {
    %c0_i32 = arith.constant 0 : i32
    %c0_i32_0 = arith.constant 0 : i32
    %c0_i32_1 = arith.constant 0 : i32
    return %c0_i32, %c0_i32_0 : i32, i32
  }
  func.func @transform_4(%arg0: i32, %arg1: i32) -> (i32, i32) {
    %c1_i32 = arith.constant 1 : i32
    %0 = arith.muli %arg0, %c1_i32 : i32
    %1 = arith.addi %0, %arg1 : i32
    %c0_i32 = arith.constant 0 : i32
    %c0_i32_0 = arith.constant 0 : i32
    return %1, %c0_i32 : i32, i32
  }
  func.func @transform_5(%arg0: i32, %arg1: i32) -> (i32, i32) {
    %c0_i32 = arith.constant 0 : i32
    %c0_i32_0 = arith.constant 0 : i32
    %c0_i32_1 = arith.constant 0 : i32
    return %c0_i32, %c0_i32_0 : i32, i32
  }
  func.func @transform_6(%arg0: i32, %arg1: i32) -> (i32, i32, i32) {
    %c0_i32 = arith.constant 0 : i32
    %c0_i32_0 = arith.constant 0 : i32
    %c0_i32_1 = arith.constant 0 : i32
    return %arg0, %c0_i32, %c0_i32_0 : i32, i32, i32
  }
}

</mosaic_0001>

<bundles_post_ra>
// kernel: gcn_resnet_forward.1
= control target key start
LH: loop header
LB: loop body
LE: loop exit
PB: predicated region body
PF: predicated region fallthrough
CT: control target
= control target key end

     0   :  { %s13263_s21 = smov 0   ;;  %s13265_s22 = smov 0   ;;  %s18412_s0 = inlined_call_operand.vmem [shape: f32[2,2048,196], index: 0, kind: input, shape index: {}]   ;;  %s18413_s1 = inlined_call_operand.vmem [shape: f32[32,32], index: 1, kind: input, shape index: {}]   ;;  %s18414_s2 = inlined_call_operand.vmem [shape: bf16[32,128], index: 2, kind: input, shape index: {}]   ;;  %s18415_s3 = inlined_call_operand.vmem [shape: bf16[128,1024], index: 3, kind: input, shape index: {}]   ;;  %s18416_s4 = inlined_call_operand.vmem [shape: bf16[2048,1024], index: 4, kind: input, shape index: {}]   ;;  %s18417_s5 = inlined_call_operand.vmem [shape: f32[32,5], index: 5, kind: input, shape index: {}]   ;;  %s18418_s6 = inlined_call_operand.vmem [shape: f32[2,2,5], index: 6, kind: output, shape index: {}]  }
   0x1   :  { %s13267_s23 = smov 0   ;;  %s13269_s24 = smov 0  }
   0x2   :  { %s13271_s25 = smov 0  }
   0x3 LB: > { %s28_s26 = sadd.s32 1, %s13206_s24  ;;  %p44_p1 = scmp.ne.s32.totalorder %s13198_s22, %s13194_s21  ;;  %s13210_s25 = sphi %s13271_s25, %s16_s25   ;;  %s13206_s24 = sphi %s13269_s24, %s18852_s24   ;;  %s13202_s23 = sphi %s13267_s23, %s18851_s23   ;;  %s13198_s22 = sphi %s13265_s22, %s18850_s22   ;;  %s13194_s21 = sphi %s13263_s21, %s18849_s21  }
   0x4   : > { %p30_p0 = scmp.ge.s32.totalorder %s28_s26, 2  ;;  %p45_p2 = scmp.eq.s32.totalorder %s13210_s25, 0 }
   0x5   : > { %s37_s28 = sadd.s32 1, %s13198_s22  ;;  %p10099_p5 = scmp.ge.s32.totalorder %s13210_s25, 2 }
   0x6   : > { %s18854_s26 = smov (%p30_p0, %s28_s26), 0  ;;  %p46_p3 = por %p45_p2, %p44_p1 }
   0x7   : > { %s34_s27 = ssub.s32 %s13206_s24, %s18854_s26  ;;  %220 = sbr.rel (%p10099_p5) target bundleno = 274 (0x112), region = 32 }
   0x8   : > { %p35_p4 = scmp.eq.s32.totalorder %s34_s27, 0 }
   0xa   : > { %s13298_s29 = scalar_select %p35_p4, %s13198_s22, %s37_s28  }
   0xc   : > { %223 = sbr.rel (!%p46_p3) target bundleno = 274 (0x112), region = 36  ;;  %s225_s30 = sand.u32 (%p46_p3), 1, %s13198_s22  }
   0xd   : > { %s12492_s7 = sshll.u32 (%p46_p3), %s13206_s24, 11  ;;  %s13303_s8 = sshll.u32 (%p46_p3), %s225_s30, 12 }
   0xe   : > { %s13308_s11 = scalar_lea.vmem (%p46_p3), %s18412_s0, %s12492_s7   ;;  %s227_s12 = scalar_lea.vmem (%p46_p3), [#allocation4], %s13303_s8  }
   0xf   : > { %s18467_s13 = smov (%p46_p3), %s227_s12  ;;  %s18468_s14 = smov (%p46_p3), %s13308_s11 }
  0x10   : > { %s13318_s15 = smov (%p46_p3), 0   ;;  %s13320_s16 = smov (%p46_p3), 0  }
  0x11 LB: >> { %v246_v0 = vld [vmem:[%s13218_s14] sm:$0xff]  ;;  %v248_v1 = vld [vmem:[%s13218_s14 + $0x10] sm:$0xff]  ;;  %s758_s17 = sadd.s32 1, %s13222_s15  ;;  %s242_s16 = sadd.s32 1, %s13226_s16   ;;  %s13226_s16 = sphi %s13320_s16, %s242_s16   ;;  %s13222_s15 = sphi %s13318_s15, %s18471_s15   ;;  %s13218_s14 = sphi %s18468_s14, %s18470_s14   ;;  %s13214_s13 = sphi %s18467_s13, %s18469_s13  }
  0x12   : >> { %v250_v2 = vld [vmem:[%s13218_s14 + $0x20] sm:$0xff]  ;;  %247 = vst [vmem:[%s13214_s13] sm:$0xff] %v246_v0  ;;  %v252_v3 = vld [vmem:[%s13218_s14 + $0x30] sm:$0xff]  ;;  %p759_p6 = scmp.ge.s32.totalorder %s758_s17, 2  ;;  %p239_p7 = scmp.ge.s32.totalorder %s242_s16, 2  }
  0x13   : >> { %249 = vst [vmem:[%s13214_s13 + $0x10] sm:$0xff] %v248_v1  ;;  %v254_v4 = vld [vmem:[%s13218_s14 + $0x40] sm:$0xff]  ;;  %v256_v5 = vld [vmem:[%s13218_s14 + $0x50] sm:$0xff] }
  0x14   : >> { %251 = vst [vmem:[%s13214_s13 + $0x20] sm:$0xff] %v250_v2  ;;  %v258_v6 = vld [vmem:[%s13218_s14 + $0x60] sm:$0xff]  ;;  %v260_v7 = vld [vmem:[%s13218_s14 + $0x70] sm:$0xff]  ;;  %s18856_s17 = smov (%p759_p6, %s758_s17), 0 }
  0x15   : >> { %253 = vst [vmem:[%s13214_s13 + $0x30] sm:$0xff] %v252_v3  ;;  %v262_v8 = vld [vmem:[%s13218_s14 + $0x80] sm:$0xff]  ;;  %v264_v9 = vld [vmem:[%s13218_s14 + $0x90] sm:$0xff]  ;;  %s10104_s18 = sshll.u32 %s18856_s17, 3  ;;  %s18471_s15 = smov %s18856_s17 }
  0x16   : >> { %255 = vst [vmem:[%s13214_s13 + $0x40] sm:$0xff] %v254_v4  ;;  %v266_v10 = vld [vmem:[%s13218_s14 + $0xa0] sm:$0xff]  ;;  %v268_v11 = vld [vmem:[%s13218_s14 + $0xb0] sm:$0xff]  ;;  %s13598_s19 = scalar_lea.vmem %s13308_s11, %s10104_s18   ;;  %s13602_s20 = scalar_lea.vmem %s227_s12, %s10104_s18 [#allocation4]  }
  0x17   : >> { %257 = vst [vmem:[%s13214_s13 + $0x50] sm:$0xff] %v256_v5  ;;  %v270_v12 = vld [vmem:[%s13218_s14 + $0xc0] sm:$0xff]  ;;  %v272_v13 = vld [vmem:[%s13218_s14 + $0xd0] sm:$0xff] }
  0x18   : >> { %259 = vst [vmem:[%s13214_s13 + $0x60] sm:$0xff] %v258_v6  ;;  %v274_v14 = vld [vmem:[%s13218_s14 + $0xe0] sm:$0xff]  ;;  %v276_v15 = vld [vmem:[%s13218_s14 + $0xf0] sm:$0xff] }
  0x19   : >> { %261 = vst [vmem:[%s13214_s13 + $0x70] sm:$0xff] %v260_v7  ;;  %v278_v16 = vld [vmem:[%s13218_s14 + $0x100] sm:$0xff]  ;;  %v280_v17 = vld [vmem:[%s13218_s14 + $0x110] sm:$0xff] }
  0x1a   : >> { %263 = vst [vmem:[%s13214_s13 + $0x80] sm:$0xff] %v262_v8  ;;  %v282_v18 = vld [vmem:[%s13218_s14 + $0x120] sm:$0xff]  ;;  %v284_v19 = vld [vmem:[%s13218_s14 + $0x130] sm:$0xff] }
  0x1b   : >> { %265 = vst [vmem:[%s13214_s13 + $0x90] sm:$0xff] %v264_v9  ;;  %v286_v20 = vld [vmem:[%s13218_s14 + $0x140] sm:$0xff]  ;;  %v288_v21 = vld [vmem:[%s13218_s14 + $0x150] sm:$0xff] }
  0x1c   : >> { %267 = vst [vmem:[%s13214_s13 + $0xa0] sm:$0xff] %v266_v10  ;;  %v290_v22 = vld [vmem:[%s13218_s14 + $0x160] sm:$0xff]  ;;  %v292_v23 = vld [vmem:[%s13218_s14 + $0x170] sm:$0xff] }
  0x1d   : >> { %269 = vst [vmem:[%s13214_s13 + $0xb0] sm:$0xff] %v268_v11  ;;  %v294_v24 = vld [vmem:[%s13218_s14 + $0x180] sm:$0xff]  ;;  %v296_v25 = vld [vmem:[%s13218_s14 + $0x190] sm:$0xff] }
  0x1e   : >> { %271 = vst [vmem:[%s13214_s13 + $0xc0] sm:$0xff] %v270_v12  ;;  %v298_v26 = vld [vmem:[%s13218_s14 + $0x1a0] sm:$0xff]  ;;  %v300_v27 = vld [vmem:[%s13218_s14 + $0x1b0] sm:$0xff] }
  0x1f   : >> { %273 = vst [vmem:[%s13214_s13 + $0xd0] sm:$0xff] %v272_v13  ;;  %v302_v28 = vld [vmem:[%s13218_s14 + $0x1c0] sm:$0xff]  ;;  %v304_v29 = vld [vmem:[%s13218_s14 + $0x1d0] sm:$0xff] }
  0x20   : >> { %275 = vst [vmem:[%s13214_s13 + $0xe0] sm:$0xff] %v274_v14  ;;  %v306_v30 = vld [vmem:[%s13218_s14 + $0x1e0] sm:$0xff]  ;;  %v308_v31 = vld [vmem:[%s13218_s14 + $0x1f0] sm:$0xff] }
  0x21   : >> { %277 = vst [vmem:[%s13214_s13 + $0xf0] sm:$0xff] %v276_v15  ;;  %v310_v32 = vld [vmem:[%s13218_s14 + $0x200] sm:$0xff]  ;;  %v312_v33 = vld [vmem:[%s13218_s14 + $0x210] sm:$0xff] }
  0x22   : >> { %279 = vst [vmem:[%s13214_s13 + $0x100] sm:$0xff] %v278_v16  ;;  %v314_v34 = vld [vmem:[%s13218_s14 + $0x220] sm:$0xff]  ;;  %v316_v35 = vld [vmem:[%s13218_s14 + $0x230] sm:$0xff] }
  0x23   : >> { %281 = vst [vmem:[%s13214_s13 + $0x110] sm:$0xff] %v280_v17  ;;  %v318_v36 = vld [vmem:[%s13218_s14 + $0x240] sm:$0xff]  ;;  %v320_v37 = vld [vmem:[%s13218_s14 + $0x250] sm:$0xff] }
  0x24   : >> { %283 = vst [vmem:[%s13214_s13 + $0x120] sm:$0xff] %v282_v18  ;;  %v322_v38 = vld [vmem:[%s13218_s14 + $0x260] sm:$0xff]  ;;  %v324_v39 = vld [vmem:[%s13218_s14 + $0x270] sm:$0xff] }
  0x25   : >> { %285 = vst [vmem:[%s13214_s13 + $0x130] sm:$0xff] %v284_v19  ;;  %v326_v40 = vld [vmem:[%s13218_s14 + $0x280] sm:$0xff]  ;;  %v328_v41 = vld [vmem:[%s13218_s14 + $0x290] sm:$0xff] }
  0x26   : >> { %287 = vst [vmem:[%s13214_s13 + $0x140] sm:$0xff] %v286_v20  ;;  %v330_v42 = vld [vmem:[%s13218_s14 + $0x2a0] sm:$0xff]  ;;  %v332_v43 = vld [vmem:[%s13218_s14 + $0x2b0] sm:$0xff] }
  0x27   : >> { %289 = vst [vmem:[%s13214_s13 + $0x150] sm:$0xff] %v288_v21  ;;  %v334_v44 = vld [vmem:[%s13218_s14 + $0x2c0] sm:$0xff]  ;;  %v336_v45 = vld [vmem:[%s13218_s14 + $0x2d0] sm:$0xff] }
  0x28   : >> { %291 = vst [vmem:[%s13214_s13 + $0x160] sm:$0xff] %v290_v22  ;;  %v338_v46 = vld [vmem:[%s13218_s14 + $0x2e0] sm:$0xff]  ;;  %v340_v47 = vld [vmem:[%s13218_s14 + $0x2f0] sm:$0xff] }
  0x29   : >> { %293 = vst [vmem:[%s13214_s13 + $0x170] sm:$0xff] %v292_v23  ;;  %v342_v48 = vld [vmem:[%s13218_s14 + $0x300] sm:$0xff]  ;;  %v344_v49 = vld [vmem:[%s13218_s14 + $0x310] sm:$0xff] }
  0x2a   : >> { %295 = vst [vmem:[%s13214_s13 + $0x180] sm:$0xff] %v294_v24  ;;  %v346_v50 = vld [vmem:[%s13218_s14 + $0x320] sm:$0xff]  ;;  %v348_v51 = vld [vmem:[%s13218_s14 + $0x330] sm:$0xff] }
  0x2b   : >> { %297 = vst [vmem:[%s13214_s13 + $0x190] sm:$0xff] %v296_v25  ;;  %v350_v52 = vld [vmem:[%s13218_s14 + $0x340] sm:$0xff]  ;;  %v352_v53 = vld [vmem:[%s13218_s14 + $0x350] sm:$0xff] }
  0x2c   : >> { %299 = vst [vmem:[%s13214_s13 + $0x1a0] sm:$0xff] %v298_v26  ;;  %v354_v54 = vld [vmem:[%s13218_s14 + $0x360] sm:$0xff]  ;;  %v356_v55 = vld [vmem:[%s13218_s14 + $0x370] sm:$0xff] }
  0x2d   : >> { %301 = vst [vmem:[%s13214_s13 + $0x1b0] sm:$0xff] %v300_v27  ;;  %v358_v56 = vld [vmem:[%s13218_s14 + $0x380] sm:$0xff]  ;;  %v360_v57 = vld [vmem:[%s13218_s14 + $0x390] sm:$0xff] }
  0x2e   : >> { %303 = vst [vmem:[%s13214_s13 + $0x1c0] sm:$0xff] %v302_v28  ;;  %v362_v58 = vld [vmem:[%s13218_s14 + $0x3a0] sm:$0xff]  ;;  %v364_v59 = vld [vmem:[%s13218_s14 + $0x3b0] sm:$0xff] }
  0x2f   : >> { %305 = vst [vmem:[%s13214_s13 + $0x1d0] sm:$0xff] %v304_v29  ;;  %v366_v60 = vld [vmem:[%s13218_s14 + $0x3c0] sm:$0xff]  ;;  %v368_v61 = vld [vmem:[%s13218_s14 + $0x3d0] sm:$0xff] }
  0x30   : >> { %307 = vst [vmem:[%s13214_s13 + $0x1e0] sm:$0xff] %v306_v30  ;;  %v370_v62 = vld [vmem:[%s13218_s14 + $0x3e0] sm:$0xff]  ;;  %v372_v63 = vld [vmem:[%s13218_s14 + $0x3f0] sm:$0xff] }
  0x31   : >> { %309 = vst [vmem:[%s13214_s13 + $0x1f0] sm:$0xff] %v308_v31  ;;  %v374_v0 = vld [vmem:[%s13218_s14 + $0x400] sm:$0xff]  ;;  %v376_v1 = vld [vmem:[%s13218_s14 + $0x410] sm:$0xff] }
  0x32   : >> { %311 = vst [vmem:[%s13214_s13 + $0x200] sm:$0xff] %v310_v32  ;;  %v378_v2 = vld [vmem:[%s13218_s14 + $0x420] sm:$0xff]  ;;  %v380_v3 = vld [vmem:[%s13218_s14 + $0x430] sm:$0xff] }
  0x33   : >> { %313 = vst [vmem:[%s13214_s13 + $0x210] sm:$0xff] %v312_v33  ;;  %v382_v4 = vld [vmem:[%s13218_s14 + $0x440] sm:$0xff]  ;;  %v384_v5 = vld [vmem:[%s13218_s14 + $0x450] sm:$0xff] }
  0x34   : >> { %315 = vst [vmem:[%s13214_s13 + $0x220] sm:$0xff] %v314_v34  ;;  %v386_v6 = vld [vmem:[%s13218_s14 + $0x460] sm:$0xff]  ;;  %v388_v7 = vld [vmem:[%s13218_s14 + $0x470] sm:$0xff] }
  0x35   : >> { %317 = vst [vmem:[%s13214_s13 + $0x230] sm:$0xff] %v316_v35  ;;  %v390_v8 = vld [vmem:[%s13218_s14 + $0x480] sm:$0xff]  ;;  %v392_v9 = vld [vmem:[%s13218_s14 + $0x490] sm:$0xff] }
  0x36   : >> { %319 = vst [vmem:[%s13214_s13 + $0x240] sm:$0xff] %v318_v36  ;;  %v394_v10 = vld [vmem:[%s13218_s14 + $0x4a0] sm:$0xff]  ;;  %v396_v11 = vld [vmem:[%s13218_s14 + $0x4b0] sm:$0xff] }
  0x37   : >> { %321 = vst [vmem:[%s13214_s13 + $0x250] sm:$0xff] %v320_v37  ;;  %v398_v12 = vld [vmem:[%s13218_s14 + $0x4c0] sm:$0xff]  ;;  %v400_v13 = vld [vmem:[%s13218_s14 + $0x4d0] sm:$0xff] }
  0x38   : >> { %323 = vst [vmem:[%s13214_s13 + $0x260] sm:$0xff] %v322_v38  ;;  %v402_v14 = vld [vmem:[%s13218_s14 + $0x4e0] sm:$0xff]  ;;  %v404_v15 = vld [vmem:[%s13218_s14 + $0x4f0] sm:$0xff] }
  0x39   : >> { %325 = vst [vmem:[%s13214_s13 + $0x270] sm:$0xff] %v324_v39  ;;  %v406_v16 = vld [vmem:[%s13218_s14 + $0x500] sm:$0xff]  ;;  %v408_v17 = vld [vmem:[%s13218_s14 + $0x510] sm:$0xff] }
  0x3a   : >> { %327 = vst [vmem:[%s13214_s13 + $0x280] sm:$0xff] %v326_v40  ;;  %v410_v18 = vld [vmem:[%s13218_s14 + $0x520] sm:$0xff]  ;;  %v412_v19 = vld [vmem:[%s13218_s14 + $0x530] sm:$0xff] }
  0x3b   : >> { %329 = vst [vmem:[%s13214_s13 + $0x290] sm:$0xff] %v328_v41  ;;  %v414_v20 = vld [vmem:[%s13218_s14 + $0x540] sm:$0xff]  ;;  %v416_v21 = vld [vmem:[%s13218_s14 + $0x550] sm:$0xff] }
  0x3c   : >> { %331 = vst [vmem:[%s13214_s13 + $0x2a0] sm:$0xff] %v330_v42  ;;  %v418_v22 = vld [vmem:[%s13218_s14 + $0x560] sm:$0xff]  ;;  %v420_v23 = vld [vmem:[%s13218_s14 + $0x570] sm:$0xff] }
  0x3d   : >> { %333 = vst [vmem:[%s13214_s13 + $0x2b0] sm:$0xff] %v332_v43  ;;  %v422_v24 = vld [vmem:[%s13218_s14 + $0x580] sm:$0xff]  ;;  %v424_v25 = vld [vmem:[%s13218_s14 + $0x590] sm:$0xff] }
  0x3e   : >> { %335 = vst [vmem:[%s13214_s13 + $0x2c0] sm:$0xff] %v334_v44  ;;  %v426_v26 = vld [vmem:[%s13218_s14 + $0x5a0] sm:$0xff]  ;;  %v428_v27 = vld [vmem:[%s13218_s14 + $0x5b0] sm:$0xff] }
  0x3f   : >> { %337 = vst [vmem:[%s13214_s13 + $0x2d0] sm:$0xff] %v336_v45  ;;  %v430_v28 = vld [vmem:[%s13218_s14 + $0x5c0] sm:$0xff]  ;;  %v432_v29 = vld [vmem:[%s13218_s14 + $0x5d0] sm:$0xff] }
  0x40   : >> { %339 = vst [vmem:[%s13214_s13 + $0x2e0] sm:$0xff] %v338_v46  ;;  %v434_v30 = vld [vmem:[%s13218_s14 + $0x5e0] sm:$0xff]  ;;  %v436_v31 = vld [vmem:[%s13218_s14 + $0x5f0] sm:$0xff] }
  0x41   : >> { %341 = vst [vmem:[%s13214_s13 + $0x2f0] sm:$0xff] %v340_v47  ;;  %v438_v32 = vld [vmem:[%s13218_s14 + $0x600] sm:$0xff]  ;;  %v440_v33 = vld [vmem:[%s13218_s14 + $0x610] sm:$0xff] }
  0x42   : >> { %343 = vst [vmem:[%s13214_s13 + $0x300] sm:$0xff] %v342_v48  ;;  %v442_v34 = vld [vmem:[%s13218_s14 + $0x620] sm:$0xff]  ;;  %v444_v35 = vld [vmem:[%s13218_s14 + $0x630] sm:$0xff] }
  0x43   : >> { %345 = vst [vmem:[%s13214_s13 + $0x310] sm:$0xff] %v344_v49  ;;  %v446_v36 = vld [vmem:[%s13218_s14 + $0x640] sm:$0xff]  ;;  %v448_v37 = vld [vmem:[%s13218_s14 + $0x650] sm:$0xff] }
  0x44   : >> { %347 = vst [vmem:[%s13214_s13 + $0x320] sm:$0xff] %v346_v50  ;;  %v450_v38 = vld [vmem:[%s13218_s14 + $0x660] sm:$0xff]  ;;  %v452_v39 = vld [vmem:[%s13218_s14 + $0x670] sm:$0xff] }
  0x45   : >> { %349 = vst [vmem:[%s13214_s13 + $0x330] sm:$0xff] %v348_v51  ;;  %v454_v40 = vld [vmem:[%s13218_s14 + $0x680] sm:$0xff]  ;;  %v456_v41 = vld [vmem:[%s13218_s14 + $0x690] sm:$0xff] }
  0x46   : >> { %351 = vst [vmem:[%s13214_s13 + $0x340] sm:$0xff] %v350_v52  ;;  %v458_v42 = vld [vmem:[%s13218_s14 + $0x6a0] sm:$0xff]  ;;  %v460_v43 = vld [vmem:[%s13218_s14 + $0x6b0] sm:$0xff] }
  0x47   : >> { %353 = vst [vmem:[%s13214_s13 + $0x350] sm:$0xff] %v352_v53  ;;  %v462_v44 = vld [vmem:[%s13218_s14 + $0x6c0] sm:$0xff]  ;;  %v464_v45 = vld [vmem:[%s13218_s14 + $0x6d0] sm:$0xff] }
  0x48   : >> { %355 = vst [vmem:[%s13214_s13 + $0x360] sm:$0xff] %v354_v54  ;;  %v466_v46 = vld [vmem:[%s13218_s14 + $0x6e0] sm:$0xff]  ;;  %v468_v47 = vld [vmem:[%s13218_s14 + $0x6f0] sm:$0xff] }
  0x49   : >> { %357 = vst [vmem:[%s13214_s13 + $0x370] sm:$0xff] %v356_v55  ;;  %v470_v48 = vld [vmem:[%s13218_s14 + $0x700] sm:$0xff]  ;;  %v472_v49 = vld [vmem:[%s13218_s14 + $0x710] sm:$0xff] }
  0x4a   : >> { %359 = vst [vmem:[%s13214_s13 + $0x380] sm:$0xff] %v358_v56  ;;  %v474_v50 = vld [vmem:[%s13218_s14 + $0x720] sm:$0xff]  ;;  %v476_v51 = vld [vmem:[%s13218_s14 + $0x730] sm:$0xff] }
  0x4b   : >> { %361 = vst [vmem:[%s13214_s13 + $0x390] sm:$0xff] %v360_v57  ;;  %v478_v52 = vld [vmem:[%s13218_s14 + $0x740] sm:$0xff]  ;;  %v480_v53 = vld [vmem:[%s13218_s14 + $0x750] sm:$0xff] }
  0x4c   : >> { %363 = vst [vmem:[%s13214_s13 + $0x3a0] sm:$0xff] %v362_v58  ;;  %v482_v54 = vld [vmem:[%s13218_s14 + $0x760] sm:$0xff]  ;;  %v484_v55 = vld [vmem:[%s13218_s14 + $0x770] sm:$0xff] }
  0x4d   : >> { %365 = vst [vmem:[%s13214_s13 + $0x3b0] sm:$0xff] %v364_v59  ;;  %v486_v56 = vld [vmem:[%s13218_s14 + $0x780] sm:$0xff]  ;;  %v488_v57 = vld [vmem:[%s13218_s14 + $0x790] sm:$0xff] }
  0x4e   : >> { %367 = vst [vmem:[%s13214_s13 + $0x3c0] sm:$0xff] %v366_v60  ;;  %v490_v58 = vld [vmem:[%s13218_s14 + $0x7a0] sm:$0xff]  ;;  %v492_v59 = vld [vmem:[%s13218_s14 + $0x7b0] sm:$0xff] }
  0x4f   : >> { %369 = vst [vmem:[%s13214_s13 + $0x3d0] sm:$0xff] %v368_v61  ;;  %v494_v60 = vld [vmem:[%s13218_s14 + $0x7c0] sm:$0xff]  ;;  %v496_v61 = vld [vmem:[%s13218_s14 + $0x7d0] sm:$0xff] }
  0x50   : >> { %371 = vst [vmem:[%s13214_s13 + $0x3e0] sm:$0xff] %v370_v62  ;;  %v498_v62 = vld [vmem:[%s13218_s14 + $0x7e0] sm:$0xff] }
  0x51   : >> { %373 = vst [vmem:[%s13214_s13 + $0x3f0] sm:$0xff] %v372_v63  ;;  %v500_v63 = vld [vmem:[%s13218_s14 + $0x7f0] sm:$0xff] }
  0x52   : >> { %375 = vst [vmem:[%s13214_s13 + $0x400] sm:$0xff] %v374_v0  ;;  %v502_v0 = vld [vmem:[%s13218_s14 + $0x1000] sm:$0xff] }
  0x53   : >> { %377 = vst [vmem:[%s13214_s13 + $0x410] sm:$0xff] %v376_v1  ;;  %v504_v1 = vld [vmem:[%s13218_s14 + $0x1010] sm:$0xff] }
  0x54   : >> { %379 = vst [vmem:[%s13214_s13 + $0x420] sm:$0xff] %v378_v2  ;;  %v506_v2 = vld [vmem:[%s13218_s14 + $0x1020] sm:$0xff] }
  0x55   : >> { %381 = vst [vmem:[%s13214_s13 + $0x430] sm:$0xff] %v380_v3  ;;  %v508_v3 = vld [vmem:[%s13218_s14 + $0x1030] sm:$0xff] }
  0x56   : >> { %383 = vst [vmem:[%s13214_s13 + $0x440] sm:$0xff] %v382_v4  ;;  %v510_v4 = vld [vmem:[%s13218_s14 + $0x1040] sm:$0xff] }
  0x57   : >> { %385 = vst [vmem:[%s13214_s13 + $0x450] sm:$0xff] %v384_v5  ;;  %v512_v5 = vld [vmem:[%s13218_s14 + $0x1050] sm:$0xff] }
  0x58   : >> { %387 = vst [vmem:[%s13214_s13 + $0x460] sm:$0xff] %v386_v6  ;;  %v514_v6 = vld [vmem:[%s13218_s14 + $0x1060] sm:$0xff] }
  0x59   : >> { %389 = vst [vmem:[%s13214_s13 + $0x470] sm:$0xff] %v388_v7  ;;  %v516_v7 = vld [vmem:[%s13218_s14 + $0x1070] sm:$0xff] }
  0x5a   : >> { %391 = vst [vmem:[%s13214_s13 + $0x480] sm:$0xff] %v390_v8  ;;  %v518_v8 = vld [vmem:[%s13218_s14 + $0x1080] sm:$0xff] }
  0x5b   : >> { %393 = vst [vmem:[%s13214_s13 + $0x490] sm:$0xff] %v392_v9  ;;  %v520_v9 = vld [vmem:[%s13218_s14 + $0x1090] sm:$0xff] }
  0x5c   : >> { %395 = vst [vmem:[%s13214_s13 + $0x4a0] sm:$0xff] %v394_v10  ;;  %v522_v10 = vld [vmem:[%s13218_s14 + $0x10a0] sm:$0xff] }
  0x5d   : >> { %397 = vst [vmem:[%s13214_s13 + $0x4b0] sm:$0xff] %v396_v11  ;;  %v524_v11 = vld [vmem:[%s13218_s14 + $0x10b0] sm:$0xff] }
  0x5e   : >> { %399 = vst [vmem:[%s13214_s13 + $0x4c0] sm:$0xff] %v398_v12  ;;  %v526_v12 = vld [vmem:[%s13218_s14 + $0x10c0] sm:$0xff] }
  0x5f   : >> { %401 = vst [vmem:[%s13214_s13 + $0x4d0] sm:$0xff] %v400_v13  ;;  %v528_v13 = vld [vmem:[%s13218_s14 + $0x10d0] sm:$0xff] }
  0x60   : >> { %403 = vst [vmem:[%s13214_s13 + $0x4e0] sm:$0xff] %v402_v14  ;;  %v530_v14 = vld [vmem:[%s13218_s14 + $0x10e0] sm:$0xff] }
  0x61   : >> { %405 = vst [vmem:[%s13214_s13 + $0x4f0] sm:$0xff] %v404_v15  ;;  %v532_v15 = vld [vmem:[%s13218_s14 + $0x10f0] sm:$0xff] }
  0x62   : >> { %407 = vst [vmem:[%s13214_s13 + $0x500] sm:$0xff] %v406_v16  ;;  %v534_v16 = vld [vmem:[%s13218_s14 + $0x1100] sm:$0xff] }
  0x63   : >> { %409 = vst [vmem:[%s13214_s13 + $0x510] sm:$0xff] %v408_v17  ;;  %v536_v17 = vld [vmem:[%s13218_s14 + $0x1110] sm:$0xff] }
  0x64   : >> { %411 = vst [vmem:[%s13214_s13 + $0x520] sm:$0xff] %v410_v18  ;;  %v538_v18 = vld [vmem:[%s13218_s14 + $0x1120] sm:$0xff] }
  0x65   : >> { %413 = vst [vmem:[%s13214_s13 + $0x530] sm:$0xff] %v412_v19  ;;  %v540_v19 = vld [vmem:[%s13218_s14 + $0x1130] sm:$0xff] }
  0x66   : >> { %415 = vst [vmem:[%s13214_s13 + $0x540] sm:$0xff] %v414_v20  ;;  %v542_v20 = vld [vmem:[%s13218_s14 + $0x1140] sm:$0xff] }
  0x67   : >> { %417 = vst [vmem:[%s13214_s13 + $0x550] sm:$0xff] %v416_v21  ;;  %v544_v21 = vld [vmem:[%s13218_s14 + $0x1150] sm:$0xff] }
  0x68   : >> { %419 = vst [vmem:[%s13214_s13 + $0x560] sm:$0xff] %v418_v22  ;;  %v546_v22 = vld [vmem:[%s13218_s14 + $0x1160] sm:$0xff] }
  0x69   : >> { %421 = vst [vmem:[%s13214_s13 + $0x570] sm:$0xff] %v420_v23  ;;  %v548_v23 = vld [vmem:[%s13218_s14 + $0x1170] sm:$0xff] }
  0x6a   : >> { %423 = vst [vmem:[%s13214_s13 + $0x580] sm:$0xff] %v422_v24  ;;  %v550_v24 = vld [vmem:[%s13218_s14 + $0x1180] sm:$0xff] }
  0x6b   : >> { %425 = vst [vmem:[%s13214_s13 + $0x590] sm:$0xff] %v424_v25  ;;  %v552_v25 = vld [vmem:[%s13218_s14 + $0x1190] sm:$0xff] }
  0x6c   : >> { %427 = vst [vmem:[%s13214_s13 + $0x5a0] sm:$0xff] %v426_v26  ;;  %v554_v26 = vld [vmem:[%s13218_s14 + $0x11a0] sm:$0xff] }
  0x6d   : >> { %429 = vst [vmem:[%s13214_s13 + $0x5b0] sm:$0xff] %v428_v27  ;;  %v556_v27 = vld [vmem:[%s13218_s14 + $0x11b0] sm:$0xff] }
  0x6e   : >> { %431 = vst [vmem:[%s13214_s13 + $0x5c0] sm:$0xff] %v430_v28  ;;  %v558_v28 = vld [vmem:[%s13218_s14 + $0x11c0] sm:$0xff] }
  0x6f   : >> { %433 = vst [vmem:[%s13214_s13 + $0x5d0] sm:$0xff] %v432_v29  ;;  %v560_v29 = vld [vmem:[%s13218_s14 + $0x11d0] sm:$0xff] }
  0x70   : >> { %435 = vst [vmem:[%s13214_s13 + $0x5e0] sm:$0xff] %v434_v30  ;;  %v562_v30 = vld [vmem:[%s13218_s14 + $0x11e0] sm:$0xff] }
  0x71   : >> { %437 = vst [vmem:[%s13214_s13 + $0x5f0] sm:$0xff] %v436_v31  ;;  %v564_v31 = vld [vmem:[%s13218_s14 + $0x11f0] sm:$0xff] }
  0x72   : >> { %439 = vst [vmem:[%s13214_s13 + $0x600] sm:$0xff] %v438_v32  ;;  %v566_v32 = vld [vmem:[%s13218_s14 + $0x1200] sm:$0xff] }
  0x73   : >> { %441 = vst [vmem:[%s13214_s13 + $0x610] sm:$0xff] %v440_v33  ;;  %v568_v33 = vld [vmem:[%s13218_s14 + $0x1210] sm:$0xff] }
  0x74   : >> { %443 = vst [vmem:[%s13214_s13 + $0x620] sm:$0xff] %v442_v34  ;;  %v570_v34 = vld [vmem:[%s13218_s14 + $0x1220] sm:$0xff] }
  0x75   : >> { %445 = vst [vmem:[%s13214_s13 + $0x630] sm:$0xff] %v444_v35  ;;  %v572_v35 = vld [vmem:[%s13218_s14 + $0x1230] sm:$0xff] }
  0x76   : >> { %447 = vst [vmem:[%s13214_s13 + $0x640] sm:$0xff] %v446_v36  ;;  %v574_v36 = vld [vmem:[%s13218_s14 + $0x1240] sm:$0xff] }
  0x77   : >> { %449 = vst [vmem:[%s13214_s13 + $0x650] sm:$0xff] %v448_v37  ;;  %v576_v37 = vld [vmem:[%s13218_s14 + $0x1250] sm:$0xff] }
  0x78   : >> { %451 = vst [vmem:[%s13214_s13 + $0x660] sm:$0xff] %v450_v38  ;;  %v578_v38 = vld [vmem:[%s13218_s14 + $0x1260] sm:$0xff] }
  0x79   : >> { %453 = vst [vmem:[%s13214_s13 + $0x670] sm:$0xff] %v452_v39  ;;  %v580_v39 = vld [vmem:[%s13218_s14 + $0x1270] sm:$0xff] }
  0x7a   : >> { %455 = vst [vmem:[%s13214_s13 + $0x680] sm:$0xff] %v454_v40  ;;  %v582_v40 = vld [vmem:[%s13218_s14 + $0x1280] sm:$0xff] }
  0x7b   : >> { %457 = vst [vmem:[%s13214_s13 + $0x690] sm:$0xff] %v456_v41  ;;  %v584_v41 = vld [vmem:[%s13218_s14 + $0x1290] sm:$0xff] }
  0x7c   : >> { %459 = vst [vmem:[%s13214_s13 + $0x6a0] sm:$0xff] %v458_v42  ;;  %v586_v42 = vld [vmem:[%s13218_s14 + $0x12a0] sm:$0xff] }
  0x7d   : >> { %461 = vst [vmem:[%s13214_s13 + $0x6b0] sm:$0xff] %v460_v43  ;;  %v588_v43 = vld [vmem:[%s13218_s14 + $0x12b0] sm:$0xff] }
  0x7e   : >> { %463 = vst [vmem:[%s13214_s13 + $0x6c0] sm:$0xff] %v462_v44  ;;  %v590_v44 = vld [vmem:[%s13218_s14 + $0x12c0] sm:$0xff] }
  0x7f   : >> { %465 = vst [vmem:[%s13214_s13 + $0x6d0] sm:$0xff] %v464_v45  ;;  %v592_v45 = vld [vmem:[%s13218_s14 + $0x12d0] sm:$0xff] }
  0x80   : >> { %467 = vst [vmem:[%s13214_s13 + $0x6e0] sm:$0xff] %v466_v46  ;;  %v594_v46 = vld [vmem:[%s13218_s14 + $0x12e0] sm:$0xff] }
  0x81   : >> { %469 = vst [vmem:[%s13214_s13 + $0x6f0] sm:$0xff] %v468_v47  ;;  %v596_v47 = vld [vmem:[%s13218_s14 + $0x12f0] sm:$0xff] }
  0x82   : >> { %471 = vst [vmem:[%s13214_s13 + $0x700] sm:$0xff] %v470_v48  ;;  %v598_v48 = vld [vmem:[%s13218_s14 + $0x1300] sm:$0xff] }
  0x83   : >> { %473 = vst [vmem:[%s13214_s13 + $0x710] sm:$0xff] %v472_v49  ;;  %v600_v49 = vld [vmem:[%s13218_s14 + $0x1310] sm:$0xff] }
  0x84   : >> { %475 = vst [vmem:[%s13214_s13 + $0x720] sm:$0xff] %v474_v50  ;;  %v602_v50 = vld [vmem:[%s13218_s14 + $0x1320] sm:$0xff] }
  0x85   : >> { %477 = vst [vmem:[%s13214_s13 + $0x730] sm:$0xff] %v476_v51  ;;  %v604_v51 = vld [vmem:[%s13218_s14 + $0x1330] sm:$0xff] }
  0x86   : >> { %479 = vst [vmem:[%s13214_s13 + $0x740] sm:$0xff] %v478_v52  ;;  %v606_v52 = vld [vmem:[%s13218_s14 + $0x1340] sm:$0xff] }
  0x87   : >> { %481 = vst [vmem:[%s13214_s13 + $0x750] sm:$0xff] %v480_v53  ;;  %v608_v53 = vld [vmem:[%s13218_s14 + $0x1350] sm:$0xff] }
  0x88   : >> { %483 = vst [vmem:[%s13214_s13 + $0x760] sm:$0xff] %v482_v54  ;;  %v610_v54 = vld [vmem:[%s13218_s14 + $0x1360] sm:$0xff] }
  0x89   : >> { %485 = vst [vmem:[%s13214_s13 + $0x770] sm:$0xff] %v484_v55  ;;  %v612_v55 = vld [vmem:[%s13218_s14 + $0x1370] sm:$0xff] }
  0x8a   : >> { %487 = vst [vmem:[%s13214_s13 + $0x780] sm:$0xff] %v486_v56  ;;  %v614_v56 = vld [vmem:[%s13218_s14 + $0x1380] sm:$0xff] }
  0x8b   : >> { %489 = vst [vmem:[%s13214_s13 + $0x790] sm:$0xff] %v488_v57  ;;  %v616_v57 = vld [vmem:[%s13218_s14 + $0x1390] sm:$0xff] }
  0x8c   : >> { %491 = vst [vmem:[%s13214_s13 + $0x7a0] sm:$0xff] %v490_v58  ;;  %v618_v58 = vld [vmem:[%s13218_s14 + $0x13a0] sm:$0xff] }
  0x8d   : >> { %493 = vst [vmem:[%s13214_s13 + $0x7b0] sm:$0xff] %v492_v59  ;;  %v620_v59 = vld [vmem:[%s13218_s14 + $0x13b0] sm:$0xff] }
  0x8e   : >> { %495 = vst [vmem:[%s13214_s13 + $0x7c0] sm:$0xff] %v494_v60  ;;  %v622_v60 = vld [vmem:[%s13218_s14 + $0x13c0] sm:$0xff] }
  0x8f   : >> { %497 = vst [vmem:[%s13214_s13 + $0x7d0] sm:$0xff] %v496_v61  ;;  %v624_v61 = vld [vmem:[%s13218_s14 + $0x13d0] sm:$0xff] }
  0x90   : >> { %499 = vst [vmem:[%s13214_s13 + $0x7e0] sm:$0xff] %v498_v62  ;;  %v626_v62 = vld [vmem:[%s13218_s14 + $0x13e0] sm:$0xff] }
  0x91   : >> { %501 = vst [vmem:[%s13214_s13 + $0x7f0] sm:$0xff] %v500_v63  ;;  %v628_v63 = vld [vmem:[%s13218_s14 + $0x13f0] sm:$0xff] }
  0x92   : >> { %503 = vst [vmem:[%s13214_s13 + $0x800] sm:$0xff] %v502_v0  ;;  %v630_v0 = vld [vmem:[%s13218_s14 + $0x1400] sm:$0xff] }
  0x93   : >> { %505 = vst [vmem:[%s13214_s13 + $0x810] sm:$0xff] %v504_v1  ;;  %v632_v1 = vld [vmem:[%s13218_s14 + $0x1410] sm:$0xff] }
  0x94   : >> { %507 = vst [vmem:[%s13214_s13 + $0x820] sm:$0xff] %v506_v2  ;;  %v634_v2 = vld [vmem:[%s13218_s14 + $0x1420] sm:$0xff] }
  0x95   : >> { %509 = vst [vmem:[%s13214_s13 + $0x830] sm:$0xff] %v508_v3  ;;  %v636_v3 = vld [vmem:[%s13218_s14 + $0x1430] sm:$0xff] }
  0x96   : >> { %511 = vst [vmem:[%s13214_s13 + $0x840] sm:$0xff] %v510_v4  ;;  %v638_v4 = vld [vmem:[%s13218_s14 + $0x1440] sm:$0xff] }
  0x97   : >> { %513 = vst [vmem:[%s13214_s13 + $0x850] sm:$0xff] %v512_v5  ;;  %v640_v5 = vld [vmem:[%s13218_s14 + $0x1450] sm:$0xff] }
  0x98   : >> { %515 = vst [vmem:[%s13214_s13 + $0x860] sm:$0xff] %v514_v6  ;;  %v642_v6 = vld [vmem:[%s13218_s14 + $0x1460] sm:$0xff] }
  0x99   : >> { %517 = vst [vmem:[%s13214_s13 + $0x870] sm:$0xff] %v516_v7  ;;  %v644_v7 = vld [vmem:[%s13218_s14 + $0x1470] sm:$0xff] }
  0x9a   : >> { %519 = vst [vmem:[%s13214_s13 + $0x880] sm:$0xff] %v518_v8  ;;  %v646_v8 = vld [vmem:[%s13218_s14 + $0x1480] sm:$0xff] }
  0x9b   : >> { %521 = vst [vmem:[%s13214_s13 + $0x890] sm:$0xff] %v520_v9  ;;  %v648_v9 = vld [vmem:[%s13218_s14 + $0x1490] sm:$0xff] }
  0x9c   : >> { %523 = vst [vmem:[%s13214_s13 + $0x8a0] sm:$0xff] %v522_v10  ;;  %v650_v10 = vld [vmem:[%s13218_s14 + $0x14a0] sm:$0xff] }
  0x9d   : >> { %525 = vst [vmem:[%s13214_s13 + $0x8b0] sm:$0xff] %v524_v11  ;;  %v652_v11 = vld [vmem:[%s13218_s14 + $0x14b0] sm:$0xff] }
  0x9e   : >> { %527 = vst [vmem:[%s13214_s13 + $0x8c0] sm:$0xff] %v526_v12  ;;  %v654_v12 = vld [vmem:[%s13218_s14 + $0x14c0] sm:$0xff] }
  0x9f   : >> { %529 = vst [vmem:[%s13214_s13 + $0x8d0] sm:$0xff] %v528_v13  ;;  %v656_v13 = vld [vmem:[%s13218_s14 + $0x14d0] sm:$0xff] }
  0xa0   : >> { %531 = vst [vmem:[%s13214_s13 + $0x8e0] sm:$0xff] %v530_v14  ;;  %v658_v14 = vld [vmem:[%s13218_s14 + $0x14e0] sm:$0xff] }
  0xa1   : >> { %533 = vst [vmem:[%s13214_s13 + $0x8f0] sm:$0xff] %v532_v15  ;;  %v660_v15 = vld [vmem:[%s13218_s14 + $0x14f0] sm:$0xff] }
  0xa2   : >> { %535 = vst [vmem:[%s13214_s13 + $0x900] sm:$0xff] %v534_v16  ;;  %v662_v16 = vld [vmem:[%s13218_s14 + $0x1500] sm:$0xff] }
  0xa3   : >> { %537 = vst [vmem:[%s13214_s13 + $0x910] sm:$0xff] %v536_v17  ;;  %v664_v17 = vld [vmem:[%s13218_s14 + $0x1510] sm:$0xff] }
  0xa4   : >> { %539 = vst [vmem:[%s13214_s13 + $0x920] sm:$0xff] %v538_v18  ;;  %v666_v18 = vld [vmem:[%s13218_s14 + $0x1520] sm:$0xff] }
  0xa5   : >> { %541 = vst [vmem:[%s13214_s13 + $0x930] sm:$0xff] %v540_v19  ;;  %v668_v19 = vld [vmem:[%s13218_s14 + $0x1530] sm:$0xff] }
  0xa6   : >> { %543 = vst [vmem:[%s13214_s13 + $0x940] sm:$0xff] %v542_v20  ;;  %v670_v20 = vld [vmem:[%s13218_s14 + $0x1540] sm:$0xff] }
  0xa7   : >> { %545 = vst [vmem:[%s13214_s13 + $0x950] sm:$0xff] %v544_v21  ;;  %v672_v21 = vld [vmem:[%s13218_s14 + $0x1550] sm:$0xff] }
  0xa8   : >> { %547 = vst [vmem:[%s13214_s13 + $0x960] sm:$0xff] %v546_v22  ;;  %v674_v22 = vld [vmem:[%s13218_s14 + $0x1560] sm:$0xff] }
  0xa9   : >> { %549 = vst [vmem:[%s13214_s13 + $0x970] sm:$0xff] %v548_v23  ;;  %v676_v23 = vld [vmem:[%s13218_s14 + $0x1570] sm:$0xff] }
  0xaa   : >> { %551 = vst [vmem:[%s13214_s13 + $0x980] sm:$0xff] %v550_v24  ;;  %v678_v24 = vld [vmem:[%s13218_s14 + $0x1580] sm:$0xff] }
  0xab   : >> { %553 = vst [vmem:[%s13214_s13 + $0x990] sm:$0xff] %v552_v25  ;;  %v680_v25 = vld [vmem:[%s13218_s14 + $0x1590] sm:$0xff] }
  0xac   : >> { %555 = vst [vmem:[%s13214_s13 + $0x9a0] sm:$0xff] %v554_v26  ;;  %v682_v26 = vld [vmem:[%s13218_s14 + $0x15a0] sm:$0xff] }
  0xad   : >> { %557 = vst [vmem:[%s13214_s13 + $0x9b0] sm:$0xff] %v556_v27  ;;  %v684_v27 = vld [vmem:[%s13218_s14 + $0x15b0] sm:$0xff] }
  0xae   : >> { %559 = vst [vmem:[%s13214_s13 + $0x9c0] sm:$0xff] %v558_v28  ;;  %v686_v28 = vld [vmem:[%s13218_s14 + $0x15c0] sm:$0xff] }
  0xaf   : >> { %561 = vst [vmem:[%s13214_s13 + $0x9d0] sm:$0xff] %v560_v29  ;;  %v688_v29 = vld [vmem:[%s13218_s14 + $0x15d0] sm:$0xff] }
  0xb0   : >> { %563 = vst [vmem:[%s13214_s13 + $0x9e0] sm:$0xff] %v562_v30  ;;  %v690_v30 = vld [vmem:[%s13218_s14 + $0x15e0] sm:$0xff] }
  0xb1   : >> { %565 = vst [vmem:[%s13214_s13 + $0x9f0] sm:$0xff] %v564_v31  ;;  %v692_v31 = vld [vmem:[%s13218_s14 + $0x15f0] sm:$0xff] }
  0xb2   : >> { %567 = vst [vmem:[%s13214_s13 + $0xa00] sm:$0xff] %v566_v32  ;;  %v694_v32 = vld [vmem:[%s13218_s14 + $0x1600] sm:$0xff] }
  0xb3   : >> { %569 = vst [vmem:[%s13214_s13 + $0xa10] sm:$0xff] %v568_v33  ;;  %v696_v33 = vld [vmem:[%s13218_s14 + $0x1610] sm:$0xff] }
  0xb4   : >> { %571 = vst [vmem:[%s13214_s13 + $0xa20] sm:$0xff] %v570_v34  ;;  %v698_v34 = vld [vmem:[%s13218_s14 + $0x1620] sm:$0xff] }
  0xb5   : >> { %573 = vst [vmem:[%s13214_s13 + $0xa30] sm:$0xff] %v572_v35  ;;  %v700_v35 = vld [vmem:[%s13218_s14 + $0x1630] sm:$0xff] }
  0xb6   : >> { %575 = vst [vmem:[%s13214_s13 + $0xa40] sm:$0xff] %v574_v36  ;;  %v702_v36 = vld [vmem:[%s13218_s14 + $0x1640] sm:$0xff] }
  0xb7   : >> { %577 = vst [vmem:[%s13214_s13 + $0xa50] sm:$0xff] %v576_v37  ;;  %v704_v37 = vld [vmem:[%s13218_s14 + $0x1650] sm:$0xff] }
  0xb8   : >> { %579 = vst [vmem:[%s13214_s13 + $0xa60] sm:$0xff] %v578_v38  ;;  %v706_v38 = vld [vmem:[%s13218_s14 + $0x1660] sm:$0xff] }
  0xb9   : >> { %581 = vst [vmem:[%s13214_s13 + $0xa70] sm:$0xff] %v580_v39  ;;  %v708_v39 = vld [vmem:[%s13218_s14 + $0x1670] sm:$0xff] }
  0xba   : >> { %583 = vst [vmem:[%s13214_s13 + $0xa80] sm:$0xff] %v582_v40  ;;  %v710_v40 = vld [vmem:[%s13218_s14 + $0x1680] sm:$0xff] }
  0xbb   : >> { %585 = vst [vmem:[%s13214_s13 + $0xa90] sm:$0xff] %v584_v41  ;;  %v712_v41 = vld [vmem:[%s13218_s14 + $0x1690] sm:$0xff] }
  0xbc   : >> { %587 = vst [vmem:[%s13214_s13 + $0xaa0] sm:$0xff] %v586_v42  ;;  %v714_v42 = vld [vmem:[%s13218_s14 + $0x16a0] sm:$0xff] }
  0xbd   : >> { %589 = vst [vmem:[%s13214_s13 + $0xab0] sm:$0xff] %v588_v43  ;;  %v716_v43 = vld [vmem:[%s13218_s14 + $0x16b0] sm:$0xff] }
  0xbe   : >> { %591 = vst [vmem:[%s13214_s13 + $0xac0] sm:$0xff] %v590_v44  ;;  %v718_v44 = vld [vmem:[%s13218_s14 + $0x16c0] sm:$0xff] }
  0xbf   : >> { %593 = vst [vmem:[%s13214_s13 + $0xad0] sm:$0xff] %v592_v45  ;;  %v720_v45 = vld [vmem:[%s13218_s14 + $0x16d0] sm:$0xff] }
  0xc0   : >> { %595 = vst [vmem:[%s13214_s13 + $0xae0] sm:$0xff] %v594_v46  ;;  %v722_v46 = vld [vmem:[%s13218_s14 + $0x16e0] sm:$0xff] }
  0xc1   : >> { %597 = vst [vmem:[%s13214_s13 + $0xaf0] sm:$0xff] %v596_v47  ;;  %v724_v47 = vld [vmem:[%s13218_s14 + $0x16f0] sm:$0xff] }
  0xc2   : >> { %599 = vst [vmem:[%s13214_s13 + $0xb00] sm:$0xff] %v598_v48  ;;  %v726_v48 = vld [vmem:[%s13218_s14 + $0x1700] sm:$0xff] }
  0xc3   : >> { %601 = vst [vmem:[%s13214_s13 + $0xb10] sm:$0xff] %v600_v49  ;;  %v728_v49 = vld [vmem:[%s13218_s14 + $0x1710] sm:$0xff] }
  0xc4   : >> { %603 = vst [vmem:[%s13214_s13 + $0xb20] sm:$0xff] %v602_v50  ;;  %v730_v50 = vld [vmem:[%s13218_s14 + $0x1720] sm:$0xff] }
  0xc5   : >> { %605 = vst [vmem:[%s13214_s13 + $0xb30] sm:$0xff] %v604_v51  ;;  %v732_v51 = vld [vmem:[%s13218_s14 + $0x1730] sm:$0xff] }
  0xc6   : >> { %607 = vst [vmem:[%s13214_s13 + $0xb40] sm:$0xff] %v606_v52  ;;  %v734_v52 = vld [vmem:[%s13218_s14 + $0x1740] sm:$0xff] }
  0xc7   : >> { %609 = vst [vmem:[%s13214_s13 + $0xb50] sm:$0xff] %v608_v53  ;;  %v736_v53 = vld [vmem:[%s13218_s14 + $0x1750] sm:$0xff] }
  0xc8   : >> { %611 = vst [vmem:[%s13214_s13 + $0xb60] sm:$0xff] %v610_v54  ;;  %v738_v54 = vld [vmem:[%s13218_s14 + $0x1760] sm:$0xff] }
  0xc9   : >> { %613 = vst [vmem:[%s13214_s13 + $0xb70] sm:$0xff] %v612_v55  ;;  %v740_v55 = vld [vmem:[%s13218_s14 + $0x1770] sm:$0xff] }
  0xca   : >> { %615 = vst [vmem:[%s13214_s13 + $0xb80] sm:$0xff] %v614_v56  ;;  %v742_v56 = vld [vmem:[%s13218_s14 + $0x1780] sm:$0xff] }
  0xcb   : >> { %617 = vst [vmem:[%s13214_s13 + $0xb90] sm:$0xff] %v616_v57  ;;  %v744_v57 = vld [vmem:[%s13218_s14 + $0x1790] sm:$0xff] }
  0xcc   : >> { %619 = vst [vmem:[%s13214_s13 + $0xba0] sm:$0xff] %v618_v58  ;;  %v746_v58 = vld [vmem:[%s13218_s14 + $0x17a0] sm:$0xff] }
  0xcd   : >> { %621 = vst [vmem:[%s13214_s13 + $0xbb0] sm:$0xff] %v620_v59  ;;  %v748_v59 = vld [vmem:[%s13218_s14 + $0x17b0] sm:$0xff] }
  0xce   : >> { %623 = vst [vmem:[%s13214_s13 + $0xbc0] sm:$0xff] %v622_v60  ;;  %v750_v60 = vld [vmem:[%s13218_s14 + $0x17c0] sm:$0xff] }
  0xcf   : >> { %625 = vst [vmem:[%s13214_s13 + $0xbd0] sm:$0xff] %v624_v61  ;;  %v752_v61 = vld [vmem:[%s13218_s14 + $0x17d0] sm:$0xff] }
  0xd0   : >> { %627 = vst [vmem:[%s13214_s13 + $0xbe0] sm:$0xff] %v626_v62  ;;  %v754_v62 = vld [vmem:[%s13218_s14 + $0x17e0] sm:$0xff] }
  0xd1   : >> { %629 = vst [vmem:[%s13214_s13 + $0xbf0] sm:$0xff] %v628_v63  ;;  %v756_v63 = vld [vmem:[%s13218_s14 + $0x17f0] sm:$0xff]  ;;  %s18470_s14 = smov %s13598_s19 }
  0xd2   : >> { %631 = vst [vmem:[%s13214_s13 + $0xc00] sm:$0xff] %v630_v0 }
  0xd3   : >> { %633 = vst [vmem:[%s13214_s13 + $0xc10] sm:$0xff] %v632_v1 }
  0xd4   : >> { %635 = vst [vmem:[%s13214_s13 + $0xc20] sm:$0xff] %v634_v2 }
  0xd5   : >> { %637 = vst [vmem:[%s13214_s13 + $0xc30] sm:$0xff] %v636_v3 }
  0xd6   : >> { %639 = vst [vmem:[%s13214_s13 + $0xc40] sm:$0xff] %v638_v4 }
  0xd7   : >> { %641 = vst [vmem:[%s13214_s13 + $0xc50] sm:$0xff] %v640_v5 }
  0xd8   : >> { %643 = vst [vmem:[%s13214_s13 + $0xc60] sm:$0xff] %v642_v6 }
  0xd9   : >> { %645 = vst [vmem:[%s13214_s13 + $0xc70] sm:$0xff] %v644_v7 }
  0xda   : >> { %647 = vst [vmem:[%s13214_s13 + $0xc80] sm:$0xff] %v646_v8 }
  0xdb   : >> { %649 = vst [vmem:[%s13214_s13 + $0xc90] sm:$0xff] %v648_v9 }
  0xdc   : >> { %651 = vst [vmem:[%s13214_s13 + $0xca0] sm:$0xff] %v650_v10 }
  0xdd   : >> { %653 = vst [vmem:[%s13214_s13 + $0xcb0] sm:$0xff] %v652_v11 }
  0xde   : >> { %655 = vst [vmem:[%s13214_s13 + $0xcc0] sm:$0xff] %v654_v12 }
  0xdf   : >> { %657 = vst [vmem:[%s13214_s13 + $0xcd0] sm:$0xff] %v656_v13 }
  0xe0   : >> { %659 = vst [vmem:[%s13214_s13 + $0xce0] sm:$0xff] %v658_v14 }
  0xe1   : >> { %661 = vst [vmem:[%s13214_s13 + $0xcf0] sm:$0xff] %v660_v15 }
  0xe2   : >> { %663 = vst [vmem:[%s13214_s13 + $0xd00] sm:$0xff] %v662_v16 }
  0xe3   : >> { %665 = vst [vmem:[%s13214_s13 + $0xd10] sm:$0xff] %v664_v17 }
  0xe4   : >> { %667 = vst [vmem:[%s13214_s13 + $0xd20] sm:$0xff] %v666_v18 }
  0xe5   : >> { %669 = vst [vmem:[%s13214_s13 + $0xd30] sm:$0xff] %v668_v19 }
  0xe6   : >> { %671 = vst [vmem:[%s13214_s13 + $0xd40] sm:$0xff] %v670_v20 }
  0xe7   : >> { %673 = vst [vmem:[%s13214_s13 + $0xd50] sm:$0xff] %v672_v21 }
  0xe8   : >> { %675 = vst [vmem:[%s13214_s13 + $0xd60] sm:$0xff] %v674_v22 }
  0xe9   : >> { %677 = vst [vmem:[%s13214_s13 + $0xd70] sm:$0xff] %v676_v23 }
  0xea   : >> { %679 = vst [vmem:[%s13214_s13 + $0xd80] sm:$0xff] %v678_v24 }
  0xeb   : >> { %681 = vst [vmem:[%s13214_s13 + $0xd90] sm:$0xff] %v680_v25 }
  0xec   : >> { %683 = vst [vmem:[%s13214_s13 + $0xda0] sm:$0xff] %v682_v26 }
  0xed   : >> { %685 = vst [vmem:[%s13214_s13 + $0xdb0] sm:$0xff] %v684_v27 }
  0xee   : >> { %687 = vst [vmem:[%s13214_s13 + $0xdc0] sm:$0xff] %v686_v28 }
  0xef   : >> { %689 = vst [vmem:[%s13214_s13 + $0xdd0] sm:$0xff] %v688_v29 }
  0xf0   : >> { %691 = vst [vmem:[%s13214_s13 + $0xde0] sm:$0xff] %v690_v30 }
  0xf1   : >> { %693 = vst [vmem:[%s13214_s13 + $0xdf0] sm:$0xff] %v692_v31 }
  0xf2   : >> { %695 = vst [vmem:[%s13214_s13 + $0xe00] sm:$0xff] %v694_v32 }
  0xf3   : >> { %697 = vst [vmem:[%s13214_s13 + $0xe10] sm:$0xff] %v696_v33 }
  0xf4   : >> { %699 = vst [vmem:[%s13214_s13 + $0xe20] sm:$0xff] %v698_v34 }
  0xf5   : >> { %701 = vst [vmem:[%s13214_s13 + $0xe30] sm:$0xff] %v700_v35 }
  0xf6   : >> { %703 = vst [vmem:[%s13214_s13 + $0xe40] sm:$0xff] %v702_v36 }
  0xf7   : >> { %705 = vst [vmem:[%s13214_s13 + $0xe50] sm:$0xff] %v704_v37 }
  0xf8   : >> { %707 = vst [vmem:[%s13214_s13 + $0xe60] sm:$0xff] %v706_v38 }
  0xf9   : >> { %709 = vst [vmem:[%s13214_s13 + $0xe70] sm:$0xff] %v708_v39 }
  0xfa   : >> { %711 = vst [vmem:[%s13214_s13 + $0xe80] sm:$0xff] %v710_v40 }
  0xfb   : >> { %713 = vst [vmem:[%s13214_s13 + $0xe90] sm:$0xff] %v712_v41 }
  0xfc   : >> { %715 = vst [vmem:[%s13214_s13 + $0xea0] sm:$0xff] %v714_v42 }
  0xfd   : >> { %717 = vst [vmem:[%s13214_s13 + $0xeb0] sm:$0xff] %v716_v43 }
  0xfe   : >> { %719 = vst [vmem:[%s13214_s13 + $0xec0] sm:$0xff] %v718_v44 }
  0xff   : >> { %721 = vst [vmem:[%s13214_s13 + $0xed0] sm:$0xff] %v720_v45 }
 0x100   : >> { %723 = vst [vmem:[%s13214_s13 + $0xee0] sm:$0xff] %v722_v46 }
 0x101   : >> { %725 = vst [vmem:[%s13214_s13 + $0xef0] sm:$0xff] %v724_v47 }
 0x102   : >> { %727 = vst [vmem:[%s13214_s13 + $0xf00] sm:$0xff] %v726_v48 }
 0x103   : >> { %729 = vst [vmem:[%s13214_s13 + $0xf10] sm:$0xff] %v728_v49 }
 0x104   : >> { %731 = vst [vmem:[%s13214_s13 + $0xf20] sm:$0xff] %v730_v50 }
 0x105   : >> { %733 = vst [vmem:[%s13214_s13 + $0xf30] sm:$0xff] %v732_v51 }
 0x106   : >> { %735 = vst [vmem:[%s13214_s13 + $0xf40] sm:$0xff] %v734_v52 }
 0x107   : >> { %737 = vst [vmem:[%s13214_s13 + $0xf50] sm:$0xff] %v736_v53 }
 0x108   : >> { %739 = vst [vmem:[%s13214_s13 + $0xf60] sm:$0xff] %v738_v54 }
 0x109   : >> { %741 = vst [vmem:[%s13214_s13 + $0xf70] sm:$0xff] %v740_v55 }
 0x10a   : >> { %743 = vst [vmem:[%s13214_s13 + $0xf80] sm:$0xff] %v742_v56 }
 0x10b   : >> { %745 = vst [vmem:[%s13214_s13 + $0xf90] sm:$0xff] %v744_v57 }
 0x10c   : >> { %747 = vst [vmem:[%s13214_s13 + $0xfa0] sm:$0xff] %v746_v58 }
 0x10d   : >> { %749 = vst [vmem:[%s13214_s13 + $0xfb0] sm:$0xff] %v748_v59  ;;  %241 = sbr.rel (!%p239_p7) target bundleno = 17 (0x11), region = 130 }
 0x10e   : >> { %751 = vst [vmem:[%s13214_s13 + $0xfc0] sm:$0xff] %v750_v60 }
 0x10f   : >> { %753 = vst [vmem:[%s13214_s13 + $0xfd0] sm:$0xff] %v752_v61 }
 0x110   : >> { %755 = vst [vmem:[%s13214_s13 + $0xfe0] sm:$0xff] %v754_v62 }
 0x111   : >> { %757 = vst [vmem:[%s13214_s13 + $0xff0] sm:$0xff] %v756_v63  ;;  %s18469_s13 = smov %s13602_s20 }
 0x112 PF: > { %p10106_p8 = scmp.ge.s32.totalorder %s13210_s25, 1  ;;  %p1833_p9 = scmp.lt.s32.totalorder %s13210_s25, 3 }
 0x114   : > { %p1834_p10 = pnand %p10106_p8, %p1833_p9 }
 0x116   : > { %1837 = sbr.rel (%p1834_p10) target bundleno = 2102 (0x836), region = 77 }
 0x11b   : > { %v1896_v0 = vld [vmem:[%s18413_s1 + $0x10] sm:$0xff]  ;;  %vm1898_vm0 = vcmask 261120   ;;  %v13877_v1 = vld [vmem:[%s18413_s1] sm:$0xff]  ;;  %s1840_s9 = sand.u32 1, %s13194_s21   ;;  %v1897_v4 = vld [vmem:[%s18413_s1 + $0x18] sm:$0xff]  ;;  %vm3725_vm1 = vcmask 556032  }
 0x11c   : > { %v1905_v2 = vsel %vm1898_vm0, %v1896_v0, 0.0  ;;  %v1899_v3 = vsel %vm1898_vm0, %v13877_v1, 0.0  ;;  %s10107_s8 = sshll.u32 %s1840_s9, 12  ;;  %v1895_v5 = vld [vmem:[%s18413_s1 + $0x8] sm:$0xff]  ;;  %v1908_v6 = vsel %vm1898_vm0, %v1897_v4, 0.0  ;;  %vm5781_vm14 = vcmask 130112  }
 0x11d   : > { %1906 = vadd.xlane.f32.xlu1 %v1905_v2  ;;  %1900 = vadd.xlane.f32.xlu0 %v1899_v3  ;;  %v1902_v7 = vsel %vm1898_vm0, %v1895_v5, 0.0  ;;  %s13891_s21 = scalar_lea.vmem [#allocation4], %s10107_s8  ;;  %vm5785_vm15 = vcmask 195712   ;;  %s10108_s9 = sshll.u32 %s13202_s23, 7 }
 0x11e   : > { %v3216_v8 = vld [vmem:[%s13891_s21 + $0x18] sm:$0xff]  ;;  %v3214_v9 = vld [vmem:[%s13891_s21 + $0x8] sm:$0xff]  ;;  %v3215_v10 = vld [vmem:[%s13891_s21 + $0x10] sm:$0xff]  ;;  %p15630_p11 = scmp.lt.s32.totalorder %s10108_s9, 255  ;;  %p1886_p12 = scmp.lt.s32.totalorder %s13202_s23, 1 }
 0x11f   : > { %v3730_v11 = vsel %vm3725_vm1, %v3216_v8, -inf  ;;  %v3213_v12 = vld [vmem:[%s13891_s21] sm:$0xff]  ;;  %v3726_v13 = vsel %vm3725_vm1, %v3214_v9, -inf  ;;  %v3220_v16 = vld [vmem:[%s13891_s21 + $0x38] sm:$0xff]  ;;  %v3218_v17 = vld [vmem:[%s13891_s21 + $0x28] sm:$0xff] }
 0x120   : > { %v3731_v14 = vmax.f32 %v3215_v10, %v3730_v11  ;;  %v3727_v15 = vmax.f32 %v3213_v12, %v3726_v13  ;;  %v3219_v18 = vld [vmem:[%s13891_s21 + $0x30] sm:$0xff]  ;;  %v3738_v19 = vsel %vm3725_vm1, %v3220_v16, -inf  ;;  %v3217_v20 = vld [vmem:[%s13891_s21 + $0x20] sm:$0xff]  ;;  %v3734_v21 = vsel %vm3725_vm1, %v3218_v17, -inf  ;;  %v3224_v24 = vld [vmem:[%s13891_s21 + $0x58] sm:$0xff]  ;;  %s18858_s9 = smov (!%p15630_p11, %s10108_s9), 255 }
 0x121   : > { %v3739_v22 = vmax.f32 %v3219_v18, %v3738_v19  ;;  %v3735_v23 = vmax.f32 %v3217_v20, %v3734_v21  ;;  %v3222_v25 = vld [vmem:[%s13891_s21 + $0x48] sm:$0xff]  ;;  %v3223_v26 = vld [vmem:[%s13891_s21 + $0x50] sm:$0xff]  ;;  %v3746_v27 = vsel %vm3725_vm1, %v3224_v24, -inf  ;;  %v3221_v28 = vld [vmem:[%s13891_s21 + $0x40] sm:$0xff]  ;;  %s12493_s10 = sshll.u32 %s18858_s9, 5  ;;  %s18860_s23 = smov (!%p1886_p12, %s13202_s23), 1 }
 0x122   : > { %v3742_v29 = vsel %vm3725_vm1, %v3222_v25, -inf  ;;  %v3747_v30 = vmax.f32 %v3223_v26, %v3746_v27  ;;  %v3230_v32 = vld [vmem:[%s13891_s21 + $0x88] sm:$0xff]  ;;  %v3228_v33 = vld [vmem:[%s13891_s21 + $0x78] sm:$0xff]  ;;  %v3225_v34 = vld [vmem:[%s13891_s21 + $0x60] sm:$0xff]  ;;  %s15713_s13 = scalar_lea.vmem %s18416_s4, %s12493_s10  ;;  %s10111_s27 = sshll.u32 %s18860_s23, 1 }
 0x123   : > { %v3743_v31 = vmax.f32 %v3221_v28, %v3742_v29  ;;  %v3226_v35 = vld [vmem:[%s13891_s21 + $0x68] sm:$0xff]  ;;  %v3229_v36 = vld [vmem:[%s13891_s21 + $0x80] sm:$0xff]  ;;  %v3758_v37 = vsel %vm3725_vm1, %v3230_v32, -inf  ;;  %v3227_v38 = vld [vmem:[%s13891_s21 + $0x70] sm:$0xff]  ;;  %v3754_v39 = vsel %vm3725_vm1, %v3228_v33, -inf  ;;  %s1889_s7 = scalar_lea.vmem %s18418_s6, %s10111_s27 }
 0x124   : > { %v3750_v40 = vsel %vm3725_vm1, %v3226_v35, -inf  ;;  %v3759_v42 = vmax.f32 %v3229_v36, %v3758_v37  ;;  %v3755_v43 = vmax.f32 %v3227_v38, %v3754_v39  ;;  %v3234_v44 = vld [vmem:[%s13891_s21 + $0xa8] sm:$0xff]  ;;  %v3232_v45 = vld [vmem:[%s13891_s21 + $0x98] sm:$0xff]  ;;  %v3233_v46 = vld [vmem:[%s13891_s21 + $0xa0] sm:$0xff] }
 0x125   : > { %1909 = vadd.xlane.f32.xlu1 %v1908_v6  ;;  %1903 = vadd.xlane.f32.xlu0 %v1902_v7  ;;  %v3751_v41 = vmax.f32 %v3225_v34, %v3750_v40  ;;  %v3766_v47 = vsel %vm3725_vm1, %v3234_v44, -inf  ;;  %v3231_v48 = vld [vmem:[%s13891_s21 + $0x90] sm:$0xff]  ;;  %v3762_v49 = vsel %vm3725_vm1, %v3232_v45, -inf  ;;  %v3316_v52 = vld [vmem:[%s13891_s21 + $0x338] sm:$0xff]  ;;  %v3238_v53 = vld [vmem:[%s13891_s21 + $0xc8] sm:$0xff] }
 0x126   : > { %v3767_v50 = vmax.f32 %v3233_v46, %v3766_v47  ;;  %v3763_v51 = vmax.f32 %v3231_v48, %v3762_v49  ;;  %v3236_v54 = vld [vmem:[%s13891_s21 + $0xb8] sm:$0xff]  ;;  %v3315_v55 = vld [vmem:[%s13891_s21 + $0x330] sm:$0xff]  ;;  %v3930_v56 = vsel %vm3725_vm1, %v3316_v52, -inf  ;;  %v3237_v58 = vld [vmem:[%s13891_s21 + $0xc0] sm:$0xff]  ;;  %v3774_v59 = vsel %vm3725_vm1, %v3238_v53, -inf }
 0x127   : > { %3752 = vmax.xlane.f32.xlu2 %v3751_v41  ;;  %v3931_v57 = vmax.f32 %v3315_v55, %v3930_v56  ;;  %v3235_v60 = vld [vmem:[%s13891_s21 + $0xb0] sm:$0xff]  ;;  %v3770_v61 = vsel %vm3725_vm1, %v3236_v54, -inf  ;;  %v3775_v62 = vmax.f32 %v3237_v58, %v3774_v59  ;;  %v3542_v0 = vld [vmem:[%s13891_s21 + $0xa48] sm:$0xff]  ;;  %v3240_v3 = vld [vmem:[%s13891_s21 + $0xd8] sm:$0xff] }
 0x128   : > { %v3771_v63 = vmax.f32 %v3235_v60, %v3770_v61  ;;  %v3242_v2 = vld [vmem:[%s13891_s21 + $0xe8] sm:$0xff]  ;;  %v3541_v4 = vld [vmem:[%s13891_s21 + $0xa40] sm:$0xff]  ;;  %v4382_v5 = vsel %vm3725_vm1, %v3542_v0, -inf  ;;  %v3239_v9 = vld [vmem:[%s13891_s21 + $0xd0] sm:$0xff]  ;;  %v3778_v10 = vsel %vm3725_vm1, %v3240_v3, -inf }
 0x129   : > { %v4383_v6 = vmax.f32 %v3541_v4, %v4382_v5  ;;  %v3241_v7 = vld [vmem:[%s13891_s21 + $0xe0] sm:$0xff]  ;;  %v3782_v8 = vsel %vm3725_vm1, %v3242_v2, -inf  ;;  %v3246_v11 = vld [vmem:[%s13891_s21 + $0x108] sm:$0xff]  ;;  %v3244_v12 = vld [vmem:[%s13891_s21 + $0xf8] sm:$0xff] }
 0x12a   : > { %v3783_v13 = vmax.f32 %v3241_v7, %v3782_v8  ;;  %v3790_v16 = vsel %vm3725_vm1, %v3246_v11, -inf  ;;  %v3786_v17 = vsel %vm3725_vm1, %v3244_v12, -inf  ;;  %v3571_v18 = vld [vmem:[%s13891_s21 + $0xb30] sm:$0xff]  ;;  %v3245_v20 = vld [vmem:[%s13891_s21 + $0x100] sm:$0xff]  ;;  %v10346_v33 = vld [vmem:[%s18415_s3 + $0x1c0] sm:$0xf] }
 0x12b   : > { %v3243_v21 = vld [vmem:[%s13891_s21 + $0xf0] sm:$0xff]  ;;  %v12557_v24 = vld [vmem:[%s18415_s3 + $0x1e4] sm:$0xf0]  ;;  %v12553_v25 = vld [vmem:[%s18415_s3 + $0x1cc] sm:$0xf] }
 0x12c   : > { %v10356_v27 = vld [vmem:[%s18415_s3 + $0x1e8] sm:$0xf0]  ;;  %v10322_v28 = vld [vmem:[%s18415_s3 + $0x188] sm:$0xf]  ;;  %v12556_v35 = vld [vmem:[%s18415_s3 + $0x1dc] sm:$0xf0]  ;;  %v3787_v44 = vmax.f32 %v3243_v21, %v3786_v17 }
 0x12d   : > { %3732 = vmax.xlane.f32.xlu1 %v3731_v14  ;;  %3728 = vmax.xlane.f32.xlu0 %v3727_v15  ;;  %v3779_v14 = vmax.f32 %v3239_v9, %v3778_v10  ;;  %v3572_v15 = vld [vmem:[%s13891_s21 + $0xb38] sm:$0xff]  ;;  %v12549_v29 = vld [vmem:[%s18415_s3 + $0x1a4] sm:$0xf0]  ;;  %v10324_v32 = vld [vmem:[%s18415_s3 + $0x1a8] sm:$0xf0]  ;;  %v10347_v41 = vor.u32 %v12556_v35, %v10346_v33 }
 0x12e   : > { %v4442_v19 = vsel %vm3725_vm1, %v3572_v15, -inf  ;;  %v10323_v34 = vor.u32 %v12549_v29, %v10322_v28  ;;  %v12552_v36 = vld [vmem:[%s18415_s3 + $0x1c4] sm:$0xf]  ;;  %v3278_v38 = vld [vmem:[%s13891_s21 + $0x208] sm:$0xff]  ;;  %v3277_v47 = vld [vmem:[%s13891_s21 + $0x200] sm:$0xff] }
 0x12f   : > { %3932 = vmax.xlane.f32.xlu2 %v3931_v57  ;;  %v10348_v37 = vld [vmem:[%s18415_s3 + $0x1e0] sm:$0xf0]  ;;  %2359 = vmatpush.bf16.msra.mxu0 %v10347_v41  ;;  %v3854_v45 = vsel %vm3725_vm1, %v3278_v38, -inf  ;;  %v3247_v48 = vld [vmem:[%s13891_s21 + $0x110] sm:$0xff]  ;;  %v10290_v49 = vld [vmem:[%s18415_s3 + $0x148] sm:$0xf] }
 0x130   : > { %v3248_v39 = vld [vmem:[%s13891_s21 + $0x118] sm:$0xff]  ;;  %v10292_v53 = vld [vmem:[%s18415_s3 + $0x168] sm:$0xf0]  ;;  %v10258_v60 = vld [vmem:[%s18415_s3 + $0x108] sm:$0xf]  ;;  %v3855_v7 = vmax.f32 %v3277_v47, %v3854_v45 }
 0x131   : > { %v3794_v46 = vsel %vm3725_vm1, %v3248_v39, -inf  ;;  %v10314_v54 = vld [vmem:[%s18415_s3 + $0x180] sm:$0xf]  ;;  %v12544_v58 = vld [vmem:[%s18415_s3 + $0x184] sm:$0xf]  ;;  %v3534_v12 = vld [vmem:[%s13891_s21 + $0xa08] sm:$0xff] }
 0x132   : > { %v12548_v55 = vld [vmem:[%s18415_s3 + $0x19c] sm:$0xf0]  ;;  %v10316_v59 = vld [vmem:[%s18415_s3 + $0x1a0] sm:$0xf0]  ;;  %v10260_v0 = vld [vmem:[%s18415_s3 + $0x128] sm:$0xf0]  ;;  %v3795_v8 = vmax.f32 %v3247_v48, %v3794_v46 }
 0x133   : > { %v10315_v57 = vor.u32 %v12548_v55, %v10314_v54  ;;  %v10319_v61 = vor.u32 %v12544_v58, %v10316_v59  ;;  %v10282_v4 = vld [vmem:[%s18415_s3 + $0x140] sm:$0xf]  ;;  %v10284_v10 = vld [vmem:[%s18415_s3 + $0x160] sm:$0xf0]  ;;  %v12525_v15 = vld [vmem:[%s18415_s3 + $0xe4] sm:$0xf0] }
 0x134   : > { %v12540_v5 = vld [vmem:[%s18415_s3 + $0x15c] sm:$0xf0]  ;;  %v3279_v21 = vld [vmem:[%s13891_s21 + $0x210] sm:$0xff]  ;;  %v10252_v28 = vld [vmem:[%s18415_s3 + $0x120] sm:$0xf0] }
 0x135   : > { %3740 = vmax.xlane.f32.xlu1 %v3739_v22  ;;  %3736 = vmax.xlane.f32.xlu0 %v3735_v23  ;;  %v4443_v22 = vmax.f32 %v3571_v18, %v4442_v19  ;;  %v10354_v23 = vld [vmem:[%s18415_s3 + $0x1c8] sm:$0xf]  ;;  %v10283_v9 = vor.u32 %v12540_v5, %v10282_v4  ;;  %v10228_v18 = vld [vmem:[%s18415_s3 + $0xe8] sm:$0xf0]  ;;  %v3282_v35 = vld [vmem:[%s13891_s21 + $0x228] sm:$0xff] }
 0x136   : > { %v10355_v26 = vor.u32 %v12557_v24, %v10354_v23  ;;  %2360 = vmatpush.bf16.msra.mxu0 %v10315_v57  ;;  %v3533_v19 = vld [vmem:[%s13891_s21 + $0xa00] sm:$0xff]  ;;  %v10250_v24 = vld [vmem:[%s18415_s3 + $0x100] sm:$0xf]  ;;  %v12512_v58 = vld [vmem:[%s18415_s3 + $0x84] sm:$0xf] }
 0x137   : > { %4384 = vmax.xlane.f32.xlu2 %v4383_v6  ;;  %v12536_v6 = vld [vmem:[%s18415_s3 + $0x144] sm:$0xf]  ;;  %v12517_v33 = vld [vmem:[%s18415_s3 + $0xa4] sm:$0xf0]  ;;  %v10196_v38 = vld [vmem:[%s18415_s3 + $0xa8] sm:$0xf0] }
 0x138   : > { %2397 = vmatpush.bf16.msra.mxu2 %v10355_v26  ;;  %v10287_v11 = vor.u32 %v12536_v6, %v10284_v10  ;;  %v12528_v26 = vld [vmem:[%s18415_s3 + $0x104] sm:$0xf]  ;;  %v12524_v41 = vld [vmem:[%s18415_s3 + $0xdc] sm:$0xf0]  ;;  %v10162_v46 = vld [vmem:[%s18415_s3 + $0x48] sm:$0xf] }
 0x139   : > { %v12509_v47 = vld [vmem:[%s18415_s3 + $0x64] sm:$0xf0]  ;;  %v12505_v48 = vld [vmem:[%s18415_s3 + $0x4c] sm:$0xf]  ;;  %v12516_v57 = vld [vmem:[%s18415_s3 + $0x9c] sm:$0xf0] }
 0x13a   : > { %2361 = vmatpush.bf16.msra.mxu0 %v10283_v9  ;;  %v10164_v54 = vld [vmem:[%s18415_s3 + $0x68] sm:$0xf0]  ;;  %v3538_v4 = vld [vmem:[%s13891_s21 + $0xa28] sm:$0xff]  ;;  %v3284_v5 = vld [vmem:[%s13891_s21 + $0x238] sm:$0xff] }
 0x13b   : > { %v10167_v55 = vor.u32 %v12505_v48, %v10164_v54  ;;  %v10154_v9 = vld [vmem:[%s18415_s3 + $0x40] sm:$0xf]  ;;  %v10306_v48 = vld [vmem:[%s18415_s3 + $0x158] sm:$0xf] }
 0x13c   : > { %2398 = vmatpush.bf16.msra.mxu2 %v10323_v34  ;;  %v12513_v34 = vld [vmem:[%s18415_s3 + $0x8c] sm:$0xf]  ;;  %v12508_v10 = vld [vmem:[%s18415_s3 + $0x5c] sm:$0xf0] }
 0x13d   : > { %3748 = vmax.xlane.f32.xlu1 %v3747_v30  ;;  %3744 = vmax.xlane.f32.xlu0 %v3743_v31  ;;  %v10359_v30 = vor.u32 %v12553_v25, %v10356_v27  ;;  %v12545_v31 = vld [vmem:[%s18415_s3 + $0x18c] sm:$0xf]  ;;  %v12532_v25 = vld [vmem:[%s18415_s3 + $0x11c] sm:$0xf0]  ;;  %v10199_v39 = vor.u32 %v12513_v34, %v10196_v38  ;;  %v10338_v34 = vld [vmem:[%s18415_s3 + $0x198] sm:$0xf] }
 0x13e   : > { %v10327_v40 = vor.u32 %v12545_v31, %v10324_v32  ;;  %v10251_v27 = vor.u32 %v12532_v25, %v10250_v24  ;;  %v10255_v31 = vor.u32 %v12528_v26, %v10252_v28  ;;  %v10194_v32 = vld [vmem:[%s18415_s3 + $0x88] sm:$0xf]  ;;  %v10372_v24 = vld [vmem:[%s18415_s3 + $0x1f8] sm:$0xf0]  ;;  %v10122_v26 = vld [vmem:[%s18415_s3] sm:$0xf] }
 0x13f   : > { %4444 = vmax.xlane.f32.xlu2 %v4443_v22  ;;  %2416 = vmatpush.bf16.msra.mxu3 %v10359_v30  ;;  %v12496_v28 = vld [vmem:[%s18415_s3 + $0x4] sm:$0xf] }
 0x140   : > { %2362 = vmatpush.bf16.msra.mxu0 %v10251_v27  ;;  %v12500_v27 = vld [vmem:[%s18415_s3 + $0x1c] sm:$0xf0] }
 0x141   : > { %v3540_v38 = vld [vmem:[%s13891_s21 + $0xa38] sm:$0xff] }
 0x142   : > { %v4378_v54 = vsel %vm3725_vm1, %v3540_v38, -inf }
 0x143   : > { %2417 = vmatpush.bf16.msra.mxu3 %v10327_v40  ;;  %v10218_v40 = vld [vmem:[%s18415_s3 + $0xc0] sm:$0xf] }
 0x145   : > { %3760 = vmax.xlane.f32.xlu1 %v3759_v42  ;;  %3756 = vmax.xlane.f32.xlu0 %v3755_v43  ;;  %v10351_v42 = vor.u32 %v12552_v36, %v10348_v37  ;;  %v3791_v43 = vmax.f32 %v3245_v20, %v3790_v16  ;;  %v12521_v16 = vld [vmem:[%s18415_s3 + $0xcc] sm:$0xf]  ;;  %v4366_v20 = vsel %vm3725_vm1, %v3534_v12, -inf  ;;  %v3536_v36 = vld [vmem:[%s13891_s21 + $0xa18] sm:$0xff]  ;;  %v10195_v37 = vor.u32 %v12517_v33, %v10194_v32 }
 0x146   : > { %v10231_v23 = vor.u32 %v12521_v16, %v10228_v18  ;;  %v4367_v29 = vmax.f32 %v3533_v19, %v4366_v20  ;;  %v3537_v12 = vld [vmem:[%s13891_s21 + $0xa20] sm:$0xff]  ;;  %v10370_v18 = vld [vmem:[%s18415_s3 + $0x1d8] sm:$0xf] }
 0x147   : > { %2378 = vmatpush.bf16.msra.mxu1 %v10351_v42  ;;  %v12520_v42 = vld [vmem:[%s18415_s3 + $0xc4] sm:$0xf]  ;;  %v12559_v19 = vld [vmem:[%s18415_s3 + $0x1f4] sm:$0xf0] }
 0x148   : > { %v3283_v20 = vld [vmem:[%s13891_s21 + $0x230] sm:$0xff] }
 0x14b   : > { %2379 = vmatpush.bf16.msra.mxu1 %v10319_v61 }
 0x14d   : > { %3768 = vmax.xlane.f32.xlu1 %v3767_v50  ;;  %3764 = vmax.xlane.f32.xlu0 %v3763_v51  ;;  %v12541_v50 = vld [vmem:[%s18415_s3 + $0x164] sm:$0xf0]  ;;  %v12537_v51 = vld [vmem:[%s18415_s3 + $0x14c] sm:$0xf] }
 0x14e   : > { %v10291_v52 = vor.u32 %v12541_v50, %v10290_v49  ;;  %v10295_v56 = vor.u32 %v12537_v51, %v10292_v53  ;;  %v3281_v49 = vld [vmem:[%s13891_s21 + $0x220] sm:$0xff]  ;;  %v3862_v50 = vsel %vm3725_vm1, %v3282_v35, -inf  ;;  %v3535_v51 = vld [vmem:[%s13891_s21 + $0xa10] sm:$0xff]  ;;  %v10163_v53 = vor.u32 %v12509_v47, %v10162_v46  ;;  %v10364_v46 = vld [vmem:[%s18415_s3 + $0x1f0] sm:$0xf0] }
 0x14f   : > { %2380 = vmatpush.bf16.msra.mxu1 %v10287_v11  ;;  %v3863_v61 = vmax.f32 %v3281_v49, %v3862_v50  ;;  %v12504_v11 = vld [vmem:[%s18415_s3 + $0x44] sm:$0xf]  ;;  %v12551_v35 = vld [vmem:[%s18415_s3 + $0x1b4] sm:$0xf0]  ;;  %v12539_v50 = vld [vmem:[%s18415_s3 + $0x15c] sm:$0xf] }
 0x150   : > { %2399 = vmatpush.bf16.msra.mxu2 %v10291_v52  ;;  %2418 = vmatpush.bf16.msra.mxu3 %v10295_v56  ;;  %v4370_v52 = vsel %vm3725_vm1, %v3536_v36, -inf  ;;  %v10186_v56 = vld [vmem:[%s18415_s3 + $0x80] sm:$0xf]  ;;  %v12547_v36 = vld [vmem:[%s18415_s3 + $0x19c] sm:$0xf] }
 0x151   : > { %v10187_v59 = vor.u32 %v12516_v57, %v10186_v56  ;;  %v12543_v49 = vld [vmem:[%s18415_s3 + $0x174] sm:$0xf0]  ;;  %v10308_v56 = vld [vmem:[%s18415_s3 + $0x178] sm:$0xf0] }
 0x152   : > { %v10311_v57 = vor.u32 %v12539_v50, %v10308_v56  ;;  %v12526_v50 = vld [vmem:[%s18415_s3 + $0xec] sm:$0xf0]  ;;  %v3471_v56 = vld [vmem:[%s13891_s21 + $0x810] sm:$0xff] }
 0x153   : > { %2381 = vmatpush.bf16.msra.mxu1 %v10255_v31 }
 0x155   : > { %3776 = vmax.xlane.f32.xlu1 %v3775_v62  ;;  %3772 = vmax.xlane.f32.xlu0 %v3771_v63  ;;  %v12533_v62 = vld [vmem:[%s18415_s3 + $0x124] sm:$0xf0]  ;;  %v12529_v63 = vld [vmem:[%s18415_s3 + $0x10c] sm:$0xf] }
 0x156   : > { %v10259_v2 = vor.u32 %v12533_v62, %v10258_v60  ;;  %v10263_v3 = vor.u32 %v12529_v63, %v10260_v0  ;;  %v10188_v60 = vld [vmem:[%s18415_s3 + $0xa0] sm:$0xf0]  ;;  %v4371_v62 = vmax.f32 %v3535_v51, %v4370_v52  ;;  %v10130_v0 = vld [vmem:[%s18415_s3 + $0x8] sm:$0xf] }
 0x157   : > { %v10191_v63 = vor.u32 %v12512_v58, %v10188_v60  ;;  %v3309_v51 = vld [vmem:[%s13891_s21 + $0x300] sm:$0xff]  ;;  %v10330_v58 = vld [vmem:[%s18415_s3 + $0x190] sm:$0xf]  ;;  %v12546_v60 = vld [vmem:[%s18415_s3 + $0x194] sm:$0xf] }
 0x158   : > { %2400 = vmatpush.bf16.msra.mxu2 %v10259_v2  ;;  %2419 = vmatpush.bf16.msra.mxu3 %v10263_v3  ;;  %v12501_v2 = vld [vmem:[%s18415_s3 + $0x24] sm:$0xf0]  ;;  %v12497_v3 = vld [vmem:[%s18415_s3 + $0xc] sm:$0xf] }
 0x159   : > { %v10131_v6 = vor.u32 %v12501_v2, %v10130_v0 }
 0x15c   : > { %2420 = vmatpush.bf16.msra.mxu3 %v10231_v23  ;;  %v12555_v23 = vld [vmem:[%s18415_s3 + $0x1dc] sm:$0xf] }
 0x15d   : > { %3784 = vmax.xlane.f32.xlu1 %v3783_v13  ;;  %3780 = vmax.xlane.f32.xlu0 %v3779_v14  ;;  %v3280_v13 = vld [vmem:[%s13891_s21 + $0x218] sm:$0xff]  ;;  %v10226_v14 = vld [vmem:[%s18415_s3 + $0xc8] sm:$0xf]  ;;  %v10375_v25 = vor.u32 %v12555_v23, %v10372_v24  ;;  %v12527_v24 = vld [vmem:[%s18415_s3 + $0xf4] sm:$0xf0] }
 0x15e   : > { %v10227_v17 = vor.u32 %v12525_v15, %v10226_v14  ;;  %v3858_v22 = vsel %vm3725_vm1, %v3280_v13, -inf  ;;  %v10155_v13 = vor.u32 %v12508_v10, %v10154_v9  ;;  %v10156_v14 = vld [vmem:[%s18415_s3 + $0x60] sm:$0xf0]  ;;  %v4374_v15 = vsel %vm3725_vm1, %v3538_v4, -inf  ;;  %v12535_v4 = vld [vmem:[%s18415_s3 + $0x134] sm:$0xf0] }
 0x15f   : > { %v3859_v30 = vmax.f32 %v3279_v21, %v3858_v22  ;;  %v10159_v16 = vor.u32 %v12504_v11, %v10156_v14  ;;  %v3866_v21 = vsel %vm3725_vm1, %v3284_v5, -inf  ;;  %v10371_v22 = vor.u32 %v12559_v19, %v10370_v18  ;;  %v12531_v5 = vld [vmem:[%s18415_s3 + $0x11c] sm:$0xf]  ;;  %v10298_v11 = vld [vmem:[%s18415_s3 + $0x150] sm:$0xf]  ;;  %v3469_v14 = vld [vmem:[%s13891_s21 + $0x800] sm:$0xff] }
 0x160   : > { %2401 = vmatpush.bf16.msra.mxu2 %v10227_v17  ;;  %2421 = vmatpush.bf16.msra.mxu3 %v10199_v39  ;;  %v14158_v17 = vld [vmem:[%s18414_s2] sm:$0xff]  ;;  %v4375_v31 = vmax.f32 %v3537_v12, %v4374_v15  ;;  %v3867_v32 = vmax.f32 %v3283_v20, %v3866_v21  ;;  %v10339_v39 = vor.u32 %v12551_v35, %v10338_v34  ;;  %v10276_v9 = vld [vmem:[%s18415_s3 + $0x138] sm:$0xf0]  ;;  %v12542_v12 = vld [vmem:[%s18415_s3 + $0x16c] sm:$0xf0] }
 0x161   : > { %v10279_v10 = vor.u32 %v12531_v5, %v10276_v9  ;;  %v10299_v15 = vor.u32 %v12542_v12, %v10298_v11  ;;  %v3311_v19 = vld [vmem:[%s13891_s21 + $0x310] sm:$0xff]  ;;  %v14277_v21 = vld [vmem:[%s18414_s2 + $0x8] sm:$0xff]  ;;  %v12530_v34 = vld [vmem:[%s18415_s3 + $0x114] sm:$0xf] }
 0x162   : > { %v10268_v35 = vld [vmem:[%s18415_s3 + $0x130] sm:$0xf0] }
 0x164   : > { %2402 = vmatpush.bf16.msra.mxu2 %v10195_v37  ;;  %2422 = vmatpush.bf16.msra.mxu3 %v10167_v55  ;;  %v3310_v37 = vld [vmem:[%s13891_s21 + $0x308] sm:$0xff]  ;;  %v10307_v55 = vor.u32 %v12543_v49, %v10306_v48 }
 0x165   : > { %3792 = vmax.xlane.f32.xlu1 %v3791_v43  ;;  %3788 = vmax.xlane.f32.xlu0 %v3787_v44  ;;  %v10219_v43 = vor.u32 %v12524_v41, %v10218_v40  ;;  %v10220_v44 = vld [vmem:[%s18415_s3 + $0xe0] sm:$0xf0]  ;;  %v10340_v40 = vld [vmem:[%s18415_s3 + $0x1b8] sm:$0xf0]  ;;  %v3918_v52 = vsel %vm3725_vm1, %v3310_v37, -inf }
 0x166   : > { %v10223_v45 = vor.u32 %v12520_v42, %v10220_v44  ;;  %v10343_v41 = vor.u32 %v12547_v36, %v10340_v40  ;;  %v10362_v42 = vld [vmem:[%s18415_s3 + $0x1d0] sm:$0xf]  ;;  %v12554_v44 = vld [vmem:[%s18415_s3 + $0x1d4] sm:$0xf] }
 0x167   : > { %2363 = vmatpush.bf16.msra.mxu0 %v10219_v43  ;;  %v12558_v43 = vld [vmem:[%s18415_s3 + $0x1ec] sm:$0xf0]  ;;  %v10367_v47 = vor.u32 %v12554_v44, %v10364_v46  ;;  %v12519_v44 = vld [vmem:[%s18415_s3 + $0xb4] sm:$0xf0]  ;;  %v10212_v46 = vld [vmem:[%s18415_s3 + $0xb8] sm:$0xf0] }
 0x168   : > { %2382 = vmatpush.bf16.msra.mxu1 %v10223_v45  ;;  %2403 = vmatpush.bf16.msra.mxu2 %v10163_v53  ;;  %v10363_v45 = vor.u32 %v12558_v43, %v10362_v42  ;;  %v3539_v53 = vld [vmem:[%s13891_s21 + $0xa30] sm:$0xff]  ;;  %v3566_v40 = vld [vmem:[%s13891_s21 + $0xb08] sm:$0xff]  ;;  %v10271_v42 = vor.u32 %v12530_v34, %v10268_v35 }
 0x169   : > { %v4379_v0 = vmax.f32 %v3539_v53, %v4378_v54  ;;  %v10210_v43 = vld [vmem:[%s18415_s3 + $0x98] sm:$0xf]  ;;  %v10234_v49 = vld [vmem:[%s18415_s3 + $0xd0] sm:$0xf]  ;;  %v4430_v53 = vsel %vm3725_vm1, %v3566_v40, -inf }
 0x16a   : > { %v10235_v54 = vor.u32 %v12526_v50, %v10234_v49  ;;  %v10172_v34 = vld [vmem:[%s18415_s3 + $0x70] sm:$0xf0]  ;;  %v3567_v35 = vld [vmem:[%s13891_s21 + $0xb10] sm:$0xff] }
 0x16b   : > { %2364 = vmatpush.bf16.msra.mxu0 %v10187_v59  ;;  %v12550_v59 = vld [vmem:[%s18415_s3 + $0x1ac] sm:$0xf0] }
 0x16c   : > { %2383 = vmatpush.bf16.msra.mxu1 %v10191_v63  ;;  %2404 = vmatpush.bf16.msra.mxu2 %v10131_v6  ;;  %v3919_v63 = vmax.f32 %v3309_v51, %v3918_v52  ;;  %v3470_v6 = vld [vmem:[%s13891_s21 + $0x808] sm:$0xff]  ;;  %v3565_v52 = vld [vmem:[%s13891_s21 + $0xb00] sm:$0xff] }
 0x16d   : > { %3856 = vmax.xlane.f32.xlu1 %v3855_v7  ;;  %3796 = vmax.xlane.f32.xlu0 %v3795_v8  ;;  %v10132_v7 = vld [vmem:[%s18415_s3 + $0x28] sm:$0xf0]  ;;  %v4238_v18 = vsel %vm3725_vm1, %v3470_v6, -inf  ;;  %v12522_v51 = vld [vmem:[%s18415_s3 + $0xd4] sm:$0xf] }
 0x16e   : > { %v10135_v8 = vor.u32 %v12497_v3, %v10132_v7  ;;  %v10274_v3 = vld [vmem:[%s18415_s3 + $0x118] sm:$0xf]  ;;  %v3312_v7 = vld [vmem:[%s13891_s21 + $0x318] sm:$0xff]  ;;  %v4239_v37 = vmax.f32 %v3469_v14, %v4238_v18  ;;  %v10202_v6 = vld [vmem:[%s18415_s3 + $0x90] sm:$0xf] }
 0x16f   : > { %2365 = vmatpush.bf16.msra.mxu0 %v10155_v13  ;;  %2405 = vmatmul.bf16.vlgmr.msra.gmra.mxu2 %v14158_v17  ;;  %v12538_v13 = vld [vmem:[%s18415_s3 + $0x154] sm:$0xf]  ;;  %v3922_v20 = vsel %vm3725_vm1, %v3312_v7, -inf  ;;  %v12518_v7 = vld [vmem:[%s18415_s3 + $0xac] sm:$0xf0] }
 0x170   : > { %2423 = vmatpush.bf16.msra.mxu3 %v10135_v8  ;;  %2384 = vmatpush.bf16.msra.mxu1 %v10159_v16  ;;  %v10275_v8 = vor.u32 %v12535_v4, %v10274_v3  ;;  %v10300_v16 = vld [vmem:[%s18415_s3 + $0x170] sm:$0xf0]  ;;  %v3923_v38 = vmax.f32 %v3311_v19, %v3922_v20  ;;  %v4431_v3 = vmax.f32 %v3565_v52, %v4430_v53  ;;  %v12503_v18 = vld [vmem:[%s18415_s3 + $0x34] sm:$0xf0]  ;;  %v12499_v19 = vld [vmem:[%s18415_s3 + $0x1c] sm:$0xf] }
 0x171   : > { %2473 = vmatpush.bf16.msrb.mxu2 %v10371_v22  ;;  %v10242_v22 = vld [vmem:[%s18415_s3 + $0xd8] sm:$0xf]  ;;  %v10303_v23 = vor.u32 %v12538_v13, %v10300_v16  ;;  %v3286_v4 = vld [vmem:[%s13891_s21 + $0x248] sm:$0xff]  ;;  %v10203_v12 = vor.u32 %v12518_v7, %v10202_v6 }
 0x172   : > { %v10204_v13 = vld [vmem:[%s18415_s3 + $0xb0] sm:$0xf0]  ;;  %v10146_v16 = vld [vmem:[%s18415_s3 + $0x18] sm:$0xf] }
 0x173   : > { %2424 = vmatmul.bf16.vlgmr.msra.gmra.mxu3 %v14158_v17 }
 0x174   : > { %2492 = vmatpush.bf16.msrb.mxu3 %v10375_v25  ;;  %v12523_v25 = vld [vmem:[%s18415_s3 + $0xdc] sm:$0xf] }
 0x175   : > { %4368 = vmax.xlane.f32.xlu1 %v4367_v29  ;;  %3860 = vmax.xlane.f32.xlu0 %v3859_v30  ;;  %v10123_v29 = vor.u32 %v12500_v27, %v10122_v26  ;;  %v10124_v30 = vld [vmem:[%s18415_s3 + $0x20] sm:$0xf0]  ;;  %v10244_v26 = vld [vmem:[%s18415_s3 + $0xf8] sm:$0xf0]  ;;  %v10243_v27 = vor.u32 %v12527_v24, %v10242_v22  ;;  %v10170_v24 = vld [vmem:[%s18415_s3 + $0x50] sm:$0xf] }
 0x176   : > { %v10127_v33 = vor.u32 %v12496_v28, %v10124_v30  ;;  %2474 = vmatpush.bf16.msrb.mxu2 %v10339_v39  ;;  %v10247_v28 = vor.u32 %v12523_v25, %v10244_v26  ;;  %v12534_v30 = vld [vmem:[%s18415_s3 + $0x12c] sm:$0xf0]  ;;  %v3568_v22 = vld [vmem:[%s13891_s21 + $0xb18] sm:$0xff]  ;;  %v10147_v26 = vor.u32 %v12503_v18, %v10146_v16  ;;  %v13153_v18 = vld [vmem:[%s18413_s1 + $0x8] sm:$0xff] }
 0x177   : > { %2366 = vmatpush.bf16.msra.mxu0 %v10123_v29  ;;  %v10266_v29 = vld [vmem:[%s18415_s3 + $0x110] sm:$0xf] }
 0x178   : > { %2385 = vmatpush.bf16.msra.mxu1 %v10127_v33  ;;  %2493 = vmatpush.bf16.msrb.mxu3 %v10343_v41  ;;  %v10267_v33 = vor.u32 %v12534_v30, %v10266_v29  ;;  %v3472_v41 = vld [vmem:[%s13891_s21 + $0x818] sm:$0xff]  ;;  %v3285_v30 = vld [vmem:[%s13891_s21 + $0x240] sm:$0xff]  ;;  %v3474_v16 = vld [vmem:[%s13891_s21 + $0x828] sm:$0xff] }
 0x17a   : > { %2367 = vmatmul.bf16.vlgmr.msra.gmra.mxu0 %v14158_v17  ;;  %2475 = vmatpush.bf16.msrb.mxu2 %v10307_v55  ;;  %v10236_v55 = vld [vmem:[%s18415_s3 + $0xf0] sm:$0xf0] }
 0x17b   : > { %2386 = vmatmul.bf16.vlgmr.msra.gmra.mxu1 %v14158_v17  ;;  %2435 = vmatpush.bf16.msrb.mxu0 %v10363_v45  ;;  %v12515_v45 = vld [vmem:[%s18415_s3 + $0x9c] sm:$0xf] }
 0x17c   : > { %2454 = vmatpush.bf16.msrb.mxu1 %v10367_v47  ;;  %2494 = vmatpush.bf16.msrb.mxu3 %v10311_v57  ;;  %v10211_v47 = vor.u32 %v12519_v44, %v10210_v43  ;;  %v10215_v48 = vor.u32 %v12515_v45, %v10212_v46  ;;  %v4242_v57 = vsel %vm3725_vm1, %v3472_v41, -inf  ;;  %v12502_v43 = vld [vmem:[%s18415_s3 + $0x2c] sm:$0xf0] }
 0x17d   : > { %3864 = vmax.xlane.f32.xlu1 %v3863_v61  ;;  %4372 = vmax.xlane.f32.xlu0 %v4371_v62  ;;  %v10331_v61 = vor.u32 %v12550_v59, %v10330_v58  ;;  %v10332_v62 = vld [vmem:[%s18415_s3 + $0x1b0] sm:$0xf0]  ;;  %v10239_v58 = vor.u32 %v12522_v51, %v10236_v55  ;;  %v10178_v59 = vld [vmem:[%s18415_s3 + $0x58] sm:$0xf]  ;;  %v4243_v11 = vmax.f32 %v3471_v56, %v4242_v57 }
 0x17e   : > { %v10335_v2 = vor.u32 %v12546_v60, %v10332_v62  ;;  %2476 = vmatpush.bf16.msrb.mxu2 %v10275_v8  ;;  %v12511_v60 = vld [vmem:[%s18415_s3 + $0x74] sm:$0xf0]  ;;  %v12507_v62 = vld [vmem:[%s18415_s3 + $0x5c] sm:$0xf]  ;;  %v12514_v8 = vld [vmem:[%s18415_s3 + $0x94] sm:$0xf] }
 0x17f   : > { %2436 = vmatpush.bf16.msrb.mxu0 %v10331_v61  ;;  %2410 = vmatmul.bf16.gmra.mxu2 %v14277_v21  ;;  %v10179_v61 = vor.u32 %v12511_v60, %v10178_v59  ;;  %v10140_v51 = vld [vmem:[%s18415_s3 + $0x30] sm:$0xf0] }
 0x180   : > { %2455 = vmatpush.bf16.msrb.mxu1 %v10335_v2  ;;  %2495 = vmatpush.bf16.msrb.mxu3 %v10279_v10  ;;  %v3314_v57 = vld [vmem:[%s13891_s21 + $0x328] sm:$0xff] }
 0x182   : > { %2477 = vmatpush.bf16.msrb.mxu2 %v10243_v27  ;;  %v12510_v27 = vld [vmem:[%s18415_s3 + $0x6c] sm:$0xf0] }
 0x183   : > { %2437 = vmatpush.bf16.msrb.mxu0 %v10299_v15  ;;  %2429 = vmatmul.bf16.gmra.mxu3 %v14277_v21  ;;  %v10207_v15 = vor.u32 %v12514_v8, %v10204_v13 }
 0x184   : > { %2456 = vmatpush.bf16.msrb.mxu1 %v10303_v23  ;;  %2496 = vmatpush.bf16.msrb.mxu3 %v10247_v28  ;;  %v10148_v23 = vld [vmem:[%s18415_s3 + $0x38] sm:$0xf0]  ;;  %v12506_v28 = vld [vmem:[%s18415_s3 + $0x54] sm:$0xf] }
 0x185   : > { %4376 = vmax.xlane.f32.xlu1 %v4375_v31  ;;  %3868 = vmax.xlane.f32.xlu0 %v3867_v32 }
 0x186   : > { %2478 = vmatpush.bf16.msrb.mxu2 %v10211_v47  ;;  %v12498_v47 = vld [vmem:[%s18415_s3 + $0x14] sm:$0xf] }
 0x187   : > { %2438 = vmatpush.bf16.msrb.mxu0 %v10267_v33  ;;  %v10171_v33 = vor.u32 %v12510_v27, %v10170_v24  ;;  %v10143_v53 = vor.u32 %v12498_v47, %v10140_v51  ;;  %v3503_v51 = vld [vmem:[%s13891_s21 + $0x910] sm:$0xff] }
 0x188   : > { %2457 = vmatpush.bf16.msrb.mxu1 %v10271_v42  ;;  %2497 = vmatpush.bf16.msrb.mxu3 %v10215_v48  ;;  %v10138_v42 = vld [vmem:[%s18415_s3 + $0x10] sm:$0xf] }
 0x189   : > { %v10139_v50 = vor.u32 %v12502_v43, %v10138_v42 }
 0x18a   : > { %2372 = vmatmul.bf16.gmra.mxu0 %v14277_v21  ;;  %2479 = vmatpush.bf16.msrb.mxu2 %v10179_v61 }
 0x18b   : > { %2391 = vmatmul.bf16.gmra.mxu1 %v14277_v21  ;;  %2439 = vmatpush.bf16.msrb.mxu0 %v10235_v54 }
 0x18c   : > { %2458 = vmatpush.bf16.msrb.mxu1 %v10239_v58  ;;  %v3288_v58 = vld [vmem:[%s13891_s21 + $0x258] sm:$0xff] }
 0x18d   : > { %3920 = vmax.xlane.f32.xlu1 %v3919_v63  ;;  %4380 = vmax.xlane.f32.xlu0 %v4379_v0  ;;  %v10180_v63 = vld [vmem:[%s18415_s3 + $0x78] sm:$0xf0] }
 0x18e   : > { %v10183_v5 = vor.u32 %v12507_v62, %v10180_v63  ;;  %2480 = vmatpush.bf16.msrb.mxu2 %v10147_v26  ;;  %v3313_v63 = vld [vmem:[%s13891_s21 + $0x320] sm:$0xff] }
 0x18f   : > { %2440 = vmatpush.bf16.msrb.mxu0 %v10203_v12 }
 0x190   : > { %v1907_v31 = vpop.xlane.xlu1 %1906  ;;  %v1901_v32 = vpop.xlane.xlu0 %1900  ;;  %2498 = vmatpush.bf16.msrb.mxu3 %v10183_v5  ;;  %2459 = vmatpush.bf16.msrb.mxu1 %v10207_v15  ;;  %v3476_v15 = vld [vmem:[%s13891_s21 + $0x838] sm:$0xff] }
 0x191   : > { %v14304_v36 = vmax.f32 %v1901_v32, 1e-12  ;;  %v14307_v39 = vmax.f32 %v1907_v31, 1e-12  ;;  %v3870_v31 = vsel %vm3725_vm1, %v3286_v4, -inf  ;;  %v10151_v32 = vor.u32 %v12499_v19, %v10148_v23  ;;  %2481 = vmatmul.bf16.vlgmr.msrb.gmra.mxu2 %v14158_v17 }
 0x192   : > { %v3871_v46 = vmax.f32 %v3285_v30, %v3870_v31 }
 0x193   : > { %13145 = vrsqrt.f32 %v14304_v36  ;;  %2441 = vmatpush.bf16.msrb.mxu0 %v10171_v33  ;;  %vm1921_vm3 = vweird.f32 %v14304_v36  ;;  %vm1941_vm8 = vweird.f32 %v14307_v39  ;;  %v3544_v33 = vld [vmem:[%s13891_s21 + $0xa58] sm:$0xff] }
 0x194   : > { %13147 = vrsqrt.f32 %v14307_v39  ;;  %2499 = vmatpush.bf16.msrb.mxu3 %v10151_v32  ;;  %v3570_v32 = vld [vmem:[%s13891_s21 + $0xb28] sm:$0xff] }
 0x195   : > { %4240 = vmax.xlane.f32.xlu1 %v4239_v37  ;;  %3924 = vmax.xlane.f32.xlu0 %v3923_v38  ;;  %v4434_v37 = vsel %vm3725_vm1, %v3568_v22, -inf  ;;  %v10175_v38 = vor.u32 %v12506_v28, %v10172_v34  ;;  %v3473_v22 = vld [vmem:[%s13891_s21 + $0x820] sm:$0xff]  ;;  %v13154_v34 = vld [vmem:[%s18413_s1 + $0x10] sm:$0xff] }
 0x196   : > { %v4435_v49 = vmax.f32 %v3567_v35, %v4434_v37  ;;  %v3569_v37 = vld [vmem:[%s13891_s21 + $0xb20] sm:$0xff] }
 0x197   : > { %2460 = vmatpush.bf16.msrb.mxu1 %v10175_v38  ;;  %2500 = vmatmul.bf16.vlgmr.msrb.gmra.mxu3 %v14158_v17  ;;  %v3543_v38 = vld [vmem:[%s13891_s21 + $0xa50] sm:$0xff] }
 0x198   : > { %v1910_v0 = vpop.xlane.xlu1 %1909  ;;  %v1904_v2 = vpop.xlane.xlu0 %1903  ;;  %2442 = vmatpush.bf16.msrb.mxu0 %v10139_v50 }
 0x199   : > { %v14365_v9 = vmax.f32 %v1910_v0, 1e-12  ;;  %v14367_v10 = vmax.f32 %v1904_v2, 1e-12  ;;  %v13146_v14 = vpop.eup %13145  ;;  %v3287_v0 = vld [vmem:[%s13891_s21 + $0x250] sm:$0xff]  ;;  %v3874_v2 = vsel %vm3725_vm1, %v3288_v58, -inf }
 0x19a   : > { %v1916_v20 = vmul.f32 %v13146_v14, %v14304_v36  ;;  %v14389_v25 = vpop.eup %13147  ;;  %vm1922_vm2 = vweird.f32 %v13146_v14  ;;  %v3926_v36 = vsel %vm3725_vm1, %v3314_v57, -inf }
 0x19b   : > { %13149 = vrsqrt.f32 %v14367_v10  ;;  %v1936_v40 = vmul.f32 %v14389_v25, %v14307_v39  ;;  %vm1923_vm4 = vmor %vm1921_vm3, %vm1922_vm2  ;;  %2461 = vmatpush.bf16.msrb.mxu1 %v10143_v53  ;;  %2443 = vmatmul.bf16.vlgmr.msrb.gmra.mxu0 %v14158_v17  ;;  %v3927_v8 = vmax.f32 %v3313_v63, %v3926_v36  ;;  %vm1931_vm6 = vweird.f32 %v14367_v10  ;;  %v3501_v53 = vld [vmem:[%s13891_s21 + $0x900] sm:$0xff]  ;;  %v3251_v36 = vld [vmem:[%s13891_s21 + $0x130] sm:$0xff] }
 0x19c   : > { %v1917_v29 = vmul.f32 %v13146_v14, %v1916_v20  ;;  %13151 = vrsqrt.f32 %v14365_v9  ;;  %vm1942_vm9 = vweird.f32 %v14389_v25  ;;  %v3475_v20 = vld [vmem:[%s13891_s21 + $0x830] sm:$0xff]  ;;  %v4246_v39 = vsel %vm3725_vm1, %v3474_v16, -inf }
 0x19d   : > { %4432 = vmax.xlane.f32.xlu1 %v4431_v3  ;;  %4244 = vmax.xlane.f32.xlu0 %v4243_v11  ;;  %v1937_v54 = vmul.f32 %v14389_v25, %v1936_v40  ;;  %v3875_v11 = vmax.f32 %v3287_v0, %v3874_v2  ;;  %vm1943_vm10 = vmor %vm1941_vm8, %vm1942_vm9  ;;  %vm1951_vm11 = vweird.f32 %v14365_v9  ;;  %v4386_v40 = vsel %vm3725_vm1, %v3544_v33, -inf  ;;  %v3548_v33 = vld [vmem:[%s13891_s21 + $0xa78] sm:$0xff] }
 0x19e   : > { %v1918_v41 = vmul.f32 0.5, %v1917_v29  ;;  %2462 = vmatmul.bf16.vlgmr.msrb.gmra.mxu1 %v14158_v17  ;;  %v4247_v29 = vmax.f32 %v3473_v22, %v4246_v39  ;;  %v3505_v22 = vld [vmem:[%s13891_s21 + $0x920] sm:$0xff]  ;;  %vm5789_vm2 = vcmask 261312   ;;  %vm5793_vm3 = vcmask 326912  }
 0x19f   : > { %v1938_v3 = vmul.f32 0.5, %v1937_v54  ;;  %vm18434_vm8 = vcmask 654912   ;;  %vm18433_vm9 = vcmask 720512  }
 0x1a0   : > { %v14414_v44 = vpop.xlane.xlu1 %3732  ;;  %v14416_v45 = vpop.xlane.xlu0 %3728  ;;  %v1919_v48 = vsub.f32 1.5, %v1918_v41 }
 0x1a1   : > { %v13150_v52 = vpop.eup %13149  ;;  %v1939_v12 = vsub.f32 1.5, %v1938_v3  ;;  %2486 = vmatmul.bf16.gmra.mxu2 %v14277_v21 }
 0x1a2   : > { %v1920_v55 = vmul.f32 %v13146_v14, %v1919_v48  ;;  %v1926_v56 = vmul.f32 %v13150_v52, %v14367_v10  ;;  %v14431_v59 = vpop.eup %13151  ;;  %vm1932_vm5 = vweird.f32 %v13150_v52  ;;  %v4250_v10 = vsel %vm3725_vm1, %v3476_v15, -inf  ;;  %v3504_v48 = vld [vmem:[%s13891_s21 + $0x918] sm:$0xff] }
 0x1a3   : > { %v1946_v4 = vmul.f32 %v14431_v59, %v14365_v9  ;;  %vm1933_vm7 = vmor %vm1931_vm6, %vm1932_vm5  ;;  %v1940_v23 = vmul.f32 %v14389_v25, %v1939_v12  ;;  %v4251_v28 = vmax.f32 %v3475_v20, %v4250_v10  ;;  %vm1952_vm12 = vweird.f32 %v14431_v59  ;;  %v3506_v20 = vld [vmem:[%s13891_s21 + $0x928] sm:$0xff]  ;;  %v3480_v10 = vld [vmem:[%s13891_s21 + $0x858] sm:$0xff] }
 0x1a4   : > { %v14434_v60 = vsel %vm1923_vm4, %v13146_v14, %v1920_v55  ;;  %v1927_v61 = vmul.f32 %v13150_v52, %v1926_v56  ;;  %vm1953_vm13 = vmor %vm1951_vm11, %vm1952_vm12  ;;  %v4310_v39 = vsel %vm3725_vm1, %v3506_v20, -inf  ;;  %vm5797_vm4 = vcmask 392512  }
 0x1a5   : > { %18472 = vst [vmem:[#allocation5_spill] sm:$0xff] %v14434_v60  ;;  %3872 = vmax.xlane.f32.xlu1 %v3871_v46  ;;  %4436 = vmax.xlane.f32.xlu0 %v4435_v49  ;;  %v1955_v62 = vmul.f32 %v14434_v60, %v13877_v1  ;;  %v1947_v13 = vmul.f32 %v14431_v59, %v1946_v4  ;;  %v3502_v49 = vld [vmem:[%s13891_s21 + $0x908] sm:$0xff]  ;;  %vm5801_vm5 = vcmask 458112   ;;  %vm18448_vm6 = vcmask 523712  }
 0x1a6   : > { %v1928_v5 = vmul.f32 0.5, %v1927_v61  ;;  %v14474_v30 = vsel %vm1943_vm10, %v14389_v25, %v1940_v23  ;;  %v4438_v25 = vsel %vm3725_vm1, %v3570_v32, -inf  ;;  %v4387_v46 = vmax.f32 %v3543_v38, %v4386_v40  ;;  %v3252_v61 = vld [vmem:[%s13891_s21 + $0x138] sm:$0xff]  ;;  %v3479_v23 = vld [vmem:[%s13891_s21 + $0x850] sm:$0xff] }
 0x1a7   : > { %2511 = vxpose.xlu2.b32.start [1/4] (short) (narrow) %v1955_v62, 32  ;;  %v1948_v24 = vmul.f32 0.5, %v1947_v13  ;;  %2505 = vmatmul.bf16.gmra.mxu3 %v14277_v21  ;;  %18474 = vst [vmem:[#allocation7_spill] sm:$0xff] %v14474_v30  ;;  %v1957_v35 = vmul.f32 %v13154_v34, %v14474_v30  ;;  %v4439_v43 = vmax.f32 %v3569_v37, %v4438_v25  ;;  %v4302_v54 = vsel %vm3725_vm1, %v3502_v49, -inf  ;;  %v3289_v62 = vld [vmem:[%s13891_s21 + $0x260] sm:$0xff]  ;;  %v3546_v34 = vld [vmem:[%s13891_s21 + $0xa68] sm:$0xff] }
 0x1a8   : > { %v14446_v6 = vpop.xlane.xlu1 %3740  ;;  %v14448_v1 = vpop.xlane.xlu0 %3736  ;;  %v1929_v7 = vsub.f32 1.5, %v1928_v5  ;;  %v4303_v58 = vmax.f32 %v3501_v53, %v4302_v54  ;;  %v3802_v0 = vsel %vm3725_vm1, %v3252_v61, -inf  ;;  %v3317_v13 = vld [vmem:[%s13891_s21 + $0x340] sm:$0xff]  ;;  %v4394_v37 = vsel %vm3725_vm1, %v3548_v33, -inf  ;;  %v3576_v49 = vld [vmem:[%s13891_s21 + $0xb58] sm:$0xff]  ;;  %v3294_v61 = vld [vmem:[%s13891_s21 + $0x288] sm:$0xff] }
 0x1a9   : > { %v1949_v31 = vsub.f32 1.5, %v1948_v24  ;;  %v3803_v5 = vmax.f32 %v3251_v36, %v3802_v0  ;;  %v4258_v24 = vsel %vm3725_vm1, %v3480_v10, -inf  ;;  %v3545_v25 = vld [vmem:[%s13891_s21 + $0xa60] sm:$0xff]  ;;  %v4390_v38 = vsel %vm3725_vm1, %v3546_v34, -inf }
 0x1aa   : > { %v1930_v14 = vmul.f32 %v13150_v52, %v1929_v7  ;;  %v3320_v7 = vld [vmem:[%s13891_s21 + $0x358] sm:$0xff]  ;;  %v4259_v32 = vmax.f32 %v3479_v23, %v4258_v24  ;;  %v3293_v36 = vld [vmem:[%s13891_s21 + $0x280] sm:$0xff]  ;;  %v3886_v0 = vsel %vm3725_vm1, %v3294_v61, -inf  ;;  %v3510_v24 = vld [vmem:[%s13891_s21 + $0x948] sm:$0xff] }
 0x1ab   : > { %v1950_v9 = vmul.f32 %v14431_v59, %v1949_v31  ;;  %2448 = vmatmul.bf16.gmra.mxu0 %v14277_v21  ;;  %v3938_v12 = vsel %vm3725_vm1, %v3320_v7, -inf  ;;  %v4311_v31 = vmax.f32 %v3505_v22, %v4310_v39  ;;  %v3512_v23 = vld [vmem:[%s13891_s21 + $0x958] sm:$0xff]  ;;  %v3509_v33 = vld [vmem:[%s13891_s21 + $0x940] sm:$0xff]  ;;  %v4318_v34 = vsel %vm3725_vm1, %v3510_v24, -inf }
 0x1ac   : > { %v14456_v17 = vsel %vm1933_vm7, %v13150_v52, %v1930_v14  ;;  %v4306_v52 = vsel %vm3725_vm1, %v3504_v48, -inf  ;;  %v3254_v48 = vld [vmem:[%s13891_s21 + $0x148] sm:$0xff]  ;;  %vm18435_vm7 = vcmask 589312  }
 0x1ad   : > { %18473 = vst [vmem:[#allocation6_spill] sm:$0xff] %v14456_v17  ;;  %3928 = vmax.xlane.f32.xlu1 %v3927_v8  ;;  %3876 = vmax.xlane.f32.xlu0 %v3875_v11  ;;  %v1956_v19 = vmul.f32 %v13153_v18, %v14456_v17  ;;  %v14496_v47 = vsel %vm1953_vm13, %v14431_v59, %v1950_v9  ;;  %v3290_v59 = vld [vmem:[%s13891_s21 + $0x268] sm:$0xff]  ;;  %v3319_v11 = vld [vmem:[%s13891_s21 + $0x350] sm:$0xff] }
 0x1ae   : > { %2467 = vmatmul.bf16.gmra.mxu1 %v14277_v21  ;;  %18475 = vst [vmem:[#allocation8_spill] sm:$0xff] %v14496_v47  ;;  %v13155_v21 = vld [vmem:[%s18413_s1 + $0x18] sm:$0xff]  ;;  %v4307_v57 = vmax.f32 %v3503_v51, %v4306_v52  ;;  %v3878_v63 = vsel %vm3725_vm1, %v3290_v59, -inf  ;;  %v3318_v8 = vld [vmem:[%s13891_s21 + $0x348] sm:$0xff]  ;;  %v3939_v18 = vmax.f32 %v3319_v11, %v3938_v12  ;;  %v4450_v52 = vsel %vm3725_vm1, %v3576_v49, -inf  ;;  %v3296_v59 = vld [vmem:[%s13891_s21 + $0x298] sm:$0xff] }
 0x1af   : > { %2512 = vxpose.xlu2.b32.cont [2/4] (short) (narrow) %v1956_v19, 32  ;;  %v1958_v50 = vmul.f32 %v13155_v21, %v14496_v47  ;;  %v3879_v4 = vmax.f32 %v3289_v62, %v3878_v63  ;;  %v3934_v14 = vsel %vm3725_vm1, %v3318_v8, -inf  ;;  %v3253_v21 = vld [vmem:[%s13891_s21 + $0x140] sm:$0xff]  ;;  %v3575_v51 = vld [vmem:[%s13891_s21 + $0xb50] sm:$0xff]  ;;  %v3890_v63 = vsel %vm3725_vm1, %v3296_v59, -inf  ;;  %v3482_v11 = vld [vmem:[%s13891_s21 + $0x868] sm:$0xff] }
 0x1b0   : > { %v14467_v26 = vpop.xlane.xlu1 %3748  ;;  %v14469_v27 = vpop.xlane.xlu0 %3744  ;;  %v3935_v19 = vmax.f32 %v3317_v13, %v3934_v14  ;;  %v3295_v62 = vld [vmem:[%s13891_s21 + $0x290] sm:$0xff]  ;;  %v3887_v8 = vmax.f32 %v3293_v36, %v3886_v0  ;;  %v3324_v12 = vld [vmem:[%s13891_s21 + $0x378] sm:$0xff]  ;;  %v3481_v13 = vld [vmem:[%s13891_s21 + $0x860] sm:$0xff]  ;;  %v4262_v14 = vsel %vm3725_vm1, %v3482_v11, -inf }
 0x1b1   : > { %v3891_v7 = vmax.f32 %v3295_v62, %v3890_v63  ;;  %v4263_v22 = vmax.f32 %v3481_v13, %v4262_v14  ;;  %v3260_v0 = vld [vmem:[%s13891_s21 + $0x178] sm:$0xff]  ;;  %v3259_v13 = vld [vmem:[%s13891_s21 + $0x170] sm:$0xff] }
 0x1b2   : > { %v3818_v14 = vsel %vm3725_vm1, %v3260_v0, -inf }
 0x1b5   : > { %4252 = vmax.xlane.f32.xlu1 %v4251_v28  ;;  %4248 = vmax.xlane.f32.xlu0 %v4247_v29 }
 0x1b7   : > { %2513 = vxpose.xlu2.b32.cont [3/4] (short) (narrow) %v1957_v35, 32  ;;  %v3547_v35 = vld [vmem:[%s13891_s21 + $0xa70] sm:$0xff] }
 0x1b8   : > { %v14491_v41 = vpop.xlane.xlu1 %3760  ;;  %v14493_v42 = vpop.xlane.xlu0 %3756 }
 0x1bd   : > { %4440 = vmax.xlane.f32.xlu1 %v4439_v43  ;;  %4388 = vmax.xlane.f32.xlu0 %v4387_v46  ;;  %v4395_v43 = vmax.f32 %v3547_v35, %v4394_v37  ;;  %v4391_v46 = vmax.f32 %v3545_v25, %v4390_v38  ;;  %v4319_v38 = vmax.f32 %v3509_v33, %v4318_v34  ;;  %v3300_v33 = vld [vmem:[%s13891_s21 + $0x2b8] sm:$0xff] }
 0x1bf   : > { %2514 = vxpose.xlu2.b32.end [4/4] (short) (narrow) %v1958_v50, 32  ;;  %v3806_v50 = vsel %vm3725_vm1, %v3254_v48, -inf  ;;  %v3552_v48 = vld [vmem:[%s13891_s21 + $0xa98] sm:$0xff] }
 0x1c0   : > { %v14508_v55 = vpop.xlane.xlu1 %3768  ;;  %v14510_v56 = vpop.xlane.xlu0 %3764 }
 0x1c5   : > { %4308 = vmax.xlane.f32.xlu1 %v4307_v57  ;;  %4304 = vmax.xlane.f32.xlu0 %v4303_v58  ;;  %v3807_v57 = vmax.f32 %v3253_v21, %v3806_v50  ;;  %v4451_v58 = vmax.f32 %v3575_v51, %v4450_v52  ;;  %v3577_v51 = vld [vmem:[%s13891_s21 + $0xb60] sm:$0xff] }
 0x1c8   : > { %v14518_v2 = vpop.xlane.xlu1 %3776  ;;  %v14520_v3 = vpop.xlane.xlu0 %3772 }
 0x1cd   : > { %3880 = vmax.xlane.f32.xlu1 %v3879_v4  ;;  %3804 = vmax.xlane.f32.xlu0 %v3803_v5 }
 0x1d0   : > { %v14528_v15 = vpop.xlane.xlu1 %3784  ;;  %v14530_v16 = vpop.xlane.xlu0 %3780 }
 0x1d5   : > { %3940 = vmax.xlane.f32.xlu1 %v3939_v18  ;;  %3936 = vmax.xlane.f32.xlu0 %v3935_v19  ;;  %v3323_v18 = vld [vmem:[%s13891_s21 + $0x370] sm:$0xff]  ;;  %v3946_v19 = vsel %vm3725_vm1, %v3324_v12, -inf }
 0x1d6   : > { %v3947_v39 = vmax.f32 %v3323_v18, %v3946_v19  ;;  %v3257_v18 = vld [vmem:[%s13891_s21 + $0x160] sm:$0xff] }
 0x1d8   : > { %v14538_v28 = vpop.xlane.xlu1 %3792  ;;  %v14540_v29 = vpop.xlane.xlu0 %3788 }
 0x1dd   : > { %4312 = vmax.xlane.f32.xlu1 %v4311_v31  ;;  %4260 = vmax.xlane.f32.xlu0 %v4259_v32  ;;  %v3511_v31 = vld [vmem:[%s13891_s21 + $0x950] sm:$0xff]  ;;  %v4322_v32 = vsel %vm3725_vm1, %v3512_v23, -inf  ;;  %v3819_v23 = vmax.f32 %v3259_v13, %v3818_v14  ;;  %v3488_v13 = vld [vmem:[%s13891_s21 + $0x898] sm:$0xff]  ;;  %v3486_v14 = vld [vmem:[%s13891_s21 + $0x888] sm:$0xff] }
 0x1de   : > { %v4323_v25 = vmax.f32 %v3511_v31, %v4322_v32  ;;  %v3326_v32 = vld [vmem:[%s13891_s21 + $0x388] sm:$0xff] }
 0x1e0   : > { %v14548_v40 = vpop.xlane.xlu1 %3856  ;;  %v14550_v9 = vpop.xlane.xlu0 %3796 }
 0x1e5   : > { %4396 = vmax.xlane.f32.xlu1 %v4395_v43  ;;  %4392 = vmax.xlane.f32.xlu0 %v4391_v46  ;;  %v3578_v46 = vld [vmem:[%s13891_s21 + $0xb68] sm:$0xff] }
 0x1e6   : > { %v4454_v52 = vsel %vm3725_vm1, %v3578_v46, -inf  ;;  %v3325_v46 = vld [vmem:[%s13891_s21 + $0x380] sm:$0xff] }
 0x1e7   : > { %v4455_v62 = vmax.f32 %v3577_v51, %v4454_v52  ;;  %v3299_v51 = vld [vmem:[%s13891_s21 + $0x2b0] sm:$0xff]  ;;  %v3898_v52 = vsel %vm3725_vm1, %v3300_v33, -inf  ;;  %v3485_v33 = vld [vmem:[%s13891_s21 + $0x880] sm:$0xff] }
 0x1e8   : > { %v14558_v53 = vpop.xlane.xlu1 %4368  ;;  %v14560_v54 = vpop.xlane.xlu0 %3860  ;;  %v3899_v0 = vmax.f32 %v3299_v51, %v3898_v52 }
 0x1ed   : > { %3808 = vmax.xlane.f32.xlu1 %v3807_v57  ;;  %4452 = vmax.xlane.f32.xlu0 %v4451_v58  ;;  %v3551_v57 = vld [vmem:[%s13891_s21 + $0xa90] sm:$0xff]  ;;  %v4402_v58 = vsel %vm3725_vm1, %v3552_v48, -inf  ;;  %v3950_v48 = vsel %vm3725_vm1, %v3326_v32, -inf  ;;  %v4274_v32 = vsel %vm3725_vm1, %v3488_v13, -inf  ;;  %v3249_v13 = vld [vmem:[%s13891_s21 + $0x120] sm:$0xff] }
 0x1ee   : > { %v4403_v63 = vmax.f32 %v3551_v57, %v4402_v58 }
 0x1f0   : > { %v14568_v4 = vpop.xlane.xlu1 %3864  ;;  %v14570_v5 = vpop.xlane.xlu0 %4372 }
 0x1f2   : > { %v14592_v43 = vpop.f32.mrf.mxu2 }
 0x1f5   : > { %3892 = vmax.xlane.f32.xlu1 %v3891_v7  ;;  %3888 = vmax.xlane.f32.xlu0 %v3887_v8  ;;  %v3258_v7 = vld [vmem:[%s13891_s21 + $0x168] sm:$0xff] }
 0x1f6   : > { %v14600_v50 = vpop.f32.mrf.mxu3  ;;  %v3814_v19 = vsel %vm3725_vm1, %v3258_v7, -inf }
 0x1f7   : > { %v14596_v49 = vpop.f32.mrf.mxu0  ;;  %v3815_v24 = vmax.f32 %v3257_v18, %v3814_v19 }
 0x1f8   : > { %v14578_v20 = vpop.xlane.xlu1 %4376  ;;  %v14580_v10 = vpop.xlane.xlu0 %3868 }
 0x1f9   : > { %v14598_v21 = vpop.f32.mrf.mxu1 }
 0x1fa   : > { %v2408_v36 = vpop.f32.mrf.mxu2 }
 0x1fd   : > { %4264 = vmax.xlane.f32.xlu1 %v4263_v22  ;;  %3948 = vmax.xlane.f32.xlu0 %v3947_v39 }
 0x1fe   : > { %v2427_v12 = vpop.f32.mrf.mxu3 }
 0x1ff   : > { %v2370_v8 = vpop.f32.mrf.mxu0 }
 0x200   : > { %v14588_v35 = vpop.xlane.xlu1 %3920  ;;  %v14590_v37 = vpop.xlane.xlu0 %4380 }
 0x201   : > { %v2389_v11 = vpop.f32.mrf.mxu1 }
 0x202   : > { %v2411_v31 = vpop.f32.mrf.mxu2 }
 0x205   : > { %4324 = vmax.xlane.f32.xlu1 %v4323_v25  ;;  %4320 = vmax.xlane.f32.xlu0 %v4319_v38 }
 0x206   : > { %v2430_v38 = vpop.f32.mrf.mxu3 }
 0x207   : > { %v2373_v34 = vpop.f32.mrf.mxu0 }
 0x208   : > { %v14606_v59 = vpop.xlane.xlu1 %4240  ;;  %v14608_v61 = vpop.xlane.xlu0 %3924 }
 0x209   : > { %v2392_v25 = vpop.f32.mrf.mxu1 }
 0x20a   : > { %v2413_v7 = vpop.f32.mrf.mxu2 }
 0x20b   : > { %2625 = vmatpush.msra.mxu2 %v2413_v7 }
 0x20d   : > { %4456 = vmax.xlane.f32.xlu1 %v4455_v62  ;;  %4404 = vmax.xlane.f32.xlu0 %v4403_v63  ;;  %v14630_v62 = vpop.xlane.xlu2 %3752  ;;  %v3951_v63 = vmax.f32 %v3325_v46, %v3950_v48 }
 0x20e   : > { %2626 = vmatpush.msra.mxu2 %v2411_v31  ;;  %v3516_v31 = vld [vmem:[%s13891_s21 + $0x978] sm:$0xff] }
 0x20f   : > { %v2375_v18 = vpop.f32.mrf.mxu0 }
 0x210   : > { %v14616_v22 = vpop.xlane.xlu1 %4432  ;;  %v14618_v39 = vpop.xlane.xlu0 %4244  ;;  %2567 = vmatpush.msra.mxu0 %v2375_v18  ;;  %2627 = vmatpush.msra.mxu2 %v2408_v36 }
 0x211   : > { %18476 = vst [vmem:[#allocation9_spill] sm:$0xff] %v14616_v22  ;;  %v2394_v19 = vpop.f32.mrf.mxu1 }
 0x212   : > { %18477 = vst [vmem:[#allocation10_spill] sm:$0xff] %v14618_v39  ;;  %2596 = vmatpush.msra.mxu1 %v2394_v19  ;;  %2568 = vmatpush.msra.mxu0 %v2373_v34  ;;  %v3584_v19 = vld [vmem:[%s13891_s21 + $0xb98] sm:$0xff] }
 0x213   : > { %2628 = vmatpush.msra.mxu2 %v14592_v43 }
 0x214   : > { %2597 = vmatpush.msra.mxu1 %v2392_v25  ;;  %2569 = vmatpush.msra.mxu0 %v2370_v8  ;;  %v14653_v8 = vpop.f32.mrf.mxu2  ;;  %v4330_v25 = vsel %vm3725_vm1, %v3516_v31, -inf }
 0x215   : > { %3820 = vmax.xlane.f32.xlu1 %v3819_v23  ;;  %3816 = vmax.xlane.f32.xlu0 %v3815_v24  ;;  %v2432_v23 = vpop.f32.mrf.mxu3  ;;  %v3487_v24 = vld [vmem:[%s13891_s21 + $0x890] sm:$0xff] }
 0x216   : > { %2654 = vmatpush.msra.mxu3 %v2432_v23  ;;  %v4275_v51 = vmax.f32 %v3487_v24, %v4274_v32  ;;  %2598 = vmatpush.msra.mxu1 %v2389_v11  ;;  %v3582_v23 = vld [vmem:[%s13891_s21 + $0xb88] sm:$0xff] }
 0x217   : > { %2570 = vmatpush.msra.mxu0 %v14596_v49  ;;  %v3250_v49 = vld [vmem:[%s13891_s21 + $0x128] sm:$0xff] }
 0x218   : > { %v14626_v57 = vpop.xlane.xlu1 %3872  ;;  %v14628_v58 = vpop.xlane.xlu0 %4436  ;;  %2655 = vmatpush.msra.mxu3 %v2430_v38  ;;  %2599 = vmatpush.msra.mxu1 %v14598_v21  ;;  %v3515_v21 = vld [vmem:[%s13891_s21 + $0x970] sm:$0xff] }
 0x219   : > { %18478 = vst [vmem:[#allocation11_spill] sm:$0xff] %v14626_v57  ;;  %v14649_v34 = vpop.f32.mrf.mxu0  ;;  %v4331_v18 = vmax.f32 %v3515_v21, %v4330_v25  ;;  %v3330_v57 = vld [vmem:[%s13891_s21 + $0x3a8] sm:$0xff] }
 0x21a   : > { %18479 = vst [vmem:[#allocation12_spill] sm:$0xff] %v14628_v58  ;;  %v4270_v58 = vsel %vm3725_vm1, %v3486_v14, -inf  ;;  %2656 = vmatpush.msra.mxu3 %v2427_v12  ;;  %v3553_v12 = vld [vmem:[%s13891_s21 + $0xaa0] sm:$0xff]  ;;  %v3798_v14 = vsel %vm3725_vm1, %v3250_v49, -inf  ;;  %v4462_v49 = vsel %vm3725_vm1, %v3582_v23, -inf }
 0x21b   : > { %v4271_v52 = vmax.f32 %v3485_v33, %v4270_v58  ;;  %v14651_v36 = vpop.f32.mrf.mxu1  ;;  %v3799_v32 = vmax.f32 %v3249_v13, %v3798_v14  ;;  %v3291_v13 = vld [vmem:[%s13891_s21 + $0x270] sm:$0xff] }
 0x21c   : > { %2657 = vmatpush.msra.mxu3 %v14600_v50  ;;  %v14675_v33 = vpop.f32.mrf.mxu2 }
 0x21d   : > { %3952 = vmax.xlane.f32.xlu1 %v3951_v63  ;;  %3900 = vmax.xlane.f32.xlu0 %v3899_v0  ;;  %v14642_v63 = vpop.xlane.xlu2 %3932  ;;  %v3554_v0 = vld [vmem:[%s13891_s21 + $0xaa8] sm:$0xff]  ;;  %v14655_v11 = vpop.f32.mrf.mxu3 }
 0x21e   : > { %18482 = vst [vmem:[#allocation15_spill] sm:$0xff] %v14642_v63  ;;  %v4406_v43 = vsel %vm3725_vm1, %v3554_v0, -inf  ;;  %v4466_v0 = vsel %vm3725_vm1, %v3584_v19, -inf  ;;  %v3302_v19 = vld [vmem:[%s13891_s21 + $0x2c8] sm:$0xff] }
 0x21f   : > { %v4407_v7 = vmax.f32 %v3553_v12, %v4406_v43  ;;  %v3292_v12 = vld [vmem:[%s13891_s21 + $0x278] sm:$0xff]  ;;  %v3581_v43 = vld [vmem:[%s13891_s21 + $0xb80] sm:$0xff] }
 0x220   : > { %v14638_v46 = vpop.xlane.xlu1 %3928  ;;  %v14640_v48 = vpop.xlane.xlu0 %3876  ;;  %v3882_v14 = vsel %vm3725_vm1, %v3292_v12, -inf }
 0x221   : > { %18480 = vst [vmem:[#allocation13_spill] sm:$0xff] %v14638_v46  ;;  %v14671_v24 = vpop.f32.mrf.mxu0  ;;  %v3883_v22 = vmax.f32 %v3291_v13, %v3882_v14  ;;  %v3477_v13 = vld [vmem:[%s13891_s21 + $0x840] sm:$0xff] }
 0x222   : > { %18481 = vst [vmem:[#allocation14_spill] sm:$0xff] %v14640_v48 }
 0x223   : > { %v14673_v50 = vpop.f32.mrf.mxu1 }
 0x224   : > { %v2487_v23 = vpop.f32.mrf.mxu2 }
 0x225   : > { %4276 = vmax.xlane.f32.xlu1 %v4275_v51  ;;  %4272 = vmax.xlane.f32.xlu0 %v4271_v52  ;;  %v14677_v51 = vpop.f32.mrf.mxu3  ;;  %v3583_v52 = vld [vmem:[%s13891_s21 + $0xb90] sm:$0xff]  ;;  %v14681_v31 = vpop.xlane.xlu2 %4384 }
 0x226   : > { %18485 = vst [vmem:[#allocation18_spill] sm:$0xff] %v14681_v31 }
 0x228   : > { %v14663_v38 = vpop.xlane.xlu1 %4252  ;;  %v14665_v58 = vpop.xlane.xlu0 %4248 }
 0x229   : > { %18483 = vst [vmem:[#allocation16_spill] sm:$0xff] %v14663_v38  ;;  %v3264_v38 = vld [vmem:[%s13891_s21 + $0x198] sm:$0xff]  ;;  %v2449_v31 = vpop.f32.mrf.mxu0 }
 0x22a   : > { %18484 = vst [vmem:[#allocation17_spill] sm:$0xff] %v14665_v58  ;;  %v3826_v12 = vsel %vm3725_vm1, %v3264_v38, -inf }
 0x22b   : > { %v2468_v58 = vpop.f32.mrf.mxu1 }
 0x22d   : > { %4408 = vmax.xlane.f32.xlu1 %v4407_v7  ;;  %4332 = vmax.xlane.f32.xlu0 %v4331_v18  ;;  %v4467_v7 = vmax.f32 %v3583_v52, %v4466_v0  ;;  %v4463_v18 = vmax.f32 %v3581_v43, %v4462_v49  ;;  %v3902_v52 = vsel %vm3725_vm1, %v3302_v19, -inf  ;;  %v3478_v0 = vld [vmem:[%s13891_s21 + $0x848] sm:$0xff]  ;;  %v14703_v48 = vpop.xlane.xlu2 %4444  ;;  %v3332_v19 = vld [vmem:[%s13891_s21 + $0x3b8] sm:$0xff] }
 0x22e   : > { %18490 = vst [vmem:[#allocation23_spill] sm:$0xff] %v14703_v48  ;;  %v4254_v14 = vsel %vm3725_vm1, %v3478_v0, -inf  ;;  %v3958_v0 = vsel %vm3725_vm1, %v3330_v57, -inf }
 0x22f   : > { %v4255_v38 = vmax.f32 %v3477_v13, %v4254_v14  ;;  %v3574_v13 = vld [vmem:[%s13891_s21 + $0xb48] sm:$0xff]  ;;  %v3491_v14 = vld [vmem:[%s13891_s21 + $0x8b0] sm:$0xff] }
 0x230   : > { %v14686_v21 = vpop.xlane.xlu1 %4440  ;;  %v14688_v25 = vpop.xlane.xlu0 %4388  ;;  %3800 = vmax.xlane.f32.xlu2 %v3799_v32  ;;  %v3301_v32 = vld [vmem:[%s13891_s21 + $0x2c0] sm:$0xff] }
 0x231   : > { %18486 = vst [vmem:[#allocation19_spill] sm:$0xff] %v14686_v21  ;;  %v2506_v21 = vpop.f32.mrf.mxu3  ;;  %v2451_v63 = vpop.f32.mrf.mxu0 }
 0x232   : > { %18487 = vst [vmem:[#allocation20_spill] sm:$0xff] %v14688_v25  ;;  %v3263_v25 = vld [vmem:[%s13891_s21 + $0x190] sm:$0xff]  ;;  %2683 = vmatpush.msrb.mxu0 %v2451_v63 }
 0x233   : > { %v2470_v46 = vpop.f32.mrf.mxu1 }
 0x234   : > { %2712 = vmatpush.msrb.mxu1 %v2470_v46  ;;  %2684 = vmatpush.msrb.mxu0 %v2449_v31  ;;  %v3492_v31 = vld [vmem:[%s13891_s21 + $0x8b8] sm:$0xff] }
 0x235   : > { %4468 = vmax.xlane.f32.xlu1 %v4467_v7  ;;  %4464 = vmax.xlane.f32.xlu0 %v4463_v18  ;;  %v3903_v7 = vmax.f32 %v3301_v32, %v3902_v52  ;;  %v3827_v18 = vmax.f32 %v3263_v25, %v3826_v12  ;;  %v3508_v32 = vld [vmem:[%s13891_s21 + $0x938] sm:$0xff]  ;;  %v3329_v52 = vld [vmem:[%s13891_s21 + $0x3a0] sm:$0xff] }
 0x236   : > { %2713 = vmatpush.msrb.mxu1 %v2468_v58  ;;  %v4314_v57 = vsel %vm3725_vm1, %v3508_v32, -inf  ;;  %v3959_v46 = vmax.f32 %v3329_v52, %v3958_v0  ;;  %v3518_v58 = vld [vmem:[%s13891_s21 + $0x988] sm:$0xff]  ;;  %2685 = vmatpush.msrb.mxu0 %v14671_v24  ;;  %v3256_v32 = vld [vmem:[%s13891_s21 + $0x158] sm:$0xff]  ;;  %v3557_v52 = vld [vmem:[%s13891_s21 + $0xac0] sm:$0xff] }
 0x238   : > { %v14699_v43 = vpop.xlane.xlu1 %4308  ;;  %v14701_v49 = vpop.xlane.xlu0 %4304  ;;  %3884 = vmax.xlane.f32.xlu2 %v3883_v22  ;;  %v3962_v22 = vsel %vm3725_vm1, %v3332_v19, -inf  ;;  %2714 = vmatpush.msrb.mxu1 %v14673_v50  ;;  %v3558_v19 = vld [vmem:[%s13891_s21 + $0xac8] sm:$0xff] }
 0x239   : > { %18488 = vst [vmem:[#allocation21_spill] sm:$0xff] %v14699_v43  ;;  %v2489_v43 = vpop.f32.mrf.mxu2  ;;  %v2508_v39 = vpop.f32.mrf.mxu3  ;;  %2686 = vmatpush.msrb.mxu0 %v14649_v34  ;;  %v3573_v34 = vld [vmem:[%s13891_s21 + $0xb40] sm:$0xff]  ;;  %v4414_v0 = vsel %vm3725_vm1, %v3558_v19, -inf }
 0x23a   : > { %18489 = vst [vmem:[#allocation22_spill] sm:$0xff] %v14701_v49  ;;  %v3331_v49 = vld [vmem:[%s13891_s21 + $0x3b0] sm:$0xff]  ;;  %2741 = vmatpush.msrb.mxu2 %v2489_v43  ;;  %2770 = vmatpush.msrb.mxu3 %v2508_v39  ;;  %v3517_v43 = vld [vmem:[%s13891_s21 + $0x980] sm:$0xff] }
 0x23b   : > { %v3507_v39 = vld [vmem:[%s13891_s21 + $0x930] sm:$0xff]  ;;  %2715 = vmatpush.msrb.mxu1 %v14651_v36  ;;  %v4446_v36 = vsel %vm3725_vm1, %v3574_v13, -inf }
 0x23c   : > { %2742 = vmatpush.msrb.mxu2 %v2487_v23  ;;  %2771 = vmatpush.msrb.mxu3 %v2506_v21  ;;  %v4315_v23 = vmax.f32 %v3507_v39, %v4314_v57 }
 0x23d   : > { %3904 = vmax.xlane.f32.xlu1 %v3903_v7  ;;  %3828 = vmax.xlane.f32.xlu0 %v3827_v18  ;;  %v3963_v7 = vmax.f32 %v3331_v49, %v3962_v22  ;;  %v4334_v49 = vsel %vm3725_vm1, %v3518_v58, -inf  ;;  %v4282_v18 = vsel %vm3725_vm1, %v3492_v31, -inf  ;;  %v3255_v58 = vld [vmem:[%s13891_s21 + $0x150] sm:$0xff]  ;;  %v3810_v31 = vsel %vm3725_vm1, %v3256_v32, -inf }
 0x23e   : > { %2743 = vmatpush.msrb.mxu2 %v14675_v33  ;;  %2772 = vmatpush.msrb.mxu3 %v14677_v51  ;;  %v4335_v21 = vmax.f32 %v3517_v43, %v4334_v49  ;;  %v4283_v51 = vmax.f32 %v3491_v14, %v4282_v18  ;;  %v3266_v43 = vld [vmem:[%s13891_s21 + $0x1a8] sm:$0xff]  ;;  %v3588_v49 = vld [vmem:[%s13891_s21 + $0xbb8] sm:$0xff]  ;;  %v3811_v13 = vmax.f32 %v3255_v58, %v3810_v31  ;;  %v3265_v14 = vld [vmem:[%s13891_s21 + $0x1a0] sm:$0xff] }
 0x23f   : > { %v3830_v18 = vsel %vm3725_vm1, %v3266_v43, -inf  ;;  %v3307_v58 = vld [vmem:[%s13891_s21 + $0x2f0] sm:$0xff]  ;;  %v3305_v43 = vld [vmem:[%s13891_s21 + $0x2e0] sm:$0xff] }
 0x240   : > { %v14714_v25 = vpop.xlane.xlu1 %3880  ;;  %v14716_v12 = vpop.xlane.xlu0 %3804  ;;  %4256 = vmax.xlane.f32.xlu2 %v4255_v38  ;;  %2744 = vmatpush.msrb.mxu2 %v14653_v8  ;;  %v3560_v8 = vld [vmem:[%s13891_s21 + $0xad8] sm:$0xff]  ;;  %v3559_v38 = vld [vmem:[%s13891_s21 + $0xad0] sm:$0xff] }
 0x241   : > { %18491 = vst [vmem:[#allocation24_spill] sm:$0xff] %v14714_v25  ;;  %v14718_v63 = vpop.trf.xlu2  ;;  %2773 = vmatpush.msrb.mxu3 %v14655_v11  ;;  %v4447_v11 = vmax.f32 %v3573_v34, %v4446_v36  ;;  %v4418_v22 = vsel %vm3725_vm1, %v3560_v8, -inf  ;;  %v3587_v34 = vld [vmem:[%s13891_s21 + $0xbb0] sm:$0xff]  ;;  %v4474_v36 = vsel %vm3725_vm1, %v3588_v49, -inf }
 0x242   : > { %18492 = vst [vmem:[#allocation25_spill] sm:$0xff] %v14716_v12  ;;  %10376 = vmatmul.msk.f32.vlgmr.msra.gmra.mxu0 %vm1898_vm0, %v14718_v63  ;;  %10380 = vmatmul.msk.f32.vlgmr.msra.gmra.mxu1 %vm1898_vm0, %v14718_v63  ;;  %v4475_v32 = vmax.f32 %v3587_v34, %v4474_v36 }
 0x243   : > { %10384 = vmatmul.msk.f32.vlgmr.msra.gmra.mxu2 %vm1898_vm0, %v14718_v63  ;;  %10388 = vmatmul.msk.f32.vlgmr.msra.gmra.mxu3 %vm1898_vm0, %v14718_v63 }
 0x245   : > { %3964 = vmax.xlane.f32.xlu1 %v3963_v7  ;;  %3960 = vmax.xlane.f32.xlu0 %v3959_v46  ;;  %v4419_v46 = vmax.f32 %v3559_v38, %v4418_v22  ;;  %v3321_v38 = vld [vmem:[%s13891_s21 + $0x360] sm:$0xff] }
 0x248   : > { %v14742_v24 = vpop.xlane.xlu1 %3940  ;;  %v14744_v50 = vpop.xlane.xlu0 %3936  ;;  %4316 = vmax.xlane.f32.xlu2 %v4315_v23  ;;  %v4415_v23 = vmax.f32 %v3557_v52, %v4414_v0  ;;  %v3308_v52 = vld [vmem:[%s13891_s21 + $0x2f8] sm:$0xff]  ;;  %v3306_v0 = vld [vmem:[%s13891_s21 + $0x2e8] sm:$0xff] }
 0x249   : > { %18493 = vst [vmem:[#allocation26_spill] sm:$0xff] %v14742_v24  ;;  %v14748_v33 = vpop.trf.xlu2  ;;  %v3914_v31 = vsel %vm3725_vm1, %v3308_v52, -inf  ;;  %v3910_v49 = vsel %vm3725_vm1, %v3306_v0, -inf  ;;  %v3550_v0 = vld [vmem:[%s13891_s21 + $0xa88] sm:$0xff] }
 0x24a   : > { %18494 = vst [vmem:[#allocation27_spill] sm:$0xff] %v14744_v50  ;;  %10377 = vmatmul.msk.f32.gmra.mxu0 %vm1898_vm0, %v14748_v33  ;;  %10381 = vmatmul.msk.f32.gmra.mxu1 %vm1898_vm0, %v14748_v33  ;;  %v3911_v36 = vmax.f32 %v3305_v43, %v3910_v49  ;;  %v3549_v49 = vld [vmem:[%s13891_s21 + $0xa80] sm:$0xff] }
 0x24b   : > { %10385 = vmatmul.msk.f32.gmra.mxu2 %vm1898_vm0, %v14748_v33  ;;  %10389 = vmatmul.msk.f32.gmra.mxu3 %vm1898_vm0, %v14748_v33 }
 0x24d   : > { %4336 = vmax.xlane.f32.xlu1 %v4335_v21  ;;  %4284 = vmax.xlane.f32.xlu0 %v4283_v51  ;;  %v3322_v21 = vld [vmem:[%s13891_s21 + $0x368] sm:$0xff] }
 0x24e   : > { %v3942_v22 = vsel %vm3725_vm1, %v3322_v21, -inf  ;;  %v3483_v21 = vld [vmem:[%s13891_s21 + $0x870] sm:$0xff] }
 0x250   : > { %v14768_v7 = vpop.xlane.xlu1 %4312  ;;  %v14770_v39 = vpop.xlane.xlu0 %4260  ;;  %4448 = vmax.xlane.f32.xlu2 %v4447_v11  ;;  %v3831_v11 = vmax.f32 %v3265_v14, %v3830_v18  ;;  %v3915_v18 = vmax.f32 %v3307_v58, %v3914_v31 }
 0x251   : > { %18495 = vst [vmem:[#allocation28_spill] sm:$0xff] %v14768_v7  ;;  %v14772_v57 = vpop.trf.xlu2 }
 0x252   : > { %18496 = vst [vmem:[#allocation29_spill] sm:$0xff] %v14770_v39  ;;  %10378 = vmatmul.msk.f32.gmra.mxu0 %vm1898_vm0, %v14772_v57  ;;  %10382 = vmatmul.msk.f32.gmra.mxu1 %vm1898_vm0, %v14772_v57 }
 0x253   : > { %10386 = vmatmul.msk.f32.gmra.mxu2 %vm1898_vm0, %v14772_v57  ;;  %10390 = vmatmul.msk.f32.gmra.mxu3 %vm1898_vm0, %v14772_v57 }
 0x255   : > { %4420 = vmax.xlane.f32.xlu1 %v4419_v46  ;;  %4416 = vmax.xlane.f32.xlu0 %v4415_v23  ;;  %v3943_v46 = vmax.f32 %v3321_v38, %v3942_v22  ;;  %v3484_v23 = vld [vmem:[%s13891_s21 + $0x878] sm:$0xff] }
 0x256   : > { %v4266_v34 = vsel %vm3725_vm1, %v3484_v23, -inf  ;;  %v3336_v38 = vld [vmem:[%s13891_s21 + $0x3d8] sm:$0xff] }
 0x257   : > { %v4267_v22 = vmax.f32 %v3483_v21, %v4266_v34  ;;  %v3970_v58 = vsel %vm3725_vm1, %v3336_v38, -inf  ;;  %v3524_v34 = vld [vmem:[%s13891_s21 + $0x9b8] sm:$0xff]  ;;  %v3523_v38 = vld [vmem:[%s13891_s21 + $0x9b0] sm:$0xff] }
 0x258   : > { %v14791_v51 = vpop.xlane.xlu1 %4396  ;;  %v14793_v8 = vpop.xlane.xlu0 %4392  ;;  %3812 = vmax.xlane.f32.xlu2 %v3811_v13 }
 0x259   : > { %18497 = vst [vmem:[#allocation30_spill] sm:$0xff] %v14791_v51  ;;  %v14795_v19 = vpop.trf.xlu2 }
 0x25a   : > { %18498 = vst [vmem:[#allocation31_spill] sm:$0xff] %v14793_v8  ;;  %10379 = vmatmul.msk.f32.gmra.mxu0 %vm1898_vm0, %v14795_v19  ;;  %10383 = vmatmul.msk.f32.gmra.mxu1 %vm1898_vm0, %v14795_v19 }
 0x25b   : > { %10387 = vmatmul.msk.f32.gmra.mxu2 %vm1898_vm0, %v14795_v19  ;;  %10391 = vmatmul.msk.f32.gmra.mxu3 %vm1898_vm0, %v14795_v19 }
 0x25d   : > { %3832 = vmax.xlane.f32.xlu1 %v3831_v11  ;;  %4476 = vmax.xlane.f32.xlu0 %v4475_v32  ;;  %v3494_v11 = vld [vmem:[%s13891_s21 + $0x8c8] sm:$0xff]  ;;  %v3493_v32 = vld [vmem:[%s13891_s21 + $0x8c0] sm:$0xff] }
 0x25e   : > { %v4286_v52 = vsel %vm3725_vm1, %v3494_v11, -inf }
 0x25f   : > { %v4287_v43 = vmax.f32 %v3493_v32, %v4286_v52  ;;  %v3580_v32 = vld [vmem:[%s13891_s21 + $0xb78] sm:$0xff]  ;;  %v3521_v52 = vld [vmem:[%s13891_s21 + $0x9a0] sm:$0xff] }
 0x260   : > { %v14814_v13 = vpop.xlane.xlu1 %3808  ;;  %v14816_v14 = vpop.xlane.xlu0 %4452  ;;  %3944 = vmax.xlane.f32.xlu2 %v3943_v46  ;;  %v3335_v46 = vld [vmem:[%s13891_s21 + $0x3d0] sm:$0xff] }
 0x261   : > { %18499 = vst [vmem:[#allocation32_spill] sm:$0xff] %v14814_v13  ;;  %v3971_v21 = vmax.f32 %v3335_v46, %v3970_v58 }
 0x262   : > { %18500 = vst [vmem:[#allocation33_spill] sm:$0xff] %v14816_v14  ;;  %10392 = vmatmul.msk.f32.vlgmr.msrb.gmra.mxu0 %vm1898_vm0, %v14718_v63  ;;  %10396 = vmatmul.msk.f32.vlgmr.msrb.gmra.mxu1 %vm1898_vm0, %v14718_v63 }
 0x263   : > { %10400 = vmatmul.msk.f32.vlgmr.msrb.gmra.mxu2 %vm1898_vm0, %v14718_v63  ;;  %10404 = vmatmul.msk.f32.vlgmr.msrb.gmra.mxu3 %vm1898_vm0, %v14718_v63 }
 0x265   : > { %3916 = vmax.xlane.f32.xlu1 %v3915_v18  ;;  %3912 = vmax.xlane.f32.xlu0 %v3911_v36  ;;  %v4398_v18 = vsel %vm3725_vm1, %v3550_v0, -inf  ;;  %v3522_v36 = vld [vmem:[%s13891_s21 + $0x9a8] sm:$0xff] }
 0x266   : > { %v4399_v11 = vmax.f32 %v3549_v49, %v4398_v18  ;;  %v4342_v0 = vsel %vm3725_vm1, %v3522_v36, -inf  ;;  %v4458_v49 = vsel %vm3725_vm1, %v3580_v32, -inf  ;;  %v3563_v32 = vld [vmem:[%s13891_s21 + $0xaf0] sm:$0xff] }
 0x267   : > { %v4343_v18 = vmax.f32 %v3521_v52, %v4342_v0 }
 0x268   : > { %v14835_v31 = vpop.xlane.xlu1 %3892  ;;  %v14837_v23 = vpop.xlane.xlu0 %3888  ;;  %4268 = vmax.xlane.f32.xlu2 %v4267_v22  ;;  %v4346_v22 = vsel %vm3725_vm1, %v3524_v34, -inf  ;;  %v3564_v34 = vld [vmem:[%s13891_s21 + $0xaf8] sm:$0xff] }
 0x269   : > { %18501 = vst [vmem:[#allocation34_spill] sm:$0xff] %v14835_v31  ;;  %v4347_v14 = vmax.f32 %v3523_v38, %v4346_v22  ;;  %v3298_v22 = vld [vmem:[%s13891_s21 + $0x2a8] sm:$0xff]  ;;  %v4426_v52 = vsel %vm3725_vm1, %v3564_v34, -inf }
 0x26a   : > { %18502 = vst [vmem:[#allocation35_spill] sm:$0xff] %v14837_v23  ;;  %10393 = vmatmul.msk.f32.gmra.mxu0 %vm1898_vm0, %v14748_v33  ;;  %10397 = vmatmul.msk.f32.gmra.mxu1 %vm1898_vm0, %v14748_v33 }
 0x26b   : > { %10401 = vmatmul.msk.f32.gmra.mxu2 %vm1898_vm0, %v14748_v33  ;;  %10405 = vmatmul.msk.f32.gmra.mxu3 %vm1898_vm0, %v14748_v33 }
 0x26d   : > { %4288 = vmax.xlane.f32.xlu1 %v4287_v43  ;;  %3972 = vmax.xlane.f32.xlu0 %v3971_v21  ;;  %v3579_v43 = vld [vmem:[%s13891_s21 + $0xb70] sm:$0xff]  ;;  %v3590_v21 = vld [vmem:[%s13891_s21 + $0xbc8] sm:$0xff] }
 0x26e   : > { %v4459_v36 = vmax.f32 %v3579_v43, %v4458_v49  ;;  %v4478_v38 = vsel %vm3725_vm1, %v3590_v21, -inf  ;;  %v3894_v43 = vsel %vm3725_vm1, %v3298_v22, -inf  ;;  %v4427_v49 = vmax.f32 %v3563_v32, %v4426_v52  ;;  %v3270_v21 = vld [vmem:[%s13891_s21 + $0x1c8] sm:$0xff]  ;;  %v3269_v22 = vld [vmem:[%s13891_s21 + $0x1c0] sm:$0xff] }
 0x26f   : > { %v3838_v32 = vsel %vm3725_vm1, %v3270_v21, -inf  ;;  %v3497_v21 = vld [vmem:[%s13891_s21 + $0x8e0] sm:$0xff] }
 0x270   : > { %v14856_v46 = vpop.xlane.xlu1 %4264  ;;  %v14858_v58 = vpop.xlane.xlu0 %3948  ;;  %4400 = vmax.xlane.f32.xlu2 %v4399_v11  ;;  %v3589_v11 = vld [vmem:[%s13891_s21 + $0xbc0] sm:$0xff] }
 0x271   : > { %18503 = vst [vmem:[#allocation36_spill] sm:$0xff] %v14856_v46 }
 0x272   : > { %18504 = vst [vmem:[#allocation37_spill] sm:$0xff] %v14858_v58  ;;  %10394 = vmatmul.msk.f32.gmra.mxu0 %vm1898_vm0, %v14772_v57  ;;  %10398 = vmatmul.msk.f32.gmra.mxu1 %vm1898_vm0, %v14772_v57  ;;  %v4479_v58 = vmax.f32 %v3589_v11, %v4478_v38  ;;  %v3328_v38 = vld [vmem:[%s13891_s21 + $0x398] sm:$0xff] }
 0x273   : > { %10402 = vmatmul.msk.f32.gmra.mxu2 %vm1898_vm0, %v14772_v57  ;;  %10406 = vmatmul.msk.f32.gmra.mxu3 %vm1898_vm0, %v14772_v57 }
 0x275   : > { %4348 = vmax.xlane.f32.xlu1 %v4347_v14  ;;  %4344 = vmax.xlane.f32.xlu0 %v4343_v18  ;;  %v3297_v14 = vld [vmem:[%s13891_s21 + $0x2a0] sm:$0xff]  ;;  %v3272_v18 = vld [vmem:[%s13891_s21 + $0x1d8] sm:$0xff] }
 0x276   : > { %v3895_v34 = vmax.f32 %v3297_v14, %v3894_v43  ;;  %v3842_v11 = vsel %vm3725_vm1, %v3272_v18, -inf  ;;  %v3327_v14 = vld [vmem:[%s13891_s21 + $0x390] sm:$0xff]  ;;  %v3839_v43 = vmax.f32 %v3269_v22, %v3838_v32  ;;  %v3340_v18 = vld [vmem:[%s13891_s21 + $0x3f8] sm:$0xff]  ;;  %v3513_v22 = vld [vmem:[%s13891_s21 + $0x960] sm:$0xff] }
 0x278   : > { %v14877_v0 = vpop.xlane.xlu1 %4324  ;;  %v14879_v46 = vpop.xlane.xlu0 %4320  ;;  %4460 = vmax.xlane.f32.xlu2 %v4459_v36  ;;  %v3271_v36 = vld [vmem:[%s13891_s21 + $0x1d0] sm:$0xff] }
 0x279   : > { %18505 = vst [vmem:[#allocation38_spill] sm:$0xff] %v14877_v0  ;;  %v3843_v13 = vmax.f32 %v3271_v36, %v3842_v11 }
 0x27a   : > { %18506 = vst [vmem:[#allocation39_spill] sm:$0xff] %v14879_v46  ;;  %10395 = vmatmul.msk.f32.gmra.mxu0 %vm1898_vm0, %v14795_v19  ;;  %10399 = vmatmul.msk.f32.gmra.mxu1 %vm1898_vm0, %v14795_v19 }
 0x27b   : > { %10403 = vmatmul.msk.f32.gmra.mxu2 %vm1898_vm0, %v14795_v19  ;;  %10407 = vmatmul.msk.f32.gmra.mxu3 %vm1898_vm0, %v14795_v19 }
 0x27d   : > { %4480 = vmax.xlane.f32.xlu1 %v4479_v58  ;;  %4428 = vmax.xlane.f32.xlu0 %v4427_v49  ;;  %v3954_v58 = vsel %vm3725_vm1, %v3328_v38, -inf  ;;  %v3498_v49 = vld [vmem:[%s13891_s21 + $0x8e8] sm:$0xff] }
 0x27e   : > { %v3955_v7 = vmax.f32 %v3327_v14, %v3954_v58  ;;  %v4294_v12 = vsel %vm3725_vm1, %v3498_v49, -inf  ;;  %v3528_v14 = vld [vmem:[%s13891_s21 + $0x9d8] sm:$0xff]  ;;  %v3526_v58 = vld [vmem:[%s13891_s21 + $0x9c8] sm:$0xff]  ;;  %v3527_v49 = vld [vmem:[%s13891_s21 + $0x9d0] sm:$0xff] }
 0x27f   : > { %v4295_v38 = vmax.f32 %v3497_v21, %v4294_v12  ;;  %v4350_v12 = vsel %vm3725_vm1, %v3526_v58, -inf  ;;  %v3555_v21 = vld [vmem:[%s13891_s21 + $0xab0] sm:$0xff] }
 0x280   : > { %v14898_v52 = vpop.xlane.xlu1 %4456  ;;  %v14900_v39 = vpop.xlane.xlu0 %4404  ;;  %3896 = vmax.xlane.f32.xlu2 %v3895_v34  ;;  %v3978_v34 = vsel %vm3725_vm1, %v3340_v18, -inf  ;;  %v4354_v18 = vsel %vm3725_vm1, %v3528_v14, -inf  ;;  %v3405_v14 = vld [vmem:[%s13891_s21 + $0x600] sm:$0xff] }
 0x281   : > { %18507 = vst [vmem:[#allocation40_spill] sm:$0xff] %v14898_v52  ;;  %v3514_v52 = vld [vmem:[%s13891_s21 + $0x968] sm:$0xff] }
 0x282   : > { %18508 = vst [vmem:[#allocation41_spill] sm:$0xff] %v14900_v39  ;;  %v3339_v39 = vld [vmem:[%s13891_s21 + $0x3f0] sm:$0xff] }
 0x283   : > { %v3979_v32 = vmax.f32 %v3339_v39, %v3978_v34 }
 0x285   : > { %3844 = vmax.xlane.f32.xlu1 %v3843_v13  ;;  %3840 = vmax.xlane.f32.xlu0 %v3839_v43  ;;  %v4326_v13 = vsel %vm3725_vm1, %v3514_v52, -inf  ;;  %v4355_v52 = vmax.f32 %v3527_v49, %v4354_v18  ;;  %v3261_v18 = vld [vmem:[%s13891_s21 + $0x180] sm:$0xff] }
 0x286   : > { %v4327_v43 = vmax.f32 %v3513_v22, %v4326_v13  ;;  %v3406_v22 = vld [vmem:[%s13891_s21 + $0x608] sm:$0xff]  ;;  %v3596_v13 = vld [vmem:[%s13891_s21 + $0xbf8] sm:$0xff] }
 0x287   : > { %v4110_v58 = vsel %vm3725_vm1, %v3406_v22, -inf  ;;  %v3663_v22 = vld [vmem:[%s13891_s21 + $0xe10] sm:$0xff] }
 0x288   : > { %v14911_v36 = vpop.xlane.xlu1 %3820  ;;  %v14913_v11 = vpop.xlane.xlu0 %3816  ;;  %3956 = vmax.xlane.f32.xlu2 %v3955_v7  ;;  %v4111_v49 = vmax.f32 %v3405_v14, %v4110_v58 }
 0x289   : > { %18509 = vst [vmem:[#allocation42_spill] sm:$0xff] %v14911_v36  ;;  %v3556_v36 = vld [vmem:[%s13891_s21 + $0xab8] sm:$0xff] }
 0x28a   : > { %18510 = vst [vmem:[#allocation43_spill] sm:$0xff] %v14913_v11  ;;  %v3525_v11 = vld [vmem:[%s13891_s21 + $0x9c0] sm:$0xff]  ;;  %v4410_v34 = vsel %vm3725_vm1, %v3556_v36, -inf }
 0x28d   : > { %4296 = vmax.xlane.f32.xlu1 %v4295_v38  ;;  %3980 = vmax.xlane.f32.xlu0 %v3979_v32  ;;  %v4351_v38 = vmax.f32 %v3525_v11, %v4350_v12  ;;  %v4411_v32 = vmax.f32 %v3555_v21, %v4410_v34  ;;  %v3664_v21 = vld [vmem:[%s13891_s21 + $0xe18] sm:$0xff]  ;;  %v3662_v34 = vld [vmem:[%s13891_s21 + $0xe08] sm:$0xff] }
 0x28e   : > { %v4622_v14 = vsel %vm3725_vm1, %v3662_v34, -inf  ;;  %v3409_v34 = vld [vmem:[%s13891_s21 + $0x620] sm:$0xff] }
 0x290   : > { %v14924_v7 = vpop.xlane.xlu1 %3952  ;;  %v14926_v39 = vpop.xlane.xlu0 %3900  ;;  %4328 = vmax.xlane.f32.xlu2 %v4327_v43  ;;  %v4490_v43 = vsel %vm3725_vm1, %v3596_v13, -inf  ;;  %v4626_v13 = vsel %vm3725_vm1, %v3664_v21, -inf  ;;  %v3276_v21 = vld [vmem:[%s13891_s21 + $0x1f8] sm:$0xff] }
 0x291   : > { %18511 = vst [vmem:[#allocation44_spill] sm:$0xff] %v14924_v7  ;;  %v3262_v7 = vld [vmem:[%s13891_s21 + $0x188] sm:$0xff] }
 0x292   : > { %18512 = vst [vmem:[#allocation45_spill] sm:$0xff] %v14926_v39  ;;  %v3595_v39 = vld [vmem:[%s13891_s21 + $0xbf0] sm:$0xff]  ;;  %v3822_v12 = vsel %vm3725_vm1, %v3262_v7, -inf }
 0x295   : > { %4356 = vmax.xlane.f32.xlu1 %v4355_v52  ;;  %4352 = vmax.xlane.f32.xlu0 %v4351_v38  ;;  %v4491_v52 = vmax.f32 %v3595_v39, %v4490_v43  ;;  %v3823_v38 = vmax.f32 %v3261_v18, %v3822_v12  ;;  %v4627_v39 = vmax.f32 %v3663_v22, %v4626_v13  ;;  %v3303_v43 = vld [vmem:[%s13891_s21 + $0x2d0] sm:$0xff]  ;;  %v3410_v12 = vld [vmem:[%s13891_s21 + $0x628] sm:$0xff]  ;;  %v3850_v22 = vsel %vm3725_vm1, %v3276_v21, -inf }
 0x298   : > { %v14937_v36 = vpop.xlane.xlu1 %4276  ;;  %4412 = vmax.xlane.f32.xlu2 %v4411_v32  ;;  %v14939_v11 = vpop.xlane.xlu0 %4272  ;;  %v3661_v32 = vld [vmem:[%s13891_s21 + $0xe00] sm:$0xff] }
 0x299   : > { %18513 = vst [vmem:[#allocation46_spill] sm:$0xff] %v14937_v36  ;;  %v3304_v36 = vld [vmem:[%s13891_s21 + $0x2d8] sm:$0xff]  ;;  %v4623_v18 = vmax.f32 %v3661_v32, %v4622_v14 }
 0x29a   : > { %18514 = vst [vmem:[#allocation47_spill] sm:$0xff] %v14939_v11 }
 0x29d   : > { %4112 = vmax.xlane.f32.xlu1 %v4111_v49  ;;  %4492 = vmax.xlane.f32.xlu0 %v4491_v52  ;;  %v3906_v49 = vsel %vm3725_vm1, %v3304_v36, -inf  ;;  %v5776_v36 = vlaneseq }
 0x29e   : > { %v3907_v11 = vmax.f32 %v3303_v43, %v3906_v49 }
 0x29f   : > { %v14975_v25 = vand.u32 127, %v5776_v36  ;;  %v4751_v36 = vpack.c.bf16 %v14446_v6, %v14448_v1 }
 0x2a0   : > { %v14950_v58 = vpop.xlane.xlu1 %4408  ;;  %3824 = vmax.xlane.f32.xlu2 %v3823_v38  ;;  %v14952_v7 = vpop.xlane.xlu0 %4332  ;;  %v4118_v38 = vsel %vm3725_vm1, %v3410_v12, -inf }
 0x2a1   : > { %18515 = vst [vmem:[#allocation48_spill] sm:$0xff] %v14950_v58  ;;  %v3490_v58 = vld [vmem:[%s13891_s21 + $0x8a8] sm:$0xff]  ;;  %v4119_v14 = vmax.f32 %v3409_v34, %v4118_v38  ;;  %v3520_v38 = vld [vmem:[%s13891_s21 + $0x998] sm:$0xff] }
 0x2a2   : > { %18516 = vst [vmem:[#allocation49_spill] sm:$0xff] %v14952_v7  ;;  %v3275_v7 = vld [vmem:[%s13891_s21 + $0x1f0] sm:$0xff]  ;;  %v4278_v43 = vsel %vm3725_vm1, %v3490_v58, -inf }
 0x2a3   : > { %v14957_v52 = vpop.xlane.xlu2 %3800  ;;  %v3851_v49 = vmax.f32 %v3275_v7, %v3850_v22  ;;  %18521 = vst [vmem:[#allocation54_spill] sm:$0xff] %v14975_v25  ;;  %v14987_v22 = vadd.s32 4294967288, %v14975_v25 }
 0x2a4   : > { %18517 = vst [vmem:[#allocation50_spill] sm:$0xff] %v14957_v52  ;;  %v3530_v52 = vld [vmem:[%s13891_s21 + $0x9e8] sm:$0xff] }
 0x2a5   : > { %4628 = vmax.xlane.f32.xlu1 %v4627_v39  ;;  %4624 = vmax.xlane.f32.xlu0 %v4623_v18  ;;  %v3489_v39 = vld [vmem:[%s13891_s21 + $0x8a0] sm:$0xff]  ;;  %v3532_v18 = vld [vmem:[%s13891_s21 + $0x9f8] sm:$0xff]  ;;  %v4358_v58 = vsel %vm3725_vm1, %v3530_v52, -inf  ;;  %18523 = vst [vmem:[#allocation56_spill] sm:$0xff] %v14987_v22 }
 0x2a6   : > { %v4279_v21 = vmax.f32 %v3489_v39, %v4278_v43  ;;  %v4362_v34 = vsel %vm3725_vm1, %v3532_v18, -inf  ;;  %v3519_v43 = vld [vmem:[%s13891_s21 + $0x990] sm:$0xff] }
 0x2a8   : > { %v14965_v13 = vpop.xlane.xlu1 %4468  ;;  %3908 = vmax.xlane.f32.xlu2 %v3907_v11  ;;  %v14967_v32 = vpop.xlane.xlu0 %4464  ;;  %v4750_v11 = vpack.c.bf16 %v14414_v44, %v14416_v45 }
 0x2a9   : > { %18518 = vst [vmem:[#allocation51_spill] sm:$0xff] %v14965_v13  ;;  %v3531_v13 = vld [vmem:[%s13891_s21 + $0x9f0] sm:$0xff] }
 0x2aa   : > { %18519 = vst [vmem:[#allocation52_spill] sm:$0xff] %v14967_v32  ;;  %v3529_v32 = vld [vmem:[%s13891_s21 + $0x9e0] sm:$0xff]  ;;  %v4363_v44 = vmax.f32 %v3531_v13, %v4362_v34  ;;  %v5520_v45 = vunpack.c.l.b16 %v4750_v11  ;;  %v5521_v39 = vunpack.c.h.b16 %v4750_v11  ;;  %v4752_v13 = vpack.c.bf16 %v14467_v26, %v14469_v27 }
 0x2ab   : > { %v14972_v12 = vpop.xlane.xlu2 %3884  ;;  %v4359_v18 = vmax.f32 %v3529_v32, %v4358_v58  ;;  %v3586_v32 = vld [vmem:[%s13891_s21 + $0xba8] sm:$0xff]  ;;  %v5523_v11 = vunpack.c.h.b16 %v4751_v36  ;;  %v3341_v27 = vld [vmem:[%s13891_s21 + $0x400] sm:$0xff] }
 0x2ac   : > { %18520 = vst [vmem:[#allocation53_spill] sm:$0xff] %v14972_v12  ;;  %v5522_v12 = vunpack.c.l.b16 %v4751_v36  ;;  %v5778_v6 = vperm.slane %v5520_v45, %v14975_v25  ;;  %v5780_v1 = vperm.slane %v5521_v39, %v14987_v22  ;;  %v3668_v45 = vld [vmem:[%s13891_s21 + $0xe38] sm:$0xff]  ;;  %v4470_v26 = vsel %vm3725_vm1, %v3586_v32, -inf }
 0x2ad   : > { %4120 = vmax.xlane.f32.xlu1 %v4119_v14  ;;  %3852 = vmax.xlane.f32.xlu0 %v3851_v49  ;;  %v4338_v49 = vsel %vm3725_vm1, %v3520_v38, -inf  ;;  %v4634_v36 = vsel %vm3725_vm1, %v3668_v45, -inf  ;;  %v5525_v45 = vunpack.c.h.b16 %v4752_v13 }
 0x2ae   : > { %v4339_v0 = vmax.f32 %v3519_v43, %v4338_v49  ;;  %v5782_v39 = vsel %vm5781_vm14, %v5780_v1, %v5778_v6  ;;  %v3585_v43 = vld [vmem:[%s13891_s21 + $0xba0] sm:$0xff]  ;;  %v4753_v1 = vpack.c.bf16 %v14493_v42, %v14630_v62 }
 0x2af   : > { %v4471_v32 = vmax.f32 %v3585_v43, %v4470_v26  ;;  %v3267_v26 = vld [vmem:[%s13891_s21 + $0x1b0] sm:$0xff] }
 0x2b0   : > { %v14984_v7 = vpop.xlane.xlu1 %3904  ;;  %4280 = vmax.xlane.f32.xlu2 %v4279_v21  ;;  %v14991_v14 = vpop.xlane.xlu0 %3828  ;;  %v15006_v21 = vadd.s32 4294967272, %v14975_v25 }
 0x2b1   : > { %18522 = vst [vmem:[#allocation55_spill] sm:$0xff] %v14984_v7  ;;  %v14998_v7 = vadd.s32 4294967280, %v14975_v25 }
 0x2b2   : > { %18524 = vst [vmem:[#allocation57_spill] sm:$0xff] %v14991_v14  ;;  %v15023_v14 = vadd.s32 4294967264, %v14975_v25 }
 0x2b3   : > { %v14995_v52 = vpop.xlane.xlu2 %4256  ;;  %18526 = vst [vmem:[#allocation59_spill] sm:$0xff] %v14998_v7  ;;  %v5784_v38 = vperm.slane %v5522_v12, %v14998_v7  ;;  %v5524_v12 = vunpack.c.l.b16 %v4752_v13  ;;  %v5526_v13 = vunpack.c.l.b16 %v4753_v1 }
 0x2b4   : > { %18525 = vst [vmem:[#allocation58_spill] sm:$0xff] %v14995_v52 }
 0x2b5   : > { %4364 = vmax.xlane.f32.xlu1 %v4363_v44  ;;  %4360 = vmax.xlane.f32.xlu0 %v4359_v18  ;;  %18527 = vst [vmem:[#allocation60_spill] sm:$0xff] %v15006_v21  ;;  %v3342_v44 = vld [vmem:[%s13891_s21 + $0x408] sm:$0xff]  ;;  %v3667_v18 = vld [vmem:[%s13891_s21 + $0xe30] sm:$0xff]  ;;  %v5786_v6 = vsel %vm5785_vm15, %v5784_v38, %v5782_v39  ;;  %v3268_v38 = vld [vmem:[%s13891_s21 + $0x1b8] sm:$0xff]  ;;  %v15044_v39 = vadd.s32 4294967248, %v14975_v25 }
 0x2b6   : > { %v3982_v49 = vsel %vm3725_vm1, %v3342_v44, -inf  ;;  %18530 = vst [vmem:[#allocation63_spill] sm:$0xff] %v15023_v14  ;;  %v15032_v44 = vadd.s32 4294967256, %v14975_v25 }
 0x2b7   : > { %18534 = vst [vmem:[#allocation67_spill] sm:$0xff] %v15044_v39 }
 0x2b8   : > { %v15008_v34 = vpop.xlane.xlu1 %3964  ;;  %4340 = vmax.xlane.f32.xlu2 %v4339_v0  ;;  %v15011_v58 = vpop.xlane.xlu0 %3960  ;;  %v3983_v0 = vmax.f32 %v3341_v27, %v3982_v49  ;;  %18532 = vst [vmem:[#allocation65_spill] sm:$0xff] %v15032_v44  ;;  %v5792_v27 = vperm.slane %v5524_v12, %v15023_v14  ;;  %v5796_v43 = vperm.slane %v5525_v45, %v15032_v44  ;;  %v3439_v12 = vld [vmem:[%s13891_s21 + $0x710] sm:$0xff] }
 0x2b9   : > { %18528 = vst [vmem:[#allocation61_spill] sm:$0xff] %v15008_v34  ;;  %v4635_v34 = vmax.f32 %v3667_v18, %v4634_v36  ;;  %v3834_v18 = vsel %vm3725_vm1, %v3268_v38, -inf  ;;  %v5800_v38 = vperm.slane %v5526_v13, %v15044_v39  ;;  %v3334_v13 = vld [vmem:[%s13891_s21 + $0x3c8] sm:$0xff]  ;;  %v3600_v39 = vld [vmem:[%s13891_s21 + $0xc18] sm:$0xff] }
 0x2ba   : > { %18529 = vst [vmem:[#allocation62_spill] sm:$0xff] %v15011_v58  ;;  %v5788_v58 = vperm.slane %v5523_v11, %v15006_v21  ;;  %v3835_v46 = vmax.f32 %v3267_v26, %v3834_v18 }
 0x2bb   : > { %v15026_v52 = vpop.xlane.xlu2 %4316 }
 0x2bc   : > { %18531 = vst [vmem:[#allocation64_spill] sm:$0xff] %v15026_v52  ;;  %v5790_v42 = vsel %vm5789_vm2, %v5788_v58, %v5786_v6  ;;  %v4754_v58 = vpack.c.bf16 %v14510_v56, %v14491_v41  ;;  %v3437_v6 = vld [vmem:[%s13891_s21 + $0x700] sm:$0xff] }
 0x2bd   : > { %3984 = vmax.xlane.f32.xlu1 %v3983_v0  ;;  %4636 = vmax.xlane.f32.xlu0 %v4635_v34  ;;  %v5794_v36 = vsel %vm5793_vm3, %v5792_v27, %v5790_v42  ;;  %v3440_v0 = vld [vmem:[%s13891_s21 + $0x718] sm:$0xff] }
 0x2be   : > { %v4178_v45 = vsel %vm3725_vm1, %v3440_v0, -inf  ;;  %v5798_v41 = vsel %vm5797_vm4, %v5796_v43, %v5794_v36  ;;  %v5528_v0 = vunpack.c.l.b16 %v4754_v58  ;;  %v15084_v36 = vadd.s32 4294967224, %v14975_v25 }
 0x2bf   : > { %v15035_v49 = vpop.f32.mrf.mxu0  ;;  %v15037_v11 = vpop.f32.mrf.mxu1  ;;  %v4179_v27 = vmax.f32 %v3439_v12, %v4178_v45  ;;  %v5802_v43 = vsel %vm5801_vm5, %v5800_v38, %v5798_v41  ;;  %v5529_v12 = vunpack.c.h.b16 %v4754_v58  ;;  %v3333_v45 = vld [vmem:[%s13891_s21 + $0x3c0] sm:$0xff]  ;;  %v3496_v41 = vld [vmem:[%s13891_s21 + $0x8d8] sm:$0xff]  ;;  %v15097_v58 = vadd.s32 4294967216, %v14975_v25 }
 0x2c0   : > { %v15041_v62 = vpop.xlane.xlu1 %4336  ;;  %4472 = vmax.xlane.f32.xlu2 %v4471_v32  ;;  %v15046_v34 = vpop.xlane.xlu0 %4284  ;;  %v5527_v32 = vunpack.c.h.b16 %v4753_v1  ;;  %18541 = vst [vmem:[#allocation74_spill] sm:$0xff] %v15084_v36 }
 0x2c1   : > { %18533 = vst [vmem:[#allocation66_spill] sm:$0xff] %v15041_v62  ;;  %v15058_v62 = vadd.s32 4294967240, %v14975_v25 }
 0x2c2   : > { %18535 = vst [vmem:[#allocation68_spill] sm:$0xff] %v15046_v34  ;;  %v3438_v34 = vld [vmem:[%s13891_s21 + $0x708] sm:$0xff] }
 0x2c3   : > { %18536 = vst [vmem:[#allocation69_spill] sm:$0xff] %v15058_v62  ;;  %v15060_v52 = vpop.xlane.xlu2 %4448  ;;  %v4174_v42 = vsel %vm3725_vm1, %v3438_v34, -inf  ;;  %v5804_v34 = vperm.slane %v5527_v32, %v15058_v62  ;;  %v3966_v32 = vsel %vm3725_vm1, %v3334_v13, -inf }
 0x2c4   : > { %18537 = vst [vmem:[#allocation70_spill] sm:$0xff] %v15060_v52  ;;  %v4175_v1 = vmax.f32 %v3437_v6, %v4174_v42  ;;  %v15072_v52 = vadd.s32 4294967232, %v14975_v25  ;;  %v4755_v6 = vpack.c.bf16 %v14520_v3, %v14508_v55  ;;  %v3967_v38 = vmax.f32 %v3333_v45, %v3966_v32 }
 0x2c5   : > { %4180 = vmax.xlane.f32.xlu1 %v4179_v27  ;;  %v5806_v42 = vsel %vm18448_vm6, %v5804_v34, %v5802_v43  ;;  %18543 = vst [vmem:[#allocation76_spill] sm:$0xff] %v15097_v58  ;;  %v2787_v43 = vmul.f32 %v15035_v49, %v14434_v60  ;;  %v3693_v49 = vld [vmem:[%s13891_s21 + $0xf00] sm:$0xff] }
 0x2c6   : > { %v15067_v56 = vpop.f32.mrf.mxu2  ;;  %v15069_v31 = vpop.f32.mrf.mxu3  ;;  %18538 = vst [vmem:[#allocation71_spill] sm:$0xff] %v15072_v52  ;;  %4176 = vmax.xlane.f32.xlu0 %v4175_v1  ;;  %v5808_v27 = vperm.slane %v5528_v0, %v15072_v52  ;;  %v5812_v1 = vperm.slane %v5529_v12, %v15084_v36  ;;  %v5530_v55 = vunpack.c.l.b16 %v4755_v6  ;;  %v3694_v0 = vld [vmem:[%s13891_s21 + $0xf08] sm:$0xff]  ;;  %v2788_v12 = vmul.f32 %v15037_v11, %v14434_v60 }
 0x2c7   : > { %v2575_v23 = vpop.f32.mrf.mxu0  ;;  %v15074_v51 = vpop.f32.mrf.mxu1  ;;  %v3562_v36 = vld [vmem:[%s13891_s21 + $0xae8] sm:$0xff]  ;;  %v15115_v52 = vadd.s32 4294967208, %v14975_v25  ;;  %v5531_v62 = vunpack.c.h.b16 %v4755_v6  ;;  %v2851_v8 = vmul.f32 0.2, %v2787_v43  ;;  %v15135_v6 = vld [vmem:[%s13891_s21 + $0xae0] sm:$0xff]  ;;  %vm2819_vm10 = vcmp.ge.f32.partialorder %v2787_v43, 0.0 }
 0x2c8   : > { %v15078_v26 = vpop.xlane.xlu1 %4420  ;;  %3836 = vmax.xlane.f32.xlu2 %v3835_v46  ;;  %v15081_v18 = vpop.xlane.xlu0 %4416  ;;  %v5810_v34 = vsel %vm18435_vm7, %v5808_v27, %v5806_v42  ;;  %v4686_v42 = vsel %vm3725_vm1, %v3694_v0, -inf  ;;  %v5816_v11 = vperm.slane %v5530_v55, %v15097_v58  ;;  %v2852_v50 = vmul.f32 0.2, %v2788_v12 }
 0x2c9   : > { %18539 = vst [vmem:[#allocation72_spill] sm:$0xff] %v15078_v26  ;;  %v3495_v26 = vld [vmem:[%s13891_s21 + $0x8d0] sm:$0xff]  ;;  %vm2820_vm11 = vcmp.ge.f32.partialorder %v2788_v12, 0.0  ;;  %v4687_v55 = vmax.f32 %v3693_v49, %v4686_v42  ;;  %vm18447_vm7 = vcmask 786112  }
 0x2ca   : > { %18540 = vst [vmem:[#allocation73_spill] sm:$0xff] %v15081_v18  ;;  %v4290_v18 = vsel %vm3725_vm1, %v3496_v41, -inf  ;;  %v5814_v41 = vsel %vm18434_vm8, %v5812_v1, %v5810_v34  ;;  %v15138_v1 = vmul.f32 %v2575_v23, %v14456_v17  ;;  %v15150_v23 = vperm.slane %v5531_v62, %v15115_v52 }
 0x2cb   : > { %v15092_v46 = vpop.xlane.xlu2 %3812  ;;  %18545 = vst [vmem:[#allocation78_spill] sm:$0xff] %v15115_v52  ;;  %v4291_v24 = vmax.f32 %v3495_v26, %v4290_v18  ;;  %v4498_v26 = vsel %vm3725_vm1, %v3600_v39, -inf  ;;  %v15144_v18 = vadd.s32 4294967200, %v14975_v25  ;;  %v15166_v62 = vsel %vm2820_vm11, %v2788_v12, %v2852_v50 }
 0x2cc   : > { %18542 = vst [vmem:[#allocation75_spill] sm:$0xff] %v15092_v46  ;;  %vm2827_vm12 = vcmp.ge.f32.partialorder %v15138_v1, 0.0  ;;  %v2859_v50 = vmul.f32 0.2, %v15138_v1 }
 0x2cd   : > { %4688 = vmax.xlane.f32.xlu1 %v4687_v55 }
 0x2ce   : > { %v15099_v3 = vpop.f32.mrf.mxu2  ;;  %v15101_v13 = vpop.f32.mrf.mxu3 }
 0x2cf   : > { %v2578_v45 = vpop.f32.mrf.mxu0  ;;  %v2607_v32 = vpop.f32.mrf.mxu1 }
 0x2d0   : > { %v15111_v46 = vpop.xlane.xlu1 %3832  ;;  %3968 = vmax.xlane.f32.xlu2 %v3967_v38  ;;  %v15117_v27 = vpop.xlane.xlu0 %4476  ;;  %v15129_v38 = vsel %vm3725_vm1, %v3562_v36, -inf  ;;  %v15147_v36 = vadd.s32 4294967192, %v14975_v25 }
 0x2d1   : > { %18544 = vst [vmem:[#allocation77_spill] sm:$0xff] %v15111_v46  ;;  %v15126_v46 = vpack.c.bf16 %v14530_v16, %v14518_v2  ;;  %v2803_v2 = vmul.f32 %v2578_v45, %v14474_v30  ;;  %v2804_v16 = vmul.f32 %v2607_v32, %v14474_v30  ;;  %v15154_v32 = vsel %vm18433_vm9, %v5816_v11, %v5814_v41  ;;  %v3348_v11 = vld [vmem:[%s13891_s21 + $0x438] sm:$0xff] }
 0x2d2   : > { %18546 = vst [vmem:[#allocation79_spill] sm:$0xff] %v15117_v27  ;;  %v3599_v27 = vld [vmem:[%s13891_s21 + $0xc10] sm:$0xff]  ;;  %v4423_v58 = vmax.f32 %v15135_v6, %v15129_v38  ;;  %v2796_v41 = vmul.f32 %v15074_v51, %v14456_v17  ;;  %v15179_v51 = vmul.f32 %v15099_v3, %v14456_v17  ;;  %v15188_v45 = vmul.f32 %v15067_v56, %v14434_v60 }
 0x2d3   : > { %v15132_v44 = vpop.xlane.xlu2 %3944  ;;  %v4499_v49 = vmax.f32 %v3599_v27, %v4498_v26  ;;  %v15163_v27 = vsel %vm2819_vm10, %v2787_v43, %v2851_v8  ;;  %v2867_v55 = vmul.f32 0.2, %v2803_v2  ;;  %v2868_v38 = vmul.f32 0.2, %v2804_v16  ;;  %v3347_v8 = vld [vmem:[%s13891_s21 + $0x430] sm:$0xff] }
 0x2d4   : > { %18547 = vst [vmem:[#allocation80_spill] sm:$0xff] %v15132_v44  ;;  %vm2835_vm9 = vcmp.ge.f32.partialorder %v2803_v2, 0.0  ;;  %vm2836_vm11 = vcmp.ge.f32.partialorder %v2804_v16, 0.0  ;;  %v3994_v43 = vsel %vm3725_vm1, %v3348_v11, -inf  ;;  %vm2828_vm8 = vcmp.ge.f32.partialorder %v2796_v41, 0.0  ;;  %v3346_v11 = vld [vmem:[%s13891_s21 + $0x428] sm:$0xff] }
 0x2d5   : > { %4500 = vmax.xlane.f32.xlu0 %v4499_v49  ;;  %v2860_v3 = vmul.f32 0.2, %v2796_v41  ;;  %v2900_v56 = vsel %vm2836_vm11, %v2804_v16, %v2868_v38  ;;  %v2798_v16 = vmul.f32 %v15101_v13, %v14456_v17  ;;  %v2861_v38 = vmul.f32 0.2, %v15179_v51 }
 0x2d6   : > { %v2636_v0 = vpop.f32.mrf.mxu2  ;;  %v2665_v34 = vpop.f32.mrf.mxu3 }
 0x2d7   : > { %v2581_v39 = vpop.f32.mrf.mxu0  ;;  %v2610_v42 = vpop.f32.mrf.mxu1  ;;  %vm2830_vm11 = vcmp.ge.f32.partialorder %v2798_v16, 0.0 }
 0x2d8   : > { %v2811_v44 = vmul.f32 %v2581_v39, %v14496_v47  ;;  %v2812_v48 = vmul.f32 %v2610_v42, %v14496_v47  ;;  %v15160_v14 = vpop.xlane.xlu1 %3916  ;;  %4292 = vmax.xlane.f32.xlu2 %v4291_v24  ;;  %v15172_v6 = vpop.xlane.xlu0 %3912  ;;  %v15182_v24 = vmul.f32 %v2636_v0, %v14474_v30  ;;  %v15196_v0 = vmul.f32 %v2665_v34, %v14474_v30 }
 0x2d9   : > { %18548 = vst [vmem:[#allocation81_spill] sm:$0xff] %v15160_v14  ;;  %v15192_v14 = vmul.f32 %v15069_v31, %v14434_v60  ;;  %v3995_v31 = vmax.f32 %v3347_v8, %v3994_v43  ;;  %v3345_v43 = vld [vmem:[%s13891_s21 + $0x420] sm:$0xff] }
 0x2da   : > { %18549 = vst [vmem:[#allocation82_spill] sm:$0xff] %v15172_v6  ;;  %v2875_v26 = vmul.f32 0.2, %v2811_v44  ;;  %v2876_v39 = vmul.f32 0.2, %v2812_v48  ;;  %vm2843_vm13 = vcmp.ge.f32.partialorder %v2811_v44, 0.0 }
 0x2db   : > { %vm2844_vm10 = vcmp.ge.f32.partialorder %v2812_v48, 0.0  ;;  %v15184_v12 = vpop.xlane.xlu2 %4268  ;;  %3996 = vmax.xlane.f32.xlu1 %v3995_v31  ;;  %v3441_v31 = vld [vmem:[%s13891_s21 + $0x720] sm:$0xff] }
 0x2dc   : > { %18550 = vst [vmem:[#allocation83_spill] sm:$0xff] %v15184_v12  ;;  %v2907_v49 = vsel %vm2843_vm13, %v2811_v44, %v2875_v26  ;;  %v2908_v42 = vsel %vm2844_vm10, %v2812_v48, %v2876_v39  ;;  %v2899_v48 = vsel %vm2835_vm9, %v2803_v2, %v2867_v55  ;;  %v3592_v26 = vld [vmem:[%s13891_s21 + $0xbd8] sm:$0xff]  ;;  %v2891_v2 = vsel %vm2827_vm12, %v15138_v1, %v2859_v50  ;;  %v3442_v39 = vld [vmem:[%s13891_s21 + $0x728] sm:$0xff] }
 0x2dd   : > { %2927 = vmatpush.msra.mxu0 %v2907_v49  ;;  %2956 = vmatpush.msra.mxu1 %v2908_v42  ;;  %v2869_v55 = vmul.f32 0.2, %v15182_v24  ;;  %v2892_v1 = vsel %vm2828_vm8, %v2796_v41, %v2860_v3  ;;  %v4482_v13 = vsel %vm3725_vm1, %v3592_v26, -inf  ;;  %v2870_v12 = vmul.f32 0.2, %v15196_v0 }
 0x2de   : > { %v2639_v6 = vpop.f32.mrf.mxu2  ;;  %v2668_v44 = vpop.f32.mrf.mxu3  ;;  %vm2837_vm13 = vcmp.ge.f32.partialorder %v15182_v24, 0.0  ;;  %vm2838_vm8 = vcmp.ge.f32.partialorder %v15196_v0, 0.0  ;;  %v2853_v3 = vmul.f32 0.2, %v15188_v45  ;;  %vm2829_vm10 = vcmp.ge.f32.partialorder %v15179_v51, 0.0 }
 0x2df   : > { %v2813_v49 = vmul.f32 %v2639_v6, %v14496_v47  ;;  %v2814_v42 = vmul.f32 %v2668_v44, %v14496_v47  ;;  %v15204_v52 = vpop.f32.mrf.mxu0  ;;  %v15206_v34 = vpop.f32.mrf.mxu1  ;;  %2928 = vmatpush.msra.mxu0 %v2899_v48  ;;  %2957 = vmatpush.msra.mxu1 %v2900_v56  ;;  %v15216_v6 = vld [vmem:[%s13891_s21 + $0xbd0] sm:$0xff]  ;;  %v3990_v44 = vsel %vm3725_vm1, %v3346_v11, -inf }
 0x2e0   : > { %v15218_v8 = vpop.xlane.xlu1 %4288  ;;  %4424 = vmax.xlane.f32.xlu2 %v4423_v58  ;;  %v15224_v50 = vpop.xlane.xlu0 %3972  ;;  %v3991_v41 = vmax.f32 %v3345_v43, %v3990_v44  ;;  %v15247_v43 = vpack.c.bf16 %v14540_v29, %v14528_v15 }
 0x2e1   : > { %18551 = vst [vmem:[#allocation84_spill] sm:$0xff] %v15218_v8  ;;  %v2877_v48 = vmul.f32 0.2, %v2813_v49  ;;  %v2878_v56 = vmul.f32 0.2, %v2814_v42  ;;  %2929 = vmatpush.msra.mxu0 %v2891_v2  ;;  %2958 = vmatpush.msra.mxu1 %v2892_v1  ;;  %vm2845_vm9 = vcmp.ge.f32.partialorder %v2813_v49, 0.0 }
 0x2e2   : > { %18552 = vst [vmem:[#allocation85_spill] sm:$0xff] %v15224_v50  ;;  %vm2846_vm12 = vcmp.ge.f32.partialorder %v2814_v42, 0.0  ;;  %v2862_v2 = vmul.f32 0.2, %v2798_v16  ;;  %v4182_v1 = vsel %vm3725_vm1, %v3442_v39, -inf  ;;  %3992 = vmax.xlane.f32.xlu0 %v3991_v41 }
 0x2e3   : > { %2930 = vmatpush.msra.mxu0 %v15163_v27  ;;  %v2909_v11 = vsel %vm2845_vm9, %v2813_v49, %v2877_v48  ;;  %v2910_v58 = vsel %vm2846_vm12, %v2814_v42, %v2878_v56  ;;  %2959 = vmatpush.msra.mxu1 %v15166_v62  ;;  %v15234_v26 = vpop.xlane.xlu2 %4400  ;;  %v2901_v27 = vsel %vm2837_vm13, %v15182_v24, %v2869_v55  ;;  %v3416_v42 = vld [vmem:[%s13891_s21 + $0x658] sm:$0xff]  ;;  %v2854_v39 = vmul.f32 0.2, %v15192_v14 }
 0x2e4   : > { %2985 = vmatpush.msra.mxu2 %v2909_v11  ;;  %3014 = vmatpush.msra.mxu3 %v2910_v58  ;;  %v4483_v49 = vmax.f32 %v15216_v6, %v4482_v13  ;;  %v4183_v62 = vmax.f32 %v3441_v31, %v4182_v1  ;;  %v2902_v24 = vsel %vm2838_vm8, %v15196_v0, %v2870_v12  ;;  %vm2821_vm9 = vcmp.ge.f32.partialorder %v15188_v45, 0.0  ;;  %v3338_v6 = vld [vmem:[%s13891_s21 + $0x3e8] sm:$0xff]  ;;  %v3604_v56 = vld [vmem:[%s13891_s21 + $0xc38] sm:$0xff]  ;;  %v3415_v11 = vld [vmem:[%s13891_s21 + $0x650] sm:$0xff] }
 0x2e5   : > { %10408 = vmatmul.msk.f32.vlgmr.msra.gmra.mxu0 %vm1898_vm0, %v14718_v63  ;;  %10412 = vmatmul.msk.f32.vlgmr.msra.gmra.mxu1 %vm1898_vm0, %v14718_v63  ;;  %v2893_v55 = vsel %vm2829_vm10, %v15179_v51, %v2861_v38  ;;  %vm2822_vm12 = vcmp.ge.f32.partialorder %v15192_v14, 0.0  ;;  %v18553_v12 = vunpack.c.l.b16 %v15126_v46  ;;  %vm18446_vm13 = vcmask 851712  }
 0x2e6   : > { %v15252_v44 = vpop.f32.mrf.mxu2  ;;  %v15254_v48 = vpop.f32.mrf.mxu3  ;;  %2986 = vmatpush.msra.mxu2 %v2901_v27  ;;  %3015 = vmatpush.msra.mxu3 %v2902_v24  ;;  %v2894_v13 = vsel %vm2830_vm11, %v2798_v16, %v2862_v2  ;;  %v4130_v51 = vsel %vm3725_vm1, %v3416_v42, -inf  ;;  %v5822_v38 = vsel %vm18447_vm7, %v15150_v23, %v15154_v32  ;;  %v15282_v58 = vadd.s32 4294967184, %v14975_v25  ;;  %v3603_v2 = vld [vmem:[%s13891_s21 + $0xc30] sm:$0xff] }
 0x2e7   : > { %v15260_v15 = vpop.f32.mrf.mxu0  ;;  %v15262_v29 = vpop.f32.mrf.mxu1  ;;  %v5824_v0 = vperm.slane %v18553_v12, %v15144_v18  ;;  %4184 = vmax.xlane.f32.xlu1 %v4183_v62  ;;  %v2885_v16 = vsel %vm2821_vm9, %v15188_v45, %v2853_v3  ;;  %v4506_v1 = vsel %vm3725_vm1, %v3604_v56, -inf  ;;  %v18555_v27 = vunpack.c.h.b16 %v15126_v46 }
 0x2e8   : > { %2987 = vmatpush.msra.mxu2 %v2893_v55  ;;  %v15274_v31 = vpop.xlane.xlu1 %4348  ;;  %18554 = vst [vmem:[#allocation86_spill] sm:$0xff] %v15282_v58  ;;  %3016 = vmatpush.msra.mxu3 %v2894_v13  ;;  %v15287_v41 = vpop.xlane.xlu0 %4344  ;;  %v5534_v23 = vunpack.c.l.b16 %v15247_v43  ;;  %v2886_v32 = vsel %vm2822_vm12, %v15192_v14, %v2854_v39  ;;  %v3974_v45 = vsel %vm3725_vm1, %v3338_v6, -inf  ;;  %v15302_v3 = vpack.c.bf16 %v14550_v9, %v14538_v28 }
 0x2e9   : > { %4484 = vmax.xlane.f32.xlu2 %v4483_v49  ;;  %v5828_v62 = vperm.slane %v18555_v27, %v15147_v36  ;;  %v3337_v49 = vld [vmem:[%s13891_s21 + $0x3e0] sm:$0xff]  ;;  %v4766_v42 = vpack.c.bf16 %v14560_v54, %v14548_v40  ;;  %v4131_v46 = vmax.f32 %v3415_v11, %v4130_v51  ;;  %v5826_v24 = vsel %vm18446_vm13, %v5824_v0, %v5822_v38  ;;  %v3602_v54 = vld [vmem:[%s13891_s21 + $0xc28] sm:$0xff]  ;;  %v3500_v51 = vld [vmem:[%s13891_s21 + $0x8f8] sm:$0xff] }
 0x2ea   : > { %2988 = vmatpush.msra.mxu2 %v2885_v16  ;;  %3017 = vmatpush.msra.mxu3 %v2886_v32  ;;  %vm18445_vm8 = vcmask 917312   ;;  %v4507_v39 = vmax.f32 %v3603_v2, %v4506_v1  ;;  %v15314_v28 = vadd.s32 4294967176, %v14975_v25  ;;  %v5535_v40 = vunpack.c.h.b16 %v15247_v43  ;;  %v3594_v2 = vld [vmem:[%s13891_s21 + $0xbe8] sm:$0xff]  ;;  %v3601_v1 = vld [vmem:[%s13891_s21 + $0xc20] sm:$0xff] }
 0x2eb   : > { %10416 = vmatmul.msk.f32.vlgmr.msra.gmra.mxu2 %vm1898_vm0, %v14718_v63  ;;  %10420 = vmatmul.msk.f32.vlgmr.msra.gmra.mxu3 %vm1898_vm0, %v14718_v63  ;;  %v15311_v14 = vpop.xlane.xlu2 %4460  ;;  %v3975_v9 = vmax.f32 %v3337_v49, %v3974_v45  ;;  %v5832_v55 = vperm.slane %v5534_v23, %v15282_v58  ;;  %v5830_v12 = vsel %vm18445_vm8, %v5828_v62, %v5826_v24  ;;  %vm18444_vm10 = vcmask 982912  }
 0x2ec   : > { %18556 = vst [vmem:[#allocation87_spill] sm:$0xff] %v15314_v28  ;;  %v5536_v43 = vunpack.c.l.b16 %v15302_v3  ;;  %v5552_v0 = vunpack.c.l.b16 %v4766_v42  ;;  %4132 = vmax.xlane.f32.xlu0 %v4131_v46  ;;  %v5553_v38 = vunpack.c.h.b16 %v4766_v42  ;;  %v4502_v27 = vsel %vm3725_vm1, %v3602_v54, -inf  ;;  %v3499_v46 = vld [vmem:[%s13891_s21 + $0x8f0] sm:$0xff]  ;;  %v3698_v54 = vld [vmem:[%s13891_s21 + $0xf28] sm:$0xff] }
 0x2ed   : > { %10409 = vmatmul.msk.f32.gmra.mxu0 %vm1898_vm0, %v14748_v33  ;;  %10413 = vmatmul.msk.f32.gmra.mxu1 %vm1898_vm0, %v14748_v33  ;;  %v15336_v62 = vperm.slane %v5535_v40, %v15314_v28  ;;  %v15340_v23 = vmul.f32 %v15204_v52, %v14434_v60  ;;  %v15345_v49 = vsel %vm18444_vm10, %v5832_v55, %v5830_v12  ;;  %v4298_v24 = vsel %vm3725_vm1, %v3500_v51, -inf  ;;  %v15363_v40 = vld [vmem:[%s13891_s21 + $0xbe0] sm:$0xff] }
 0x2ee   : > { %v15323_v6 = vpop.f32.mrf.mxu2  ;;  %v15325_v56 = vpop.f32.mrf.mxu3  ;;  %v15350_v42 = vmul.f32 %v15206_v34, %v14434_v60  ;;  %v15358_v52 = vperm.slane %v5552_v0, %v14975_v25  ;;  %v4503_v34 = vmax.f32 %v3601_v1, %v4502_v27  ;;  %v15370_v55 = vperm.slane %v5553_v38, %v14987_v22 }
 0x2ef   : > { %v2694_v13 = vpop.f32.mrf.mxu0  ;;  %v2723_v11 = vpop.f32.mrf.mxu1  ;;  %4508 = vmax.xlane.f32.xlu1 %v4507_v39  ;;  %v15355_v39 = vperm.slane %v5536_v43, %v14975_v25  ;;  %v15374_v12 = vpack.c.bf16 %v14570_v5, %v14558_v53  ;;  %v15378_v43 = vpack.c.bf16 %v14580_v10, %v14568_v4  ;;  %v15382_v0 = vpack.c.bf16 %v14590_v37, %v14578_v20  ;;  %v3697_v5 = vld [vmem:[%s13891_s21 + $0xf20] sm:$0xff]  ;;  %v3672_v20 = vld [vmem:[%s13891_s21 + $0xe58] sm:$0xff] }
 0x2f0   : > { %v15330_v16 = vpop.xlane.xlu1 %4480  ;;  %v15342_v32 = vpop.xlane.xlu0 %4428  ;;  %v2855_v38 = vmul.f32 0.2, %v15340_v23  ;;  %v15392_v53 = vmul.f32 %v2723_v11, %v14474_v30  ;;  %v4299_v4 = vmax.f32 %v3499_v46, %v4298_v24  ;;  %v2856_v10 = vmul.f32 0.2, %v15350_v42 }
 0x2f1   : > { %18557 = vst [vmem:[#allocation88_spill] sm:$0xff] %v15330_v16  ;;  %3976 = vmax.xlane.f32.xlu2 %v3975_v9  ;;  %v15366_v9 = vsel %vm3725_vm1, %v3594_v2, -inf  ;;  %v2800_v2 = vmul.f32 %v15262_v29, %v14456_v17  ;;  %vm2823_vm11 = vcmp.ge.f32.partialorder %v15340_v23, 0.0  ;;  %v4694_v11 = vsel %vm3725_vm1, %v3698_v54, -inf }
 0x2f2   : > { %18558 = vst [vmem:[#allocation89_spill] sm:$0xff] %v15342_v32  ;;  %v15407_v27 = vmul.f32 %v15252_v44, %v14434_v60  ;;  %v15411_v46 = vmul.f32 %v15254_v48, %v14434_v60  ;;  %v2807_v24 = vmul.f32 %v2694_v13, %v14474_v30  ;;  %vm2824_vm9 = vcmp.ge.f32.partialorder %v15350_v42, 0.0  ;;  %v3671_v32 = vld [vmem:[%s13891_s21 + $0xe50] sm:$0xff] }
 0x2f3   : > { %10417 = vmatmul.msk.f32.gmra.mxu2 %vm1898_vm0, %v14748_v33  ;;  %10421 = vmatmul.msk.f32.gmra.mxu3 %vm1898_vm0, %v14748_v33  ;;  %v15386_v51 = vpop.xlane.xlu2 %3896  ;;  %v4695_v8 = vmax.f32 %v3697_v5, %v4694_v11  ;;  %v4642_v44 = vsel %vm3725_vm1, %v3672_v20, -inf  ;;  %v2799_v48 = vmul.f32 %v15260_v15, %v14456_v17  ;;  %v2872_v13 = vmul.f32 0.2, %v15392_v53 }
 0x2f4   : > { %4504 = vmax.xlane.f32.xlu0 %v4503_v34  ;;  %vm2832_vm12 = vcmp.ge.f32.partialorder %v2800_v2, 0.0  ;;  %v2864_v60 = vmul.f32 0.2, %v2800_v2  ;;  %vm2840_vm13 = vcmp.ge.f32.partialorder %v15392_v53, 0.0  ;;  %vm2839_vm7 = vcmp.ge.f32.partialorder %v2807_v24, 0.0 }
 0x2f5   : > { %10410 = vmatmul.msk.f32.gmra.mxu0 %vm1898_vm0, %v14772_v57  ;;  %10414 = vmatmul.msk.f32.gmra.mxu1 %vm1898_vm0, %v14772_v57  ;;  %vm2831_vm6 = vcmp.ge.f32.partialorder %v2799_v48, 0.0 }
 0x2f6   : > { %v2752_v37 = vpop.f32.mrf.mxu2  ;;  %v2781_v1 = vpop.f32.mrf.mxu3 }
 0x2f7   : > { %v2697_v45 = vpop.f32.mrf.mxu0  ;;  %v2726_v16 = vpop.f32.mrf.mxu1  ;;  %4696 = vmax.xlane.f32.xlu1 %v4695_v8  ;;  %v2887_v8 = vsel %vm2823_vm11, %v15340_v23, %v2855_v38 }
 0x2f8   : > { %v2815_v29 = vmul.f32 %v2697_v45, %v14496_v47  ;;  %v2816_v50 = vmul.f32 %v2726_v16, %v14496_v47  ;;  %v3845_v54 = vpop.xlane.xlu1 %3844  ;;  %v3841_v28 = vpop.xlane.xlu0 %3840  ;;  %v2871_v16 = vmul.f32 0.2, %v2807_v24  ;;  %v4643_v45 = vmax.f32 %v3671_v32, %v4642_v44 }
 0x2f9   : > { %4300 = vmax.xlane.f32.xlu2 %v4299_v4  ;;  %v15425_v15 = vpack.c.bf16 %v3845_v54, %v3841_v28  ;;  %v3376_v4 = vld [vmem:[%s13891_s21 + $0x518] sm:$0xff]  ;;  %v2863_v28 = vmul.f32 0.2, %v2799_v48  ;;  %v2896_v32 = vsel %vm2832_vm12, %v2800_v2, %v2864_v60  ;;  %v2888_v54 = vsel %vm2824_vm9, %v15350_v42, %v2856_v10  ;;  %v3374_v42 = vld [vmem:[%s13891_s21 + $0x508] sm:$0xff] }
 0x2fa   : > { %v2879_v34 = vmul.f32 0.2, %v2815_v29  ;;  %v2880_v58 = vmul.f32 0.2, %v2816_v50  ;;  %vm2847_vm10 = vcmp.ge.f32.partialorder %v2815_v29, 0.0  ;;  %vm2848_vm8 = vcmp.ge.f32.partialorder %v2816_v50, 0.0 }
 0x2fb   : > { %10418 = vmatmul.msk.f32.gmra.mxu2 %vm1898_vm0, %v14772_v57  ;;  %18559 = vst [vmem:[#allocation90_spill] sm:$0xff] %v15425_v15  ;;  %10422 = vmatmul.msk.f32.gmra.mxu3 %vm1898_vm0, %v14772_v57  ;;  %v15430_v5 = vpop.xlane.xlu2 %3956  ;;  %v2810_v44 = vmul.f32 %v2781_v1, %v14474_v30  ;;  %v2904_v60 = vsel %vm2840_vm13, %v15392_v53, %v2872_v13  ;;  %v4050_v2 = vsel %vm3725_vm1, %v3376_v4, -inf  ;;  %v5680_v10 = vunpack.c.l.b16 %v15374_v12  ;;  %v15461_v13 = vld [vmem:[%s13891_s21 + $0x610] sm:$0xff]  ;;  %v11114_v15 = vld [vmem:[%s15713_s13 + $0x540] sm:$0xf] }
 0x2fc   : > { %v2911_v20 = vsel %vm2847_vm10, %v2815_v29, %v2879_v34  ;;  %v2912_v11 = vsel %vm2848_vm8, %v2816_v50, %v2880_v58  ;;  %v3408_v29 = vld [vmem:[%s13891_s21 + $0x618] sm:$0xff]  ;;  %v3375_v50 = vld [vmem:[%s13891_s21 + $0x510] sm:$0xff]  ;;  %v2809_v58 = vmul.f32 %v2752_v37, %v14474_v30  ;;  %v2903_v34 = vsel %vm2839_vm7, %v2807_v24, %v2871_v16  ;;  %4644 = vmax.xlane.f32.xlu0 %v4643_v45  ;;  %v3373_v45 = vld [vmem:[%s13891_s21 + $0x500] sm:$0xff] }
 0x2fd   : > { %10411 = vmatmul.msk.f32.gmra.mxu0 %vm1898_vm0, %v14795_v19  ;;  %3072 = vmatpush.msrb.mxu1 %v2912_v11  ;;  %v2802_v53 = vmul.f32 %v15325_v56, %v14456_v17  ;;  %v15464_v4 = vsel %vm3725_vm1, %v3408_v29, -inf  ;;  %v18561_v16 = vmax.f32 %v15363_v40, %v15366_v9  ;;  %vm2842_vm8 = vcmp.ge.f32.partialorder %v2810_v44, 0.0 }
 0x2fe   : > { %10415 = vmatmul.msk.f32.gmra.mxu1 %vm1898_vm0, %v14795_v19  ;;  %v2755_v23 = vpop.f32.mrf.mxu2  ;;  %v2784_v38 = vpop.f32.mrf.mxu3  ;;  %3043 = vmatpush.msrb.mxu0 %v2911_v20  ;;  %v2801_v20 = vmul.f32 %v15323_v6, %v14456_v17  ;;  %v2895_v6 = vsel %vm2831_vm6, %v2799_v48, %v2863_v28  ;;  %v2873_v29 = vmul.f32 0.2, %v2809_v58  ;;  %vm2841_vm6 = vcmp.ge.f32.partialorder %v2809_v58, 0.0  ;;  %v3350_v48 = vld [vmem:[%s13891_s21 + $0x448] sm:$0xff]  ;;  %v18602_v17 = vld [vmem:[#allocation25_spill] sm:$0xff] }
 0x2ff   : > { %v2817_v37 = vmul.f32 %v2755_v23, %v14496_v47  ;;  %v2818_v1 = vmul.f32 %v2784_v38, %v14496_v47  ;;  %3073 = vmatpush.msrb.mxu1 %v2904_v60  ;;  %v4051_v23 = vmax.f32 %v3375_v50, %v4050_v2  ;;  %v4046_v60 = vsel %vm3725_vm1, %v3374_v42, -inf  ;;  %v3349_v42 = vld [vmem:[%s13891_s21 + $0x440] sm:$0xff] }
 0x300   : > { %3044 = vmatpush.msrb.mxu0 %v2903_v34  ;;  %v15466_v11 = vpop.xlane.xlu1 %4296  ;;  %v15472_v56 = vpop.xlane.xlu0 %3980  ;;  %v2874_v34 = vmul.f32 0.2, %v2810_v44  ;;  %v2866_v50 = vmul.f32 0.2, %v2802_v53  ;;  %v4047_v2 = vmax.f32 %v3373_v45, %v4046_v60  ;;  %vm2833_vm10 = vcmp.ge.f32.partialorder %v2801_v20, 0.0  ;;  %v3274_v60 = vld [vmem:[%s13891_s21 + $0x1e8] sm:$0xff] }
 0x301   : > { %18560 = vst [vmem:[#allocation91_spill] sm:$0xff] %v15466_v11  ;;  %v2881_v38 = vmul.f32 0.2, %v2817_v37  ;;  %v2882_v24 = vmul.f32 0.2, %v2818_v1  ;;  %4488 = vmax.xlane.f32.xlu2 %v18561_v16  ;;  %3074 = vmatpush.msrb.mxu1 %v2896_v32  ;;  %vm2849_vm7 = vcmp.ge.f32.partialorder %v2817_v37, 0.0  ;;  %v5554_v45 = vunpack.c.l.b16 %v15378_v43 }
 0x302   : > { %18562 = vst [vmem:[#allocation92_spill] sm:$0xff] %v15472_v56  ;;  %3045 = vmatpush.msrb.mxu0 %v2895_v6  ;;  %vm2850_vm13 = vcmp.ge.f32.partialorder %v2818_v1, 0.0  ;;  %4052 = vmax.xlane.f32.xlu1 %v4051_v23  ;;  %v2865_v32 = vmul.f32 0.2, %v2801_v20  ;;  %v3998_v23 = vsel %vm3725_vm1, %v3350_v48, -inf  ;;  %vm2834_vm11 = vcmp.ge.f32.partialorder %v2802_v53, 0.0 }
 0x303   : > { %10419 = vmatmul.msk.f32.gmra.mxu2 %vm1898_vm0, %v14795_v19  ;;  %3075 = vmatpush.msrb.mxu1 %v2888_v54  ;;  %v2913_v40 = vsel %vm2849_vm7, %v2817_v37, %v2881_v38  ;;  %v2914_v9 = vsel %vm2850_vm13, %v2818_v1, %v2882_v24  ;;  %v15481_v28 = vpop.xlane.xlu2 %4328  ;;  %v2857_v54 = vmul.f32 0.2, %v15407_v27  ;;  %v4115_v37 = vmax.f32 %v15461_v13, %v15464_v4  ;;  %v3632_v16 = vld [vmem:[%s13891_s21 + $0xd18] sm:$0xff]  ;;  %v18621_v56 = vld [vmem:[#allocation70_spill] sm:$0xff] }
 0x304   : > { %10423 = vmatmul.msk.f32.gmra.mxu3 %vm1898_vm0, %v14795_v19  ;;  %3046 = vmatpush.msrb.mxu0 %v2887_v8  ;;  %v2858_v8 = vmul.f32 0.2, %v15411_v46  ;;  %v2905_v1 = vsel %vm2841_vm6, %v2809_v58, %v2873_v29  ;;  %v2906_v38 = vsel %vm2842_vm8, %v2810_v44, %v2874_v34  ;;  %v3999_v24 = vmax.f32 %v3349_v42, %v3998_v23  ;;  %v3379_v23 = vld [vmem:[%s13891_s21 + $0x530] sm:$0xff] }
 0x305   : > { %3101 = vmatpush.msrb.mxu2 %v2913_v40  ;;  %3130 = vmatpush.msrb.mxu3 %v2914_v9  ;;  %v5681_v6 = vunpack.c.h.b16 %v15374_v12  ;;  %vm2825_vm9 = vcmp.ge.f32.partialorder %v15407_v27, 0.0  ;;  %vm2826_vm12 = vcmp.ge.f32.partialorder %v15411_v46, 0.0  ;;  %v5555_v13 = vunpack.c.h.b16 %v15378_v43 }
 0x306   : > { %10424 = vmatmul.msk.f32.vlgmr.msrb.gmra.mxu0 %vm1898_vm0, %v14718_v63  ;;  %10428 = vmatmul.msk.f32.vlgmr.msrb.gmra.mxu1 %vm1898_vm0, %v14718_v63  ;;  %v5682_v4 = vunpack.c.l.b16 %v15382_v0  ;;  %v2897_v58 = vsel %vm2833_vm10, %v2801_v20, %v2865_v32  ;;  %v2898_v44 = vsel %vm2834_vm11, %v2802_v53, %v2866_v50  ;;  %v18563_v34 = vunpack.c.h.b16 %v15302_v3  ;;  %v3631_v53 = vld [vmem:[%s13891_s21 + $0xd10] sm:$0xff]  ;;  %v18564_v32 = vld [vmem:[#allocation10_spill] sm:$0xff]  ;;  %v3273_v50 = vld [vmem:[%s13891_s21 + $0x1e0] sm:$0xff] }
 0x307   : > { %3102 = vmatpush.msrb.mxu2 %v2905_v1  ;;  %3131 = vmatpush.msrb.mxu3 %v2906_v38  ;;  %v5872_v9 = vsel %vm5781_vm14, %v15370_v55, %v15358_v52  ;;  %v4774_v43 = vpack.c.bf16 %v14608_v61, %v14588_v35  ;;  %v4562_v48 = vsel %vm3725_vm1, %v3632_v16, -inf  ;;  %vm5837_vm7 = vcmask 1048512   ;;  %v18565_v1 = vld [vmem:[#allocation13_spill] sm:$0xff]  ;;  %v18566_v38 = vld [vmem:[#allocation15_spill] sm:$0xff] }
 0x308   : > { %v15505_v29 = vpop.xlane.xlu1 %4356  ;;  %4048 = vmax.xlane.f32.xlu0 %v4047_v2  ;;  %v5840_v40 = vperm.slane %v18563_v34, %v14987_v22  ;;  %v15515_v20 = vpop.xlane.xlu0 %4352  ;;  %v4814_v3 = vpack.c.bf16 %v18564_v32, %v14606_v59  ;;  %v2889_v52 = vsel %vm2825_vm9, %v15407_v27, %v2857_v54  ;;  %v2890_v35 = vsel %vm2826_vm12, %v15411_v46, %v2858_v8  ;;  %v3380_v54 = vld [vmem:[%s13891_s21 + $0x538] sm:$0xff] }
 0x309   : > { %3103 = vmatpush.msrb.mxu2 %v2897_v58  ;;  %3132 = vmatpush.msrb.mxu3 %v2898_v44  ;;  %v6118_v61 = vperm.slane %v5680_v10, %v14975_v25  ;;  %v6119_v55 = vperm.slane %v5681_v6, %v14987_v22  ;;  %v5873_v59 = vperm.slane %v5554_v45, %v14998_v7  ;;  %v3846_v27 = vsel %vm3725_vm1, %v3274_v60, -inf  ;;  %v18567_v6 = vld [vmem:[#allocation11_spill] sm:$0xff]  ;;  %v18568_v45 = vld [vmem:[#allocation14_spill] sm:$0xff] }
 0x30a   : > { %4116 = vmax.xlane.f32.xlu2 %v4115_v37  ;;  %4000 = vmax.xlane.f32.xlu1 %v3999_v24  ;;  %v5875_v2 = vperm.slane %v5555_v13, %v15006_v21  ;;  %v5683_v46 = vunpack.c.h.b16 %v15382_v0  ;;  %v6121_v42 = vperm.slane %v5682_v4, %v14998_v7  ;;  %v4563_v10 = vmax.f32 %v3631_v53, %v4562_v48  ;;  %v3378_v58 = vld [vmem:[%s13891_s21 + $0x528] sm:$0xff]  ;;  %v18570_v53 = vld [vmem:[#allocation12_spill] sm:$0xff] }
 0x30b   : > { %3104 = vmatpush.msrb.mxu2 %v2889_v52  ;;  %3133 = vmatpush.msrb.mxu3 %v2890_v35  ;;  %v15541_v12 = vpop.xlane.xlu2 %4412  ;;  %v5568_v37 = vunpack.c.l.b16 %v4774_v43  ;;  %v5569_v8 = vunpack.c.h.b16 %v4774_v43  ;;  %v15547_v24 = vpack.c.bf16 %v18566_v38, %v18565_v1  ;;  %v4058_v0 = vsel %vm3725_vm1, %v3380_v54, -inf  ;;  %v18569_v43 = vld [vmem:[#allocation9_spill] sm:$0xff]  ;;  %v3411_v1 = vld [vmem:[%s13891_s21 + $0x630] sm:$0xff] }
 0x30c   : > { %10432 = vmatmul.msk.f32.vlgmr.msrb.gmra.mxu2 %vm1898_vm0, %v14718_v63  ;;  %10436 = vmatmul.msk.f32.vlgmr.msrb.gmra.mxu3 %vm1898_vm0, %v14718_v63  ;;  %v5648_v16 = vunpack.c.l.b16 %v4814_v3  ;;  %v15552_v13 = vpack.c.bf16 %v18568_v45, %v18567_v6  ;;  %v3847_v63 = vmax.f32 %v3273_v50, %v3846_v27  ;;  %v4059_v4 = vmax.f32 %v3379_v23, %v4058_v0  ;;  %v3412_v50 = vld [vmem:[%s13891_s21 + $0x638] sm:$0xff]  ;;  %v18574_v54 = vld [vmem:[#allocation17_spill] sm:$0xff]  ;;  %v18576_v0 = vld [vmem:[#allocation18_spill] sm:$0xff] }
 0x30d   : > { %v6120_v44 = vsel %vm5781_vm14, %v6119_v55, %v6118_v61  ;;  %v5874_v60 = vsel %vm5785_vm15, %v5873_v59, %v5872_v9  ;;  %v5649_v34 = vunpack.c.h.b16 %v4814_v3  ;;  %v4838_v48 = vpack.c.bf16 %v18570_v53, %v18569_v43  ;;  %v18580_v43 = vld [vmem:[#allocation19_spill] sm:$0xff] }
 0x30e   : > { %10425 = vmatmul.msk.f32.gmra.mxu0 %vm1898_vm0, %v14748_v33  ;;  %10429 = vmatmul.msk.f32.gmra.mxu1 %vm1898_vm0, %v14748_v33  ;;  %v15566_v32 = vsel %vm5837_vm7, %v15336_v62, %v15345_v49  ;;  %v15570_v52 = vsel %vm5781_vm14, %v5840_v40, %v15355_v39  ;;  %v6123_v35 = vperm.slane %v5683_v46, %v15006_v21  ;;  %v5570_v61 = vunpack.c.l.b16 %v15547_v24  ;;  %v3377_v62 = vld [vmem:[%s13891_s21 + $0x520] sm:$0xff]  ;;  %v18581_v53 = vld [vmem:[#allocation23_spill] sm:$0xff] }
 0x30f   : > { %18571 = vst [vmem:[#allocation10_spill] sm:$0xff] %v15566_v32  ;;  %v5901_v9 = vperm.slane %v5568_v37, %v14975_v25  ;;  %v5902_v3 = vperm.slane %v5569_v8, %v14987_v22  ;;  %v4054_v49 = vsel %vm3725_vm1, %v3378_v58, -inf  ;;  %v5876_v39 = vsel %vm5789_vm2, %v5875_v2, %v5874_v60  ;;  %v18575_v37 = vld [vmem:[#allocation16_spill] sm:$0xff]  ;;  %v18579_v60 = vld [vmem:[#allocation63_spill] sm:$0xff] }
 0x310   : > { %v15574_v27 = vpop.xlane.xlu1 %4112  ;;  %4564 = vmax.xlane.f32.xlu0 %v4563_v10  ;;  %v15579_v55 = vpop.xlane.xlu0 %4492  ;;  %v6122_v40 = vsel %vm5785_vm15, %v6121_v42, %v6120_v44  ;;  %v6056_v59 = vperm.slane %v5648_v16, %v14975_v25  ;;  %v5556_v46 = vunpack.c.l.b16 %v15552_v13  ;;  %v6057_v10 = vperm.slane %v5649_v34, %v14987_v22  ;;  %v18577_v16 = vld [vmem:[#allocation20_spill] sm:$0xff] }
 0x311   : > { %18572 = vst [vmem:[#allocation13_spill] sm:$0xff] %v15574_v27  ;;  %v5696_v23 = vunpack.c.l.b16 %v4838_v48  ;;  %v15590_v8 = vpack.c.bf16 %v18575_v37, %v18574_v54  ;;  %v4122_v38 = vsel %vm3725_vm1, %v3412_v50, -inf  ;;  %v5697_v2 = vunpack.c.h.b16 %v4838_v48  ;;  %v3446_v50 = vld [vmem:[%s13891_s21 + $0x748] sm:$0xff]  ;;  %v18583_v37 = vld [vmem:[#allocation65_spill] sm:$0xff] }
 0x312   : > { %18573 = vst [vmem:[#allocation15_spill] sm:$0xff] %v15579_v55  ;;  %3848 = vmax.xlane.f32.xlu2 %v3847_v63  ;;  %4060 = vmax.xlane.f32.xlu1 %v4059_v4  ;;  %v5571_v42 = vunpack.c.h.b16 %v15547_v24  ;;  %v15597_v6 = vpack.c.bf16 %v18577_v16, %v18576_v0  ;;  %v4055_v63 = vmax.f32 %v3377_v62, %v4054_v49  ;;  %v5557_v44 = vunpack.c.h.b16 %v15552_v13  ;;  %v3420_v62 = vld [vmem:[%s13891_s21 + $0x678] sm:$0xff]  ;;  %v18585_v0 = vld [vmem:[#allocation26_spill] sm:$0xff] }
 0x313   : > { %v15603_v45 = vpop.xlane.xlu2 %3824  ;;  %v15607_v4 = vsel %vm5789_vm2, %v6123_v35, %v6122_v40  ;;  %v5903_v24 = vsel %vm5781_vm14, %v5902_v3, %v5901_v9  ;;  %v5904_v58 = vperm.slane %v5570_v61, %v14998_v7  ;;  %v5877_v34 = vperm.slane %v5556_v46, %v18579_v60  ;;  %v3445_v35 = vld [vmem:[%s13891_s21 + $0x740] sm:$0xff] }
 0x314   : > { %10433 = vmatmul.msk.f32.gmra.mxu2 %vm1898_vm0, %v14748_v33  ;;  %10437 = vmatmul.msk.f32.gmra.mxu3 %vm1898_vm0, %v14748_v33  ;;  %18578 = vst [vmem:[#allocation11_spill] sm:$0xff] %v15603_v45  ;;  %v15615_v33 = vpack.c.bf16 %v18581_v53, %v18580_v43  ;;  %v4123_v48 = vmax.f32 %v3411_v1, %v4122_v38  ;;  %v5650_v3 = vunpack.c.l.b16 %v15590_v8  ;;  %v4190_v61 = vsel %vm3725_vm1, %v3446_v50, -inf  ;;  %v18584_v38 = vld [vmem:[#allocation27_spill] sm:$0xff]  ;;  %v18587_v50 = vld [vmem:[#allocation30_spill] sm:$0xff]  ;;  %v18622_v45 = vld [vmem:[#allocation33_spill] sm:$0xff] }
 0x315   : > { %v6058_v9 = vsel %vm5781_vm14, %v6057_v10, %v6056_v59  ;;  %v6149_v13 = vperm.slane %v5696_v23, %v14975_v25  ;;  %v6150_v49 = vperm.slane %v5697_v2, %v14987_v22  ;;  %v5906_v40 = vperm.slane %v5571_v42, %v15006_v21  ;;  %v3666_v59 = vld [vmem:[%s13891_s21 + $0xe28] sm:$0xff]  ;;  %v3419_v43 = vld [vmem:[%s13891_s21 + $0x670] sm:$0xff] }
 0x316   : > { %10426 = vmatmul.msk.f32.gmra.mxu0 %vm1898_vm0, %v14772_v57  ;;  %10430 = vmatmul.msk.f32.gmra.mxu1 %vm1898_vm0, %v14772_v57  ;;  %v5684_v46 = vunpack.c.l.b16 %v15597_v6  ;;  %v4191_v23 = vmax.f32 %v3445_v35, %v4190_v61  ;;  %v5905_v54 = vsel %vm5785_vm15, %v5904_v58, %v5903_v24  ;;  %v5879_v1 = vperm.slane %v5557_v44, %v18583_v37  ;;  %v18586_v35 = vld [vmem:[#allocation31_spill] sm:$0xff] }
 0x317   : > { %v15642_v16 = vpack.c.bf16 %v18585_v0, %v18584_v38  ;;  %v4138_v42 = vsel %vm3725_vm1, %v3420_v62, -inf  ;;  %v5878_v53 = vsel %vm5793_vm3, %v5877_v34, %v5876_v39  ;;  %v15650_v61 = vpack.c.bf16 %v18587_v50, %v18586_v35  ;;  %v3665_v38 = vld [vmem:[%s13891_s21 + $0xe20] sm:$0xff] }
 0x318   : > { %v4629_v10 = vpop.xlane.xlu1 %4628  ;;  %4056 = vmax.xlane.f32.xlu0 %v4055_v63  ;;  %v4625_v2 = vpop.xlane.xlu0 %4624  ;;  %v5698_v63 = vunpack.c.l.b16 %v15615_v33  ;;  %v5651_v58 = vunpack.c.h.b16 %v15590_v8  ;;  %v6059_v44 = vperm.slane %v5650_v3, %v14998_v7  ;;  %v5685_v62 = vunpack.c.h.b16 %v15597_v6  ;;  %v18590_v0 = vld [vmem:[#allocation21_spill] sm:$0xff]  ;;  %v3607_v3 = vld [vmem:[%s13891_s21 + $0xc50] sm:$0xff] }
 0x319   : > { %v15652_v24 = vpack.c.bf16 %v4629_v10, %v4625_v2  ;;  %v4630_v39 = vsel %vm3725_vm1, %v3666_v59, -inf  ;;  %v5699_v34 = vunpack.c.h.b16 %v15615_v33  ;;  %v18589_v10 = vld [vmem:[#allocation22_spill] sm:$0xff]  ;;  %v4139_v6 = vmax.f32 %v3419_v43, %v4138_v42  ;;  %v3608_v59 = vld [vmem:[%s13891_s21 + $0xc58] sm:$0xff] }
 0x31a   : > { %4124 = vmax.xlane.f32.xlu2 %v4123_v48  ;;  %4192 = vmax.xlane.f32.xlu1 %v4191_v23  ;;  %v6125_v48 = vperm.slane %v5684_v46, %v18579_v60  ;;  %v4822_v23 = vpack.c.bf16 %v18590_v0, %v18589_v10  ;;  %v6151_v33 = vsel %vm5781_vm14, %v6150_v49, %v6149_v13  ;;  %v5572_v2 = vunpack.c.l.b16 %v15642_v16  ;;  %v3606_v13 = vld [vmem:[%s13891_s21 + $0xc48] sm:$0xff] }
 0x31b   : > { %18588 = vst [vmem:[#allocation14_spill] sm:$0xff] %v15652_v24  ;;  %v15673_v8 = vpop.xlane.xlu2 %3908  ;;  %v5907_v46 = vsel %vm5789_vm2, %v5906_v40, %v5905_v54  ;;  %v4514_v35 = vsel %vm3725_vm1, %v3608_v59, -inf  ;;  %v6152_v50 = vperm.slane %v5698_v63, %v14998_v7  ;;  %v5686_v10 = vunpack.c.l.b16 %v15650_v61 }
 0x31c   : > { %10434 = vmatmul.msk.f32.gmra.mxu2 %vm1898_vm0, %v14772_v57  ;;  %10438 = vmatmul.msk.f32.gmra.mxu3 %vm1898_vm0, %v14772_v57  ;;  %v4631_v57 = vmax.f32 %v3665_v38, %v4630_v39  ;;  %v4515_v43 = vmax.f32 %v3607_v3, %v4514_v35  ;;  %v15689_v49 = vsel %vm5797_vm4, %v5879_v1, %v5878_v53  ;;  %v5664_v59 = vunpack.c.l.b16 %v4822_v23  ;;  %v3344_v39 = vld [vmem:[%s13891_s21 + $0x418] sm:$0xff]  ;;  %v18592_v35 = vld [vmem:[#allocation35_spill] sm:$0xff] }
 0x31d   : > { %v6060_v40 = vsel %vm5785_vm15, %v6059_v44, %v6058_v9  ;;  %v6061_v54 = vperm.slane %v5651_v58, %v15006_v21  ;;  %v6127_v42 = vperm.slane %v5685_v62, %v18583_v37  ;;  %v6154_v63 = vperm.slane %v5699_v34, %v15006_v21  ;;  %v3605_v58 = vld [vmem:[%s13891_s21 + $0xc40] sm:$0xff]  ;;  %v18591_v34 = vld [vmem:[#allocation67_spill] sm:$0xff] }
 0x31e   : > { %10427 = vmatmul.msk.f32.gmra.mxu0 %vm1898_vm0, %v14795_v19  ;;  %10431 = vmatmul.msk.f32.gmra.mxu1 %vm1898_vm0, %v14795_v19  ;;  %v6126_v0 = vsel %vm5793_vm3, %v6125_v48, %v15607_v4  ;;  %v5665_v38 = vunpack.c.h.b16 %v4822_v23  ;;  %v5573_v1 = vunpack.c.h.b16 %v15642_v16  ;;  %v5908_v53 = vperm.slane %v5572_v2, %v18579_v60  ;;  %v18593_v4 = vld [vmem:[#allocation34_spill] sm:$0xff]  ;;  %v18597_v2 = vld [vmem:[#allocation24_spill] sm:$0xff] }
 0x31f   : > { %v5687_v9 = vunpack.c.h.b16 %v15650_v61  ;;  %v4510_v44 = vsel %vm3725_vm1, %v3606_v13, -inf  ;;  %v6153_v62 = vsel %vm5785_vm15, %v6152_v50, %v6151_v33  ;;  %v6129_v3 = vperm.slane %v5686_v10, %v18591_v34  ;;  %v18595_v61 = vld [vmem:[#allocation39_spill] sm:$0xff]  ;;  %v18598_v50 = vld [vmem:[#allocation53_spill] sm:$0xff] }
 0x320   : > { %4140 = vmax.xlane.f32.xlu0 %v4139_v6  ;;  %v4770_v48 = vpack.c.bf16 %v18593_v4, %v18592_v35  ;;  %v15708_v23 = vpop.xlane.xlu1 %4120  ;;  %v6128_v16 = vsel %vm5797_vm4, %v6127_v42, %v6126_v0  ;;  %v18596_v6 = vld [vmem:[#allocation38_spill] sm:$0xff]  ;;  %v4769_v10 = vpack.c.bf16 %v18598_v50, %v18597_v2  ;;  %v3343_v13 = vld [vmem:[%s13891_s21 + $0x410] sm:$0xff]  ;;  %v15722_v35 = vpop.xlane.xlu0 %3852  ;;  %v6088_v4 = vperm.slane %v5665_v38, %v14987_v22  ;;  %v11178_v38 = vld [vmem:[%s15713_s13 + $0x5c0] sm:$0xf] }
 0x321   : > { %18594 = vst [vmem:[#allocation9_spill] sm:$0xff] %v15708_v23  ;;  %v4824_v33 = vpack.c.bf16 %v18596_v6, %v18595_v61  ;;  %v4511_v0 = vmax.f32 %v3605_v58, %v4510_v44  ;;  %v5909_v61 = vsel %vm5793_vm3, %v5908_v53, %v5907_v46  ;;  %v18600_v6 = vld [vmem:[#allocation69_spill] sm:$0xff]  ;;  %v18601_v50 = vld [vmem:[#allocation50_spill] sm:$0xff]  ;;  %v6130_v30 = vsel %vm5801_vm5, %v6129_v3, %v6128_v16 }
 0x322   : > { %4632 = vmax.xlane.f32.xlu2 %v4631_v57  ;;  %4516 = vmax.xlane.f32.xlu1 %v4515_v43  ;;  %v3986_v57 = vsel %vm3725_vm1, %v3344_v39, -inf  ;;  %18599 = vst [vmem:[#allocation12_spill] sm:$0xff] %v15722_v35  ;;  %v6087_v43 = vperm.slane %v5664_v59, %v14975_v25  ;;  %v5910_v39 = vperm.slane %v5573_v1, %v18583_v37  ;;  %v5560_v47 = vunpack.c.l.b16 %v4770_v48 }
 0x323   : > { %v15730_v42 = vpop.xlane.xlu2 %4280  ;;  %v6131_v2 = vperm.slane %v5687_v9, %v18600_v6  ;;  %v4759_v59 = vpack.c.bf16 %v18602_v17, %v18601_v50  ;;  %v5561_v24 = vunpack.c.h.b16 %v4770_v48  ;;  %v3987_v23 = vmax.f32 %v3343_v13, %v3986_v57  ;;  %v18603_v17 = vld [vmem:[#allocation43_spill] sm:$0xff]  ;;  %v18604_v9 = vld [vmem:[#allocation42_spill] sm:$0xff]  ;;  %v18610_v50 = vld [vmem:[#allocation28_spill] sm:$0xff] }
 0x324   : > { %10435 = vmatmul.msk.f32.gmra.mxu2 %vm1898_vm0, %v14795_v19  ;;  %10439 = vmatmul.msk.f32.gmra.mxu3 %vm1898_vm0, %v14795_v19  ;;  %v12748_v19 = vld [vmem:[%s15713_s13 + $0x5dc] sm:$0xf0]  ;;  %v5668_v22 = vunpack.c.l.b16 %v4824_v33  ;;  %v5669_v25 = vunpack.c.h.b16 %v4824_v33  ;;  %v5558_v58 = vunpack.c.l.b16 %v4769_v10  ;;  %v15741_v46 = vsel %vm5789_vm2, %v6061_v54, %v6060_v40  ;;  %v3598_v48 = vld [vmem:[%s13891_s21 + $0xc08] sm:$0xff]  ;;  %v18606_v40 = vld [vmem:[#allocation47_spill] sm:$0xff] }
 0x325   : > { %v11179_v44 = vor.u32 %v12748_v19, %v11178_v38  ;;  %v15744_v1 = vsel %vm5789_vm2, %v6154_v63, %v6153_v62  ;;  %v15747_v53 = vsel %vm5781_vm14, %v6088_v4, %v6087_v43  ;;  %v4761_v3 = vpack.c.bf16 %v18604_v9, %v18603_v17  ;;  %v18607_v54 = vld [vmem:[#allocation46_spill] sm:$0xff]  ;;  %v18608_v62 = vld [vmem:[#allocation71_spill] sm:$0xff] }
 0x326   : > { %v15753_v16 = vsel %vm5797_vm4, %v5910_v39, %v5909_v61  ;;  %vm18605_vm13 = vcmask 523712   ;;  %v4818_v13 = vpack.c.bf16 %v18607_v54, %v18606_v40  ;;  %v5538_v63 = vunpack.c.l.b16 %v4759_v59  ;;  %v18609_v43 = vld [vmem:[#allocation74_spill] sm:$0xff]  ;;  %v18611_v61 = vld [vmem:[#allocation64_spill] sm:$0xff]  ;;  %v18613_v17 = vld [vmem:[#allocation51_spill] sm:$0xff] }
 0x327   : > { %v15756_v33 = vsel %vm18605_vm13, %v6131_v2, %v6130_v30  ;;  %8915 = vmatpush.bf16.msra.mxu2 %v11179_v44  ;;  %v15761_v57 = vperm.slane %v5560_v47, %v18608_v62  ;;  %v15764_v4 = vperm.slane %v5561_v24, %v18609_v43  ;;  %v4823_v39 = vpack.c.bf16 %v18611_v61, %v18610_v50  ;;  %v3597_v47 = vld [vmem:[%s13891_s21 + $0xc00] sm:$0xff]  ;;  %v18614_v40 = vld [vmem:[#allocation32_spill] sm:$0xff]  ;;  %vm18623_vm6 = vmmov %vm18605_vm13 }
 0x328   : > { %4512 = vmax.xlane.f32.xlu0 %v4511_v0  ;;  %v5559_v0 = vunpack.c.h.b16 %v4769_v10  ;;  %v15769_v30 = vperm.slane %v5668_v22, %v18579_v60  ;;  %v15772_v2 = vperm.slane %v5669_v25, %v18583_v37  ;;  %v5881_v38 = vperm.slane %v5558_v58, %v18591_v34  ;;  %v18612_v10 = vld [vmem:[#allocation52_spill] sm:$0xff]  ;;  %v15785_v25 = vpop.xlane.xlu1 %4364  ;;  %vm18641_vm11 = vmmov %vm18623_vm6 }
 0x329   : > { %v4494_v24 = vsel %vm3725_vm1, %v3598_v48, -inf  ;;  %v5542_v19 = vunpack.c.l.b16 %v4761_v3  ;;  %v5539_v44 = vunpack.c.h.b16 %v4759_v59  ;;  %v4842_v9 = vpack.c.bf16 %v18613_v17, %v18612_v10  ;;  %18617 = vst [vmem:[#allocation16_spill] sm:$0xff] %v15785_v25  ;;  %v11146_v50 = vld [vmem:[%s15713_s13 + $0x580] sm:$0xf]  ;;  %v15790_v48 = vpop.xlane.xlu0 %4360  ;;  %vm18650_vm12 = vmmov %vm18623_vm6 }
 0x32a   : > { %3988 = vmax.xlane.f32.xlu2 %v3987_v23  ;;  %v18615_v23 = vld [vmem:[#allocation75_spill] sm:$0xff]  ;;  %v12740_v58 = vld [vmem:[%s15713_s13 + $0x59c] sm:$0xf0]  ;;  %v5543_v61 = vunpack.c.h.b16 %v4761_v3  ;;  %v5656_v35 = vunpack.c.l.b16 %v4818_v13  ;;  %v5842_v27 = vperm.slane %v5538_v63, %v14998_v7  ;;  %18618 = vst [vmem:[#allocation18_spill] sm:$0xff] %v15790_v48  ;;  %v5883_v17 = vperm.slane %v5559_v0, %v18600_v6  ;;  %vm18651_vm13 = vmmov %vm18623_vm6 }
 0x32b   : > { %v15781_v54 = vpack.c.bf16 %v18615_v23, %v18614_v40  ;;  %v15783_v22 = vpop.xlane.xlu2 %4340  ;;  %v11147_v59 = vor.u32 %v12740_v58, %v11146_v50  ;;  %v12732_v10 = vld [vmem:[%s15713_s13 + $0x55c] sm:$0xf0]  ;;  %v18619_v40 = vld [vmem:[#allocation58_spill] sm:$0xff]  ;;  %v18620_v23 = vld [vmem:[#allocation29_spill] sm:$0xff]  ;;  %v5666_v32 = vunpack.c.l.b16 %v4823_v39  ;;  %v4495_v11 = vmax.f32 %v3597_v47, %v4494_v24 }
 0x32c   : > { %18616 = vst [vmem:[#allocation17_spill] sm:$0xff] %v15783_v22  ;;  %v4816_v55 = vpack.c.bf16 %v18620_v23, %v18619_v40  ;;  %v5657_v25 = vunpack.c.h.b16 %v4818_v13  ;;  %v5882_v3 = vsel %vm5801_vm5, %v5881_v38, %v15689_v49  ;;  %v15801_v63 = vpack.c.bf16 %v18622_v45, %v18621_v56  ;;  %v3696_v40 = vld [vmem:[%s13891_s21 + $0xf18] sm:$0xff] }
 0x32d   : > { %8916 = vmatpush.bf16.msra.mxu2 %v11147_v59  ;;  %v11115_v50 = vor.u32 %v12732_v10, %v11114_v15  ;;  %v5844_v58 = vperm.slane %v5539_v44, %v15006_v21  ;;  %v5704_v48 = vunpack.c.l.b16 %v4842_v9  ;;  %v5705_v0 = vunpack.c.h.b16 %v4842_v9 }
 0x32e   : > { %v5540_v22 = vunpack.c.l.b16 %v15781_v54  ;;  %v15807_v47 = vperm.slane %v5542_v19, %v18591_v34  ;;  %v15810_v13 = vperm.slane %v5543_v61, %v18600_v6  ;;  %v5843_v56 = vsel %vm5785_vm15, %v5842_v27, %v15570_v52  ;;  %v3695_v52 = vld [vmem:[%s13891_s21 + $0xf10] sm:$0xff]  ;;  %v12724_v61 = vld [vmem:[%s15713_s13 + $0x51c] sm:$0xf0] }
 0x32f   : > { %v5667_v45 = vunpack.c.h.b16 %v4823_v39  ;;  %v15815_v15 = vperm.slane %v5656_v35, %v18608_v62  ;;  %v5884_v49 = vsel %vm18623_vm6, %v5883_v17, %v5882_v3  ;;  %v5652_v38 = vunpack.c.l.b16 %v4816_v55 }
 0x330   : > { %v6090_v24 = vperm.slane %v5666_v32, %v14998_v7  ;;  %v15820_v19 = vperm.slane %v5657_v25, %v18609_v43  ;;  %v5700_v44 = vunpack.c.l.b16 %v15801_v63  ;;  %v5541_v9 = vunpack.c.h.b16 %v15781_v54  ;;  %v11082_v54 = vld [vmem:[%s15713_s13 + $0x500] sm:$0xf]  ;;  %v15838_v59 = vpop.xlane.xlu1 %3984 }
 0x331   : > { %v4690_v27 = vsel %vm3725_vm1, %v3696_v40, -inf  ;;  %8917 = vmatpush.bf16.msra.mxu2 %v11115_v50  ;;  %v5845_v35 = vsel %vm5789_vm2, %v5844_v58, %v5843_v56  ;;  %v15828_v39 = vperm.slane %v5704_v48, %v18608_v62  ;;  %v5846_v32 = vperm.slane %v5540_v22, %v18579_v60  ;;  %18625 = vst [vmem:[#allocation63_spill] sm:$0xff] %v15838_v59  ;;  %v15843_v3 = vpop.xlane.xlu0 %4636  ;;  %v11050_v22 = vld [vmem:[%s15713_s13 + $0x4c0] sm:$0xf]  ;;  %v18628_v40 = vld [vmem:[#allocation62_spill] sm:$0xff]  ;;  %v18629_v56 = vld [vmem:[#allocation61_spill] sm:$0xff] }
 0x332   : > { %4496 = vmax.xlane.f32.xlu2 %v4495_v11  ;;  %v15831_v11 = vperm.slane %v5705_v0, %v18609_v43  ;;  %vm18626_vm8 = vcmask 589312   ;;  %v5653_v17 = vunpack.c.h.b16 %v4816_v55  ;;  %v6092_v48 = vperm.slane %v5667_v45, %v15006_v21  ;;  %18627 = vst [vmem:[#allocation19_spill] sm:$0xff] %v15843_v3  ;;  %v12716_v50 = vld [vmem:[%s15713_s13 + $0x4dc] sm:$0xf0]  ;;  %v3673_v55 = vld [vmem:[%s13891_s21 + $0xe60] sm:$0xff]  ;;  %v3635_v21 = vld [vmem:[%s13891_s21 + $0xd30] sm:$0xff] }
 0x333   : > { %v15834_v25 = vpop.xlane.xlu2 %4472  ;;  %v5886_v10 = vsel %vm18626_vm8, %v15761_v57, %v5884_v49  ;;  %v11083_v23 = vor.u32 %v12724_v61, %v11082_v54  ;;  %v6063_v58 = vperm.slane %v5652_v38, %v18579_v60  ;;  %v6091_v0 = vsel %vm5785_vm15, %v6090_v24, %v15747_v53  ;;  %v3674_v49 = vld [vmem:[%s13891_s21 + $0xe68] sm:$0xff]  ;;  %v3636_v7 = vld [vmem:[%s13891_s21 + $0xd38] sm:$0xff]  ;;  %vm18648_vm9 = vmmov %vm18626_vm8 }
 0x334   : > { %18624 = vst [vmem:[#allocation20_spill] sm:$0xff] %v15834_v25  ;;  %v4779_v59 = vpack.c.bf16 %v18629_v56, %v18628_v40  ;;  %v4691_v57 = vmax.f32 %v3695_v52, %v4690_v27  ;;  %v5701_v45 = vunpack.c.h.b16 %v15801_v63  ;;  %v6156_v54 = vperm.slane %v5700_v44, %v18579_v60  ;;  %v18630_v25 = vld [vmem:[#allocation73_spill] sm:$0xff]  ;;  %v18631_v53 = vld [vmem:[#allocation72_spill] sm:$0xff]  ;;  %v3414_v40 = vld [vmem:[%s13891_s21 + $0x648] sm:$0xff] }
 0x335   : > { %v5848_v61 = vperm.slane %v5541_v9, %v18583_v37  ;;  %8918 = vmatpush.bf16.msra.mxu2 %v11083_v23  ;;  %v11051_v3 = vor.u32 %v12716_v50, %v11050_v22  ;;  %v5847_v38 = vsel %vm5793_vm3, %v5846_v32, %v5845_v35  ;;  %v4836_v24 = vpack.c.bf16 %v18631_v53, %v18630_v25  ;;  %v18632_v9 = vld [vmem:[#allocation80_spill] sm:$0xff]  ;;  %v18633_v23 = vld [vmem:[#allocation37_spill] sm:$0xff] }
 0x336   : > { %v4646_v52 = vsel %vm3725_vm1, %v3674_v49, -inf  ;;  %v4570_v27 = vsel %vm3725_vm1, %v3636_v7, -inf  ;;  %v6065_v63 = vperm.slane %v5653_v17, %v18583_v37  ;;  %v6093_v44 = vsel %vm5789_vm2, %v6092_v48, %v6091_v0  ;;  %v3413_v48 = vld [vmem:[%s13891_s21 + $0x640] sm:$0xff] }
 0x337   : > { %v15869_v22 = vpack.c.bf16 %v18633_v23, %v18632_v9  ;;  %v4647_v50 = vmax.f32 %v3673_v55, %v4646_v52  ;;  %v6064_v35 = vsel %vm5793_vm3, %v6063_v58, %v15741_v46  ;;  %v5578_v32 = vunpack.c.l.b16 %v4779_v59  ;;  %v18635_v58 = vld [vmem:[#allocation36_spill] sm:$0xff] }
 0x338   : > { %v5579_v25 = vunpack.c.h.b16 %v4779_v59  ;;  %v4571_v56 = vmax.f32 %v3635_v21, %v4570_v27  ;;  %v6158_v49 = vperm.slane %v5701_v45, %v18583_v37  ;;  %v5849_v7 = vsel %vm5797_vm4, %v5848_v61, %v5847_v38  ;;  %v18639_v38 = vld [vmem:[#allocation78_spill] sm:$0xff]  ;;  %v12708_v27 = vld [vmem:[%s15713_s13 + $0x49c] sm:$0xf0] }
 0x339   : > { %vm18634_vm10 = vcmask 654912   ;;  %v4126_v0 = vsel %vm3725_vm1, %v3414_v40, -inf  ;;  %8919 = vmatpush.bf16.msra.mxu2 %v11051_v3  ;;  %4648 = vmax.xlane.f32.xlu1 %v4647_v50  ;;  %v6095_v46 = vsel %vm5793_vm3, %v15769_v30, %v6093_v44  ;;  %v6157_v21 = vsel %vm5793_vm3, %v6156_v54, %v15744_v1  ;;  %v18637_v30 = vld [vmem:[#allocation41_spill] sm:$0xff]  ;;  %v18638_v54 = vld [vmem:[#allocation76_spill] sm:$0xff]  ;;  %v4177_v44 = vpop.xlane.xlu0 %4176 }
 0x33a   : > { %4692 = vmax.xlane.f32.xlu2 %v4691_v57  ;;  %v15877_v17 = vsel %vm18634_vm10, %v15764_v4, %v5886_v10  ;;  %v5692_v59 = vunpack.c.l.b16 %v4836_v24  ;;  %v18636_v57 = vld [vmem:[#allocation83_spill] sm:$0xff]  ;;  %4572 = vmax.xlane.f32.xlu0 %v4571_v56  ;;  %v15892_v10 = vsel %vm5797_vm4, %v6065_v63, %v6064_v35  ;;  %v5693_v3 = vunpack.c.h.b16 %v4836_v24  ;;  %v11018_v24 = vld [vmem:[%s15713_s13 + $0x480] sm:$0xf]  ;;  %v4181_v63 = vpop.xlane.xlu1 %4180  ;;  %vm18652_vm6 = vmmov %vm18634_vm10 }
 0x33b   : > { %v15887_v55 = vpack.c.bf16 %v18636_v57, %v18635_v58  ;;  %v15889_v4 = vpop.xlane.xlu2 %3836  ;;  %v5574_v45 = vunpack.c.l.b16 %v15869_v22  ;;  %v15897_v1 = vpack.c.bf16 %v18637_v30, %v15234_v26  ;;  %v15900_v61 = vperm.slane %v5578_v32, %v18638_v54  ;;  %v3444_v23 = vld [vmem:[%s13891_s21 + $0x738] sm:$0xff]  ;;  %v3701_v57 = vld [vmem:[%s13891_s21 + $0xf40] sm:$0xff]  ;;  %v3702_v30 = vld [vmem:[%s13891_s21 + $0xf48] sm:$0xff] }
 0x33c   : > { %v15903_v53 = vperm.slane %v5579_v25, %v18639_v38  ;;  %v5851_v40 = vsel %vm5801_vm5, %v15807_v47, %v5849_v7  ;;  %v4127_v52 = vmax.f32 %v3413_v48, %v4126_v0  ;;  %v15910_v26 = vsel %vm5797_vm4, %v6158_v49, %v6157_v21  ;;  %v10666_v47 = vld [vmem:[%s15713_s13 + $0x1c0] sm:$0xf]  ;;  %v3703_v0 = vld [vmem:[%s13891_s21 + $0xf50] sm:$0xff] }
 0x33d   : > { %v15914_v9 = vsel %vm5797_vm4, %v15772_v2, %v6095_v46  ;;  %v11019_v50 = vor.u32 %v12708_v27, %v11018_v24  ;;  %v15917_v35 = vpack.c.bf16 %v4181_v63, %v4177_v44  ;;  %v12620_v32 = vld [vmem:[%s15713_s13 + $0x1dc] sm:$0xf0]  ;;  %v15922_v25 = vperm.slane %v5692_v59, %v15144_v18  ;;  %v18642_v63 = vld [vmem:[#allocation45_spill] sm:$0xff] }
 0x33e   : > { %v5575_v56 = vunpack.c.h.b16 %v15869_v22  ;;  %v5654_v49 = vunpack.c.l.b16 %v15887_v55  ;;  %v10667_v7 = vor.u32 %v12620_v32, %v10666_v47  ;;  %v10986_v48 = vld [vmem:[%s15713_s13 + $0x440] sm:$0xf]  ;;  %v15930_v46 = vperm.slane %v5693_v3, %v15147_v36 }
 0x33f   : > { %18640 = vst [vmem:[#allocation23_spill] sm:$0xff] %v15917_v35  ;;  %v12700_v2 = vld [vmem:[%s15713_s13 + $0x45c] sm:$0xf0]  ;;  %v5912_v21 = vperm.slane %v5574_v45, %v18591_v34  ;;  %v5688_v58 = vunpack.c.l.b16 %v15897_v1  ;;  %v15936_v59 = vsel %vm18641_vm11, %v15810_v13, %v5851_v40  ;;  %8920 = vmatpush.bf16.msra.mxu2 %v11019_v50  ;;  %v5655_v24 = vunpack.c.h.b16 %v15887_v55  ;;  %v3443_v50 = vld [vmem:[%s13891_s21 + $0x730] sm:$0xff] }
 0x340   : > { %v3704_v22 = vld [vmem:[%s13891_s21 + $0xf58] sm:$0xff]  ;;  %8889 = vmatpush.bf16.msra.mxu0 %v10667_v7  ;;  %v10987_v3 = vor.u32 %v12700_v2, %v10986_v48  ;;  %v4702_v27 = vsel %vm3725_vm1, %v3702_v30, -inf  ;;  %v15946_v13 = vpack.c.bf16 %v18642_v63, %v15386_v51  ;;  %v4186_v55 = vsel %vm3725_vm1, %v3444_v23, -inf }
 0x341   : > { %v4706_v45 = vsel %vm3725_vm1, %v3704_v22, -inf  ;;  %v18643_v40 = vld [vmem:[#allocation48_spill] sm:$0xff]  ;;  %v5914_v47 = vperm.slane %v5575_v56, %v18600_v6  ;;  %v6067_v32 = vperm.slane %v5654_v49, %v18591_v34  ;;  %v5689_v7 = vunpack.c.h.b16 %v15897_v1  ;;  %v18645_v49 = vld [vmem:[#allocation82_spill] sm:$0xff] }
 0x342   : > { %4128 = vmax.xlane.f32.xlu2 %v4127_v52  ;;  %v15950_v44 = vpack.c.bf16 %v15541_v12, %v18643_v40  ;;  %v4707_v52 = vmax.f32 %v3703_v0, %v4706_v45  ;;  %v4703_v51 = vmax.f32 %v3701_v57, %v4702_v27  ;;  %v10634_v2 = vld [vmem:[%s15713_s13 + $0x180] sm:$0xf]  ;;  %v5913_v30 = vsel %vm5801_vm5, %v5912_v21, %v15753_v16  ;;  %v18646_v45 = vld [vmem:[#allocation81_spill] sm:$0xff] }
 0x343   : > { %v15957_v48 = vpop.xlane.xlu2 %3968  ;;  %v12612_v22 = vld [vmem:[%s15713_s13 + $0x19c] sm:$0xf0]  ;;  %v6133_v23 = vperm.slane %v5688_v58, %v18608_v62  ;;  %8921 = vmatpush.bf16.msra.mxu2 %v10987_v3  ;;  %v15970_v57 = vpack.c.bf16 %v18646_v45, %v18645_v49  ;;  %v4187_v27 = vmax.f32 %v3443_v50, %v4186_v55  ;;  %v6069_v58 = vperm.slane %v5655_v24, %v18600_v6  ;;  %v18647_v3 = vld [vmem:[#allocation55_spill] sm:$0xff]  ;;  %v15994_v45 = vpop.xlane.xlu1 %4688 }
 0x344   : > { %v10954_v12 = vld [vmem:[%s15713_s13 + $0x400] sm:$0xf]  ;;  %4708 = vmax.xlane.f32.xlu1 %v4707_v52  ;;  %4704 = vmax.xlane.f32.xlu0 %v4703_v51  ;;  %v10635_v63 = vor.u32 %v12612_v22, %v10634_v2  ;;  %v5562_v35 = vunpack.c.l.b16 %v15946_v13  ;;  %v15979_v52 = vpack.c.bf16 %v15673_v8, %v18647_v3  ;;  %v6068_v50 = vsel %vm5801_vm5, %v6067_v32, %v15892_v10  ;;  %v3670_v51 = vld [vmem:[%s13891_s21 + $0xe48] sm:$0xff] }
 0x345   : > { %v18644_v0 = vld [vmem:[#allocation40_spill] sm:$0xff]  ;;  %v6135_v55 = vperm.slane %v5689_v7, %v18609_v43  ;;  %v6134_v24 = vsel %vm18648_vm9, %v6133_v23, %v15756_v33  ;;  %v15997_v10 = vsel %vm18650_vm12, %v5914_v47, %v5913_v30  ;;  %v5566_v32 = vunpack.c.l.b16 %v15970_v57  ;;  %v3669_v23 = vld [vmem:[%s13891_s21 + $0xe40] sm:$0xff] }
 0x346   : > { %v4841_v56 = vpack.c.bf16 %v15311_v14, %v18644_v0  ;;  %v12692_v1 = vld [vmem:[%s15713_s13 + $0x41c] sm:$0xf0]  ;;  %v5690_v14 = vunpack.c.l.b16 %v15950_v44  ;;  %8890 = vmatpush.bf16.msra.mxu0 %v10635_v63  ;;  %v5691_v33 = vunpack.c.h.b16 %v15950_v44  ;;  %v5564_v7 = vunpack.c.l.b16 %v15979_v52 }
 0x347   : > { %v10955_v40 = vor.u32 %v12692_v1, %v10954_v12  ;;  %v10602_v16 = vld [vmem:[%s15713_s13 + $0x140] sm:$0xf]  ;;  %v5563_v1 = vunpack.c.h.b16 %v15946_v13  ;;  %v5889_v13 = vperm.slane %v5562_v35, %v18638_v54  ;;  %v4638_v47 = vsel %vm3725_vm1, %v3670_v51, -inf }
 0x348   : > { %v12604_v21 = vld [vmem:[%s15713_s13 + $0x15c] sm:$0xf0]  ;;  %v5702_v12 = vunpack.c.l.b16 %v4841_v56  ;;  %v6070_v30 = vsel %vm18651_vm13, %v6069_v58, %v6068_v50  ;;  %v6136_v63 = vsel %vm18652_vm6, %v6135_v55, %v6134_v24  ;;  %v16011_v44 = vpack.c.bf16 %v15274_v31, %v15287_v41 }
 0x349   : > { %v11434_v0 = vld [vmem:[%s15713_s13 + $0x7c0] sm:$0xf]  ;;  %v10603_v2 = vor.u32 %v12604_v21, %v10602_v16  ;;  %8922 = vmatpush.bf16.msra.mxu2 %v10955_v40  ;;  %v6139_v41 = vperm.slane %v5691_v33, %v18639_v38  ;;  %v5565_v3 = vunpack.c.h.b16 %v15979_v52  ;;  %vm18653_vm8 = vcmask 720512  }
 0x34a   : > { %v12812_v37 = vld [vmem:[%s15713_s13 + $0x7dc] sm:$0xf0]  ;;  %4188 = vmax.xlane.f32.xlu2 %v4187_v27  ;;  %v6160_v21 = vperm.slane %v5702_v12, %v18591_v34  ;;  %v5890_v24 = vsel %vm18653_vm8, %v5889_v13, %v15877_v17  ;;  %vm18654_vm10 = vmmov %vm18653_vm8  ;;  %v3355_v17 = vld [vmem:[%s13891_s21 + $0x470] sm:$0xff]  ;;  %vm18655_vm11 = vcmask 786112   ;;  %vm18659_vm12 = vcmask 851712  }
 0x34b   : > { %v11435_v22 = vor.u32 %v12812_v37, %v11434_v0  ;;  %v18649_v8 = vld [vmem:[#allocation44_spill] sm:$0xff]  ;;  %v5703_v37 = vunpack.c.h.b16 %v4841_v56  ;;  %v5567_v56 = vunpack.c.h.b16 %v15970_v57  ;;  %v16013_v35 = vpop.xlane.xlu2 %4292  ;;  %8891 = vmatpush.bf16.msra.mxu0 %v10603_v2  ;;  %v5891_v57 = vperm.slane %v5563_v1, %v18639_v38  ;;  %v3381_v2 = vld [vmem:[%s13891_s21 + $0x540] sm:$0xff]  ;;  %vm18656_vm9 = vmmov %vm18655_vm11 }
 0x34c   : > { %v15992_v49 = vpack.c.bf16 %v15430_v5, %v18649_v8  ;;  %v6137_v5 = vperm.slane %v5690_v14, %v18638_v54  ;;  %v10570_v27 = vld [vmem:[%s15713_s13 + $0x100] sm:$0xf]  ;;  %v4639_v0 = vmax.f32 %v3669_v23, %v4638_v47  ;;  %v5893_v1 = vperm.slane %v5564_v7, %v15144_v18  ;;  %v16037_v47 = vpop.xlane.xlu0 %4500 }
 0x34d   : > { %8928 = vmatpush.bf16.msra.mxu3 %v11435_v22  ;;  %v12596_v40 = vld [vmem:[%s15713_s13 + $0x11c] sm:$0xf0]  ;;  %v6162_v22 = vperm.slane %v5703_v37, %v18600_v6  ;;  %vm18661_vm6 = vcmask 589312  }
 0x34e   : > { %v11402_v16 = vld [vmem:[%s15713_s13 + $0x780] sm:$0xf]  ;;  %v5576_v58 = vunpack.c.l.b16 %v15992_v49  ;;  %v10571_v14 = vor.u32 %v12596_v40, %v10570_v27  ;;  %v6138_v12 = vsel %vm18654_vm10, %v6137_v5, %v6136_v63  ;;  %v3382_v27 = vld [vmem:[%s13891_s21 + $0x548] sm:$0xff]  ;;  %v5577_v52 = vunpack.c.h.b16 %v15992_v49  ;;  %vm18662_vm8 = vmmov %vm18661_vm6 }
 0x34f   : > { %v12804_v31 = vld [vmem:[%s15713_s13 + $0x79c] sm:$0xf0]  ;;  %v6161_v5 = vsel %vm5801_vm5, %v6160_v21, %v15910_v26  ;;  %v3699_v21 = vld [vmem:[%s13891_s21 + $0xf30] sm:$0xff]  ;;  %vm18663_vm10 = vmmov %vm18659_vm12 }
 0x350   : > { %v11403_v50 = vor.u32 %v12804_v31, %v11402_v16  ;;  %v10538_v55 = vld [vmem:[%s15713_s13 + $0xc0] sm:$0xf]  ;;  %8892 = vmatpush.bf16.msra.mxu0 %v10571_v14  ;;  %v4062_v16 = vsel %vm3725_vm1, %v3382_v27, -inf  ;;  %v5916_v7 = vperm.slane %v5576_v58, %v18608_v62  ;;  %v5892_v31 = vsel %vm18655_vm11, %v5891_v57, %v5890_v24 }
 0x351   : > { %v12588_v51 = vld [vmem:[%s15713_s13 + $0xdc] sm:$0xf0]  ;;  %v4063_v63 = vmax.f32 %v3381_v2, %v4062_v16  ;;  %v6140_v14 = vsel %vm18656_vm9, %v6139_v41, %v6138_v12  ;;  %v5894_v26 = vsel %vm18659_vm12, %v5893_v1, %v5892_v31  ;;  %v3997_v2 = vpop.xlane.xlu1 %3996  ;;  %v6163_v57 = vsel %vm18651_vm13, %v6162_v22, %v6161_v5  ;;  %v18664_v12 = vld [vmem:[#allocation89_spill] sm:$0xff]  ;;  %vm18666_vm9 = vmmov %vm18661_vm6 }
 0x352   : > { %v11370_v8 = vld [vmem:[%s15713_s13 + $0x740] sm:$0xf]  ;;  %8929 = vmatpush.bf16.msra.mxu3 %v11403_v50  ;;  %v10539_v40 = vor.u32 %v12588_v51, %v10538_v55  ;;  %v5895_v50 = vperm.slane %v5565_v3, %v15147_v36  ;;  %4640 = vmax.xlane.f32.xlu2 %v4639_v0  ;;  %v18657_v51 = vld [vmem:[#allocation86_spill] sm:$0xff]  ;;  %v5918_v41 = vperm.slane %v5577_v52, %v18609_v43  ;;  %v18660_v3 = vld [vmem:[#allocation49_spill] sm:$0xff]  ;;  %v5675_v52 = vunpack.c.h.b16 %v16011_v44 }
 0x353   : > { %v12796_v33 = vld [vmem:[%s15713_s13 + $0x75c] sm:$0xf0]  ;;  %4064 = vmax.xlane.f32.xlu1 %v4063_v63  ;;  %v16064_v0 = vsel %vm18661_vm6, %v15815_v15, %v6070_v30  ;;  %v5917_v24 = vsel %vm18662_vm8, %v5916_v7, %v15997_v10  ;;  %v6142_v22 = vsel %vm18663_vm10, %v15922_v25, %v6140_v14  ;;  %vm18665_vm11 = vcmask 917312  }
 0x354   : > { %v3700_v23 = vld [vmem:[%s13891_s21 + $0xf38] sm:$0xff]  ;;  %v11371_v37 = vor.u32 %v12796_v33, %v11370_v8  ;;  %v5897_v8 = vperm.slane %v5566_v32, %v18657_v51  ;;  %v18658_v33 = vld [vmem:[#allocation87_spill] sm:$0xff]  ;;  %v16060_v32 = vpack.c.bf16 %v18660_v3, %v15481_v28  ;;  %8893 = vmatpush.bf16.msra.mxu0 %v10539_v40  ;;  %v5674_v28 = vunpack.c.l.b16 %v16011_v44  ;;  %vm18668_vm13 = vmmov %vm18665_vm11 }
 0x355   : > { %v3356_v13 = vld [vmem:[%s13891_s21 + $0x478] sm:$0xff]  ;;  %v16051_v27 = vperm.slane %v5567_v56, %v18658_v33  ;;  %v4698_v58 = vsel %vm3725_vm1, %v3700_v23, -inf  ;;  %v4425_v56 = vpop.xlane.xlu2 %4424  ;;  %v5896_v23 = vsel %vm18665_vm11, %v5895_v50, %v5894_v26  ;;  %vm18667_vm12 = vcmask 654912  }
 0x356   : > { %v4010_v49 = vsel %vm3725_vm1, %v3356_v13, -inf  ;;  %8930 = vmatpush.bf16.msra.mxu3 %v11371_v37  ;;  %v4837_v1 = vpack.c.bf16 %v18664_v12, %v4425_v56  ;;  %v4699_v15 = vmax.f32 %v3699_v21, %v4698_v58  ;;  %v10506_v30 = vld [vmem:[%s15713_s13 + $0x80] sm:$0xf]  ;;  %v6165_v37 = vsel %vm18666_vm9, %v15828_v39, %v6163_v57  ;;  %vm18673_vm9 = vmmov %vm18667_vm12 }
 0x357   : > { %v4011_v55 = vmax.f32 %v3355_v17, %v4010_v49  ;;  %v12580_v40 = vld [vmem:[%s15713_s13 + $0x9c] sm:$0xf0]  ;;  %v3630_v17 = vld [vmem:[%s13891_s21 + $0xd08] sm:$0xff]  ;;  %v5919_v7 = vsel %vm18667_vm12, %v5918_v41, %v5917_v24  ;;  %v5670_v63 = vunpack.c.l.b16 %v16060_v32  ;;  %v6144_v49 = vsel %vm18668_vm13, %v15930_v46, %v6142_v22  ;;  %v3993_v24 = vpop.xlane.xlu0 %3992  ;;  %vm18674_vm12 = vmmov %vm18673_vm9 }
 0x358   : > { %v11338_v10 = vld [vmem:[%s15713_s13 + $0x700] sm:$0xf]  ;;  %v5694_v25 = vunpack.c.l.b16 %v4837_v1  ;;  %v5695_v16 = vunpack.c.h.b16 %v4837_v1  ;;  %v10507_v13 = vor.u32 %v12580_v40, %v10506_v30  ;;  %vm18669_vm6 = vcmask 982912   ;;  %v3629_v30 = vld [vmem:[%s13891_s21 + $0xd00] sm:$0xff] }
 0x359   : > { %4012 = vmax.xlane.f32.xlu0 %v4011_v55  ;;  %v12788_v5 = vld [vmem:[%s15713_s13 + $0x71c] sm:$0xf0]  ;;  %v3423_v55 = vld [vmem:[%s13891_s21 + $0x690] sm:$0xff]  ;;  %v5898_v39 = vsel %vm18669_vm6, %v5897_v8, %v5896_v23  ;;  %vm6304_vm8 = vcmask 1041409   ;;  %v4558_v8 = vsel %vm3725_vm1, %v3630_v17, -inf  ;;  %vm18671_vm10 = vmmov %vm18669_vm6  ;;  %v16103_v40 = vpack.c.bf16 %v3997_v2, %v3993_v24 }
 0x35a   : > { %v11339_v31 = vor.u32 %v12788_v5, %v11338_v10  ;;  %v10474_v14 = vld [vmem:[%s15713_s13 + $0x40] sm:$0xf]  ;;  %v6145_v26 = vperm.slane %v5694_v25, %v18657_v51  ;;  %v6147_v21 = vperm.slane %v5695_v16, %v18658_v33  ;;  %8894 = vmatpush.bf16.msra.mxu0 %v10507_v13  ;;  %4700 = vmax.xlane.f32.xlu2 %v4699_v15  ;;  %v16105_v10 = vpop.xlane.xlu1 %4184  ;;  %v3421_v16 = vld [vmem:[%s13891_s21 + $0x680] sm:$0xff]  ;;  %v3422_v13 = vld [vmem:[%s13891_s21 + $0x688] sm:$0xff]  ;;  %vm18672_vm11 = vcmask 720512  }
 0x35b   : > { %v12572_v50 = vld [vmem:[%s15713_s13 + $0x5c] sm:$0xf0]  ;;  %v5900_v15 = vsel %vm5837_vm7, %v16051_v27, %v5898_v39  ;;  %v16155_v24 = vpack.c.bf16 %v15505_v29, %v15515_v20  ;;  %vm18682_vm13 = vcmask 523712   ;;  %vm18683_vm6 = vcmask 786112  }
 0x35c   : > { %v10475_v58 = vor.u32 %v12572_v50, %v10474_v14  ;;  %v10922_v57 = vld [vmem:[%s15713_s13 + $0x3c0] sm:$0xf]  ;;  %8931 = vmatpush.bf16.msra.mxu3 %v11339_v31  ;;  %v6146_v23 = vsel %vm18671_vm10, %v6145_v26, %v6144_v49  ;;  %v4142_v49 = vsel %vm3725_vm1, %v3422_v13, -inf  ;;  %v16117_v31 = vperm.slane %v5674_v28, %v18638_v54  ;;  %vm18684_vm10 = vmmov %vm18672_vm11 }
 0x35d   : > { %v12684_v41 = vld [vmem:[%s15713_s13 + $0x3dc] sm:$0xf0]  ;;  %v6148_v17 = vsel %vm5837_vm7, %v6147_v21, %v6146_v23  ;;  %v16113_v5 = vpop.xlane.xlu2 %4484  ;;  %v5671_v14 = vunpack.c.h.b16 %v16060_v32  ;;  %v6098_v50 = vperm.slane %v5670_v63, %v18591_v34  ;;  %v4559_v26 = vmax.f32 %v3629_v30, %v4558_v8 }
 0x35e   : > { %v11306_v3 = vld [vmem:[%s15713_s13 + $0x6c0] sm:$0xf]  ;;  %v10923_v22 = vor.u32 %v12684_v41, %v10922_v57  ;;  %v6307_v27 = vsel %vm6304_vm8, %v6148_v17, %v5900_v15  ;;  %8895 = vmatpush.bf16.msra.mxu0 %v10475_v58  ;;  %v16130_v32 = vperm.slane %v5675_v52, %v18639_v38  ;;  %v5921_v63 = vsel %vm18672_vm11, %v15900_v61, %v5919_v7  ;;  %vm18687_vm11 = vmmov %vm18683_vm6 }
 0x35f   : > { %v18670_v46 = vld [vmem:[#allocation68_spill] sm:$0xff]  ;;  %v16122_v39 = vpack.c.b16 %v6307_v27, %v6307_v27  ;;  %v16137_v58 = vsel %vm18673_vm9, %v15820_v19, %v16064_v0  ;;  %v16141_v41 = vsel %vm18674_vm12, %v15831_v11, %v6165_v37  ;;  %v6099_v11 = vsel %vm5801_vm5, %v6098_v50, %v15914_v9  ;;  %v18680_v9 = vld [vmem:[#allocation79_spill] sm:$0xff]  ;;  %v16176_v20 = vpop.xlane.xlu0 %4132 }
 0x360   : > { %v16096_v56 = vpack.c.bf16 %v18670_v46, %v15730_v42  ;;  %v12780_v12 = vld [vmem:[%s15713_s13 + $0x6dc] sm:$0xf0]  ;;  %8902 = vmatpush.bf16.msra.mxu1 %v10923_v22  ;;  %v6100_v37 = vperm.slane %v5671_v14, %v18600_v6  ;;  %v18675_v22 = vld [vmem:[#allocation66_spill] sm:$0xff]  ;;  %v3451_v50 = vld [vmem:[%s13891_s21 + $0x770] sm:$0xff]  ;;  %vm18690_vm9 = vcmask 589312   ;;  %vm18691_vm12 = vcmask 851712  }
 0x361   : > { %v3424_v1 = vld [vmem:[%s13891_s21 + $0x698] sm:$0xff]  ;;  %v11307_v25 = vor.u32 %v12780_v12, %v11306_v3  ;;  %8923 = vmatmul.bf16.vlgmr.msra.gmra.mxu2 %v16122_v39  ;;  %v18676_v12 = vld [vmem:[#allocation17_spill] sm:$0xff]  ;;  %v3610_v14 = vld [vmem:[%s13891_s21 + $0xc68] sm:$0xff] }
 0x362   : > { %v4146_v42 = vsel %vm3725_vm1, %v3424_v1, -inf  ;;  %v10442_v21 = vld [vmem:[%s15713_s13] sm:$0xf]  ;;  %v5658_v52 = vunpack.c.l.b16 %v16096_v56  ;;  %v16159_v1 = vpack.c.bf16 %v18676_v12, %v18675_v22  ;;  %4560 = vmax.xlane.f32.xlu2 %v4559_v26  ;;  %v3351_v27 = vld [vmem:[%s13891_s21 + $0x450] sm:$0xff]  ;;  %v4518_v26 = vsel %vm3725_vm1, %v3610_v14, -inf }
 0x363   : > { %v4147_v2 = vmax.f32 %v3423_v55, %v4146_v42  ;;  %8932 = vmatpush.bf16.msra.mxu3 %v11307_v25  ;;  %v4143_v55 = vmax.f32 %v3421_v16, %v4142_v49  ;;  %v12564_v28 = vld [vmem:[%s15713_s13 + $0x1c] sm:$0xf0]  ;;  %v3609_v25 = vld [vmem:[%s13891_s21 + $0xc60] sm:$0xff]  ;;  %v18677_v42 = vld [vmem:[#allocation11_spill] sm:$0xff] }
 0x364   : > { %v10890_v57 = vld [vmem:[%s15713_s13 + $0x380] sm:$0xf]  ;;  %v10443_v7 = vor.u32 %v12564_v28, %v10442_v21  ;;  %v18678_v16 = vld [vmem:[#allocation57_spill] sm:$0xff]  ;;  %v4509_v21 = vpop.xlane.xlu1 %4508 }
 0x365   : > { %4148 = vmax.xlane.f32.xlu1 %v4147_v2  ;;  %v12676_v3 = vld [vmem:[%s15713_s13 + $0x39c] sm:$0xf0]  ;;  %4144 = vmax.xlane.f32.xlu0 %v4143_v55  ;;  %v16166_v13 = vpack.c.bf16 %v18678_v16, %v18677_v42 }
 0x366   : > { %v11274_v46 = vld [vmem:[%s15713_s13 + $0x680] sm:$0xf]  ;;  %v10891_v8 = vor.u32 %v12676_v3, %v10890_v57  ;;  %8896 = vmatpush.bf16.msra.mxu0 %v10443_v7  ;;  %v5659_v3 = vunpack.c.h.b16 %v16096_v56  ;;  %v4519_v7 = vmax.f32 %v3609_v25, %v4518_v26 }
 0x367   : > { %v12772_v44 = vld [vmem:[%s15713_s13 + $0x69c] sm:$0xf0]  ;;  %v5544_v25 = vunpack.c.l.b16 %v16166_v13 }
 0x368   : > { %v3352_v61 = vld [vmem:[%s13891_s21 + $0x458] sm:$0xff]  ;;  %v11275_v19 = vor.u32 %v12772_v44, %v11274_v46  ;;  %8903 = vmatpush.bf16.msra.mxu1 %v10891_v8  ;;  %v6075_v46 = vperm.slane %v5658_v52, %v18638_v54  ;;  %v3977_v44 = vpop.xlane.xlu2 %3976  ;;  %v6101_v8 = vsel %vm18682_vm13, %v6100_v37, %v6099_v11  ;;  %v5545_v37 = vunpack.c.h.b16 %v16166_v13  ;;  %vm18692_vm13 = vmmov %vm18684_vm10 }
 0x369   : > { %v10858_v0 = vld [vmem:[%s15713_s13 + $0x340] sm:$0xf]  ;;  %v4002_v55 = vsel %vm3725_vm1, %v3352_v61, -inf  ;;  %v6077_v14 = vperm.slane %v5659_v3, %v18639_v38 }
 0x36a   : > { %v12668_v23 = vld [vmem:[%s15713_s13 + $0x35c] sm:$0xf0]  ;;  %8933 = vmatpush.bf16.msra.mxu3 %v11275_v19  ;;  %v5672_v19 = vunpack.c.l.b16 %v16159_v1  ;;  %v4003_v11 = vmax.f32 %v3351_v27, %v4002_v55  ;;  %v3418_v55 = vld [vmem:[%s13891_s21 + $0x668] sm:$0xff] }
 0x36b   : > { %v11242_v30 = vld [vmem:[%s15713_s13 + $0x640] sm:$0xf]  ;;  %v10859_v28 = vor.u32 %v12668_v23, %v10858_v0  ;;  %v16194_v0 = vsel %vm18683_vm6, %v15903_v53, %v5921_v63  ;;  %vm18694_vm6 = vcmask 917312  }
 0x36c   : > { %v18679_v15 = vld [vmem:[#allocation20_spill] sm:$0xff]  ;;  %4004 = vmax.xlane.f32.xlu2 %v4003_v11 }
 0x36d   : > { %v16170_v17 = vpack.c.bf16 %v18680_v9, %v18679_v15  ;;  %v18681_v2 = vld [vmem:[#allocation84_spill] sm:$0xff]  ;;  %4520 = vmax.xlane.f32.xlu1 %v4519_v7  ;;  %8904 = vmatpush.bf16.msra.mxu1 %v10859_v28  ;;  %v3639_v15 = vld [vmem:[%s13891_s21 + $0xd50] sm:$0xff]  ;;  %v6102_v7 = vperm.slane %v5672_v19, %v18608_v62  ;;  %v4134_v19 = vsel %vm3725_vm1, %v3418_v55, -inf }
 0x36e   : > { %v16174_v29 = vpack.c.bf16 %v16013_v35, %v18681_v2  ;;  %v12764_v49 = vld [vmem:[%s15713_s13 + $0x65c] sm:$0xf0]  ;;  %v3638_v2 = vld [vmem:[%s13891_s21 + $0xd48] sm:$0xff] }
 0x36f   : > { %v11243_v35 = vor.u32 %v12764_v49, %v11242_v30  ;;  %v3452_v57 = vld [vmem:[%s13891_s21 + $0x778] sm:$0xff]  ;;  %v5676_v30 = vunpack.c.l.b16 %v16155_v24  ;;  %v5706_v53 = vunpack.c.l.b16 %v16170_v17  ;;  %v6076_v49 = vsel %vm18684_vm10, %v6075_v46, %v16137_v58  ;;  %v3637_v58 = vld [vmem:[%s13891_s21 + $0xd40] sm:$0xff] }
 0x370   : > { %v4202_v22 = vsel %vm3725_vm1, %v3452_v57, -inf  ;;  %v10826_v12 = vld [vmem:[%s15713_s13 + $0x300] sm:$0xf]  ;;  %v5660_v42 = vunpack.c.l.b16 %v16174_v29  ;;  %v5673_v57 = vunpack.c.h.b16 %v16159_v1  ;;  %v4574_v3 = vsel %vm3725_vm1, %v3638_v2, -inf  ;;  %v4301_v11 = vpop.xlane.xlu2 %4300 }
 0x371   : > { %v12660_v61 = vld [vmem:[%s15713_s13 + $0x31c] sm:$0xf0]  ;;  %v4203_v23 = vmax.f32 %v3451_v50, %v4202_v22  ;;  %8934 = vmatpush.bf16.msra.mxu3 %v11243_v35  ;;  %v18685_v50 = vld [vmem:[#allocation85_spill] sm:$0xff]  ;;  %v5661_v22 = vunpack.c.h.b16 %v16174_v29  ;;  %v5707_v46 = vunpack.c.h.b16 %v16170_v17  ;;  %v6168_v1 = vperm.slane %v5706_v53, %v18638_v54 }
 0x372   : > { %v11210_v56 = vld [vmem:[%s15713_s13 + $0x600] sm:$0xf]  ;;  %v10827_v63 = vor.u32 %v12660_v61, %v10826_v12  ;;  %v16211_v27 = vpack.c.bf16 %v18685_v50, %v15957_v48  ;;  %v6079_v48 = vperm.slane %v5660_v42, %v15144_v18  ;;  %v16234_v17 = vperm.slane %v5544_v25, %v18608_v62  ;;  %v16246_v50 = vpop.xlane.xlu1 %4696 }
 0x373   : > { %v12756_v52 = vld [vmem:[%s15713_s13 + $0x61c] sm:$0xf0]  ;;  %4204 = vmax.xlane.f32.xlu0 %v4203_v23  ;;  %v4505_v23 = vpop.xlane.xlu0 %4504  ;;  %v6078_v42 = vsel %vm18687_vm11, %v6077_v14, %v6076_v49  ;;  %v16239_v53 = vperm.slane %v5673_v57, %v18609_v43  ;;  %v16249_v49 = vsel %vm18690_vm9, %v6102_v7, %v6101_v8  ;;  %vm18695_vm10 = vcmask 982912   ;;  %vm18696_vm11 = vmmov %vm18691_vm12 }
 0x374   : > { %v11211_v16 = vor.u32 %v12756_v52, %v11210_v56  ;;  %v3640_v9 = vld [vmem:[%s13891_s21 + $0xd58] sm:$0xff]  ;;  %v3417_v52 = vld [vmem:[%s13891_s21 + $0x660] sm:$0xff]  ;;  %v16231_v29 = vpack.c.bf16 %v4509_v21, %v4505_v23  ;;  %8905 = vmatpush.bf16.msra.mxu1 %v10827_v63  ;;  %v6081_v21 = vperm.slane %v5661_v22, %v15147_v36  ;;  %v6080_v14 = vsel %vm18691_vm12, %v6079_v48, %v6078_v42  ;;  %v3679_v42 = vld [vmem:[%s13891_s21 + $0xe90] sm:$0xff] }
 0x375   : > { %v10794_v28 = vld [vmem:[%s15713_s13 + $0x2c0] sm:$0xf]  ;;  %v4578_v26 = vsel %vm3725_vm1, %v3640_v9, -inf  ;;  %v5581_v48 = vunpack.c.h.b16 %v16211_v27  ;;  %vm18699_vm9 = vcmask 786112   ;;  %vm18700_vm12 = vmmov %vm18696_vm11 }
 0x376   : > { %v12652_v35 = vld [vmem:[%s15713_s13 + $0x2dc] sm:$0xf0]  ;;  %v4579_v56 = vmax.f32 %v3639_v15, %v4578_v26  ;;  %8935 = vmatpush.bf16.msra.mxu3 %v11211_v16  ;;  %v4575_v15 = vmax.f32 %v3637_v58, %v4574_v3  ;;  %v18689_v16 = vld [vmem:[#allocation91_spill] sm:$0xff]  ;;  %v18693_v58 = vld [vmem:[#allocation77_spill] sm:$0xff] }
 0x377   : > { %v18686_v12 = vld [vmem:[#allocation88_spill] sm:$0xff]  ;;  %v10795_v9 = vor.u32 %v12652_v35, %v10794_v28  ;;  %v4821_v25 = vpack.c.bf16 %v4301_v11, %v18689_v16  ;;  %v4135_v28 = vmax.f32 %v3417_v52, %v4134_v19  ;;  %v6169_v35 = vsel %vm18692_vm13, %v6168_v1, %v16141_v41  ;;  %vm18701_vm13 = vmmov %vm18694_vm6 }
 0x378   : > { %v16226_v61 = vpack.c.bf16 %v16113_v5, %v18686_v12  ;;  %v5580_v5 = vunpack.c.l.b16 %v16211_v27  ;;  %v18688_v2 = vld [vmem:[#allocation92_spill] sm:$0xff]  ;;  %4580 = vmax.xlane.f32.xlu1 %v4579_v56  ;;  %v16261_v3 = vpack.c.bf16 %v15889_v4, %v18693_v58  ;;  %v6082_v56 = vsel %vm18694_vm6, %v6081_v21, %v6080_v14  ;;  %v3705_v4 = vld [vmem:[%s13891_s21 + $0xf60] sm:$0xff]  ;;  %vm18702_vm6 = vmmov %vm18695_vm10 }
 0x379   : > { %v16243_v63 = vpack.c.bf16 %v18688_v2, %v3977_v44  ;;  %v6170_v44 = vperm.slane %v5707_v46, %v18639_v38  ;;  %v5662_v26 = vunpack.c.l.b16 %v4821_v25  ;;  %v5663_v57 = vunpack.c.h.b16 %v4821_v25  ;;  %v3448_v22 = vld [vmem:[%s13891_s21 + $0x758] sm:$0xff]  ;;  %8906 = vmatpush.bf16.msra.mxu1 %v10795_v9  ;;  %v3706_v9 = vld [vmem:[%s13891_s21 + $0xf68] sm:$0xff]  ;;  %4136 = vmax.xlane.f32.xlu2 %v4135_v28  ;;  %v3447_v25 = vld [vmem:[%s13891_s21 + $0x750] sm:$0xff] }
 0x37a   : > { %v5708_v55 = vunpack.c.l.b16 %v16226_v61  ;;  %v10762_v8 = vld [vmem:[%s15713_s13 + $0x280] sm:$0xf]  ;;  %v5924_v12 = vperm.slane %v5580_v5, %v15144_v18  ;;  %v5709_v27 = vunpack.c.h.b16 %v16226_v61  ;;  %v4194_v11 = vsel %vm3725_vm1, %v3448_v22, -inf  ;;  %v4489_v22 = vpop.xlane.xlu2 %4488 }
 0x37b   : > { %v12644_v7 = vld [vmem:[%s15713_s13 + $0x29c] sm:$0xf0]  ;;  %4576 = vmax.xlane.f32.xlu0 %v4575_v15  ;;  %v5582_v1 = vunpack.c.l.b16 %v16243_v63  ;;  %v6083_v52 = vperm.slane %v5662_v26, %v18657_v51  ;;  %v6085_v19 = vperm.slane %v5663_v57, %v18658_v33  ;;  %v16277_v15 = vpop.xlane.xlu0 %4644  ;;  %v4710_v21 = vsel %vm3725_vm1, %v3706_v9, -inf }
 0x37c   : > { %v10763_v41 = vor.u32 %v12644_v7, %v10762_v8  ;;  %v10730_v46 = vld [vmem:[%s15713_s13 + $0x240] sm:$0xf]  ;;  %v6172_v5 = vperm.slane %v5708_v55, %v15144_v18  ;;  %v4711_v26 = vmax.f32 %v3705_v4, %v4710_v21  ;;  %v5926_v55 = vperm.slane %v5581_v48, %v15147_v36  ;;  %v4053_v48 = vpop.xlane.xlu1 %4052 }
 0x37d   : > { %v12636_v23 = vld [vmem:[%s15713_s13 + $0x25c] sm:$0xf0]  ;;  %v6084_v16 = vsel %vm18695_vm10, %v6083_v52, %v6082_v56  ;;  %v5583_v28 = vunpack.c.h.b16 %v16243_v63  ;;  %v5925_v7 = vsel %vm18696_vm11, %v5924_v12, %v16194_v0  ;;  %v5928_v58 = vperm.slane %v5582_v1, %v18657_v51  ;;  %v18697_v56 = vld [vmem:[#allocation10_spill] sm:$0xff]  ;;  %vm18704_vm11 = vmmov %vm18701_vm13 }
 0x37e   : > { %v3680_v2 = vld [vmem:[%s13891_s21 + $0xe98] sm:$0xff]  ;;  %8907 = vmatpush.bf16.msra.mxu1 %v10763_v41  ;;  %v10731_v14 = vor.u32 %v12636_v23, %v10730_v46  ;;  %v6086_v57 = vsel %vm5837_vm7, %v6085_v19, %v6084_v16  ;;  %v18698_v46 = vld [vmem:[#allocation15_spill] sm:$0xff]  ;;  %v6171_v4 = vsel %vm18699_vm9, %v6170_v44, %v6169_v35  ;;  %v6174_v19 = vperm.slane %v5709_v27, %v15147_v36  ;;  %v3634_v27 = vld [vmem:[%s13891_s21 + $0xd28] sm:$0xff] }
 0x37f   : > { %v4658_v61 = vsel %vm3725_vm1, %v3680_v2, -inf  ;;  %v6305_v41 = vsel %vm6304_vm8, %v6086_v57, %v18697_v56  ;;  %v4845_v23 = vpack.c.bf16 %v18698_v46, %v4489_v22  ;;  %v10698_v52 = vld [vmem:[%s15713_s13 + $0x200] sm:$0xf]  ;;  %v4195_v0 = vmax.f32 %v3447_v25, %v4194_v11  ;;  %v3359_v16 = vld [vmem:[%s13891_s21 + $0x490] sm:$0xff]  ;;  %v3633_v46 = vld [vmem:[%s13891_s21 + $0xd20] sm:$0xff] }
 0x380   : > { %v4659_v8 = vmax.f32 %v3679_v42, %v4658_v61  ;;  %v12628_v63 = vld [vmem:[%s15713_s13 + $0x21c] sm:$0xf0]  ;;  %v16297_v9 = vpack.c.b16 %v6305_v41, %v6305_v41  ;;  %4712 = vmax.xlane.f32.xlu1 %v4711_v26  ;;  %v6173_v1 = vsel %vm18700_vm12, %v6172_v5, %v6171_v4  ;;  %v3358_v61 = vld [vmem:[%s13891_s21 + $0x488] sm:$0xff]  ;;  %v5546_v57 = vunpack.c.l.b16 %v16261_v3  ;;  %v3357_v26 = vld [vmem:[%s13891_s21 + $0x480] sm:$0xff] }
 0x381   : > { %v3360_v12 = vld [vmem:[%s13891_s21 + $0x498] sm:$0xff]  ;;  %v5710_v42 = vunpack.c.l.b16 %v4845_v23  ;;  %v5711_v21 = vunpack.c.h.b16 %v4845_v23  ;;  %v10699_v2 = vor.u32 %v12628_v63, %v10698_v52  ;;  %v5927_v35 = vsel %vm18701_vm13, %v5926_v55, %v5925_v7  ;;  %4196 = vmax.xlane.f32.xlu2 %v4195_v0  ;;  %vm18706_vm12 = vmmov %vm18702_vm6 }
 0x382   : > { %8908 = vmatpush.bf16.msra.mxu1 %v10731_v14  ;;  %v5930_v44 = vperm.slane %v5583_v28, %v18658_v33  ;;  %8897 = vmatmul.bf16.vlgmr.msra.gmra.mxu0 %v16297_v9  ;;  %v4018_v5 = vsel %vm3725_vm1, %v3360_v12, -inf  ;;  %v5929_v11 = vsel %vm18702_vm6, %v5928_v58, %v5927_v35  ;;  %v4014_v22 = vsel %vm3725_vm1, %v3358_v61, -inf  ;;  %v4117_v0 = vpop.xlane.xlu2 %4116 }
 0x383   : > { %4660 = vmax.xlane.f32.xlu0 %v4659_v8  ;;  %v6176_v25 = vperm.slane %v5710_v42, %v18657_v51  ;;  %v6178_v14 = vperm.slane %v5711_v21, %v18658_v33  ;;  %v5856_v55 = vperm.slane %v5545_v37, %v18609_v43  ;;  %vm18703_vm10 = vcmask 654912   ;;  %v4049_v37 = vpop.xlane.xlu0 %4048  ;;  %v3426_v21 = vld [vmem:[%s13891_s21 + $0x6a8] sm:$0xff] }
 0x384   : > { %v6105_v28 = vsel %vm18703_vm10, %v16239_v53, %v16249_v49  ;;  %v6175_v8 = vsel %vm18704_vm11, %v6174_v19, %v6173_v1  ;;  %v4019_v7 = vmax.f32 %v3359_v16, %v4018_v5  ;;  %vm18705_vm9 = vcmask 589312   ;;  %v16338_v12 = vpop.xlane.xlu1 %4000  ;;  %vm18711_vm6 = vmmov %vm18703_vm10 }
 0x385   : > { %v5855_v58 = vsel %vm18705_vm9, %v16234_v17, %v15936_v59  ;;  %v5547_v56 = vunpack.c.h.b16 %v16261_v3  ;;  %v6177_v41 = vsel %vm18706_vm12, %v6176_v25, %v6175_v8  ;;  %v4566_v13 = vsel %vm3725_vm1, %v3634_v27, -inf  ;;  %v18708_v17 = vld [vmem:[#allocation18_spill] sm:$0xff]  ;;  %v18709_v3 = vld [vmem:[#allocation16_spill] sm:$0xff]  ;;  %v3675_v8 = vld [vmem:[%s13891_s21 + $0xe70] sm:$0xff] }
 0x386   : > { %8909 = vmatpush.bf16.msra.mxu1 %v10699_v2  ;;  %v5931_v53 = vsel %vm5837_vm7, %v5930_v44, %v5929_v11  ;;  %v6179_v49 = vsel %vm5837_vm7, %v6178_v14, %v6177_v41  ;;  %v16330_v23 = vpack.c.bf16 %v4053_v48, %v4049_v37  ;;  %v4015_v52 = vmax.f32 %v3357_v26, %v4014_v22  ;;  %v18710_v2 = vld [vmem:[#allocation90_spill] sm:$0xff]  ;;  %v3676_v11 = vld [vmem:[%s13891_s21 + $0xe78] sm:$0xff] }
 0x387   : > { %vm18707_vm13 = vcmask 720512   ;;  %v4829_v63 = vpack.c.bf16 %v18709_v3, %v18708_v17  ;;  %v5858_v4 = vperm.slane %v5546_v57, %v18638_v54  ;;  %v6308_v19 = vsel %vm6304_vm8, %v6179_v49, %v5931_v53  ;;  %v3425_v57 = vld [vmem:[%s13891_s21 + $0x6a0] sm:$0xff] }
 0x388   : > { %v6107_v59 = vsel %vm18707_vm13, %v16117_v31, %v6105_v28  ;;  %v5677_v1 = vunpack.c.h.b16 %v16155_v24  ;;  %v16341_v48 = vpack.c.b16 %v6308_v19, %v6308_v19  ;;  %v4567_v42 = vmax.f32 %v3633_v46, %v4566_v13  ;;  %4020 = vmax.xlane.f32.xlu1 %v4019_v7  ;;  %v3388_v31 = vld [vmem:[%s13891_s21 + $0x578] sm:$0xff]  ;;  %vm18713_vm11 = vmmov %vm18707_vm13  ;;  %v3387_v24 = vld [vmem:[%s13891_s21 + $0x570] sm:$0xff] }
 0x389   : > { %v5548_v16 = vunpack.c.l.b16 %v18710_v2  ;;  %v6110_v61 = vperm.slane %v5676_v30, %v15144_v18  ;;  %v4150_v35 = vsel %vm3725_vm1, %v3426_v21, -inf  ;;  %v5857_v44 = vsel %vm18711_vm6, %v5856_v55, %v5855_v58  ;;  %v18717_v49 = vld [vmem:[#allocation13_spill] sm:$0xff]  ;;  %v3456_v19 = vld [vmem:[%s13891_s21 + $0x798] sm:$0xff]  ;;  %v3455_v21 = vld [vmem:[%s13891_s21 + $0x790] sm:$0xff] }
 0x38a   : > { %vm18712_vm10 = vcmask 786112   ;;  %v5860_v5 = vperm.slane %v5547_v56, %v18639_v38  ;;  %8936 = vmatmul.bf16.vlgmr.msra.gmra.mxu3 %v16341_v48  ;;  %v5678_v25 = vunpack.c.l.b16 %v4829_v63  ;;  %v5859_v14 = vsel %vm18713_vm11, %v5858_v4, %v5857_v44  ;;  %4568 = vmax.xlane.f32.xlu2 %v4567_v42  ;;  %v3849_v37 = vpop.xlane.xlu2 %3848 }
 0x38b   : > { %v6109_v27 = vsel %vm18712_vm10, %v16130_v32, %v6107_v59  ;;  %4016 = vmax.xlane.f32.xlu0 %v4015_v52  ;;  %v4074_v30 = vsel %vm3725_vm1, %v3388_v31, -inf  ;;  %v6112_v26 = vperm.slane %v5677_v1, %v15147_v36  ;;  %v4151_v22 = vmax.f32 %v3425_v57, %v4150_v35  ;;  %vm18715_vm12 = vmmov %vm18712_vm10  ;;  %v16367_v56 = vpop.xlane.xlu0 %4564  ;;  %v18718_v59 = vld [vmem:[#allocation12_spill] sm:$0xff]  ;;  %v3454_v1 = vld [vmem:[%s13891_s21 + $0x788] sm:$0xff] }
 0x38c   : > { %v5549_v55 = vunpack.c.h.b16 %v18710_v2  ;;  %v5862_v32 = vperm.slane %v5548_v16, %v15144_v18  ;;  %vm18714_vm9 = vcmask 851712   ;;  %v4650_v7 = vsel %vm3725_vm1, %v3676_v11, -inf  ;;  %v4061_v4 = vpop.xlane.xlu1 %4060  ;;  %v3354_v57 = vld [vmem:[%s13891_s21 + $0x468] sm:$0xff] }
 0x38d   : > { %v6111_v28 = vsel %vm18714_vm9, %v6110_v61, %v6109_v27  ;;  %v5861_v58 = vsel %vm18715_vm12, %v5860_v5, %v5859_v14  ;;  %v4075_v41 = vmax.f32 %v3387_v24, %v4074_v30  ;;  %v5679_v46 = vunpack.c.h.b16 %v4829_v63  ;;  %vm18719_vm6 = vmmov %vm18714_vm9  ;;  %v3453_v27 = vld [vmem:[%s13891_s21 + $0x780] sm:$0xff] }
 0x38e   : > { %v6114_v13 = vperm.slane %v5678_v25, %v18657_v51  ;;  %vm18716_vm13 = vcmask 917312   ;;  %v4798_v52 = vpack.c.bf16 %v4117_v0, %v18717_v49  ;;  %v4765_v17 = vpack.c.bf16 %v18718_v59, %v3849_v37  ;;  %v18725_v59 = vld [vmem:[#allocation9_spill] sm:$0xff] }
 0x38f   : > { %v6113_v53 = vsel %vm18716_vm13, %v6112_v26, %v6111_v28  ;;  %v4651_v3 = vmax.f32 %v3675_v8, %v4650_v7  ;;  %v5864_v42 = vperm.slane %v5549_v55, %v15147_v36  ;;  %v5863_v63 = vsel %vm18719_vm6, %v5862_v32, %v5861_v58  ;;  %vm18721_vm11 = vmmov %vm18716_vm13  ;;  %v18723_v32 = vld [vmem:[#allocation54_spill] sm:$0xff]  ;;  %v18724_v8 = vld [vmem:[#allocation56_spill] sm:$0xff] }
 0x390   : > { %4152 = vmax.xlane.f32.xlu1 %v4151_v22  ;;  %v4210_v31 = vsel %vm3725_vm1, %v3456_v19, -inf  ;;  %v5550_v2 = vunpack.c.l.b16 %v4765_v17  ;;  %v5551_v16 = vunpack.c.h.b16 %v4765_v17  ;;  %v5600_v0 = vunpack.c.l.b16 %v16330_v23 }
 0x391   : > { %v5601_v61 = vunpack.c.h.b16 %v16330_v23  ;;  %vm18720_vm10 = vcmask 982912   ;;  %v6116_v44 = vperm.slane %v5679_v46, %v18658_v33  ;;  %v4206_v5 = vsel %vm3725_vm1, %v3454_v1, -inf  ;;  %v3353_v23 = vld [vmem:[%s13891_s21 + $0x460] sm:$0xff] }
 0x392   : > { %v6115_v35 = vsel %vm18720_vm10, %v6114_v13, %v6113_v53  ;;  %v5616_v11 = vunpack.c.l.b16 %v4798_v52  ;;  %v5866_v25 = vperm.slane %v5550_v2, %v18657_v51  ;;  %v5868_v14 = vperm.slane %v5551_v16, %v18658_v33  ;;  %4652 = vmax.xlane.f32.xlu2 %v4651_v3  ;;  %vm18722_vm9 = vmmov %vm18720_vm10  ;;  %v4125_v37 = vpop.xlane.xlu2 %4124 }
 0x393   : > { %4076 = vmax.xlane.f32.xlu0 %v4075_v41  ;;  %v4211_v24 = vmax.f32 %v3455_v21, %v4210_v31  ;;  %v5617_v30 = vunpack.c.h.b16 %v4798_v52  ;;  %v5865_v26 = vsel %vm18721_vm11, %v5864_v42, %v5863_v63  ;;  %v4006_v22 = vsel %vm3725_vm1, %v3354_v57, -inf  ;;  %v4057_v58 = vpop.xlane.xlu0 %4056  ;;  %v3384_v21 = vld [vmem:[%s13891_s21 + $0x558] sm:$0xff] }
 0x394   : > { %v5867_v55 = vsel %vm18722_vm9, %v5866_v25, %v5865_v26  ;;  %v5963_v28 = vperm.slane %v5600_v0, %v18723_v32  ;;  %v5964_v7 = vperm.slane %v5601_v61, %v18724_v8  ;;  %v4207_v41 = vmax.f32 %v3453_v27, %v4206_v5  ;;  %v16404_v16 = vpop.xlane.xlu1 %4192  ;;  %v3641_v0 = vld [vmem:[%s13891_s21 + $0xd60] sm:$0xff]  ;;  %v18726_v61 = vld [vmem:[#allocation14_spill] sm:$0xff]  ;;  %v18728_v5 = vld [vmem:[#allocation60_spill] sm:$0xff] }
 0x395   : > { %v6117_v46 = vsel %vm5837_vm7, %v6116_v44, %v6115_v35  ;;  %v5869_v13 = vsel %vm5837_vm7, %v5868_v14, %v5867_v55  ;;  %v4791_v53 = vpack.c.bf16 %v4061_v4, %v4057_v58  ;;  %v5994_v49 = vperm.slane %v5616_v11, %v18723_v32  ;;  %v18727_v44 = vld [vmem:[#allocation59_spill] sm:$0xff]  ;;  %v3642_v25 = vld [vmem:[%s13891_s21 + $0xd68] sm:$0xff]  ;;  %v3616_v14 = vld [vmem:[%s13891_s21 + $0xc98] sm:$0xff] }
 0x396   : > { %v6306_v52 = vsel %vm6304_vm8, %v6117_v46, %v5869_v13  ;;  %v4799_v17 = vpack.c.bf16 %v4125_v37, %v18725_v59  ;;  %v4007_v3 = vmax.f32 %v3353_v23, %v4006_v22  ;;  %v5995_v19 = vperm.slane %v5617_v30, %v18724_v8  ;;  %v3615_v22 = vld [vmem:[%s13891_s21 + $0xc90] sm:$0xff] }
 0x397   : > { %v16400_v1 = vpack.c.b16 %v6306_v52, %v6306_v52  ;;  %v5602_v42 = vunpack.c.l.b16 %v4791_v53  ;;  %v5603_v63 = vunpack.c.h.b16 %v4791_v53  ;;  %v5965_v4 = vsel %vm5781_vm14, %v5964_v7, %v5963_v28  ;;  %v3383_v7 = vld [vmem:[%s13891_s21 + $0x550] sm:$0xff]  ;;  %v16429_v53 = vpop.f32.mrf.mxu2 }
 0x398   : > { %4212 = vmax.xlane.f32.xlu1 %v4211_v24  ;;  %v5618_v31 = vunpack.c.l.b16 %v4799_v17  ;;  %v5619_v2 = vunpack.c.h.b16 %v4799_v17  ;;  %v5744_v57 = vunpack.c.l.b16 %v18726_v61  ;;  %v5745_v35 = vunpack.c.h.b16 %v18726_v61  ;;  %18729 = vst [vmem:[#allocation27_spill] sm:$0xff] %v16429_v53  ;;  %v3684_v17 = vld [vmem:[%s13891_s21 + $0xeb8] sm:$0xff] }
 0x399   : > { %8910 = vmatmul.bf16.vlgmr.msra.gmra.mxu1 %v16400_v1  ;;  %v5966_v27 = vperm.slane %v5602_v42, %v18727_v44  ;;  %v5968_v11 = vperm.slane %v5603_v63, %v18728_v5  ;;  %v4066_v26 = vsel %vm3725_vm1, %v3384_v21, -inf  ;;  %v4582_v23 = vsel %vm3725_vm1, %v3642_v25, -inf  ;;  %v3682_v63 = vld [vmem:[%s13891_s21 + $0xea8] sm:$0xff] }
 0x39a   : > { %v5997_v24 = vperm.slane %v5618_v31, %v18727_v44  ;;  %v5999_v30 = vperm.slane %v5619_v2, %v18728_v5  ;;  %4008 = vmax.xlane.f32.xlu2 %v4007_v3  ;;  %v5996_v55 = vsel %vm5781_vm14, %v5995_v19, %v5994_v49  ;;  %v4583_v58 = vmax.f32 %v3641_v0, %v4582_v23  ;;  %v4633_v52 = vpop.xlane.xlu2 %4632  ;;  %v18730_v3 = vld [vmem:[#allocation19_spill] sm:$0xff] }
 0x39b   : > { %4208 = vmax.xlane.f32.xlu0 %v4207_v41  ;;  %v5967_v28 = vsel %vm5785_vm15, %v5966_v27, %v5965_v4  ;;  %v4530_v41 = vsel %vm3725_vm1, %v3616_v14, -inf  ;;  %v16427_v37 = vpop.xlane.xlu0 %4140  ;;  %v4863_v19 = vpack.c.bf16 %v18730_v3, %v4633_v52  ;;  %v4067_v42 = vmax.f32 %v3383_v7, %v4066_v26  ;;  %v3683_v31 = vld [vmem:[%s13891_s21 + $0xeb0] sm:$0xff]  ;;  %v3450_v27 = vld [vmem:[%s13891_s21 + $0x768] sm:$0xff]  ;;  %v3449_v26 = vld [vmem:[%s13891_s21 + $0x760] sm:$0xff] }
 0x39c   : > { %v5998_v46 = vsel %vm5785_vm15, %v5997_v24, %v5996_v55  ;;  %v16425_v13 = vsel %vm5789_vm2, %v5968_v11, %v5967_v28  ;;  %v4531_v59 = vmax.f32 %v3615_v22, %v4530_v41  ;;  %v6242_v21 = vperm.slane %v5744_v57, %v18723_v32  ;;  %v3681_v11 = vld [vmem:[%s13891_s21 + $0xea0] sm:$0xff] }
 0x39d   : > { %v16432_v49 = vsel %vm5789_vm2, %v5999_v30, %v5998_v46  ;;  %v6243_v4 = vperm.slane %v5745_v35, %v18724_v8  ;;  %v4666_v2 = vsel %vm3725_vm1, %v3684_v17, -inf  ;;  %v5746_v0 = vunpack.c.l.b16 %v4863_v19  ;;  %v4517_v30 = vpop.xlane.xlu1 %4516 }
 0x39e   : > { %v5747_v61 = vunpack.c.h.b16 %v4863_v19  ;;  %v4662_v25 = vsel %vm3725_vm1, %v3682_v63, -inf  ;;  %v4667_v57 = vmax.f32 %v3683_v31, %v4666_v2  ;;  %v4198_v23 = vsel %vm3725_vm1, %v3450_v27, -inf  ;;  %v3362_v19 = vld [vmem:[%s13891_s21 + $0x4a8] sm:$0xff]  ;;  %v3711_v27 = vld [vmem:[%s13891_s21 + $0xf90] sm:$0xff] }
 0x39f   : > { %v6245_v14 = vperm.slane %v5746_v0, %v18727_v44  ;;  %v6244_v35 = vsel %vm5781_vm14, %v6243_v4, %v6242_v21  ;;  %v4663_v28 = vmax.f32 %v3681_v11, %v4662_v25  ;;  %v5586_v7 = vunpack.c.l.b16 %v16103_v40  ;;  %v16458_v63 = vpop.f32.mrf.mxu2  ;;  %v3361_v21 = vld [vmem:[%s13891_s21 + $0x4a0] sm:$0xff]  ;;  %v3612_v0 = vld [vmem:[%s13891_s21 + $0xc78] sm:$0xff] }
 0x3a0   : > { %4584 = vmax.xlane.f32.xlu1 %v4583_v58  ;;  %v6247_v24 = vperm.slane %v5747_v61, %v18728_v5  ;;  %v5587_v52 = vunpack.c.h.b16 %v16103_v40  ;;  %v4199_v3 = vmax.f32 %v3449_v26, %v4198_v23  ;;  %18732 = vst [vmem:[#allocation26_spill] sm:$0xff] %v16458_v63  ;;  %v4022_v4 = vsel %vm3725_vm1, %v3362_v19, -inf }
 0x3a1   : > { %v6246_v22 = vsel %vm5785_vm15, %v6245_v14, %v6244_v35  ;;  %v5935_v61 = vperm.slane %v5586_v7, %v18727_v44  ;;  %v5714_v23 = vunpack.c.l.b16 %v16231_v29  ;;  %v5715_v7 = vunpack.c.h.b16 %v16231_v29 }
 0x3a2   : > { %4068 = vmax.xlane.f32.xlu2 %v4067_v42  ;;  %v16452_v58 = vsel %vm5789_vm2, %v6247_v24, %v6246_v22  ;;  %v3989_v41 = vpop.xlane.xlu2 %3988  ;;  %v3712_v42 = vld [vmem:[%s13891_s21 + $0xf98] sm:$0xff]  ;;  %v5937_v11 = vperm.slane %v5587_v52, %v18728_v5  ;;  %v4023_v24 = vmax.f32 %v3361_v21, %v4022_v4  ;;  %vm18755_vm12 = vcmask 523712  }
 0x3a3   : > { %4532 = vmax.xlane.f32.xlu0 %v4531_v59  ;;  %v4513_v55 = vpop.xlane.xlu0 %4512  ;;  %v18731_v59 = vld [vmem:[#allocation63_spill] sm:$0xff]  ;;  %v4722_v40 = vsel %vm3725_vm1, %v3712_v42, -inf  ;;  %vm18756_vm13 = vcmask 589312   ;;  %vm18757_vm6 = vcmask 654912  }
 0x3a4   : > { %v4848_v46 = vpack.c.bf16 %v4517_v30, %v4513_v55  ;;  %v4782_v17 = vpack.c.bf16 %v3989_v41, %v18731_v59  ;;  %v3611_v30 = vld [vmem:[%s13891_s21 + $0xc70] sm:$0xff]  ;;  %v4723_v26 = vmax.f32 %v3711_v27, %v4722_v40  ;;  %v3392_v59 = vld [vmem:[%s13891_s21 + $0x598] sm:$0xff]  ;;  %v6185_v40 = vperm.slane %v5715_v7, %v18728_v5  ;;  %vm18763_vm10 = vmmov %vm18757_vm6 }
 0x3a5   : > { %v3391_v42 = vld [vmem:[%s13891_s21 + $0x590] sm:$0xff]  ;;  %v4082_v21 = vsel %vm3725_vm1, %v3392_v59, -inf  ;;  %v3458_v59 = vld [vmem:[%s13891_s21 + $0x7a8] sm:$0xff]  ;;  %vm18766_vm11 = vmmov %vm18757_vm6 }
 0x3a6   : > { %v5584_v31 = vunpack.c.l.b16 %v4782_v17  ;;  %v5585_v2 = vunpack.c.h.b16 %v4782_v17  ;;  %v3390_v17 = vld [vmem:[%s13891_s21 + $0x588] sm:$0xff]  ;;  %v5716_v19 = vunpack.c.l.b16 %v4848_v46 }
 0x3a7   : > { %v16487_v29 = vpop.f32.mrf.mxu2  ;;  %v4078_v27 = vsel %vm3725_vm1, %v3390_v17, -inf  ;;  %v3432_v17 = vld [vmem:[%s13891_s21 + $0x6d8] sm:$0xff] }
 0x3a8   : > { %4668 = vmax.xlane.f32.xlu1 %v4667_v57  ;;  %v5932_v25 = vperm.slane %v5584_v31, %v18723_v32  ;;  %v5933_v14 = vperm.slane %v5585_v2, %v18724_v8  ;;  %v4522_v57 = vsel %vm3725_vm1, %v3612_v0, -inf  ;;  %v5717_v2 = vunpack.c.h.b16 %v4848_v46  ;;  %v3678_v0 = vld [vmem:[%s13891_s21 + $0xe88] sm:$0xff] }
 0x3a9   : > { %v4523_v52 = vmax.f32 %v3611_v30, %v4522_v57  ;;  %v6187_v46 = vperm.slane %v5716_v19, %v18579_v60  ;;  %v4654_v30 = vsel %vm3725_vm1, %v3678_v0, -inf  ;;  %v3708_v0 = vld [vmem:[%s13891_s21 + $0xf78] sm:$0xff] }
 0x3aa   : > { %4200 = vmax.xlane.f32.xlu2 %v4199_v3  ;;  %v5934_v35 = vsel %vm5781_vm14, %v5933_v14, %v5932_v25  ;;  %v4497_v55 = vpop.xlane.xlu2 %4496  ;;  %v4083_v14 = vmax.f32 %v3391_v42, %v4082_v21  ;;  %v3457_v21 = vld [vmem:[%s13891_s21 + $0x7a0] sm:$0xff] }
 0x3ab   : > { %4664 = vmax.xlane.f32.xlu0 %v4663_v28  ;;  %v5936_v22 = vsel %vm5785_vm15, %v5935_v61, %v5934_v35  ;;  %v16474_v28 = vpop.f32.mrf.mxu0  ;;  %v4846_v41 = vpack.c.bf16 %v16037_v47, %v4497_v55  ;;  %v6183_v47 = vperm.slane %v5714_v23, %v18727_v44  ;;  %v3389_v61 = vld [vmem:[%s13891_s21 + $0x580] sm:$0xff] }
 0x3ac   : > { %18733 = vst [vmem:[#allocation31_spill] sm:$0xff] %v16474_v28  ;;  %v16481_v3 = vsel %vm5789_vm2, %v5937_v11, %v5936_v22  ;;  %v18734_v35 = vld [vmem:[#allocation65_spill] sm:$0xff]  ;;  %v4079_v23 = vmax.f32 %v3389_v61, %v4078_v27  ;;  %v4162_v61 = vsel %vm3725_vm1, %v3432_v17, -inf  ;;  %v3618_v17 = vld [vmem:[%s13891_s21 + $0xca8] sm:$0xff] }
 0x3ad   : > { %v5712_v4 = vunpack.c.l.b16 %v4846_v41  ;;  %v5713_v31 = vunpack.c.h.b16 %v4846_v41  ;;  %v16508_v42 = vpop.xlane.xlu0 %4572 }
 0x3af   : > { %v6180_v11 = vperm.slane %v5712_v4, %v18723_v32  ;;  %v6181_v25 = vperm.slane %v5713_v31, %v18724_v8  ;;  %v4214_v4 = vsel %vm3725_vm1, %v3458_v59, -inf  ;;  %v3620_v59 = vld [vmem:[%s13891_s21 + $0xcb8] sm:$0xff] }
 0x3b0   : > { %4024 = vmax.xlane.f32.xlu1 %v4023_v24  ;;  %v3677_v24 = vld [vmem:[%s13891_s21 + $0xe80] sm:$0xff]  ;;  %v4215_v27 = vmax.f32 %v3457_v21, %v4214_v4  ;;  %v4538_v21 = vsel %vm3725_vm1, %v3620_v59, -inf }
 0x3b1   : > { %v6182_v57 = vsel %vm5781_vm14, %v6181_v25, %v6180_v11  ;;  %v4655_v41 = vmax.f32 %v3677_v24, %v4654_v30  ;;  %v3707_v11 = vld [vmem:[%s13891_s21 + $0xf70] sm:$0xff]  ;;  %v4714_v25 = vsel %vm3725_vm1, %v3708_v0, -inf  ;;  %v3617_v4 = vld [vmem:[%s13891_s21 + $0xca0] sm:$0xff]  ;;  %v4534_v0 = vsel %vm3725_vm1, %v3618_v17, -inf }
 0x3b2   : > { %4524 = vmax.xlane.f32.xlu2 %v4523_v52  ;;  %v6184_v22 = vsel %vm5785_vm15, %v6183_v47, %v6182_v57  ;;  %v16500_v55 = vpop.xlane.xlu2 %4692  ;;  %v16503_v52 = vpop.xlane.xlu1 %4648  ;;  %v3431_v47 = vld [vmem:[%s13891_s21 + $0x6d0] sm:$0xff]  ;;  %v4715_v57 = vmax.f32 %v3707_v11, %v4714_v25 }
 0x3b3   : > { %4724 = vmax.xlane.f32.xlu0 %v4723_v26  ;;  %v6189_v26 = vperm.slane %v5717_v2, %v18734_v35  ;;  %v6186_v7 = vsel %vm5789_vm2, %v6185_v40, %v6184_v22  ;;  %v16512_v31 = vpop.f32.mrf.mxu0  ;;  %v16520_v40 = vpop.f32.mrf.mxu2  ;;  %v18736_v25 = vld [vmem:[#allocation23_spill] sm:$0xff] }
 0x3b4   : > { %v6188_v19 = vsel %vm5793_vm3, %v6187_v46, %v6186_v7  ;;  %v16524_v46 = vpop.f32.mrf.mxu3  ;;  %v3386_v7 = vld [vmem:[%s13891_s21 + $0x568] sm:$0xff] }
 0x3b5   : > { %v16515_v2 = vsel %vm5797_vm4, %v6189_v26, %v6188_v19  ;;  %18735 = vst [vmem:[#allocation30_spill] sm:$0xff] %v16524_v46  ;;  %v3619_v26 = vld [vmem:[%s13891_s21 + $0xcb0] sm:$0xff]  ;;  %v4070_v59 = vsel %vm3725_vm1, %v3386_v7, -inf  ;;  %v4535_v46 = vmax.f32 %v3617_v4, %v4534_v0  ;;  %v3685_v4 = vld [vmem:[%s13891_s21 + $0xec0] sm:$0xff] }
 0x3b6   : > { %v4539_v11 = vmax.f32 %v3619_v26, %v4538_v21  ;;  %v3686_v26 = vld [vmem:[%s13891_s21 + $0xec8] sm:$0xff]  ;;  %v3648_v21 = vld [vmem:[%s13891_s21 + $0xd98] sm:$0xff] }
 0x3b7   : > { %v4705_v19 = vpop.xlane.xlu0 %4704  ;;  %v4670_v0 = vsel %vm3725_vm1, %v3686_v26, -inf }
 0x3b8   : > { %4084 = vmax.xlane.f32.xlu1 %v4083_v14  ;;  %v4163_v14 = vmax.f32 %v3431_v47, %v4162_v61 }
 0x3ba   : > { %4656 = vmax.xlane.f32.xlu2 %v4655_v41  ;;  %v4129_v24 = vpop.xlane.xlu2 %4128  ;;  %v4709_v41 = vpop.xlane.xlu1 %4708 }
 0x3bb   : > { %4080 = vmax.xlane.f32.xlu0 %v4079_v23  ;;  %v4800_v30 = vpack.c.bf16 %v16176_v20, %v4129_v24  ;;  %v16534_v47 = vpop.f32.mrf.mxu0  ;;  %v5633_v24 = vunpack.c.h.b16 %v18736_v25 }
 0x3bd   : > { %v5620_v23 = vunpack.c.l.b16 %v4800_v30  ;;  %v5621_v22 = vunpack.c.h.b16 %v4800_v30  ;;  %v3385_v30 = vld [vmem:[%s13891_s21 + $0x560] sm:$0xff] }
 0x3bf   : > { %v6001_v20 = vperm.slane %v5620_v23, %v18579_v60  ;;  %v6003_v61 = vperm.slane %v5621_v22, %v18734_v35  ;;  %v16546_v23 = vpop.f32.mrf.mxu2 }
 0x3c0   : > { %4216 = vmax.xlane.f32.xlu1 %v4215_v27  ;;  %v16538_v27 = vpack.c.bf16 %v4709_v41, %v4705_v19  ;;  %18737 = vst [vmem:[#allocation22_spill] sm:$0xff] %v16546_v23  ;;  %v4071_v19 = vmax.f32 %v3385_v30, %v4070_v59  ;;  %v3428_v23 = vld [vmem:[%s13891_s21 + $0x6b8] sm:$0xff]  ;;  %v4671_v30 = vmax.f32 %v3685_v4, %v4670_v0 }
 0x3c1   : > { %v6002_v17 = vsel %vm5793_vm3, %v6001_v20, %v16432_v49  ;;  %v16556_v49 = vpop.f32.mrf.mxu3  ;;  %v16560_v20 = vpop.f32.mrf.mxu1  ;;  %v4154_v26 = vsel %vm3725_vm1, %v3428_v23, -inf  ;;  %v4870_v23 = vpack.c.bf16 %v16500_v55, %v15994_v45 }
 0x3c2   : > { %4716 = vmax.xlane.f32.xlu2 %v4715_v57  ;;  %v16549_v57 = vsel %vm5797_vm4, %v6003_v61, %v6002_v17  ;;  %v4189_v22 = vpop.xlane.xlu2 %4188  ;;  %18738 = vst [vmem:[#allocation21_spill] sm:$0xff] %v16556_v49  ;;  %v3613_v49 = vld [vmem:[%s13891_s21 + $0xc80] sm:$0xff] }
 0x3c3   : > { %4164 = vmax.xlane.f32.xlu0 %v4163_v14  ;;  %v5632_v14 = vunpack.c.l.b16 %v18736_v25  ;;  %v4807_v41 = vpack.c.bf16 %v4189_v22, %v16105_v10  ;;  %v6026_v25 = vperm.slane %v5633_v24, %v18724_v8  ;;  %18739 = vst [vmem:[#allocation67_spill] sm:$0xff] %v16560_v20  ;;  %v3647_v10 = vld [vmem:[%s13891_s21 + $0xd90] sm:$0xff] }
 0x3c4   : > { %v3427_v22 = vld [vmem:[%s13891_s21 + $0x6b0] sm:$0xff] }
 0x3c5   : > { %v6025_v7 = vperm.slane %v5632_v14, %v18723_v32  ;;  %v5634_v61 = vunpack.c.l.b16 %v4807_v41  ;;  %v5635_v17 = vunpack.c.h.b16 %v4807_v41  ;;  %v16570_v41 = vpop.f32.mrf.mxu0 }
 0x3c6   : > { %v16583_v0 = vpop.xlane.xlu1 %4064 }
 0x3c7   : > { %v6028_v14 = vperm.slane %v5634_v61, %v18727_v44  ;;  %v6030_v24 = vperm.slane %v5635_v17, %v18728_v5  ;;  %v6027_v59 = vsel %vm5781_vm14, %v6026_v25, %v6025_v7  ;;  %v3716_v7 = vld [vmem:[%s13891_s21 + $0xfb8] sm:$0xff]  ;;  %v3714_v25 = vld [vmem:[%s13891_s21 + $0xfa8] sm:$0xff]  ;;  %v16579_v4 = vpop.f32.mrf.mxu2 }
 0x3c8   : > { %4540 = vmax.xlane.f32.xlu1 %v4539_v11  ;;  %v4594_v11 = vsel %vm3725_vm1, %v3648_v21, -inf  ;;  %18740 = vst [vmem:[#allocation35_spill] sm:$0xff] %v16579_v4 }
 0x3c9   : > { %v4595_v21 = vmax.f32 %v3647_v10, %v4594_v11  ;;  %v4730_v10 = vsel %vm3725_vm1, %v3716_v7, -inf  ;;  %v5760_v7 = vunpack.c.l.b16 %v4870_v23 }
 0x3ca   : > { %4072 = vmax.xlane.f32.xlu2 %v4071_v19  ;;  %v4641_v61 = vpop.xlane.xlu2 %4640  ;;  %v4155_v19 = vmax.f32 %v3427_v22, %v4154_v26  ;;  %v3713_v22 = vld [vmem:[%s13891_s21 + $0xfa0] sm:$0xff]  ;;  %v4726_v26 = vsel %vm3725_vm1, %v3714_v25, -inf }
 0x3cb   : > { %4536 = vmax.xlane.f32.xlu0 %v4535_v46  ;;  %v6029_v46 = vsel %vm5785_vm15, %v6028_v14, %v6027_v59  ;;  %v4864_v17 = vpack.c.bf16 %v16277_v15, %v4641_v61  ;;  %v3715_v14 = vld [vmem:[%s13891_s21 + $0xfb0] sm:$0xff]  ;;  %v3614_v59 = vld [vmem:[%s13891_s21 + $0xc88] sm:$0xff]  ;;  %v16588_v15 = vpop.f32.mrf.mxu3  ;;  %v4727_v4 = vmax.f32 %v3713_v22, %v4726_v26  ;;  %v3393_v22 = vld [vmem:[%s13891_s21 + $0x5a0] sm:$0xff] }
 0x3cc   : > { %v16574_v20 = vsel %vm5789_vm2, %v6030_v24, %v6029_v46  ;;  %18741 = vst [vmem:[#allocation34_spill] sm:$0xff] %v16588_v15  ;;  %v16594_v46 = vpop.f32.mrf.mxu1  ;;  %v4731_v61 = vmax.f32 %v3715_v14, %v4730_v10  ;;  %v6273_v10 = vperm.slane %v5760_v7, %v18723_v32 }
 0x3cd   : > { %v5748_v11 = vunpack.c.l.b16 %v4864_v17  ;;  %v5749_v24 = vunpack.c.h.b16 %v4864_v17  ;;  %18742 = vst [vmem:[#allocation39_spill] sm:$0xff] %v16594_v46  ;;  %v5761_v17 = vunpack.c.h.b16 %v4870_v23  ;;  %v5764_v23 = vunpack.c.l.b16 %v16538_v27  ;;  %v3368_v46 = vld [vmem:[%s13891_s21 + $0x4d8] sm:$0xff] }
 0x3ce   : > { %v4034_v7 = vsel %vm3725_vm1, %v3368_v46, -inf }
 0x3cf   : > { %v6249_v45 = vperm.slane %v5748_v11, %v18579_v60  ;;  %v6251_v55 = vperm.slane %v5749_v24, %v18734_v35  ;;  %v16605_v24 = vpop.f32.mrf.mxu0 }
 0x3d0   : > { %4672 = vmax.xlane.f32.xlu1 %v4671_v30  ;;  %v16590_v30 = vpop.xlane.xlu0 %4012  ;;  %18743 = vst [vmem:[#allocation38_spill] sm:$0xff] %v16605_v24 }
 0x3d1   : > { %v6250_v15 = vsel %vm5793_vm3, %v6249_v45, %v16452_v58  ;;  %v6274_v58 = vperm.slane %v5761_v17, %v18724_v8  ;;  %v3644_v45 = vld [vmem:[%s13891_s21 + $0xd78] sm:$0xff] }
 0x3d2   : > { %4156 = vmax.xlane.f32.xlu2 %v4155_v19  ;;  %v16603_v25 = vsel %vm5797_vm4, %v6251_v55, %v6250_v15  ;;  %v4701_v11 = vpop.xlane.xlu2 %4700  ;;  %v3394_v55 = vld [vmem:[%s13891_s21 + $0x5a8] sm:$0xff]  ;;  %v4586_v46 = vsel %vm3725_vm1, %v3644_v45, -inf }
 0x3d3   : > { %4596 = vmax.xlane.f32.xlu0 %v4595_v21  ;;  %v4526_v21 = vsel %vm3725_vm1, %v3614_v59, -inf  ;;  %v4871_v19 = vpack.c.bf16 %v4701_v11, %v16246_v50  ;;  %v5765_v59 = vunpack.c.h.b16 %v16538_v27  ;;  %v16616_v50 = vpop.f32.mrf.mxu2  ;;  %v6275_v24 = vsel %vm5781_vm14, %v6274_v58, %v6273_v10  ;;  %v3434_v45 = vld [vmem:[%s13891_s21 + $0x6e8] sm:$0xff] }
 0x3d4   : > { %v4527_v14 = vmax.f32 %v3613_v49, %v4526_v21  ;;  %18744 = vst [vmem:[#allocation24_spill] sm:$0xff] %v16616_v50  ;;  %v4086_v49 = vsel %vm3725_vm1, %v3394_v55, -inf  ;;  %v6280_v21 = vperm.slane %v5764_v23, %v18579_v60  ;;  %v3643_v55 = vld [vmem:[%s13891_s21 + $0xd70] sm:$0xff] }
 0x3d5   : > { %v5762_v15 = vunpack.c.l.b16 %v4871_v19  ;;  %v5763_v26 = vunpack.c.h.b16 %v4871_v19  ;;  %v4087_v19 = vmax.f32 %v3393_v22, %v4086_v49  ;;  %v6282_v50 = vperm.slane %v5765_v59, %v18734_v35  ;;  %v3436_v59 = vld [vmem:[%s13891_s21 + $0x6f8] sm:$0xff] }
 0x3d6   : > { %v4587_v58 = vmax.f32 %v3643_v55, %v4586_v46 }
 0x3d7   : > { %v6276_v17 = vperm.slane %v5762_v15, %v18727_v44  ;;  %v6278_v27 = vperm.slane %v5763_v26, %v18728_v5  ;;  %v16630_v15 = vpop.f32.mrf.mxu1 }
 0x3d8   : > { %4732 = vmax.xlane.f32.xlu1 %v4731_v61  ;;  %v4149_v11 = vpop.xlane.xlu1 %4148  ;;  %v3367_v61 = vld [vmem:[%s13891_s21 + $0x4d0] sm:$0xff]  ;;  %v4145_v53 = vpop.xlane.xlu0 %4144  ;;  %18746 = vst [vmem:[#allocation69_spill] sm:$0xff] %v16630_v15 }
 0x3d9   : > { %v6277_v23 = vsel %vm5785_vm15, %v6276_v17, %v6275_v24  ;;  %v4035_v22 = vmax.f32 %v3367_v61, %v4034_v7  ;;  %v3435_v15 = vld [vmem:[%s13891_s21 + $0x6f0] sm:$0xff]  ;;  %v16646_v24 = vpop.f32.mrf.mxu0  ;;  %v3433_v7 = vld [vmem:[%s13891_s21 + $0x6e0] sm:$0xff]  ;;  %v4166_v17 = vsel %vm3725_vm1, %v3434_v45, -inf }
 0x3da   : > { %4528 = vmax.xlane.f32.xlu2 %v4527_v14  ;;  %v16633_v14 = vpack.c.bf16 %v4149_v11, %v4145_v53  ;;  %v6279_v26 = vsel %vm5789_vm2, %v6278_v27, %v6277_v23  ;;  %v16636_v49 = vpop.xlane.xlu2 %4560  ;;  %v4170_v53 = vsel %vm3725_vm1, %v3436_v59, -inf  ;;  %18747 = vst [vmem:[#allocation50_spill] sm:$0xff] %v16646_v24  ;;  %v3710_v11 = vld [vmem:[%s13891_s21 + $0xf88] sm:$0xff]  ;;  %v4167_v46 = vmax.f32 %v3433_v7, %v4166_v17  ;;  %v3464_v24 = vld [vmem:[%s13891_s21 + $0x7d8] sm:$0xff]  ;;  %v3463_v17 = vld [vmem:[%s13891_s21 + $0x7d0] sm:$0xff] }
 0x3db   : > { %4728 = vmax.xlane.f32.xlu0 %v4727_v4  ;;  %v16624_v4 = vpop.f32.mrf.mxu3  ;;  %v6281_v10 = vsel %vm5793_vm3, %v6280_v21, %v6279_v26  ;;  %v4171_v27 = vmax.f32 %v3435_v15, %v4170_v53  ;;  %v16653_v21 = vpop.f32.mrf.mxu2  ;;  %v3621_v15 = vld [vmem:[%s13891_s21 + $0xcc0] sm:$0xff]  ;;  %v3364_v53 = vld [vmem:[%s13891_s21 + $0x4b8] sm:$0xff] }
 0x3dc   : > { %18745 = vst [vmem:[#allocation53_spill] sm:$0xff] %v16624_v4  ;;  %v16642_v4 = vsel %vm5797_vm4, %v6282_v50, %v6281_v10  ;;  %v3709_v50 = vld [vmem:[%s13891_s21 + $0xf80] sm:$0xff] }
 0x3dd   : > { %18748 = vst [vmem:[#allocation25_spill] sm:$0xff] %v16653_v21 }
 0x3df   : > { %v16661_v26 = vpop.f32.mrf.mxu1 }
 0x3e0   : > { %4088 = vmax.xlane.f32.xlu1 %v4087_v19  ;;  %v16649_v61 = vpop.xlane.xlu1 %4520  ;;  %v4718_v19 = vsel %vm3725_vm1, %v3710_v11, -inf  ;;  %18750 = vst [vmem:[#allocation42_spill] sm:$0xff] %v16661_v26  ;;  %v3622_v11 = vld [vmem:[%s13891_s21 + $0xcc8] sm:$0xff] }
 0x3e1   : > { %v4542_v7 = vsel %vm3725_vm1, %v3622_v11, -inf  ;;  %v16671_v63 = vpop.f32.mrf.mxu0 }
 0x3e2   : > { %4588 = vmax.xlane.f32.xlu2 %v4587_v58  ;;  %v4719_v58 = vmax.f32 %v3709_v50, %v4718_v19  ;;  %18751 = vst [vmem:[#allocation47_spill] sm:$0xff] %v16671_v63  ;;  %v4543_v50 = vmax.f32 %v3621_v15, %v4542_v7  ;;  %v3650_v63 = vld [vmem:[%s13891_s21 + $0xda8] sm:$0xff] }
 0x3e3   : > { %4036 = vmax.xlane.f32.xlu0 %v4035_v22  ;;  %v16659_v23 = vpop.f32.mrf.mxu3  ;;  %v4005_v22 = vpop.xlane.xlu2 %4004 }
 0x3e4   : > { %18749 = vst [vmem:[#allocation43_spill] sm:$0xff] %v16659_v23  ;;  %v4784_v10 = vpack.c.bf16 %v4005_v22, %v16338_v12  ;;  %v4226_v23 = vsel %vm3725_vm1, %v3464_v24, -inf  ;;  %v16675_v19 = vpop.f32.mrf.mxu2  ;;  %v4026_v22 = vsel %vm3725_vm1, %v3364_v53, -inf  ;;  %v3652_v53 = vld [vmem:[%s13891_s21 + $0xdb8] sm:$0xff] }
 0x3e5   : > { %v4227_v26 = vmax.f32 %v3463_v17, %v4226_v23  ;;  %v4602_v23 = vsel %vm3725_vm1, %v3652_v53, -inf }
 0x3e6   : > { %v16657_v55 = vpop.xlane.xlu0 %4204  ;;  %v5588_v59 = vunpack.c.l.b16 %v4784_v10  ;;  %v5589_v45 = vunpack.c.h.b16 %v4784_v10 }
 0x3e7   : > { %v16695_v17 = vpop.f32.mrf.mxu1 }
 0x3e8   : > { %4172 = vmax.xlane.f32.xlu1 %v4171_v27  ;;  %v5939_v12 = vperm.slane %v5588_v59, %v18579_v60  ;;  %v5941_v27 = vperm.slane %v5589_v45, %v18734_v35  ;;  %v5624_v45 = vunpack.c.l.b16 %v16633_v14  ;;  %18753 = vst [vmem:[#allocation71_spill] sm:$0xff] %v16695_v17 }
 0x3ea   : > { %4720 = vmax.xlane.f32.xlu2 %v4719_v58  ;;  %v5940_v24 = vsel %vm5793_vm3, %v5939_v12, %v16481_v3  ;;  %v5625_v3 = vunpack.c.h.b16 %v16633_v14  ;;  %v6009_v14 = vperm.slane %v5624_v45, %v18608_v62 }
 0x3eb   : > { %4168 = vmax.xlane.f32.xlu0 %v4167_v46  ;;  %v4581_v21 = vpop.xlane.xlu1 %4580  ;;  %v3363_v46 = vld [vmem:[%s13891_s21 + $0x4b0] sm:$0xff]  ;;  %v16684_v59 = vsel %vm5797_vm4, %v5941_v27, %v5940_v24  ;;  %v16690_v28 = vpop.f32.mrf.mxu3 }
 0x3ec   : > { %v4137_v58 = vpop.xlane.xlu2 %4136  ;;  %v4027_v7 = vmax.f32 %v3363_v46, %v4026_v22  ;;  %18752 = vst [vmem:[#allocation46_spill] sm:$0xff] %v16690_v28  ;;  %v3649_v46 = vld [vmem:[%s13891_s21 + $0xda0] sm:$0xff]  ;;  %v6011_v53 = vperm.slane %v5625_v3, %v18609_v43  ;;  %v8926_v17 = vpop.f32.mrf.mxu2 }
 0x3ed   : > { %v4801_v15 = vpack.c.bf16 %v16427_v37, %v4137_v58  ;;  %v3430_v37 = vld [vmem:[%s13891_s21 + $0x6c8] sm:$0xff]  ;;  %v4854_v17 = vpack.c.bf16 %v16367_v56, %v16636_v49 }
 0x3ee   : > { %v4577_v10 = vpop.xlane.xlu0 %4576 }
 0x3ef   : > { %v16681_v11 = vpack.c.bf16 %v4581_v21, %v4577_v10  ;;  %v3651_v21 = vld [vmem:[%s13891_s21 + $0xdb0] sm:$0xff]  ;;  %v5622_v12 = vunpack.c.l.b16 %v4801_v15  ;;  %v5623_v27 = vunpack.c.h.b16 %v4801_v15  ;;  %v3429_v15 = vld [vmem:[%s13891_s21 + $0x6c0] sm:$0xff]  ;;  %v16731_v56 = vpop.f32.mrf.mxu1 }
 0x3f0   : > { %4544 = vmax.xlane.f32.xlu1 %v4543_v50  ;;  %v4598_v50 = vsel %vm3725_vm1, %v3650_v63, -inf  ;;  %v4603_v58 = vmax.f32 %v3651_v21, %v4602_v23  ;;  %18759 = vst [vmem:[#allocation64_spill] sm:$0xff] %v16731_v56 }
 0x3f1   : > { %v6005_v22 = vperm.slane %v5622_v12, %v18591_v34  ;;  %v6007_v24 = vperm.slane %v5623_v27, %v18600_v6  ;;  %v4599_v12 = vmax.f32 %v3649_v46, %v4598_v50  ;;  %v16712_v27 = vpop.f32.mrf.mxu0 }
 0x3f2   : > { %4028 = vmax.xlane.f32.xlu2 %v4027_v7  ;;  %18754 = vst [vmem:[#allocation74_spill] sm:$0xff] %v16712_v27  ;;  %v3370_v27 = vld [vmem:[%s13891_s21 + $0x4e8] sm:$0xff] }
 0x3f3   : > { %4228 = vmax.xlane.f32.xlu0 %v4227_v26  ;;  %v16698_v10 = vpop.xlane.xlu1 %4712  ;;  %v4158_v26 = vsel %vm3725_vm1, %v3430_v37, -inf  ;;  %v6006_v63 = vsel %vm5801_vm5, %v6005_v22, %v16549_v57  ;;  %v3717_v37 = vld [vmem:[%s13891_s21 + $0xfc0] sm:$0xff]  ;;  %v3460_v22 = vld [vmem:[%s13891_s21 + $0x7b8] sm:$0xff] }
 0x3f4   : > { %v6008_v45 = vsel %vm18755_vm12, %v6007_v24, %v6006_v63  ;;  %v4197_v7 = vpop.xlane.xlu2 %4196  ;;  %v4159_v23 = vmax.f32 %v3429_v15, %v4158_v26  ;;  %v3718_v24 = vld [vmem:[%s13891_s21 + $0xfc8] sm:$0xff]  ;;  %v3692_v63 = vld [vmem:[%s13891_s21 + $0xef8] sm:$0xff] }
 0x3f5   : > { %v6010_v3 = vsel %vm18756_vm13, %v6009_v14, %v6008_v45  ;;  %v4808_v21 = vpack.c.bf16 %v4197_v7, %v16404_v16  ;;  %v16726_v14 = vpop.f32.mrf.mxu3  ;;  %v4734_v16 = vsel %vm3725_vm1, %v3718_v24, -inf  ;;  %v4682_v15 = vsel %vm3725_vm1, %v3692_v63, -inf }
 0x3f6   : > { %v16708_v28 = vpop.xlane.xlu0 %4660  ;;  %v16720_v57 = vsel %vm18757_vm6, %v6011_v53, %v6010_v3  ;;  %18758 = vst [vmem:[#allocation28_spill] sm:$0xff] %v16726_v14  ;;  %v4735_v26 = vmax.f32 %v3717_v37, %v4734_v16  ;;  %v5729_v7 = vunpack.c.h.b16 %v4854_v17  ;;  %v3459_v3 = vld [vmem:[%s13891_s21 + $0x7b0] sm:$0xff]  ;;  %v3372_v16 = vld [vmem:[%s13891_s21 + $0x4f8] sm:$0xff] }
 0x3f7   : > { %v5636_v46 = vunpack.c.l.b16 %v4808_v21  ;;  %v5637_v50 = vunpack.c.h.b16 %v4808_v21  ;;  %v4218_v21 = vsel %vm3725_vm1, %v3460_v22, -inf }
 0x3f8   : > { %4604 = vmax.xlane.f32.xlu1 %v4603_v58  ;;  %v3691_v58 = vld [vmem:[%s13891_s21 + $0xef0] sm:$0xff]  ;;  %v4219_v22 = vmax.f32 %v3459_v3, %v4218_v21  ;;  %v3369_v3 = vld [vmem:[%s13891_s21 + $0x4e0] sm:$0xff] }
 0x3f9   : > { %v6032_v49 = vperm.slane %v5636_v46, %v18579_v60  ;;  %v6034_v53 = vperm.slane %v5637_v50, %v18734_v35  ;;  %v4683_v56 = vmax.f32 %v3691_v58, %v4682_v15  ;;  %v5732_v50 = vunpack.c.l.b16 %v16681_v11  ;;  %v3371_v58 = vld [vmem:[%s13891_s21 + $0x4f0] sm:$0xff] }
 0x3fa   : > { %4160 = vmax.xlane.f32.xlu2 %v4159_v23  ;;  %v4042_v15 = vsel %vm3725_vm1, %v3372_v16, -inf }
 0x3fb   : > { %4600 = vmax.xlane.f32.xlu0 %v4599_v12  ;;  %v4021_v45 = vpop.xlane.xlu1 %4020  ;;  %v5728_v12 = vunpack.c.l.b16 %v4854_v17  ;;  %v6033_v24 = vsel %vm5793_vm3, %v6032_v49, %v16574_v20 }
 0x3fc   : > { %v16742_v46 = vsel %vm5797_vm4, %v6034_v53, %v6033_v24 }
 0x3fd   : > { %v4569_v23 = vpop.xlane.xlu2 %4568  ;;  %v6211_v20 = vperm.slane %v5728_v12, %v18723_v32  ;;  %v16763_v12 = vpop.f32.mrf.mxu3 }
 0x3fe   : > { %v4017_v14 = vpop.xlane.xlu0 %4016  ;;  %v4855_v17 = vpack.c.bf16 %v16508_v42, %v4569_v23  ;;  %v3646_v42 = vld [vmem:[%s13891_s21 + $0xd88] sm:$0xff] }
 0x3ff   : > { %v16739_v63 = vpack.c.bf16 %v4021_v45, %v4017_v14  ;;  %v16744_v37 = vpop.f32.mrf.mxu0  ;;  %v6212_v14 = vperm.slane %v5729_v7, %v18724_v8  ;;  %v5733_v45 = vunpack.c.h.b16 %v16681_v11  ;;  %v6218_v8 = vperm.slane %v5732_v50, %v18579_v60 }
 0x400   : > { %4736 = vmax.xlane.f32.xlu1 %v4735_v26  ;;  %v5730_v49 = vunpack.c.l.b16 %v4855_v17  ;;  %v5731_v53 = vunpack.c.h.b16 %v4855_v17  ;;  %v4038_v26 = vsel %vm3725_vm1, %v3370_v27, -inf  ;;  %v4043_v11 = vmax.f32 %v3371_v58, %v4042_v15  ;;  %v16771_v27 = vpop.f32.mrf.mxu1 }
 0x401   : > { %v6213_v7 = vsel %vm5781_vm14, %v6212_v14, %v6211_v20  ;;  %v6220_v23 = vperm.slane %v5733_v45, %v18734_v35  ;;  %v4590_v17 = vsel %vm3725_vm1, %v3646_v42, -inf  ;;  %v3688_v42 = vld [vmem:[%s13891_s21 + $0xed8] sm:$0xff]  ;;  %vm18760_vm14 = vmmov %vm18755_vm12 }
 0x402   : > { %v6214_v21 = vperm.slane %v5730_v49, %v18727_v44  ;;  %v6216_v32 = vperm.slane %v5731_v53, %v18728_v5  ;;  %4220 = vmax.xlane.f32.xlu2 %v4219_v22  ;;  %v4039_v5 = vmax.f32 %v3369_v3, %v4038_v26 }
 0x403   : > { %4684 = vmax.xlane.f32.xlu0 %v4683_v56  ;;  %v16756_v24 = vpop.xlane.xlu1 %4152  ;;  %v3645_v56 = vld [vmem:[%s13891_s21 + $0xd80] sm:$0xff] }
 0x404   : > { %v6215_v44 = vsel %vm5785_vm15, %v6214_v21, %v6213_v7  ;;  %v4591_v45 = vmax.f32 %v3645_v56, %v4590_v17  ;;  %vm18761_vm15 = vmmov %vm18755_vm12 }
 0x405   : > { %v6217_v50 = vsel %vm5789_vm2, %v6216_v32, %v6215_v44  ;;  %v4653_v22 = vpop.xlane.xlu2 %4652  ;;  %v3687_v32 = vld [vmem:[%s13891_s21 + $0xed0] sm:$0xff]  ;;  %v3465_v44 = vld [vmem:[%s13891_s21 + $0x7e0] sm:$0xff]  ;;  %vm18762_vm2 = vmmov %vm18756_vm13 }
 0x406   : > { %v16769_v16 = vpop.xlane.xlu0 %4076  ;;  %v6219_v20 = vsel %vm5793_vm3, %v6218_v8, %v6217_v50  ;;  %v4865_v14 = vpack.c.bf16 %v4653_v22, %v16503_v52  ;;  %v4674_v8 = vsel %vm3725_vm1, %v3688_v42, -inf  ;;  %v5592_v22 = vunpack.c.l.b16 %v16739_v63  ;;  %vm18769_vm13 = vmmov %vm18757_vm6 }
 0x407   : > { %v8900_v58 = vpop.f32.mrf.mxu0  ;;  %v16778_v15 = vsel %vm5797_vm4, %v6220_v23, %v6219_v20  ;;  %v3466_v20 = vld [vmem:[%s13891_s21 + $0x7e8] sm:$0xff]  ;;  %vm18770_vm6 = vcmask 720512  }
 0x408   : > { %4044 = vmax.xlane.f32.xlu1 %v4043_v11  ;;  %v5750_v49 = vunpack.c.l.b16 %v4865_v14  ;;  %v5751_v53 = vunpack.c.h.b16 %v4865_v14  ;;  %v4675_v58 = vmax.f32 %v3687_v32, %v4674_v8  ;;  %v3399_v14 = vld [vmem:[%s13891_s21 + $0x5d0] sm:$0xff]  ;;  %v5947_v8 = vperm.slane %v5592_v22, %v18608_v62 }
 0x40a   : > { %v6253_v26 = vperm.slane %v5750_v49, %v18591_v34  ;;  %v6255_v21 = vperm.slane %v5751_v53, %v18600_v6  ;;  %4592 = vmax.xlane.f32.xlu2 %v4591_v45  ;;  %v3400_v45 = vld [vmem:[%s13891_s21 + $0x5d8] sm:$0xff]  ;;  %v4230_v49 = vsel %vm3725_vm1, %v3466_v20, -inf  ;;  %v3365_v20 = vld [vmem:[%s13891_s21 + $0x4c0] sm:$0xff] }
 0x40b   : > { %4040 = vmax.xlane.f32.xlu0 %v4039_v5  ;;  %v4213_v3 = vpop.xlane.xlu1 %4212  ;;  %v16795_v5 = vpop.f32.mrf.mxu1  ;;  %v4098_v53 = vsel %vm3725_vm1, %v3400_v45, -inf }
 0x40c   : > { %v6254_v7 = vsel %vm5801_vm5, %v6253_v26, %v16603_v25  ;;  %v5593_v25 = vunpack.c.h.b16 %v16739_v63  ;;  %v3366_v26 = vld [vmem:[%s13891_s21 + $0x4c8] sm:$0xff] }
 0x40d   : > { %v16783_v52 = vpop.f32.mrf.mxu3  ;;  %v16792_v56 = vsel %vm18760_vm14, %v6255_v21, %v6254_v7  ;;  %v4009_v17 = vpop.xlane.xlu2 %4008  ;;  %vm18771_vm14 = vcmask 786112  }
 0x40e   : > { %v4209_v11 = vpop.xlane.xlu0 %4208  ;;  %v4785_v50 = vpack.c.bf16 %v16590_v30, %v4009_v17  ;;  %v4099_v30 = vmax.f32 %v3399_v14, %v4098_v53  ;;  %v5949_v63 = vperm.slane %v5593_v25, %v18609_v43 }
 0x40f   : > { %v16789_v23 = vpack.c.bf16 %v4213_v3, %v4209_v11  ;;  %v4231_v11 = vmax.f32 %v3465_v44, %v4230_v49 }
 0x410   : > { %v5590_v42 = vunpack.c.l.b16 %v4785_v50  ;;  %v5591_v3 = vunpack.c.h.b16 %v4785_v50  ;;  %v4030_v50 = vsel %vm3725_vm1, %v3366_v26, -inf  ;;  %v3396_v26 = vld [vmem:[%s13891_s21 + $0x5b8] sm:$0xff] }
 0x411   : > { %4232 = vmax.xlane.f32.xlu1 %v4231_v11  ;;  %v4031_v53 = vmax.f32 %v3365_v20, %v4030_v50  ;;  %v3627_v11 = vld [vmem:[%s13891_s21 + $0xcf0] sm:$0xff] }
 0x412   : > { %v5943_v7 = vperm.slane %v5590_v42, %v18591_v34  ;;  %v5945_v32 = vperm.slane %v5591_v3, %v18600_v6  ;;  %4676 = vmax.xlane.f32.xlu2 %v4675_v58 }
 0x413   : > { %v16806_v21 = vpop.xlane.xlu1 %4584  ;;  %4100 = vmax.xlane.f32.xlu0 %v4099_v30 }
 0x414   : > { %v5944_v44 = vsel %vm5801_vm5, %v5943_v7, %v16684_v59  ;;  %v3628_v59 = vld [vmem:[%s13891_s21 + $0xcf8] sm:$0xff]  ;;  %v3625_v7 = vld [vmem:[%s13891_s21 + $0xce0] sm:$0xff] }
 0x415   : > { %v8939_v17 = vpop.f32.mrf.mxu3  ;;  %v5946_v22 = vsel %vm18761_vm15, %v5945_v32, %v5944_v44  ;;  %v4069_v58 = vpop.xlane.xlu2 %4068  ;;  %v3626_v32 = vld [vmem:[%s13891_s21 + $0xce8] sm:$0xff] }
 0x416   : > { %v16814_v45 = vpop.xlane.xlu0 %4532  ;;  %v5948_v14 = vsel %vm18762_vm2, %v5947_v8, %v5946_v22  ;;  %v4792_v25 = vpack.c.bf16 %v4069_v58, %v16583_v0  ;;  %v8911_v49 = vpop.f32.mrf.mxu1  ;;  %v4554_v0 = vsel %vm3725_vm1, %v3628_v59, -inf  ;;  %v4550_v20 = vsel %vm3725_vm1, %v3626_v32, -inf  ;;  %v3395_v58 = vld [vmem:[%s13891_s21 + $0x5b0] sm:$0xff] }
 0x417   : > { %v16822_v42 = vsel %vm18763_vm10, %v5949_v63, %v5948_v14  ;;  %v8912_v3 = vadd.f32 %v8911_v49, %v16744_v37  ;;  %v4555_v37 = vmax.f32 %v3627_v11, %v4554_v0  ;;  %v4551_v22 = vmax.f32 %v3625_v7, %v4550_v20  ;;  %v3461_v0 = vld [vmem:[%s13891_s21 + $0x7c0] sm:$0xff] }
 0x418   : > { %v5604_v30 = vunpack.c.l.b16 %v4792_v25  ;;  %v5605_v17 = vunpack.c.h.b16 %v4792_v25  ;;  %v4090_v14 = vsel %vm3725_vm1, %v3396_v26, -inf  ;;  %v5640_v11 = vunpack.c.l.b16 %v16789_v23 }
 0x419   : > { %v8925_v44 = vadd.f32 %v16675_v19, %v8912_v3  ;;  %4556 = vmax.xlane.f32.xlu1 %v4555_v37 }
 0x41a   : > { %v5970_v63 = vperm.slane %v5604_v30, %v18579_v60  ;;  %v5972_v50 = vperm.slane %v5605_v17, %v18734_v35  ;;  %4032 = vmax.xlane.f32.xlu2 %v4031_v53  ;;  %v4091_v30 = vmax.f32 %v3395_v58, %v4090_v14 }
 0x41b   : > { %v4669_v8 = vpop.xlane.xlu1 %4668  ;;  %v16838_v49 = vadd.f32 %v16783_v52, %v8925_v44  ;;  %4552 = vmax.xlane.f32.xlu0 %v4551_v22  ;;  %v5641_v52 = vunpack.c.h.b16 %v16789_v23 }
 0x41c   : > { %v5971_v19 = vsel %vm5793_vm3, %v5970_v63, %v16425_v13  ;;  %v3462_v13 = vld [vmem:[%s13891_s21 + $0x7c8] sm:$0xff]  ;;  %vm18764_vm3 = vmmov %vm18755_vm12 }
 0x41d   : > { %v16845_v60 = vsel %vm5797_vm4, %v5972_v50, %v5971_v19  ;;  %v4201_v35 = vpop.xlane.xlu2 %4200  ;;  %v4222_v23 = vsel %vm3725_vm1, %v3462_v13, -inf  ;;  %vm18765_vm4 = vmmov %vm18762_vm2  ;;  %v3624_v19 = vld [vmem:[%s13891_s21 + $0xcd8] sm:$0xff] }
 0x41e   : > { %v4665_v25 = vpop.xlane.xlu0 %4664  ;;  %v4809_v53 = vpack.c.bf16 %v16657_v55, %v4201_v35  ;;  %v8913_v26 = vpop.f32.mrf.mxu1  ;;  %v6042_v55 = vperm.slane %v5641_v52, %v18609_v43  ;;  %v4223_v14 = vmax.f32 %v3461_v0, %v4222_v23  ;;  %v3721_v35 = vld [vmem:[%s13891_s21 + $0xfe0] sm:$0xff]  ;;  %v3656_v52 = vld [vmem:[%s13891_s21 + $0xdd8] sm:$0xff]  ;;  %vm18767_vm9 = vmmov %vm18764_vm3 }
 0x41f   : > { %v16842_v3 = vpack.c.bf16 %v4669_v8, %v4665_v25  ;;  %v6040_v8 = vperm.slane %v5640_v11, %v18608_v62  ;;  %v3722_v11 = vld [vmem:[%s13891_s21 + $0xfe8] sm:$0xff]  ;;  %vm18768_vm12 = vmmov %vm18762_vm2 }
 0x420   : > { %v5638_v17 = vunpack.c.l.b16 %v4809_v53  ;;  %v5639_v59 = vunpack.c.h.b16 %v4809_v53  ;;  %vm18772_vm15 = vmmov %vm18764_vm3 }
 0x421   : > { %vm18773_vm2 = vmmov %vm18764_vm3 }
 0x422   : > { %v6036_v32 = vperm.slane %v5638_v17, %v18591_v34  ;;  %v6038_v44 = vperm.slane %v5639_v59, %v18600_v6  ;;  %4092 = vmax.xlane.f32.xlu2 %v4091_v30  ;;  %v3655_v30 = vld [vmem:[%s13891_s21 + $0xdd0] sm:$0xff]  ;;  %v4742_v17 = vsel %vm3725_vm1, %v3722_v11, -inf  ;;  %v4610_v59 = vsel %vm3725_vm1, %v3656_v52, -inf  ;;  %vm18774_vm10 = vmmov %vm18765_vm4 }
 0x423   : > { %v16851_v7 = vpop.xlane.xlu1 %4024 }
 0x424   : > { %v6037_v63 = vsel %vm5801_vm5, %v6036_v32, %v16742_v46  ;;  %v4743_v32 = vmax.f32 %v3721_v35, %v4742_v17  ;;  %v3690_v17 = vld [vmem:[%s13891_s21 + $0xee8] sm:$0xff] }
 0x425   : > { %v6039_v50 = vsel %vm18764_vm3, %v6038_v44, %v6037_v63  ;;  %v4525_v37 = vpop.xlane.xlu2 %4524  ;;  %v4611_v44 = vmax.f32 %v3655_v30, %v4610_v59  ;;  %vm18775_vm3 = vmmov %vm18766_vm11 }
 0x426   : > { %v16859_v20 = vpop.xlane.xlu0 %4724  ;;  %v6041_v22 = vsel %vm18765_vm4, %v6040_v8, %v6039_v50  ;;  %v4849_v58 = vpack.c.bf16 %v4525_v37, %v16649_v61  ;;  %v3623_v8 = vld [vmem:[%s13891_s21 + $0xcd0] sm:$0xff]  ;;  %4744 = vmax.xlane.f32.xlu1 %v4743_v32  ;;  %vm18776_vm4 = vmmov %vm18770_vm6 }
 0x427   : > { %v16867_v25 = vsel %vm18766_vm11, %v6042_v55, %v6041_v22  ;;  %v4546_v55 = vsel %vm3725_vm1, %v3624_v19, -inf  ;;  %4612 = vmax.xlane.f32.xlu0 %v4611_v44  ;;  %v3403_v22 = vld [vmem:[%s13891_s21 + $0x5f0] sm:$0xff]  ;;  %v3404_v19 = vld [vmem:[%s13891_s21 + $0x5f8] sm:$0xff]  ;;  %vm18777_vm11 = vmmov %vm18771_vm14 }
 0x428   : > { %v5718_v53 = vunpack.c.l.b16 %v4849_v58  ;;  %v5719_v26 = vunpack.c.h.b16 %v4849_v58  ;;  %v4547_v35 = vmax.f32 %v3623_v8, %v4546_v55  ;;  %v4106_v11 = vsel %vm3725_vm1, %v3404_v19, -inf  ;;  %v3689_v8 = vld [vmem:[%s13891_s21 + $0xee0] sm:$0xff] }
 0x429   : > { %v4678_v55 = vsel %vm3725_vm1, %v3690_v17, -inf }
 0x42a   : > { %v6191_v61 = vperm.slane %v5718_v53, %v18591_v34  ;;  %v6193_v13 = vperm.slane %v5719_v26, %v18600_v6  ;;  %4224 = vmax.xlane.f32.xlu2 %v4223_v14  ;;  %v5754_v14 = vunpack.c.l.b16 %v16842_v3  ;;  %v3401_v53 = vld [vmem:[%s13891_s21 + $0x5e0] sm:$0xff]  ;;  %v3402_v26 = vld [vmem:[%s13891_s21 + $0x5e8] sm:$0xff] }
 0x42b   : > { %v4085_v46 = vpop.xlane.xlu1 %4084  ;;  %v4102_v30 = vsel %vm3725_vm1, %v3402_v26, -inf }
 0x42c   : > { %v6192_v23 = vsel %vm5801_vm5, %v6191_v61, %v16515_v2  ;;  %v5755_v2 = vunpack.c.h.b16 %v16842_v3  ;;  %v4107_v61 = vmax.f32 %v3403_v22, %v4106_v11  ;;  %v6261_v44 = vperm.slane %v5754_v14, %v18638_v54 }
 0x42d   : > { %v16885_v50 = vsel %vm18767_vm9, %v6193_v13, %v6192_v23  ;;  %v4657_v37 = vpop.xlane.xlu2 %4656  ;;  %vm18778_vm9 = vmmov %vm18774_vm10 }
 0x42e   : > { %v4081_v0 = vpop.xlane.xlu0 %4080  ;;  %v4866_v58 = vpack.c.bf16 %v16708_v28, %v4657_v37  ;;  %v4103_v28 = vmax.f32 %v3401_v53, %v4102_v30  ;;  %v6263_v3 = vperm.slane %v5755_v2, %v18639_v38  ;;  %4108 = vmax.xlane.f32.xlu1 %v4107_v61  ;;  %v3720_v2 = vld [vmem:[%s13891_s21 + $0xfd8] sm:$0xff] }
 0x42f   : > { %v16882_v63 = vpack.c.bf16 %v4085_v46, %v4081_v0 }
 0x430   : > { %v5752_v52 = vunpack.c.l.b16 %v4866_v58  ;;  %v5753_v46 = vunpack.c.h.b16 %v4866_v58  ;;  %4104 = vmax.xlane.f32.xlu0 %v4103_v28 }
 0x432   : > { %v6257_v13 = vperm.slane %v5752_v52, %v18608_v62  ;;  %v6259_v32 = vperm.slane %v5753_v46, %v18609_v43  ;;  %4548 = vmax.xlane.f32.xlu2 %v4547_v35  ;;  %v4679_v35 = vmax.f32 %v3689_v8, %v4678_v55  ;;  %v3719_v52 = vld [vmem:[%s13891_s21 + $0xfd0] sm:$0xff]  ;;  %v4738_v46 = vsel %vm3725_vm1, %v3720_v2, -inf }
 0x433   : > { %v16897_v59 = vpop.xlane.xlu1 %4216  ;;  %v5609_v8 = vunpack.c.h.b16 %v16882_v63 }
 0x434   : > { %v6258_v23 = vsel %vm18768_vm12, %v6257_v13, %v16792_v56  ;;  %vm18779_vm12 = vmmov %vm18775_vm3 }
 0x435   : > { %v6260_v37 = vsel %vm18769_vm13, %v6259_v32, %v6258_v23  ;;  %v4717_v22 = vpop.xlane.xlu2 %4716  ;;  %vm18780_vm13 = vmmov %vm18776_vm4 }
 0x436   : > { %v16905_v0 = vpop.xlane.xlu0 %4164  ;;  %v6262_v58 = vsel %vm18770_vm6, %v6261_v44, %v6260_v37  ;;  %v4873_v14 = vpack.c.bf16 %v4717_v22, %v16698_v10  ;;  %v5608_v44 = vunpack.c.l.b16 %v16882_v63  ;;  %v3398_v37 = vld [vmem:[%s13891_s21 + $0x5c8] sm:$0xff]  ;;  %vm18781_vm6 = vmmov %vm18777_vm11 }
 0x437   : > { %v16913_v19 = vsel %vm18771_vm14, %v6263_v3, %v6262_v58  ;;  %v4739_v3 = vmax.f32 %v3719_v52, %v4738_v46  ;;  %vm18782_vm14 = vmmov %vm18773_vm2 }
 0x438   : > { %v5766_v53 = vunpack.c.l.b16 %v4873_v14  ;;  %v5767_v26 = vunpack.c.h.b16 %v4873_v14  ;;  %v5978_v14 = vperm.slane %v5608_v44, %v18608_v62 }
 0x43a   : > { %v6284_v56 = vperm.slane %v5766_v53, %v18591_v34  ;;  %v6286_v30 = vperm.slane %v5767_v26, %v18600_v6  ;;  %4680 = vmax.xlane.f32.xlu2 %v4679_v35  ;;  %v3397_v35 = vld [vmem:[%s13891_s21 + $0x5c0] sm:$0xff]  ;;  %v4094_v53 = vsel %vm3725_vm1, %v3398_v37, -inf }
 0x43b   : > { %v4541_v11 = vpop.xlane.xlu1 %4540  ;;  %v4095_v52 = vmax.f32 %v3397_v35, %v4094_v53  ;;  %v3659_v35 = vld [vmem:[%s13891_s21 + $0xdf0] sm:$0xff]  ;;  %v3660_v53 = vld [vmem:[%s13891_s21 + $0xdf8] sm:$0xff] }
 0x43c   : > { %v6285_v10 = vsel %vm5801_vm5, %v6284_v56, %v16642_v4 }
 0x43d   : > { %v16923_v28 = vsel %vm18772_vm15, %v6286_v30, %v6285_v10  ;;  %v4073_v13 = vpop.xlane.xlu2 %4072  ;;  %vm18784_vm15 = vmmov %vm18775_vm3 }
 0x43e   : > { %v4537_v17 = vpop.xlane.xlu0 %4536  ;;  %v4793_v32 = vpack.c.bf16 %v16769_v16, %v4073_v13  ;;  %v5980_v16 = vperm.slane %v5609_v8, %v18609_v43  ;;  %v3468_v13 = vld [vmem:[%s13891_s21 + $0x7f8] sm:$0xff] }
 0x43f   : > { %v4851_v61 = vpack.c.bf16 %v4541_v11, %v4537_v17  ;;  %v4234_v8 = vsel %vm3725_vm1, %v3468_v13, -inf }
 0x440   : > { %v5606_v55 = vunpack.c.l.b16 %v4793_v32  ;;  %v5607_v23 = vunpack.c.h.b16 %v4793_v32 }
 0x442   : > { %v5974_v4 = vperm.slane %v5606_v55, %v18591_v34  ;;  %v5976_v58 = vperm.slane %v5607_v23, %v18600_v6  ;;  %4740 = vmax.xlane.f32.xlu2 %v4739_v3  ;;  %v3467_v3 = vld [vmem:[%s13891_s21 + $0x7f0] sm:$0xff] }
 0x443   : > { %v16929_v22 = vpop.xlane.xlu1 %4672 }
 0x444   : > { %v5975_v26 = vsel %vm5801_vm5, %v5974_v4, %v16845_v60 }
 0x445   : > { %v5977_v2 = vsel %vm18773_vm2, %v5976_v58, %v5975_v26  ;;  %v4157_v11 = vpop.xlane.xlu2 %4156  ;;  %v5723_v26 = vunpack.c.h.b16 %v4851_v61  ;;  %vm18785_vm2 = vmmov %vm18776_vm4 }
 0x446   : > { %v16937_v63 = vpop.xlane.xlu0 %4596  ;;  %v5979_v56 = vsel %vm18774_vm10, %v5978_v14, %v5977_v2  ;;  %v4803_v30 = vpack.c.bf16 %v4157_v11, %v16756_v24  ;;  %v5722_v14 = vunpack.c.l.b16 %v4851_v61  ;;  %v4618_v2 = vsel %vm3725_vm1, %v3660_v53, -inf  ;;  %vm18787_vm10 = vmmov %vm18785_vm2 }
 0x447   : > { %v16945_v46 = vsel %vm18775_vm3, %v5980_v16, %v5979_v56  ;;  %v4235_v16 = vmax.f32 %v3467_v3, %v4234_v8  ;;  %v6201_v13 = vperm.slane %v5723_v26, %v18639_v38 }
 0x448   : > { %v5626_v17 = vunpack.c.l.b16 %v4803_v30  ;;  %v5627_v10 = vunpack.c.h.b16 %v4803_v30  ;;  %v3654_v30 = vld [vmem:[%s13891_s21 + $0xdc8] sm:$0xff] }
 0x449   : > { %v4606_v61 = vsel %vm3725_vm1, %v3654_v30, -inf }
 0x44a   : > { %v6013_v44 = vperm.slane %v5626_v17, %v18638_v54  ;;  %v6015_v60 = vperm.slane %v5627_v10, %v18639_v38  ;;  %4096 = vmax.xlane.f32.xlu2 %v4095_v52  ;;  %v4619_v52 = vmax.f32 %v3659_v35, %v4618_v2  ;;  %v3724_v35 = vld [vmem:[%s13891_s21 + $0xff8] sm:$0xff]  ;;  %v3723_v2 = vld [vmem:[%s13891_s21 + $0xff0] sm:$0xff] }
 0x44b   : > { %v4733_v32 = vpop.xlane.xlu1 %4732 }
 0x44c   : > { %v6014_v55 = vsel %vm18776_vm4, %v6013_v44, %v16720_v57  ;;  %4620 = vmax.xlane.f32.xlu0 %v4619_v52  ;;  %vm18789_vm4 = vcmask 851712  }
 0x44d   : > { %v16957_v37 = vsel %vm18777_vm11, %v6015_v60, %v6014_v55  ;;  %v4529_v4 = vpop.xlane.xlu2 %4528  ;;  %vm18790_vm11 = vcmask 917312  }
 0x44e   : > { %v4729_v24 = vpop.xlane.xlu0 %4728  ;;  %v4850_v58 = vpack.c.bf16 %v16814_v45, %v4529_v4  ;;  %v6199_v45 = vperm.slane %v5722_v14, %v18638_v54 }
 0x44f   : > { %v16954_v23 = vpack.c.bf16 %v4733_v32, %v4729_v24  ;;  %v3653_v32 = vld [vmem:[%s13891_s21 + $0xdc0] sm:$0xff] }
 0x450   : > { %v5720_v11 = vunpack.c.l.b16 %v4850_v58  ;;  %v5721_v56 = vunpack.c.h.b16 %v4850_v58  ;;  %v4607_v4 = vmax.f32 %v3653_v32, %v4606_v61  ;;  %v12868_v61 = vld [vmem:[%s15713_s13 + $0x99c] sm:$0xf0] }
 0x452   : > { %v6195_v17 = vperm.slane %v5720_v11, %v18608_v62  ;;  %v6197_v10 = vperm.slane %v5721_v56, %v18609_v43  ;;  %4236 = vmax.xlane.f32.xlu2 %v4235_v16 }
 0x453   : > { %v16964_v57 = vpop.xlane.xlu1 %4088 }
 0x454   : > { %v6196_v60 = vsel %vm18778_vm9, %v6195_v17, %v16885_v50  ;;  %v11690_v17 = vld [vmem:[%s15713_s13 + $0x9c0] sm:$0xf] }
 0x455   : > { %v6198_v3 = vsel %vm18779_vm12, %v6197_v10, %v6196_v60  ;;  %v4589_v8 = vpop.xlane.xlu2 %4588  ;;  %v12876_v10 = vld [vmem:[%s15713_s13 + $0x9dc] sm:$0xf0]  ;;  %v5771_v60 = vunpack.c.h.b16 %v16954_v23 }
 0x456   : > { %v16972_v44 = vpop.xlane.xlu0 %4036  ;;  %v6200_v24 = vsel %vm18780_vm13, %v6199_v45, %v6198_v3  ;;  %v4857_v55 = vpack.c.bf16 %v4589_v8, %v16806_v21  ;;  %v4746_v21 = vsel %vm3725_vm1, %v3724_v35, -inf  ;;  %v11691_v32 = vor.u32 %v12876_v10, %v11690_v17 }
 0x457   : > { %v16980_v58 = vsel %vm18781_vm6, %v6201_v13, %v6200_v24  ;;  %v4747_v13 = vmax.f32 %v3723_v2, %v4746_v21 }
 0x458   : > { %v5734_v14 = vunpack.c.l.b16 %v4857_v55  ;;  %v5735_v16 = vunpack.c.h.b16 %v4857_v55  ;;  %8941 = vmatpush.bf16.msrb.mxu0 %v11691_v32  ;;  %v12170_v32 = vld [vmem:[%s15713_s13 + $0xd80] sm:$0xf] }
 0x45a   : > { %v6222_v50 = vperm.slane %v5734_v14, %v18591_v34  ;;  %v6224_v26 = vperm.slane %v5735_v16, %v18600_v6  ;;  %4608 = vmax.xlane.f32.xlu2 %v4607_v4  ;;  %v11658_v34 = vld [vmem:[%s15713_s13 + $0x980] sm:$0xf]  ;;  %v5770_v6 = vunpack.c.l.b16 %v16954_v23  ;;  %v6294_v16 = vperm.slane %v5771_v60, %v18639_v38  ;;  %v3657_v23 = vld [vmem:[%s13891_s21 + $0xde0] sm:$0xff] }
 0x45b   : > { %v16983_v53 = vpop.xlane.xlu1 %4172  ;;  %v11659_v24 = vor.u32 %v12868_v61, %v11658_v34 }
 0x45c   : > { %v6223_v56 = vsel %vm5801_vm5, %v6222_v50, %v16778_v15  ;;  %v3658_v15 = vld [vmem:[%s13891_s21 + $0xde8] sm:$0xff]  ;;  %v6292_v14 = vperm.slane %v5770_v6, %v18638_v54  ;;  %vm18783_vm5 = vmmov %vm18778_vm9 }
 0x45d   : > { %v16994_v30 = vsel %vm18782_vm14, %v6224_v26, %v6223_v56  ;;  %v4721_v52 = vpop.xlane.xlu2 %4720  ;;  %v4614_v35 = vsel %vm3725_vm1, %v3658_v15, -inf  ;;  %8942 = vmatpush.bf16.msrb.mxu0 %v11659_v24  ;;  %v12202_v56 = vld [vmem:[%s15713_s13 + $0xdc0] sm:$0xf]  ;;  %vm18786_vm1 = vmmov %vm18781_vm6 }
 0x45e   : > { %v16989_v11 = vpop.xlane.xlu0 %4168  ;;  %v4874_v45 = vpack.c.bf16 %v16859_v20, %v4721_v52  ;;  %v13004_v52 = vld [vmem:[%s15713_s13 + $0xddc] sm:$0xf0]  ;;  %v4615_v34 = vmax.f32 %v3657_v23, %v4614_v35  ;;  %vm18788_vm3 = vmmov %vm18786_vm1 }
 0x45f   : > { %v11594_v15 = vld [vmem:[%s15713_s13 + $0x900] sm:$0xf]  ;;  %vm18791_vm9 = vmmov %vm18785_vm2 }
 0x460   : > { %v5768_v3 = vunpack.c.l.b16 %v4874_v45  ;;  %v5769_v8 = vunpack.c.h.b16 %v4874_v45  ;;  %v12203_v45 = vor.u32 %v13004_v52, %v12202_v56  ;;  %v12852_v24 = vld [vmem:[%s15713_s13 + $0x91c] sm:$0xf0]  ;;  %vm18792_vm12 = vmmov %vm18786_vm1 }
 0x461   : > { %v12138_v56 = vld [vmem:[%s15713_s13 + $0xd40] sm:$0xf]  ;;  %vm18793_vm13 = vmmov %vm18783_vm5 }
 0x462   : > { %v6288_v4 = vperm.slane %v5768_v3, %v18608_v62  ;;  %v6290_v20 = vperm.slane %v5769_v8, %v18609_v43  ;;  %4748 = vmax.xlane.f32.xlu2 %v4747_v13  ;;  %v11626_v13 = vld [vmem:[%s15713_s13 + $0x940] sm:$0xf]  ;;  %8967 = vmatpush.bf16.msrb.mxu2 %v12203_v45  ;;  %vm18794_vm6 = vmmov %vm18784_vm15 }
 0x463   : > { %v17004_v55 = vpop.xlane.xlu1 %4544  ;;  %v12996_v8 = vld [vmem:[%s15713_s13 + $0xd9c] sm:$0xf0]  ;;  %vm18795_vm14 = vmmov %vm18785_vm2 }
 0x464   : > { %v6289_v26 = vsel %vm18783_vm5, %v6288_v4, %v16923_v28  ;;  %v12860_v28 = vld [vmem:[%s15713_s13 + $0x95c] sm:$0xf0]  ;;  %vm18796_vm5 = vmmov %vm18786_vm1 }
 0x465   : > { %v6291_v2 = vsel %vm18784_vm15, %v6290_v20, %v6289_v26  ;;  %v4029_v21 = vpop.xlane.xlu2 %4028  ;;  %v11627_v3 = vor.u32 %v12860_v28, %v11626_v13  ;;  %v12988_v52 = vld [vmem:[%s15713_s13 + $0xd5c] sm:$0xf0]  ;;  %vm18797_vm15 = vmmov %vm18789_vm4 }
 0x466   : > { %v17012_v50 = vpop.xlane.xlu0 %4228  ;;  %v6293_v17 = vsel %vm18785_vm2, %v6292_v14, %v6291_v2  ;;  %v4787_v10 = vpack.c.bf16 %v4029_v21, %v16851_v7  ;;  %v12171_v7 = vor.u32 %v12996_v8, %v12170_v32  ;;  %v12844_v45 = vld [vmem:[%s15713_s13 + $0x8dc] sm:$0xf0]  ;;  %vm18798_vm2 = vmmov %vm18790_vm11 }
 0x467   : > { %v17022_v6 = vsel %vm18786_vm1, %v6294_v16, %v6293_v17  ;;  %8943 = vmatpush.bf16.msrb.mxu0 %v11627_v3  ;;  %v11595_v16 = vor.u32 %v12852_v24, %v11594_v15  ;;  %v11562_v17 = vld [vmem:[%s15713_s13 + $0x8c0] sm:$0xf]  ;;  %vm18799_vm1 = vmmov %vm18791_vm9 }
 0x468   : > { %v5594_v61 = vunpack.c.l.b16 %v4787_v10  ;;  %v5595_v60 = vunpack.c.h.b16 %v4787_v10  ;;  %8968 = vmatpush.bf16.msrb.mxu2 %v12171_v7  ;;  %v12106_v13 = vld [vmem:[%s15713_s13 + $0xd00] sm:$0xf] }
 0x469   : > { %v12980_v28 = vld [vmem:[%s15713_s13 + $0xd1c] sm:$0xf0] }
 0x46a   : > { %v5951_v20 = vperm.slane %v5594_v61, %v18638_v54  ;;  %v5953_v14 = vperm.slane %v5595_v60, %v18639_v38  ;;  %4616 = vmax.xlane.f32.xlu2 %v4615_v34  ;;  %v12139_v34 = vor.u32 %v12988_v52, %v12138_v56  ;;  %v11530_v32 = vld [vmem:[%s15713_s13 + $0x880] sm:$0xf]  ;;  %v12107_v8 = vor.u32 %v12980_v28, %v12106_v13 }
 0x46b   : > { %v4605_v4 = vpop.xlane.xlu1 %4604  ;;  %8944 = vmatpush.bf16.msrb.mxu0 %v11595_v16  ;;  %v12836_v61 = vld [vmem:[%s15713_s13 + $0x89c] sm:$0xf0] }
 0x46c   : > { %v5952_v35 = vsel %vm18787_vm10, %v5951_v20, %v16822_v42  ;;  %v11563_v42 = vor.u32 %v12844_v45, %v11562_v17  ;;  %8969 = vmatpush.bf16.msrb.mxu2 %v12139_v34  ;;  %v11531_v24 = vor.u32 %v12836_v61, %v11530_v32  ;;  %v12972_v16 = vld [vmem:[%s15713_s13 + $0xcdc] sm:$0xf0]  ;;  %vm18800_vm10 = vmmov %vm18788_vm3 }
 0x46d   : > { %v17037_v2 = vsel %vm18788_vm3, %v5953_v14, %v5952_v35  ;;  %v4161_v21 = vpop.xlane.xlu2 %4160  ;;  %v12074_v14 = vld [vmem:[%s15713_s13 + $0xcc0] sm:$0xf]  ;;  %vm18801_vm3 = vmmov %vm18789_vm4 }
 0x46e   : > { %v4601_v23 = vpop.xlane.xlu0 %4600  ;;  %v4804_v10 = vpack.c.bf16 %v16905_v0, %v4161_v21  ;;  %v12075_v35 = vor.u32 %v12972_v16, %v12074_v14  ;;  %v11498_v21 = vld [vmem:[%s15713_s13 + $0x840] sm:$0xf]  ;;  %v10636_v16 = vld [vmem:[%s15713_s13 + $0x1a0] sm:$0xf0] }
 0x46f   : > { %v17034_v26 = vpack.c.bf16 %v4605_v4, %v4601_v23  ;;  %8945 = vmatpush.bf16.msrb.mxu0 %v11563_v42  ;;  %v12828_v56 = vld [vmem:[%s15713_s13 + $0x85c] sm:$0xf0] }
 0x470   : > { %v5628_v60 = vunpack.c.l.b16 %v4804_v10  ;;  %v5629_v3 = vunpack.c.h.b16 %v4804_v10  ;;  %8970 = vmatpush.bf16.msrb.mxu2 %v12107_v8  ;;  %v12042_v52 = vld [vmem:[%s15713_s13 + $0xc80] sm:$0xf]  ;;  %v11499_v10 = vor.u32 %v12828_v56, %v11498_v21  ;;  %v12616_v8 = vld [vmem:[%s15713_s13 + $0x1c4] sm:$0xf] }
 0x471   : > { %v12964_v34 = vld [vmem:[%s15713_s13 + $0xc9c] sm:$0xf0] }
 0x472   : > { %v6017_v15 = vperm.slane %v5628_v60, %v15144_v18  ;;  %v6019_v0 = vperm.slane %v5629_v3, %v15147_v36  ;;  %v11466_v45 = vld [vmem:[%s15713_s13 + $0x800] sm:$0xf]  ;;  %v12043_v28 = vor.u32 %v12964_v34, %v12042_v52  ;;  %v12744_v52 = vld [vmem:[%s15713_s13 + $0x5c4] sm:$0xf] }
 0x473   : > { %8946 = vmatpush.bf16.msrb.mxu0 %v11531_v24  ;;  %v12820_v13 = vld [vmem:[%s15713_s13 + $0x81c] sm:$0xf0] }
 0x474   : > { %v6018_v4 = vsel %vm18789_vm4, %v6017_v15, %v16957_v37  ;;  %8971 = vmatpush.bf16.msrb.mxu2 %v12075_v35  ;;  %v11467_v32 = vor.u32 %v12820_v13, %v11466_v45  ;;  %v10668_v15 = vld [vmem:[%s15713_s13 + $0x1e0] sm:$0xf0]  ;;  %v12956_v14 = vld [vmem:[%s15713_s13 + $0xc5c] sm:$0xf0]  ;;  %vm18802_vm4 = vmmov %vm18801_vm3 }
 0x475   : > { %v17053_v7 = vsel %vm18790_vm11, %v6019_v0, %v6018_v4  ;;  %v4221_v20 = vpop.xlane.xlu2 %4220  ;;  %v12010_v0 = vld [vmem:[%s15713_s13 + $0xc40] sm:$0xf]  ;;  %v5738_v4 = vunpack.c.l.b16 %v17034_v26  ;;  %vm18803_vm11 = vmmov %vm18798_vm2 }
 0x476   : > { %v4811_v23 = vpack.c.bf16 %v4221_v20, %v16897_v59  ;;  %v10671_v20 = vor.u32 %v12616_v8, %v10668_v15  ;;  %v12011_v35 = vor.u32 %v12956_v14, %v12010_v0  ;;  %v11978_v21 = vld [vmem:[%s15713_s13 + $0xc00] sm:$0xf]  ;;  %v10604_v8 = vld [vmem:[%s15713_s13 + $0x160] sm:$0xf0] }
 0x477   : > { %8947 = vmatpush.bf16.msrb.mxu0 %v11499_v10  ;;  %v12948_v56 = vld [vmem:[%s15713_s13 + $0xc1c] sm:$0xf0]  ;;  %v12736_v15 = vld [vmem:[%s15713_s13 + $0x584] sm:$0xf] }
 0x478   : > { %v5642_v17 = vunpack.c.l.b16 %v4811_v23  ;;  %v5643_v37 = vunpack.c.h.b16 %v4811_v23  ;;  %8972 = vmatpush.bf16.msrb.mxu2 %v12043_v28  ;;  %v5739_v23 = vunpack.c.h.b16 %v17034_v26  ;;  %v11979_v34 = vor.u32 %v12948_v56, %v11978_v21  ;;  %v17087_v28 = vpop.xlane.xlu1 %4736  ;;  %v12592_v14 = vld [vmem:[%s15713_s13 + $0x104] sm:$0xf] }
 0x479   : > { %v6230_v26 = vperm.slane %v5738_v4, %v18638_v54 }
 0x47a   : > { %v6044_v42 = vperm.slane %v5642_v17, %v18638_v54  ;;  %v6046_v59 = vperm.slane %v5643_v37, %v18639_v38 }
 0x47b   : > { %8948 = vmatpush.bf16.msrb.mxu0 %v11467_v32  ;;  %v17090_v32 = vpop.xlane.xlu0 %4684 }
 0x47c   : > { %v6045_v61 = vsel %vm18791_vm9, %v6044_v42, %v16867_v25  ;;  %v12608_v25 = vld [vmem:[%s15713_s13 + $0x184] sm:$0xf]  ;;  %8973 = vmatpush.bf16.msrb.mxu2 %v12011_v35  ;;  %vm18804_vm9 = vmmov %vm18798_vm2 }
 0x47d   : > { %v17069_v60 = vsel %vm18792_vm12, %v6046_v59, %v6045_v61  ;;  %v4593_v3 = vpop.xlane.xlu2 %4592  ;;  %v10639_v10 = vor.u32 %v12608_v25, %v10636_v16  ;;  %v6232_v59 = vperm.slane %v5739_v23, %v18639_v38  ;;  %v10572_v25 = vld [vmem:[%s15713_s13 + $0x120] sm:$0xf0]  ;;  %vm18805_vm12 = vcmask 982912  }
 0x47e   : > { %v4858_v24 = vpack.c.bf16 %v16937_v63, %v4593_v3  ;;  %v11180_v63 = vld [vmem:[%s15713_s13 + $0x5e0] sm:$0xf0] }
 0x47f   : > { %8993 = vmatpush.bf16.msra.mxu0 %v10671_v20  ;;  %v11183_v42 = vor.u32 %v12744_v52, %v11180_v63  ;;  %v12600_v3 = vld [vmem:[%s15713_s13 + $0x144] sm:$0xf]  ;;  %v10575_v52 = vor.u32 %v12592_v14, %v10572_v25 }
 0x480   : > { %v5736_v17 = vunpack.c.l.b16 %v4858_v24  ;;  %v5737_v37 = vunpack.c.h.b16 %v4858_v24  ;;  %8974 = vmatpush.bf16.msrb.mxu2 %v11979_v34  ;;  %v10607_v4 = vor.u32 %v12600_v3, %v10604_v8  ;;  %v11148_v20 = vld [vmem:[%s15713_s13 + $0x5a0] sm:$0xf0]  ;;  %v17112_v63 = vpop.xlane.xlu1 %4044 }
 0x481   : > { %v11151_v16 = vor.u32 %v12736_v15, %v11148_v20  ;;  %v12728_v23 = vld [vmem:[%s15713_s13 + $0x544] sm:$0xf] }
 0x482   : > { %v6226_v45 = vperm.slane %v5736_v17, %v18608_v62  ;;  %v6228_v13 = vperm.slane %v5737_v37, %v18609_v43  ;;  %v11116_v35 = vld [vmem:[%s15713_s13 + $0x560] sm:$0xf0] }
 0x483   : > { %8994 = vmatpush.bf16.msra.mxu0 %v10639_v10  ;;  %v11119_v37 = vor.u32 %v12728_v23, %v11116_v35  ;;  %v11084_v3 = vld [vmem:[%s15713_s13 + $0x520] sm:$0xf0] }
 0x484   : > { %v6227_v61 = vsel %vm18793_vm13, %v6226_v45, %v16994_v30  ;;  %9019 = vmatpush.bf16.msra.mxu2 %v11183_v42  ;;  %v10540_v42 = vld [vmem:[%s15713_s13 + $0xe0] sm:$0xf0]  ;;  %vm18806_vm13 = vmmov %vm18801_vm3 }
 0x485   : > { %v6229_v62 = vsel %vm18794_vm6, %v6228_v13, %v6227_v61  ;;  %v4677_v43 = vpop.xlane.xlu2 %4676  ;;  %v17117_v13 = vpop.xlane.xlu0 %4040  ;;  %v13068_v61 = vld [vmem:[%s15713_s13 + $0xfdc] sm:$0xf0]  ;;  %v12576_v8 = vld [vmem:[%s15713_s13 + $0x84] sm:$0xf]  ;;  %vm18807_vm6 = vmmov %vm18798_vm2 }
 0x486   : > { %v6231_v0 = vsel %vm18795_vm14, %v6230_v26, %v6229_v62  ;;  %v4868_v24 = vpack.c.bf16 %v4677_v43, %v16929_v22  ;;  %v12584_v26 = vld [vmem:[%s15713_s13 + $0xc4] sm:$0xf]  ;;  %vm18808_vm14 = vmmov %vm18805_vm12 }
 0x487   : > { %v17104_v30 = vsel %vm18796_vm5, %v6232_v59, %v6231_v0  ;;  %8995 = vmatpush.bf16.msra.mxu0 %v10607_v4  ;;  %v12458_v59 = vld [vmem:[%s15713_s13 + $0xfc0] sm:$0xf]  ;;  %v12720_v43 = vld [vmem:[%s15713_s13 + $0x504] sm:$0xf]  ;;  %vm18809_vm5 = vmmov %vm18805_vm12 }
 0x488   : > { %v5756_v21 = vunpack.c.l.b16 %v4868_v24  ;;  %v5757_v56 = vunpack.c.h.b16 %v4868_v24  ;;  %9020 = vmatpush.bf16.msra.mxu2 %v11151_v16  ;;  %v12459_v62 = vor.u32 %v13068_v61, %v12458_v59  ;;  %v10508_v15 = vld [vmem:[%s15713_s13 + $0xa0] sm:$0xf0]  ;;  %v12426_v0 = vld [vmem:[%s15713_s13 + $0xf80] sm:$0xf]  ;;  %v11087_v4 = vor.u32 %v12720_v43, %v11084_v3  ;;  %v17131_v23 = vpop.xlane.xlu1 %4232 }
 0x489   : > { %v13060_v24 = vld [vmem:[%s15713_s13 + $0xf9c] sm:$0xf0]  ;;  %v10511_v20 = vor.u32 %v12576_v8, %v10508_v15  ;;  %v12712_v25 = vld [vmem:[%s15713_s13 + $0x4c4] sm:$0xf] }
 0x48a   : > { %v6265_v22 = vperm.slane %v5756_v21, %v15144_v18  ;;  %v6267_v17 = vperm.slane %v5757_v56, %v15147_v36  ;;  %8980 = vmatpush.bf16.msrb.mxu3 %v12459_v62  ;;  %v12427_v14 = vor.u32 %v13060_v24, %v12426_v0  ;;  %v11052_v16 = vld [vmem:[%s15713_s13 + $0x4e0] sm:$0xf0]  ;;  %v12940_v59 = vld [vmem:[%s15713_s13 + $0xbdc] sm:$0xf0] }
 0x48b   : > { %8996 = vmatpush.bf16.msra.mxu0 %v10575_v52  ;;  %v11055_v56 = vor.u32 %v12712_v25, %v11052_v16  ;;  %v13052_v61 = vld [vmem:[%s15713_s13 + $0xf5c] sm:$0xf0]  ;;  %v12704_v3 = vld [vmem:[%s15713_s13 + $0x484] sm:$0xf] }
 0x48c   : > { %v6266_v10 = vsel %vm18797_vm15, %v6265_v22, %v16913_v19  ;;  %9021 = vmatpush.bf16.msra.mxu2 %v11119_v37  ;;  %v10543_v19 = vor.u32 %v12584_v26, %v10540_v42  ;;  %v12568_v22 = vld [vmem:[%s15713_s13 + $0x44] sm:$0xf]  ;;  %v11946_v37 = vld [vmem:[%s15713_s13 + $0xbc0] sm:$0xf]  ;;  %vm18810_vm15 = vmmov %vm18809_vm5 }
 0x48d   : > { %v17115_v34 = vsel %vm18798_vm2, %v6267_v17, %v6266_v10  ;;  %v4033_v45 = vpop.xlane.xlu2 %4032  ;;  %v17133_v21 = vpop.xlane.xlu0 %4100  ;;  %v10476_v17 = vld [vmem:[%s15713_s13 + $0x60] sm:$0xf0]  ;;  %v12362_v16 = vld [vmem:[%s15713_s13 + $0xf00] sm:$0xf]  ;;  %vm18811_vm2 = vmmov %vm18801_vm3 }
 0x48e   : > { %8981 = vmatpush.bf16.msrb.mxu3 %v12427_v14  ;;  %v10479_v42 = vor.u32 %v12568_v22, %v10476_v17  ;;  %v17143_v62 = vpack.c.bf16 %v16972_v44, %v4033_v45  ;;  %v11020_v8 = vld [vmem:[%s15713_s13 + $0x4a0] sm:$0xf0]  ;;  %v11914_v14 = vld [vmem:[%s15713_s13 + $0xb80] sm:$0xf] }
 0x48f   : > { %8997 = vmatpush.bf16.msra.mxu0 %v10543_v19  ;;  %v12394_v19 = vld [vmem:[%s15713_s13 + $0xf40] sm:$0xf]  ;;  %v12560_v15 = vld [vmem:[%s15713_s13 + $0x4] sm:$0xf] }
 0x490   : > { %9022 = vmatpush.bf16.msra.mxu2 %v11087_v4  ;;  %v12395_v43 = vor.u32 %v13052_v61, %v12394_v19  ;;  %v11023_v4 = vor.u32 %v12704_v3, %v11020_v8  ;;  %v12932_v44 = vld [vmem:[%s15713_s13 + $0xb9c] sm:$0xf0]  ;;  %v5596_v22 = vunpack.c.l.b16 %v17143_v62  ;;  %v4789_v61 = vpack.c.bf16 %v17112_v63, %v17117_v13 }
 0x491   : > { %v11915_v25 = vor.u32 %v12932_v44, %v11914_v14  ;;  %v12916_v14 = vld [vmem:[%s15713_s13 + $0xb1c] sm:$0xf0] }
 0x492   : > { %8982 = vmatpush.bf16.msrb.mxu3 %v12395_v43  ;;  %v5955_v44 = vperm.slane %v5596_v22, %v15144_v18  ;;  %v12298_v13 = vld [vmem:[%s15713_s13 + $0xe80] sm:$0xf]  ;;  %v17185_v22 = vpack.c.bf16 %v16983_v53, %v16989_v11 }
 0x493   : > { %8998 = vmatpush.bf16.msra.mxu0 %v10511_v20  ;;  %v10444_v20 = vld [vmem:[%s15713_s13 + $0x20] sm:$0xf0]  ;;  %v12266_v53 = vld [vmem:[%s15713_s13 + $0xe40] sm:$0xf] }
 0x494   : > { %9023 = vmatpush.bf16.msra.mxu2 %v11055_v56  ;;  %v10447_v45 = vor.u32 %v12560_v15, %v10444_v20  ;;  %v12688_v15 = vld [vmem:[%s15713_s13 + $0x404] sm:$0xf]  ;;  %v11850_v20 = vld [vmem:[%s15713_s13 + $0xb00] sm:$0xf] }
 0x495   : > { %v4093_v35 = vpop.xlane.xlu2 %4092  ;;  %v4553_v43 = vpop.xlane.xlu0 %4552  ;;  %v13020_v11 = vld [vmem:[%s15713_s13 + $0xe5c] sm:$0xf0] }
 0x496   : > { %v4795_v52 = vpack.c.bf16 %v4093_v35, %v16964_v57  ;;  %v11947_v57 = vor.u32 %v12940_v59, %v11946_v37  ;;  %v13044_v35 = vld [vmem:[%s15713_s13 + $0xf1c] sm:$0xf0] }
 0x497   : > { %8999 = vmatpush.bf16.msra.mxu0 %v10479_v42  ;;  %v12363_v56 = vor.u32 %v13044_v35, %v12362_v16  ;;  %v12924_v42 = vld [vmem:[%s15713_s13 + $0xb5c] sm:$0xf0] }
 0x498   : > { %v5610_v10 = vunpack.c.l.b16 %v4795_v52  ;;  %v5611_v26 = vunpack.c.h.b16 %v4795_v52  ;;  %8954 = vmatpush.bf16.msrb.mxu1 %v11947_v57  ;;  %v10988_v52 = vld [vmem:[%s15713_s13 + $0x460] sm:$0xf0]  ;;  %9024 = vmatpush.bf16.msra.mxu2 %v11023_v4  ;;  %v12330_v59 = vld [vmem:[%s15713_s13 + $0xec0] sm:$0xf]  ;;  %v4557_v57 = vpop.xlane.xlu1 %4556 }
 0x499   : > { %8983 = vmatpush.bf16.msrb.mxu3 %v12363_v56  ;;  %v4853_v35 = vpack.c.bf16 %v4557_v57, %v4553_v43  ;;  %v12908_v57 = vld [vmem:[%s15713_s13 + $0xadc] sm:$0xf0]  ;;  %v12267_v43 = vor.u32 %v13020_v11, %v12266_v53 }
 0x49a   : > { %v5982_v0 = vperm.slane %v5610_v10, %v18638_v54  ;;  %v5984_v24 = vperm.slane %v5611_v26, %v18639_v38  ;;  %v12696_v38 = vld [vmem:[%s15713_s13 + $0x444] sm:$0xf]  ;;  %v11882_v26 = vld [vmem:[%s15713_s13 + $0xb40] sm:$0xf] }
 0x49b   : > { %v10991_v10 = vor.u32 %v12696_v38, %v10988_v52  ;;  %9000 = vmatpush.bf16.msra.mxu0 %v10447_v45  ;;  %v11883_v3 = vor.u32 %v12924_v42, %v11882_v26  ;;  %v13028_v45 = vld [vmem:[%s15713_s13 + $0xe9c] sm:$0xf0] }
 0x49c   : > { %v5983_v54 = vsel %vm18799_vm1, %v5982_v0, %v16945_v46  ;;  %v13036_v46 = vld [vmem:[%s15713_s13 + $0xedc] sm:$0xf0]  ;;  %8955 = vmatpush.bf16.msrb.mxu1 %v11915_v25  ;;  %v10956_v0 = vld [vmem:[%s15713_s13 + $0x420] sm:$0xf0]  ;;  %v12299_v56 = vor.u32 %v13028_v45, %v12298_v13  ;;  %vm18812_vm1 = vmmov %vm18807_vm6 }
 0x49d   : > { %v17161_v17 = vsel %vm18800_vm10, %v5984_v24, %v5983_v54  ;;  %v4225_v37 = vpop.xlane.xlu2 %4224  ;;  %v12331_v8 = vor.u32 %v13036_v46, %v12330_v59  ;;  %v5597_v24 = vunpack.c.h.b16 %v17143_v62  ;;  %9025 = vmatpush.bf16.msra.mxu2 %v10991_v10  ;;  %v10959_v63 = vor.u32 %v12688_v15, %v10956_v0  ;;  %v11818_v59 = vld [vmem:[%s15713_s13 + $0xac0] sm:$0xf]  ;;  %v12808_v45 = vld [vmem:[%s15713_s13 + $0x7c4] sm:$0xf]  ;;  %vm18813_vm10 = vmmov %vm18809_vm5 }
 0x49e   : > { %v4812_v19 = vpack.c.bf16 %v17012_v50, %v4225_v37  ;;  %v5598_v54 = vunpack.c.l.b16 %v4789_v61  ;;  %v11851_v62 = vor.u32 %v12916_v14, %v11850_v20  ;;  %v5956_v37 = vsel %vm18802_vm4, %v5955_v44, %v17037_v2  ;;  %v12900_v0 = vld [vmem:[%s15713_s13 + $0xa9c] sm:$0xf0]  ;;  %vm18815_vm4 = vmmov %vm18809_vm5 }
 0x49f   : > { %8984 = vmatpush.bf16.msrb.mxu3 %v12331_v8  ;;  %v5957_v38 = vperm.slane %v5597_v24, %v15147_v36  ;;  %v5599_v10 = vunpack.c.h.b16 %v4789_v61  ;;  %v5726_v46 = vunpack.c.l.b16 %v4853_v35  ;;  %v11819_v61 = vor.u32 %v12908_v57, %v11818_v59  ;;  %v13012_v20 = vld [vmem:[%s15713_s13 + $0xe1c] sm:$0xf0] }
 0x4a0   : > { %v5644_v4 = vunpack.c.l.b16 %v4812_v19  ;;  %v5645_v50 = vunpack.c.h.b16 %v4812_v19  ;;  %8956 = vmatpush.bf16.msrb.mxu1 %v11883_v3  ;;  %v5959_v2 = vperm.slane %v5598_v54, %v18657_v51  ;;  %v5630_v24 = vunpack.c.l.b16 %v17185_v22  ;;  %v11754_v59 = vld [vmem:[%s15713_s13 + $0xa40] sm:$0xf] }
 0x4a1   : > { %9026 = vmatpush.bf16.msra.mxu2 %v10959_v63  ;;  %v5958_v3 = vsel %vm18804_vm9, %v5957_v38, %v5956_v37  ;;  %v6207_v63 = vperm.slane %v5726_v46, %v18657_v51  ;;  %v11692_v38 = vld [vmem:[%s15713_s13 + $0x9e0] sm:$0xf0]  ;;  %v5631_v37 = vunpack.c.h.b16 %v17185_v22  ;;  %v12892_v57 = vld [vmem:[%s15713_s13 + $0xa5c] sm:$0xf0]  ;;  %vm18817_vm9 = vmmov %vm18811_vm2 }
 0x4a2   : > { %v6048_v16 = vperm.slane %v5644_v4, %v15144_v18  ;;  %v6050_v25 = vperm.slane %v5645_v50, %v15147_v36  ;;  %v5961_v4 = vperm.slane %v5599_v10, %v18658_v33  ;;  %v12234_v50 = vld [vmem:[%s15713_s13 + $0xe00] sm:$0xf]  ;;  %v11755_v22 = vor.u32 %v12892_v57, %v11754_v59  ;;  %v10892_v57 = vld [vmem:[%s15713_s13 + $0x3a0] sm:$0xf0] }
 0x4a3   : > { %8985 = vmatpush.bf16.msrb.mxu3 %v12299_v56  ;;  %v12235_v54 = vor.u32 %v13012_v20, %v12234_v50  ;;  %v12872_v56 = vld [vmem:[%s15713_s13 + $0x9c4] sm:$0xf] }
 0x4a4   : > { %v6049_v52 = vsel %vm18801_vm3, %v6048_v16, %v17069_v60  ;;  %v5727_v60 = vunpack.c.h.b16 %v4853_v35  ;;  %8957 = vmatpush.bf16.msrb.mxu1 %v11851_v62  ;;  %v11436_v16 = vld [vmem:[%s15713_s13 + $0x7e0] sm:$0xf0]  ;;  %v11695_v11 = vor.u32 %v12872_v56, %v11692_v38  ;;  %vm18814_vm3 = vmmov %vm18811_vm2 }
 0x4a5   : > { %v17190_v26 = vsel %vm18803_vm11, %v6050_v25, %v6049_v52  ;;  %v4549_v42 = vpop.xlane.xlu2 %4548  ;;  %v5960_v25 = vsel %vm18805_vm12, %v5959_v2, %v5958_v3  ;;  %v11439_v52 = vor.u32 %v12808_v45, %v11436_v16  ;;  %v12800_v2 = vld [vmem:[%s15713_s13 + $0x784] sm:$0xf]  ;;  %vm18816_vm11 = vmmov %vm18812_vm1 }
 0x4a6   : > { %v4852_v19 = vpack.c.bf16 %v4549_v42, %v17004_v55  ;;  %v11786_v55 = vld [vmem:[%s15713_s13 + $0xa80] sm:$0xf]  ;;  %v6209_v13 = vperm.slane %v5727_v60, %v18658_v33  ;;  %v5962_v46 = vsel %vm5837_vm7, %v5961_v4, %v5960_v25  ;;  %v12864_v4 = vld [vmem:[%s15713_s13 + $0x984] sm:$0xf]  ;;  %vm18818_vm12 = vmmov %vm18815_vm4 }
 0x4a7   : > { %8986 = vmatpush.bf16.msrb.mxu3 %v12267_v43  ;;  %v11787_v35 = vor.u32 %v12900_v0, %v11786_v55  ;;  %v12884_v55 = vld [vmem:[%s15713_s13 + $0xa1c] sm:$0xf0]  ;;  %v6023_v0 = vperm.slane %v5631_v37, %v18658_v33  ;;  %v11660_v50 = vld [vmem:[%s15713_s13 + $0x9a0] sm:$0xf0] }
 0x4a8   : > { %v5724_v8 = vunpack.c.l.b16 %v4852_v19  ;;  %v5725_v15 = vunpack.c.h.b16 %v4852_v19  ;;  %8958 = vmatpush.bf16.msrb.mxu1 %v11819_v61  ;;  %v6021_v19 = vperm.slane %v5630_v24, %v18657_v51  ;;  %v11404_v61 = vld [vmem:[%s15713_s13 + $0x7a0] sm:$0xf0] }
 0x4a9   : > { %v12680_v20 = vld [vmem:[%s15713_s13 + $0x3c4] sm:$0xf] }
 0x4aa   : > { %v6203_v14 = vperm.slane %v5724_v8, %v15144_v18  ;;  %v6205_v44 = vperm.slane %v5725_v15, %v15147_v36  ;;  %v11722_v15 = vld [vmem:[%s15713_s13 + $0xa00] sm:$0xf]  ;;  %v12792_v45 = vld [vmem:[%s15713_s13 + $0x744] sm:$0xf] }
 0x4ab   : > { %8987 = vmatpush.bf16.msrb.mxu3 %v12235_v54  ;;  %v11372_v16 = vld [vmem:[%s15713_s13 + $0x760] sm:$0xf0]  ;;  %v11723_v54 = vor.u32 %v12884_v55, %v11722_v15 }
 0x4ac   : > { %v6204_v62 = vsel %vm18806_vm13, %v6203_v14, %v16980_v58  ;;  %8959 = vmatpush.bf16.msrb.mxu1 %v11787_v35  ;;  %v6022_v14 = vsel %vm18809_vm5, %v6021_v19, %v17053_v7  ;;  %v13000_v25 = vld [vmem:[%s15713_s13 + $0xdc4] sm:$0xf]  ;;  %v11375_v59 = vor.u32 %v12792_v45, %v11372_v16  ;;  %vm18819_vm13 = vmmov %vm18812_vm1  ;;  %vm9996_vm5 = vcmask 33792  }
 0x4ad   : > { %v6206_v10 = vsel %vm18807_vm6, %v6205_v44, %v6204_v62  ;;  %v4681_v42 = vpop.xlane.xlu2 %4680  ;;  %v12204_v35 = vld [vmem:[%s15713_s13 + $0xde0] sm:$0xf0]  ;;  %v11663_v62 = vor.u32 %v12864_v4, %v11660_v50  ;;  %v6024_v38 = vsel %vm5837_vm7, %v6023_v0, %v6022_v14  ;;  %vm18820_vm6 = vmmov %vm18815_vm4 }
 0x4ae   : > { %v6208_v60 = vsel %vm18808_vm14, %v6207_v63, %v6206_v10  ;;  %v4869_v58 = vpack.c.bf16 %v17090_v32, %v4681_v42  ;;  %v11407_v32 = vor.u32 %v12800_v2, %v11404_v61  ;;  %v12856_v10 = vld [vmem:[%s15713_s13 + $0x944] sm:$0xf]  ;;  %vm9739_vm14 = vcmask 1043456  }
 0x4af   : > { %v6210_v53 = vsel %vm5837_vm7, %v6209_v13, %v6208_v60  ;;  %9032 = vmatpush.bf16.msra.mxu3 %v11439_v52  ;;  %v10924_v13 = vld [vmem:[%s15713_s13 + $0x3e0] sm:$0xf0] }
 0x4b0   : > { %v6309_v43 = vsel %vm6304_vm8, %v6210_v53, %v5962_v46  ;;  %v5758_v3 = vunpack.c.l.b16 %v4869_v58  ;;  %v5759_v8 = vunpack.c.h.b16 %v4869_v58  ;;  %8960 = vmatpush.bf16.msrb.mxu1 %v11755_v22  ;;  %v10927_v56 = vor.u32 %v12680_v20, %v10924_v13  ;;  %v11628_v42 = vld [vmem:[%s15713_s13 + $0x960] sm:$0xf0] }
 0x4b1   : > { %v17231_v24 = vpack.c.b16 %v6309_v43, %v6309_v43  ;;  %v12207_v46 = vor.u32 %v13000_v25, %v12204_v35  ;;  %v12992_v60 = vld [vmem:[%s15713_s13 + $0xd84] sm:$0xf] }
 0x4b2   : > { %v6269_v44 = vperm.slane %v5758_v3, %v18657_v51  ;;  %v6271_v63 = vperm.slane %v5759_v8, %v18658_v33  ;;  %v12672_v58 = vld [vmem:[%s15713_s13 + $0x384] sm:$0xf]  ;;  %v11631_v3 = vor.u32 %v12856_v10, %v11628_v42 }
 0x4b3   : > { %8949 = vmatmul.bf16.vlgmr.msrb.gmra.mxu0 %v17231_v24  ;;  %9033 = vmatpush.bf16.msra.mxu3 %v11407_v32  ;;  %v12784_v22 = vld [vmem:[%s15713_s13 + $0x704] sm:$0xf]  ;;  %v10895_v8 = vor.u32 %v12672_v58, %v10892_v57 }
 0x4b4   : > { %v6270_v7 = vsel %vm18810_vm15, %v6269_v44, %v17115_v34  ;;  %9045 = vmatpush.bf16.msrb.mxu0 %v11695_v11  ;;  %v12172_v11 = vld [vmem:[%s15713_s13 + $0xda0] sm:$0xf0]  ;;  %8961 = vmatpush.bf16.msrb.mxu1 %v11723_v54 }
 0x4b5   : > { %v6272_v52 = vsel %vm5837_vm7, %v6271_v63, %v6270_v7  ;;  %v4741_v37 = vpop.xlane.xlu2 %4740  ;;  %v11340_v2 = vld [vmem:[%s15713_s13 + $0x720] sm:$0xf0]  ;;  %v12175_v20 = vor.u32 %v12992_v60, %v12172_v11 }
 0x4b6   : > { %v6311_v19 = vsel %vm6304_vm8, %v6272_v52, %v6024_v38  ;;  %v4876_v34 = vpack.c.bf16 %v4741_v37, %v17087_v28  ;;  %v12848_v28 = vld [vmem:[%s15713_s13 + $0x904] sm:$0xf]  ;;  %v11343_v15 = vor.u32 %v12784_v22, %v11340_v2 }
 0x4b7   : > { %v17257_v53 = vpack.c.b16 %v6311_v19, %v6311_v19  ;;  %v11596_v32 = vld [vmem:[%s15713_s13 + $0x920] sm:$0xf0]  ;;  %9034 = vmatpush.bf16.msra.mxu3 %v11375_v59 }
 0x4b8   : > { %v5772_v61 = vunpack.c.l.b16 %v4876_v34  ;;  %v5773_v43 = vunpack.c.h.b16 %v4876_v34  ;;  %9046 = vmatpush.bf16.msrb.mxu0 %v11663_v62  ;;  %9006 = vmatpush.bf16.msra.mxu1 %v10927_v56  ;;  %v12664_v55 = vld [vmem:[%s15713_s13 + $0x344] sm:$0xf]  ;;  %v11599_v16 = vor.u32 %v12848_v28, %v11596_v32 }
 0x4b9   : > { %8975 = vmatmul.bf16.vlgmr.msrb.gmra.mxu2 %v17257_v53  ;;  %v10860_v0 = vld [vmem:[%s15713_s13 + $0x360] sm:$0xf0] }
 0x4ba   : > { %v6296_v4 = vperm.slane %v5772_v61, %v15144_v18  ;;  %v6298_v50 = vperm.slane %v5773_v43, %v15147_v36  ;;  %9071 = vmatpush.bf16.msrb.mxu2 %v12207_v46  ;;  %v12776_v14 = vld [vmem:[%s15713_s13 + $0x6c4] sm:$0xf]  ;;  %v10863_v25 = vor.u32 %v12664_v55, %v10860_v0 }
 0x4bb   : > { %v11308_v44 = vld [vmem:[%s15713_s13 + $0x6e0] sm:$0xf0]  ;;  %9035 = vmatpush.bf16.msra.mxu3 %v11343_v15 }
 0x4bc   : > { %v12984_v63 = vld [vmem:[%s15713_s13 + $0xd44] sm:$0xf]  ;;  %v6297_v45 = vsel %vm18811_vm2, %v6296_v4, %v17022_v6  ;;  %9047 = vmatpush.bf16.msrb.mxu0 %v11631_v3  ;;  %9007 = vmatpush.bf16.msra.mxu1 %v10895_v8  ;;  %v11311_v56 = vor.u32 %v12776_v14, %v11308_v44 }
 0x4bd   : > { %v12140_v13 = vld [vmem:[%s15713_s13 + $0xd60] sm:$0xf0]  ;;  %v17276_v35 = vsel %vm18812_vm1, %v6298_v50, %v6297_v45  ;;  %v17278_v54 = vpop.xlane.xlu2 %4096 }
 0x4be   : > { %v12840_v7 = vld [vmem:[%s15713_s13 + $0x8c4] sm:$0xf]  ;;  %9072 = vmatpush.bf16.msrb.mxu2 %v12175_v20  ;;  %v12143_v6 = vor.u32 %v12984_v63, %v12140_v13 }
 0x4bf   : > { %v11564_v62 = vld [vmem:[%s15713_s13 + $0x8e0] sm:$0xf0]  ;;  %9036 = vmatpush.bf16.msra.mxu3 %v11311_v56 }
 0x4c0   : > { %v12976_v38 = vld [vmem:[%s15713_s13 + $0xd04] sm:$0xf]  ;;  %9048 = vmatpush.bf16.msrb.mxu0 %v11599_v16  ;;  %v11567_v37 = vor.u32 %v12840_v7, %v11564_v62  ;;  %9008 = vmatpush.bf16.msra.mxu1 %v10863_v25  ;;  %v4745_v16 = vpop.xlane.xlu1 %4744  ;;  %v4613_v25 = vpop.xlane.xlu0 %4612 }
 0x4c1   : > { %v12108_v52 = vld [vmem:[%s15713_s13 + $0xd20] sm:$0xf0] }
 0x4c2   : > { %v12832_v10 = vld [vmem:[%s15713_s13 + $0x884] sm:$0xf]  ;;  %9073 = vmatpush.bf16.msrb.mxu2 %v12143_v6  ;;  %v12111_v58 = vor.u32 %v12976_v38, %v12108_v52  ;;  %v10674_v52 = vld [vmem:[%s15713_s13 + $0x1c8] sm:$0xf] }
 0x4c3   : > { %v12656_v42 = vld [vmem:[%s15713_s13 + $0x304] sm:$0xf]  ;;  %9001 = vmatmul.bf16.vlgmr.msra.gmra.mxu0 %v16297_v9 }
 0x4c4   : > { %v10828_v59 = vld [vmem:[%s15713_s13 + $0x320] sm:$0xf0]  ;;  %9049 = vmatpush.bf16.msrb.mxu0 %v11567_v37  ;;  %v12621_v37 = vld [vmem:[%s15713_s13 + $0x1e4] sm:$0xf0] }
 0x4c5   : > { %v11532_v19 = vld [vmem:[%s15713_s13 + $0x8a0] sm:$0xf0]  ;;  %v10831_v34 = vor.u32 %v12656_v42, %v10828_v59  ;;  %v4237_v32 = vpop.xlane.xlu2 %4236 }
 0x4c6   : > { %v12768_v46 = vld [vmem:[%s15713_s13 + $0x684] sm:$0xf]  ;;  %v11535_v3 = vor.u32 %v12832_v10, %v11532_v19  ;;  %9074 = vmatpush.bf16.msrb.mxu2 %v12111_v58  ;;  %v10675_v58 = vor.u32 %v12621_v37, %v10674_v52  ;;  %v10578_v37 = vld [vmem:[%s15713_s13 + $0x108] sm:$0xf] }
 0x4c7   : > { %v11276_v60 = vld [vmem:[%s15713_s13 + $0x6a0] sm:$0xf0]  ;;  %9009 = vmatpush.bf16.msra.mxu1 %v10831_v34 }
 0x4c8   : > { %v12968_v57 = vld [vmem:[%s15713_s13 + $0xcc4] sm:$0xf]  ;;  %v11279_v22 = vor.u32 %v12768_v46, %v11276_v60  ;;  %9050 = vmatpush.bf16.msrb.mxu0 %v11535_v3 }
 0x4c9   : > { %v12076_v11 = vld [vmem:[%s15713_s13 + $0xce0] sm:$0xf0]  ;;  %9027 = vmatmul.bf16.vlgmr.msra.gmra.mxu2 %v16122_v39 }
 0x4ca   : > { %v12648_v2 = vld [vmem:[%s15713_s13 + $0x2c4] sm:$0xf]  ;;  %9037 = vmatpush.bf16.msra.mxu3 %v11279_v22  ;;  %v12079_v4 = vor.u32 %v12968_v57, %v12076_v11  ;;  %v4813_v11 = vpack.c.bf16 %v4237_v32, %v17131_v23 }
 0x4cb   : > { %v10796_v61 = vld [vmem:[%s15713_s13 + $0x2e0] sm:$0xf0] }
 0x4cc   : > { %v12760_v43 = vld [vmem:[%s15713_s13 + $0x644] sm:$0xf]  ;;  %v10799_v28 = vor.u32 %v12648_v2, %v10796_v61  ;;  %9075 = vmatpush.bf16.msrb.mxu2 %v12079_v4  ;;  %v10642_v2 = vld [vmem:[%s15713_s13 + $0x188] sm:$0xf]  ;;  %v5646_v32 = vunpack.c.l.b16 %v4813_v11 }
 0x4cd   : > { %v11244_v8 = vld [vmem:[%s15713_s13 + $0x660] sm:$0xf0]  ;;  %v4609_v60 = vpop.xlane.xlu2 %4608  ;;  %v12613_v61 = vld [vmem:[%s15713_s13 + $0x1a4] sm:$0xf0] }
 0x4ce   : > { %v12824_v15 = vld [vmem:[%s15713_s13 + $0x844] sm:$0xf]  ;;  %v11247_v0 = vor.u32 %v12760_v43, %v11244_v8  ;;  %9010 = vmatpush.bf16.msra.mxu1 %v10799_v28  ;;  %v4796_v8 = vpack.c.bf16 %v17133_v21, %v17278_v54  ;;  %v10643_v23 = vor.u32 %v12613_v61, %v10642_v2 }
 0x4cf   : > { %v11500_v55 = vld [vmem:[%s15713_s13 + $0x860] sm:$0xf0] }
 0x4d0   : > { %v12960_v50 = vld [vmem:[%s15713_s13 + $0xc84] sm:$0xf]  ;;  %v11503_v44 = vor.u32 %v12824_v15, %v11500_v55  ;;  %9038 = vmatpush.bf16.msra.mxu3 %v11247_v0  ;;  %v11186_v15 = vld [vmem:[%s15713_s13 + $0x5c8] sm:$0xf]  ;;  %v5612_v54 = vunpack.c.l.b16 %v4796_v8 }
 0x4d1   : > { %v12044_v20 = vld [vmem:[%s15713_s13 + $0xca0] sm:$0xf0]  ;;  %v12749_v55 = vld [vmem:[%s15713_s13 + $0x5e4] sm:$0xf0] }
 0x4d2   : > { %v12640_v14 = vld [vmem:[%s15713_s13 + $0x284] sm:$0xf]  ;;  %v12047_v38 = vor.u32 %v12960_v50, %v12044_v20  ;;  %9051 = vmatpush.bf16.msrb.mxu0 %v11503_v44  ;;  %v10610_v50 = vld [vmem:[%s15713_s13 + $0x148] sm:$0xf]  ;;  %v4105_v44 = vpop.xlane.xlu0 %4104  ;;  %v11187_v21 = vor.u32 %v12749_v55, %v11186_v15 }
 0x4d3   : > { %v10764_v63 = vld [vmem:[%s15713_s13 + $0x2a0] sm:$0xf0]  ;;  %v12605_v20 = vld [vmem:[%s15713_s13 + $0x164] sm:$0xf0] }
 0x4d4   : > { %v12752_v13 = vld [vmem:[%s15713_s13 + $0x604] sm:$0xf]  ;;  %v10767_v56 = vor.u32 %v12640_v14, %v10764_v63  ;;  %9076 = vmatpush.bf16.msrb.mxu2 %v12047_v38  ;;  %v4109_v14 = vpop.xlane.xlu1 %4108  ;;  %v4860_v63 = vpack.c.bf16 %v4613_v25, %v4609_v60  ;;  %v6052_v38 = vperm.slane %v5646_v32, %v18657_v51  ;;  %v11122_v60 = vld [vmem:[%s15713_s13 + $0x548] sm:$0xf] }
 0x4d5   : > { %v11212_v45 = vld [vmem:[%s15713_s13 + $0x620] sm:$0xf0] }
 0x4d6   : > { %v12816_v7 = vld [vmem:[%s15713_s13 + $0x804] sm:$0xf]  ;;  %v11215_v6 = vor.u32 %v12752_v13, %v11212_v45  ;;  %9011 = vmatpush.bf16.msra.mxu1 %v10767_v56  ;;  %v11154_v13 = vld [vmem:[%s15713_s13 + $0x588] sm:$0xf]  ;;  %v10611_v56 = vor.u32 %v12605_v20, %v10610_v50 }
 0x4d7   : > { %v11468_v62 = vld [vmem:[%s15713_s13 + $0x820] sm:$0xf0]  ;;  %v12741_v45 = vld [vmem:[%s15713_s13 + $0x5a4] sm:$0xf0] }
 0x4d8   : > { %v12952_v10 = vld [vmem:[%s15713_s13 + $0xc44] sm:$0xf]  ;;  %v11471_v34 = vor.u32 %v12816_v7, %v11468_v62  ;;  %9039 = vmatpush.bf16.msra.mxu3 %v11215_v6  ;;  %v5647_v7 = vunpack.c.h.b16 %v4813_v11  ;;  %v4749_v62 = vpop.xlane.xlu2 %4748  ;;  %v4797_v6 = vpack.c.bf16 %v4109_v14, %v4105_v44  ;;  %v11155_v25 = vor.u32 %v12741_v45, %v11154_v13  ;;  %v11090_v50 = vld [vmem:[%s15713_s13 + $0x508] sm:$0xf] }
 0x4d9   : > { %v12012_v42 = vld [vmem:[%s15713_s13 + $0xc60] sm:$0xf0]  ;;  %v4877_v52 = vpack.c.bf16 %v4749_v62, %v4745_v16  ;;  %v12725_v20 = vld [vmem:[%s15713_s13 + $0x524] sm:$0xf0] }
 0x4da   : > { %v12632_v59 = vld [vmem:[%s15713_s13 + $0x244] sm:$0xf]  ;;  %v12015_v22 = vor.u32 %v12952_v10, %v12012_v42  ;;  %9052 = vmatpush.bf16.msrb.mxu0 %v11471_v34  ;;  %v12597_v10 = vld [vmem:[%s15713_s13 + $0x124] sm:$0xf0]  ;;  %v5613_v42 = vunpack.c.h.b16 %v4796_v8  ;;  %v5614_v11 = vunpack.c.l.b16 %v4797_v6  ;;  %v5741_v8 = vunpack.c.h.b16 %v4860_v63  ;;  %v4621_v15 = vpop.xlane.xlu0 %4620 }
 0x4db   : > { %v10732_v19 = vld [vmem:[%s15713_s13 + $0x260] sm:$0xf0]  ;;  %v5774_v34 = vunpack.c.l.b16 %v4877_v52  ;;  %v10579_v16 = vor.u32 %v12597_v10, %v10578_v37  ;;  %v5615_v14 = vunpack.c.h.b16 %v4797_v6  ;;  %v10514_v45 = vld [vmem:[%s15713_s13 + $0x88] sm:$0xf] }
 0x4dc   : > { %v10735_v46 = vor.u32 %v12632_v59, %v10732_v19  ;;  %v12624_v57 = vld [vmem:[%s15713_s13 + $0x204] sm:$0xf]  ;;  %9077 = vmatpush.bf16.msrb.mxu2 %v12015_v22  ;;  %v5986_v59 = vperm.slane %v5612_v54, %v15144_v18  ;;  %v5740_v19 = vunpack.c.l.b16 %v4860_v63  ;;  %v6053_v22 = vsel %vm18813_vm10, %v6052_v38, %v17190_v26 }
 0x4dd   : > { %v10700_v43 = vld [vmem:[%s15713_s13 + $0x220] sm:$0xf0]  ;;  %9053 = vmatmul.bf16.vlgmr.msrb.gmra.mxu0 %v17231_v24  ;;  %v6300_v2 = vperm.slane %v5774_v34, %v18657_v51  ;;  %v11091_v38 = vor.u32 %v12725_v20, %v11090_v50  ;;  %v5992_v34 = vperm.slane %v5615_v14, %v18658_v33 }
 0x4de   : > { %v12944_v3 = vld [vmem:[%s15713_s13 + $0xc04] sm:$0xf]  ;;  %9012 = vmatpush.bf16.msra.mxu1 %v10735_v46  ;;  %v10703_v0 = vor.u32 %v12624_v57, %v10700_v43  ;;  %9097 = vmatpush.bf16.msra.mxu0 %v10675_v58  ;;  %v5775_v46 = vunpack.c.h.b16 %v4877_v52  ;;  %v12733_v58 = vld [vmem:[%s15713_s13 + $0x564] sm:$0xf0]  ;;  %v6054_v57 = vperm.slane %v5647_v7, %v18658_v33  ;;  %v5987_v32 = vsel %vm18814_vm3, %v5986_v59, %v17161_v17 }
 0x4df   : > { %v11980_v28 = vld [vmem:[%s15713_s13 + $0xc20] sm:$0xf0]  ;;  %v10546_v43 = vld [vmem:[%s15713_s13 + $0xc8] sm:$0xf]  ;;  %v11123_v55 = vor.u32 %v12733_v58, %v11122_v60  ;;  %v6234_v26 = vperm.slane %v5740_v19, %v15144_v18  ;;  %v5990_v17 = vperm.slane %v5614_v11, %v18657_v51 }
 0x4e0   : > { %v11983_v4 = vor.u32 %v12944_v3, %v11980_v28  ;;  %v6302_v61 = vperm.slane %v5775_v46, %v18658_v33  ;;  %v12589_v3 = vld [vmem:[%s15713_s13 + $0xe4] sm:$0xf0]  ;;  %v5988_v28 = vperm.slane %v5613_v42, %v15147_v36  ;;  %v6055_v44 = vsel %vm5837_vm7, %v6054_v57, %v6053_v22  ;;  %v4617_v54 = vpop.xlane.xlu2 %4616  ;;  %v13056_v52 = vld [vmem:[%s15713_s13 + $0xf84] sm:$0xf] }
 0x4e1   : > { %v10547_v63 = vor.u32 %v12589_v3, %v10546_v43  ;;  %v4861_v13 = vpack.c.bf16 %v4621_v15, %v4617_v54  ;;  %v12581_v7 = vld [vmem:[%s15713_s13 + $0xa4] sm:$0xf0]  ;;  %v12428_v37 = vld [vmem:[%s15713_s13 + $0xfa0] sm:$0xf0]  ;;  %v6235_v10 = vsel %vm18817_vm9, %v6234_v26, %v17104_v30 }
 0x4e2   : > { %9013 = vmatpush.bf16.msra.mxu1 %v10703_v0  ;;  %9098 = vmatpush.bf16.msra.mxu0 %v10643_v23  ;;  %v13064_v0 = vld [vmem:[%s15713_s13 + $0xfc4] sm:$0xf]  ;;  %v5989_v62 = vsel %vm18816_vm11, %v5988_v28, %v5987_v32  ;;  %v11058_v59 = vld [vmem:[%s15713_s13 + $0x4c8] sm:$0xf]  ;;  %v12431_v58 = vor.u32 %v13056_v52, %v12428_v37 }
 0x4e3   : > { %9078 = vmatpush.bf16.msrb.mxu2 %v11983_v4  ;;  %v12460_v23 = vld [vmem:[%s15713_s13 + $0xfe0] sm:$0xf0]  ;;  %v6301_v4 = vsel %vm18815_vm4, %v6300_v2, %v17276_v35  ;;  %v5742_v42 = vunpack.c.l.b16 %v4861_v13  ;;  %v12717_v19 = vld [vmem:[%s15713_s13 + $0x4e4] sm:$0xf0]  ;;  %v5991_v46 = vsel %vm18818_vm12, %v5990_v17, %v5989_v62 }
 0x4e4   : > { %v12463_v35 = vor.u32 %v13064_v0, %v12460_v23  ;;  %v10482_v57 = vld [vmem:[%s15713_s13 + $0x48] sm:$0xf]  ;;  %v12936_v11 = vld [vmem:[%s15713_s13 + $0xbc4] sm:$0xf]  ;;  %v11059_v2 = vor.u32 %v12717_v19, %v11058_v59 }
 0x4e5   : > { %v6238_v30 = vperm.slane %v5742_v42, %v18657_v51  ;;  %v13048_v43 = vld [vmem:[%s15713_s13 + $0xf44] sm:$0xf]  ;;  %v11026_v28 = vld [vmem:[%s15713_s13 + $0x488] sm:$0xf] }
 0x4e6   : > { %9099 = vmatpush.bf16.msra.mxu0 %v10611_v56  ;;  %9079 = vmatmul.bf16.vlgmr.msrb.gmra.mxu2 %v17257_v53  ;;  %v6236_v56 = vperm.slane %v5741_v8, %v15147_v36  ;;  %v10515_v36 = vor.u32 %v12581_v7, %v10514_v45  ;;  %v12396_v3 = vld [vmem:[%s15713_s13 + $0xf60] sm:$0xf0]  ;;  %v5993_v8 = vsel %vm5837_vm7, %v5992_v34, %v5991_v46  ;;  %v10450_v0 = vld [vmem:[%s15713_s13 + $0x8] sm:$0xf] }
 0x4e7   : > { %9123 = vmatpush.bf16.msra.mxu2 %v11187_v21  ;;  %v6303_v21 = vsel %vm5837_vm7, %v6302_v61, %v6301_v4  ;;  %v11948_v61 = vld [vmem:[%s15713_s13 + $0xbe0] sm:$0xf0]  ;;  %v12399_v26 = vor.u32 %v13048_v43, %v12396_v3  ;;  %v12565_v4 = vld [vmem:[%s15713_s13 + $0x24] sm:$0xf0] }
 0x4e8   : > { %v6312_v18 = vsel %vm6304_vm8, %v6303_v21, %v6055_v44  ;;  %v6237_v22 = vsel %vm18819_vm13, %v6236_v56, %v6235_v10  ;;  %v11951_v32 = vor.u32 %v12936_v11, %v11948_v61  ;;  %v12928_v50 = vld [vmem:[%s15713_s13 + $0xb84] sm:$0xf]  ;;  %v12877_v17 = vld [vmem:[%s15713_s13 + $0x9e4] sm:$0xf0] }
 0x4e9   : > { %v17362_v6 = vpack.c.b16 %v6312_v18, %v6312_v18  ;;  %v6239_v51 = vsel %vm18820_vm6, %v6238_v30, %v6237_v22  ;;  %v11916_v20 = vld [vmem:[%s15713_s13 + $0xba0] sm:$0xf0]  ;;  %v10994_v18 = vld [vmem:[%s15713_s13 + $0x448] sm:$0xf] }
 0x4ea   : > { %9100 = vmatpush.bf16.msra.mxu0 %v10579_v16  ;;  %v12573_v16 = vld [vmem:[%s15713_s13 + $0x64] sm:$0xf0]  ;;  %v13040_v21 = vld [vmem:[%s15713_s13 + $0xf04] sm:$0xf]  ;;  %v11919_v45 = vor.u32 %v12928_v50, %v11916_v20 }
 0x4eb   : > { %9124 = vmatpush.bf16.msra.mxu2 %v11155_v25  ;;  %v5743_v25 = vunpack.c.h.b16 %v4861_v13  ;;  %8988 = vmatmul.bf16.vlgmr.msrb.gmra.mxu3 %v17362_v6  ;;  %v12364_v54 = vld [vmem:[%s15713_s13 + $0xf20] sm:$0xf0]  ;;  %v12701_v13 = vld [vmem:[%s15713_s13 + $0x464] sm:$0xf0] }
 0x4ec   : > { %9084 = vmatpush.bf16.msrb.mxu3 %v12463_v35  ;;  %v10451_v35 = vor.u32 %v12565_v4, %v10450_v0  ;;  %v12367_v7 = vor.u32 %v13040_v21, %v12364_v54  ;;  %v12920_v62 = vld [vmem:[%s15713_s13 + $0xb44] sm:$0xf]  ;;  %v10995_v52 = vor.u32 %v12701_v13, %v10994_v18  ;;  %v11666_v42 = vld [vmem:[%s15713_s13 + $0x988] sm:$0xf] }
 0x4ed   : > { %v6240_v60 = vperm.slane %v5743_v25, %v18658_v33  ;;  %v12709_v33 = vld [vmem:[%s15713_s13 + $0x4a4] sm:$0xf0]  ;;  %v11884_v56 = vld [vmem:[%s15713_s13 + $0xb60] sm:$0xf0] }
 0x4ee   : > { %9101 = vmatpush.bf16.msra.mxu0 %v10547_v63  ;;  %v11027_v44 = vor.u32 %v12709_v33, %v11026_v28  ;;  %v11698_v63 = vld [vmem:[%s15713_s13 + $0x9c8] sm:$0xf]  ;;  %v13032_v37 = vld [vmem:[%s15713_s13 + $0xec4] sm:$0xf]  ;;  %v11887_v46 = vor.u32 %v12920_v62, %v11884_v56 }
 0x4ef   : > { %9125 = vmatpush.bf16.msra.mxu2 %v11123_v55  ;;  %v6241_v15 = vsel %vm5837_vm7, %v6240_v60, %v6239_v51  ;;  %v10483_v55 = vor.u32 %v12573_v16, %v10482_v57  ;;  %v12332_v10 = vld [vmem:[%s15713_s13 + $0xee0] sm:$0xf0]  ;;  %v12869_v25 = vld [vmem:[%s15713_s13 + $0x9a4] sm:$0xf0]  ;;  %vm9735_vm7 = vcmask 1041408  }
 0x4f0   : > { %v6310_v23 = vsel %vm6304_vm8, %v6241_v15, %v5993_v8  ;;  %9085 = vmatpush.bf16.msrb.mxu3 %v12431_v58  ;;  %v10962_v59 = vld [vmem:[%s15713_s13 + $0x408] sm:$0xf]  ;;  %v12335_v30 = vor.u32 %v13032_v37, %v12332_v10  ;;  %v12912_v60 = vld [vmem:[%s15713_s13 + $0xb04] sm:$0xf]  ;;  %v11667_v58 = vor.u32 %v12869_v25, %v11666_v42  ;;  %vm9737_vm8 = vcmask 1045508  }
 0x4f1   : > { %v17392_v14 = vpack.c.b16 %v6310_v23, %v6310_v23  ;;  %v12693_v19 = vld [vmem:[%s15713_s13 + $0x424] sm:$0xf0]  ;;  %v11852_v16 = vld [vmem:[%s15713_s13 + $0xb20] sm:$0xf0] }
 0x4f2   : > { %9102 = vmatpush.bf16.msra.mxu0 %v10515_v36  ;;  %v12210_v34 = vld [vmem:[%s15713_s13 + $0xdc8] sm:$0xf]  ;;  %v10963_v57 = vor.u32 %v12693_v19, %v10962_v59  ;;  %v13024_v11 = vld [vmem:[%s15713_s13 + $0xe84] sm:$0xf]  ;;  %v11855_v28 = vor.u32 %v12912_v60, %v11852_v16 }
 0x4f3   : > { %9126 = vmatpush.bf16.msra.mxu2 %v11091_v38  ;;  %8962 = vmatmul.bf16.vlgmr.msrb.gmra.mxu1 %v17392_v14  ;;  %v11699_v38 = vor.u32 %v12877_v17, %v11698_v63  ;;  %v13005_v36 = vld [vmem:[%s15713_s13 + $0xde4] sm:$0xf0]  ;;  %v12300_v22 = vld [vmem:[%s15713_s13 + $0xea0] sm:$0xf0] }
 0x4f4   : > { %9058 = vmatpush.bf16.msrb.mxu1 %v11951_v32  ;;  %9086 = vmatpush.bf16.msrb.mxu3 %v12399_v26  ;;  %v11634_v61 = vld [vmem:[%s15713_s13 + $0x948] sm:$0xf]  ;;  %v12303_v33 = vor.u32 %v13024_v11, %v12300_v22  ;;  %v12904_v8 = vld [vmem:[%s15713_s13 + $0xac4] sm:$0xf] }
 0x4f5   : > { %v12861_v43 = vld [vmem:[%s15713_s13 + $0x964] sm:$0xf0]  ;;  %v13016_v0 = vld [vmem:[%s15713_s13 + $0xe44] sm:$0xf] }
 0x4f6   : > { %9103 = vmatpush.bf16.msra.mxu0 %v10483_v55  ;;  %v12178_v3 = vld [vmem:[%s15713_s13 + $0xd88] sm:$0xf]  ;;  %v11635_v15 = vor.u32 %v12861_v43, %v11634_v61  ;;  %v11820_v55 = vld [vmem:[%s15713_s13 + $0xae0] sm:$0xf0] }
 0x4f7   : > { %9127 = vmatpush.bf16.msra.mxu2 %v11059_v2  ;;  %v12211_v2 = vor.u32 %v13005_v36, %v12210_v34  ;;  %v12997_v51 = vld [vmem:[%s15713_s13 + $0xda4] sm:$0xf0]  ;;  %v12268_v23 = vld [vmem:[%s15713_s13 + $0xe60] sm:$0xf0] }
 0x4f8   : > { %9059 = vmatpush.bf16.msrb.mxu1 %v11919_v45  ;;  %9087 = vmatpush.bf16.msrb.mxu3 %v12367_v7  ;;  %v12179_v32 = vor.u32 %v12997_v51, %v12178_v3  ;;  %v11602_v26 = vld [vmem:[%s15713_s13 + $0x908] sm:$0xf]  ;;  %v12271_v21 = vor.u32 %v13016_v0, %v12268_v23  ;;  %v12896_v54 = vld [vmem:[%s15713_s13 + $0xa84] sm:$0xf] }
 0x4f9   : > { %v12853_v4 = vld [vmem:[%s15713_s13 + $0x924] sm:$0xf0]  ;;  %v11788_v63 = vld [vmem:[%s15713_s13 + $0xaa0] sm:$0xf0] }
 0x4fa   : > { %9104 = vmatpush.bf16.msra.mxu0 %v10451_v35  ;;  %v12146_v50 = vld [vmem:[%s15713_s13 + $0xd48] sm:$0xf]  ;;  %v11603_v17 = vor.u32 %v12853_v4, %v11602_v26  ;;  %v13008_v18 = vld [vmem:[%s15713_s13 + $0xe04] sm:$0xf]  ;;  %v11791_v37 = vor.u32 %v12896_v54, %v11788_v63 }
 0x4fb   : > { %9128 = vmatpush.bf16.msra.mxu2 %v11027_v44  ;;  %9040 = vmatmul.bf16.vlgmr.msra.gmra.mxu3 %v16341_v48  ;;  %v12989_v20 = vld [vmem:[%s15713_s13 + $0xd64] sm:$0xf0]  ;;  %v11823_v44 = vor.u32 %v12904_v8, %v11820_v55  ;;  %v12236_v13 = vld [vmem:[%s15713_s13 + $0xe20] sm:$0xf0] }
 0x4fc   : > { %9060 = vmatpush.bf16.msrb.mxu1 %v11887_v46  ;;  %9088 = vmatpush.bf16.msrb.mxu3 %v12335_v30  ;;  %v11570_v35 = vld [vmem:[%s15713_s13 + $0x8c8] sm:$0xf]  ;;  %v12147_v45 = vor.u32 %v12989_v20, %v12146_v50  ;;  %v12239_v10 = vor.u32 %v13008_v18, %v12236_v13  ;;  %v12888_v59 = vld [vmem:[%s15713_s13 + $0xa44] sm:$0xf]  ;;  %v12617_v18 = vld [vmem:[%s15713_s13 + $0x1cc] sm:$0xf] }
 0x4fd   : > { %9105 = vmatmul.bf16.vlgmr.msra.gmra.mxu0 %v16297_v9  ;;  %v12845_v7 = vld [vmem:[%s15713_s13 + $0x8e4] sm:$0xf0]  ;;  %v11756_v19 = vld [vmem:[%s15713_s13 + $0xa60] sm:$0xf0]  ;;  %v10676_v13 = vld [vmem:[%s15713_s13 + $0x1e8] sm:$0xf0] }
 0x4fe   : > { %9149 = vmatpush.bf16.msrb.mxu0 %v11699_v38  ;;  %v11442_v62 = vld [vmem:[%s15713_s13 + $0x7c8] sm:$0xf]  ;;  %v11571_v42 = vor.u32 %v12845_v7, %v11570_v35  ;;  %v11759_v16 = vor.u32 %v12888_v59, %v11756_v19  ;;  %v12880_v11 = vld [vmem:[%s15713_s13 + $0xa04] sm:$0xf]  ;;  %v12609_v59 = vld [vmem:[%s15713_s13 + $0x18c] sm:$0xf] }
 0x4ff   : > { %9129 = vmatpush.bf16.msra.mxu2 %v10995_v52  ;;  %v12813_v56 = vld [vmem:[%s15713_s13 + $0x7e4] sm:$0xf0]  ;;  %v11724_v61 = vld [vmem:[%s15713_s13 + $0xa20] sm:$0xf0]  ;;  %v10644_v19 = vld [vmem:[%s15713_s13 + $0x1a8] sm:$0xf0] }
 0x500   : > { %9061 = vmatpush.bf16.msrb.mxu1 %v11855_v28  ;;  %9089 = vmatpush.bf16.msrb.mxu3 %v12303_v33  ;;  %v12114_v38 = vld [vmem:[%s15713_s13 + $0xd08] sm:$0xf]  ;;  %v11443_v25 = vor.u32 %v12813_v56, %v11442_v62  ;;  %v11727_v23 = vor.u32 %v12880_v11, %v11724_v61 }
 0x501   : > { %v12981_v52 = vld [vmem:[%s15713_s13 + $0xd24] sm:$0xf0] }
 0x502   : > { %9150 = vmatpush.bf16.msrb.mxu0 %v11667_v58  ;;  %v11538_v34 = vld [vmem:[%s15713_s13 + $0x888] sm:$0xf]  ;;  %v12115_v36 = vor.u32 %v12981_v52, %v12114_v38  ;;  %v10679_v38 = vor.u32 %v12617_v18, %v10676_v13 }
 0x503   : > { %9130 = vmatpush.bf16.msra.mxu2 %v10963_v57  ;;  %9014 = vmatmul.bf16.vlgmr.msra.gmra.mxu1 %v16400_v1  ;;  %v12837_v46 = vld [vmem:[%s15713_s13 + $0x8a4] sm:$0xf0] }
 0x504   : > { %9062 = vmatpush.bf16.msrb.mxu1 %v11823_v44  ;;  %9090 = vmatpush.bf16.msrb.mxu3 %v12271_v21  ;;  %v11410_v30 = vld [vmem:[%s15713_s13 + $0x788] sm:$0xf]  ;;  %v11539_v22 = vor.u32 %v12837_v46, %v11538_v34 }
 0x505   : > { %v12805_v60 = vld [vmem:[%s15713_s13 + $0x7a4] sm:$0xf0] }
 0x506   : > { %9131 = vmatmul.bf16.vlgmr.msra.gmra.mxu2 %v16122_v39  ;;  %9151 = vmatpush.bf16.msrb.mxu0 %v11635_v15  ;;  %v12082_v58 = vld [vmem:[%s15713_s13 + $0xcc8] sm:$0xf] }
 0x507   : > { %9175 = vmatpush.bf16.msrb.mxu2 %v12211_v2  ;;  %v12973_v57 = vld [vmem:[%s15713_s13 + $0xce4] sm:$0xf0]  ;;  %v11411_v2 = vor.u32 %v12805_v60, %v11410_v30  ;;  %v12745_v30 = vld [vmem:[%s15713_s13 + $0x5cc] sm:$0xf] }
 0x508   : > { %9063 = vmatpush.bf16.msrb.mxu1 %v11791_v37  ;;  %9091 = vmatpush.bf16.msrb.mxu3 %v12239_v10  ;;  %v11506_v43 = vld [vmem:[%s15713_s13 + $0x848] sm:$0xf]  ;;  %v12083_v51 = vor.u32 %v12973_v57, %v12082_v58  ;;  %v11188_v60 = vld [vmem:[%s15713_s13 + $0x5e8] sm:$0xf0]  ;;  %v10647_v57 = vor.u32 %v12609_v59, %v10644_v19 }
 0x509   : > { %v12829_v3 = vld [vmem:[%s15713_s13 + $0x864] sm:$0xf0] }
 0x50a   : > { %9152 = vmatpush.bf16.msrb.mxu0 %v11603_v17  ;;  %v10930_v28 = vld [vmem:[%s15713_s13 + $0x3c8] sm:$0xf] }
 0x50b   : > { %9176 = vmatpush.bf16.msrb.mxu2 %v12179_v32  ;;  %v12685_v33 = vld [vmem:[%s15713_s13 + $0x3e4] sm:$0xf0]  ;;  %9092 = vmatmul.bf16.vlgmr.msrb.gmra.mxu3 %v17362_v6  ;;  %v11507_v32 = vor.u32 %v12829_v3, %v11506_v43  ;;  %v11191_v43 = vor.u32 %v12745_v30, %v11188_v60  ;;  %v12601_v3 = vld [vmem:[%s15713_s13 + $0x14c] sm:$0xf] }
 0x50c   : > { %9136 = vmatpush.bf16.msra.mxu3 %v11443_v25  ;;  %v11378_v8 = vld [vmem:[%s15713_s13 + $0x748] sm:$0xf]  ;;  %9064 = vmatpush.bf16.msrb.mxu1 %v11759_v16  ;;  %v10931_v26 = vor.u32 %v12685_v33, %v10930_v28  ;;  %v12737_v33 = vld [vmem:[%s15713_s13 + $0x58c] sm:$0xf] }
 0x50d   : > { %v12797_v15 = vld [vmem:[%s15713_s13 + $0x764] sm:$0xf0]  ;;  %v10516_v60 = vld [vmem:[%s15713_s13 + $0xa8] sm:$0xf0] }
 0x50e   : > { %9153 = vmatpush.bf16.msrb.mxu0 %v11571_v42  ;;  %v12050_v55 = vld [vmem:[%s15713_s13 + $0xc88] sm:$0xf]  ;;  %v11379_v20 = vor.u32 %v12797_v15, %v11378_v8  ;;  %v11156_v8 = vld [vmem:[%s15713_s13 + $0x5a8] sm:$0xf0] }
 0x50f   : > { %9177 = vmatpush.bf16.msrb.mxu2 %v12147_v45  ;;  %v12965_v0 = vld [vmem:[%s15713_s13 + $0xca4] sm:$0xf0] }
 0x510   : > { %9137 = vmatpush.bf16.msra.mxu3 %v11411_v2  ;;  %v11474_v4 = vld [vmem:[%s15713_s13 + $0x808] sm:$0xf]  ;;  %v12051_v44 = vor.u32 %v12965_v0, %v12050_v55  ;;  %9065 = vmatpush.bf16.msrb.mxu1 %v11727_v23 }
 0x511   : > { %v12821_v50 = vld [vmem:[%s15713_s13 + $0x824] sm:$0xf0] }
 0x512   : > { %9154 = vmatpush.bf16.msrb.mxu0 %v11539_v22  ;;  %v10898_v21 = vld [vmem:[%s15713_s13 + $0x388] sm:$0xf]  ;;  %v11475_v7 = vor.u32 %v12821_v50, %v11474_v4  ;;  %v11159_v4 = vor.u32 %v12737_v33, %v11156_v8  ;;  %v12593_v50 = vld [vmem:[%s15713_s13 + $0x10c] sm:$0xf] }
 0x513   : > { %9178 = vmatpush.bf16.msrb.mxu2 %v12115_v36  ;;  %v12677_v54 = vld [vmem:[%s15713_s13 + $0x3a4] sm:$0xf0]  ;;  %9066 = vmatmul.bf16.vlgmr.msrb.gmra.mxu1 %v17392_v14 }
 0x514   : > { %v11346_v63 = vld [vmem:[%s15713_s13 + $0x708] sm:$0xf]  ;;  %9110 = vmatpush.bf16.msra.mxu1 %v10931_v26  ;;  %v10899_v62 = vor.u32 %v12677_v54, %v10898_v21  ;;  %9138 = vmatpush.bf16.msra.mxu3 %v11379_v20  ;;  %v10580_v20 = vld [vmem:[%s15713_s13 + $0x128] sm:$0xf0] }
 0x515   : > { %v12789_v17 = vld [vmem:[%s15713_s13 + $0x724] sm:$0xf0]  ;;  %v12729_v21 = vld [vmem:[%s15713_s13 + $0x54c] sm:$0xf]  ;;  %v10583_v13 = vor.u32 %v12593_v50, %v10580_v20 }
 0x516   : > { %v12018_v35 = vld [vmem:[%s15713_s13 + $0xc48] sm:$0xf]  ;;  %9155 = vmatpush.bf16.msrb.mxu0 %v11507_v32  ;;  %v11347_v56 = vor.u32 %v12789_v17, %v11346_v63  ;;  %v11124_v54 = vld [vmem:[%s15713_s13 + $0x568] sm:$0xf0] }
 0x517   : > { %9179 = vmatpush.bf16.msrb.mxu2 %v12083_v51  ;;  %v12957_v45 = vld [vmem:[%s15713_s13 + $0xc64] sm:$0xf0]  ;;  %v10612_v51 = vld [vmem:[%s15713_s13 + $0x168] sm:$0xf0] }
 0x518   : > { %v10866_v52 = vld [vmem:[%s15713_s13 + $0x348] sm:$0xf]  ;;  %v12019_v42 = vor.u32 %v12957_v45, %v12018_v35  ;;  %9111 = vmatpush.bf16.msra.mxu1 %v10899_v62  ;;  %9139 = vmatpush.bf16.msra.mxu3 %v11347_v56  ;;  %v10615_v23 = vor.u32 %v12601_v3, %v10612_v51  ;;  %v11127_v62 = vor.u32 %v12729_v21, %v11124_v54  ;;  %v10548_v56 = vld [vmem:[%s15713_s13 + $0xe8] sm:$0xf0] }
 0x519   : > { %v12669_v37 = vld [vmem:[%s15713_s13 + $0x364] sm:$0xf0]  ;;  %v12569_v51 = vld [vmem:[%s15713_s13 + $0x4c] sm:$0xf] }
 0x51a   : > { %v11314_v10 = vld [vmem:[%s15713_s13 + $0x6c8] sm:$0xf]  ;;  %9156 = vmatpush.bf16.msrb.mxu0 %v11475_v7  ;;  %v10867_v46 = vor.u32 %v12669_v37, %v10866_v52  ;;  %v12585_v7 = vld [vmem:[%s15713_s13 + $0xcc] sm:$0xf] }
 0x51b   : > { %9180 = vmatpush.bf16.msrb.mxu2 %v12051_v44  ;;  %v12781_v25 = vld [vmem:[%s15713_s13 + $0x6e4] sm:$0xf0]  ;;  %v12561_v50 = vld [vmem:[%s15713_s13 + $0xc] sm:$0xf] }
 0x51c   : > { %v11986_v34 = vld [vmem:[%s15713_s13 + $0xc08] sm:$0xf]  ;;  %v11315_v58 = vor.u32 %v12781_v25, %v11314_v10  ;;  %9112 = vmatpush.bf16.msra.mxu1 %v10867_v46  ;;  %v12721_v10 = vld [vmem:[%s15713_s13 + $0x50c] sm:$0xf] }
 0x51d   : > { %v12949_v36 = vld [vmem:[%s15713_s13 + $0xc24] sm:$0xf0]  ;;  %9157 = vmatmul.bf16.vlgmr.msrb.gmra.mxu0 %v17231_v24  ;;  %v12577_v46 = vld [vmem:[%s15713_s13 + $0x8c] sm:$0xf] }
 0x51e   : > { %9201 = vmatpush.bf16.msra.mxu0 %v10679_v38  ;;  %v10834_v16 = vld [vmem:[%s15713_s13 + $0x308] sm:$0xf]  ;;  %v11987_v22 = vor.u32 %v12949_v36, %v11986_v34  ;;  %9140 = vmatpush.bf16.msra.mxu3 %v11315_v58  ;;  %v10551_v34 = vor.u32 %v12585_v7, %v10548_v56  ;;  %v10452_v21 = vld [vmem:[%s15713_s13 + $0x28] sm:$0xf0] }
 0x51f   : > { %v12661_v11 = vld [vmem:[%s15713_s13 + $0x324] sm:$0xf0]  ;;  %9181 = vmatpush.bf16.msrb.mxu2 %v12019_v42  ;;  %v11092_v42 = vld [vmem:[%s15713_s13 + $0x528] sm:$0xf0] }
 0x520   : > { %v11282_v2 = vld [vmem:[%s15713_s13 + $0x688] sm:$0xf]  ;;  %v10835_v28 = vor.u32 %v12661_v11, %v10834_v16  ;;  %v11095_v30 = vor.u32 %v12721_v10, %v11092_v42  ;;  %v12713_v11 = vld [vmem:[%s15713_s13 + $0x4cc] sm:$0xf] }
 0x521   : > { %v12773_v61 = vld [vmem:[%s15713_s13 + $0x6a4] sm:$0xf0]  ;;  %v12697_v7 = vld [vmem:[%s15713_s13 + $0x44c] sm:$0xf] }
 0x522   : > { %9202 = vmatpush.bf16.msra.mxu0 %v10647_v57  ;;  %v11283_v15 = vor.u32 %v12773_v61, %v11282_v2  ;;  %v10802_v55 = vld [vmem:[%s15713_s13 + $0x2c8] sm:$0xf]  ;;  %9113 = vmatpush.bf16.msra.mxu1 %v10835_v28 }
 0x523   : > { %v12653_v0 = vld [vmem:[%s15713_s13 + $0x2e4] sm:$0xf0]  ;;  %9182 = vmatpush.bf16.msrb.mxu2 %v11987_v22  ;;  %v11060_v22 = vld [vmem:[%s15713_s13 + $0x4e8] sm:$0xf0] }
 0x524   : > { %v11250_v32 = vld [vmem:[%s15713_s13 + $0x648] sm:$0xf]  ;;  %v10803_v44 = vor.u32 %v12653_v0, %v10802_v55  ;;  %9141 = vmatpush.bf16.msra.mxu3 %v11283_v15  ;;  %v11063_v8 = vor.u32 %v12713_v11, %v11060_v22  ;;  %v10484_v15 = vld [vmem:[%s15713_s13 + $0x68] sm:$0xf0] }
 0x525   : > { %v12765_v26 = vld [vmem:[%s15713_s13 + $0x664] sm:$0xf0]  ;;  %v10487_v20 = vor.u32 %v12569_v51, %v10484_v15  ;;  %v12993_v15 = vld [vmem:[%s15713_s13 + $0xd8c] sm:$0xf] }
 0x526   : > { %9183 = vmatmul.bf16.vlgmr.msrb.gmra.mxu2 %v17257_v53  ;;  %v11251_v63 = vor.u32 %v12765_v26, %v11250_v32  ;;  %v10770_v17 = vld [vmem:[%s15713_s13 + $0x288] sm:$0xf]  ;;  %9203 = vmatpush.bf16.msra.mxu0 %v10615_v23  ;;  %v12705_v32 = vld [vmem:[%s15713_s13 + $0x48c] sm:$0xf] }
 0x527   : > { %9227 = vmatpush.bf16.msra.mxu2 %v11191_v43  ;;  %v12645_v18 = vld [vmem:[%s15713_s13 + $0x2a4] sm:$0xf0]  ;;  %9114 = vmatpush.bf16.msra.mxu1 %v10803_v44  ;;  %v10519_v43 = vor.u32 %v12577_v46, %v10516_v60  ;;  %v11028_v26 = vld [vmem:[%s15713_s13 + $0x4a8] sm:$0xf0] }
 0x528   : > { %v11218_v35 = vld [vmem:[%s15713_s13 + $0x608] sm:$0xf]  ;;  %v10771_v37 = vor.u32 %v12645_v18, %v10770_v17  ;;  %9142 = vmatpush.bf16.msra.mxu3 %v11251_v63  ;;  %v11031_v17 = vor.u32 %v12705_v32, %v11028_v26  ;;  %v12689_v46 = vld [vmem:[%s15713_s13 + $0x40c] sm:$0xf] }
 0x529   : > { %v12757_v45 = vld [vmem:[%s15713_s13 + $0x624] sm:$0xf0] }
 0x52a   : > { %v12466_v38 = vld [vmem:[%s15713_s13 + $0xfc8] sm:$0xf]  ;;  %v11219_v25 = vor.u32 %v12757_v45, %v11218_v35  ;;  %9204 = vmatpush.bf16.msra.mxu0 %v10583_v13  ;;  %v12873_v35 = vld [vmem:[%s15713_s13 + $0x9cc] sm:$0xf] }
 0x52b   : > { %9228 = vmatpush.bf16.msra.mxu2 %v11159_v4  ;;  %v13069_v52 = vld [vmem:[%s15713_s13 + $0xfe4] sm:$0xf0]  ;;  %9115 = vmatpush.bf16.msra.mxu1 %v10771_v37  ;;  %v11700_v45 = vld [vmem:[%s15713_s13 + $0x9e8] sm:$0xf0] }
 0x52c   : > { %v10738_v59 = vld [vmem:[%s15713_s13 + $0x248] sm:$0xf]  ;;  %v12467_v36 = vor.u32 %v13069_v52, %v12466_v38  ;;  %9143 = vmatpush.bf16.msra.mxu3 %v11219_v25  ;;  %v10455_v38 = vor.u32 %v12561_v50, %v10452_v21  ;;  %v11703_v42 = vor.u32 %v12873_v35, %v11700_v45  ;;  %v11604_v21 = vld [vmem:[%s15713_s13 + $0x928] sm:$0xf0] }
 0x52d   : > { %v12637_v19 = vld [vmem:[%s15713_s13 + $0x264] sm:$0xf0] }
 0x52e   : > { %v12434_v58 = vld [vmem:[%s15713_s13 + $0xf88] sm:$0xf]  ;;  %v10739_v16 = vor.u32 %v12637_v19, %v10738_v59  ;;  %9205 = vmatpush.bf16.msra.mxu0 %v10551_v34  ;;  %v12865_v34 = vld [vmem:[%s15713_s13 + $0x98c] sm:$0xf] }
 0x52f   : > { %9229 = vmatpush.bf16.msra.mxu2 %v11127_v62  ;;  %v13061_v57 = vld [vmem:[%s15713_s13 + $0xfa4] sm:$0xf0]  ;;  %9144 = vmatmul.bf16.vlgmr.msra.gmra.mxu3 %v16341_v48  ;;  %v10996_v62 = vld [vmem:[%s15713_s13 + $0x468] sm:$0xf0] }
 0x530   : > { %v10706_v2 = vld [vmem:[%s15713_s13 + $0x208] sm:$0xf]  ;;  %9188 = vmatpush.bf16.msrb.mxu3 %v12467_v36  ;;  %v12435_v3 = vor.u32 %v13061_v57, %v12434_v58  ;;  %9116 = vmatpush.bf16.msra.mxu1 %v10739_v16  ;;  %v10999_v25 = vor.u32 %v12697_v7, %v10996_v62  ;;  %v11668_v36 = vld [vmem:[%s15713_s13 + $0x9a8] sm:$0xf0] }
 0x531   : > { %v12629_v61 = vld [vmem:[%s15713_s13 + $0x224] sm:$0xf0]  ;;  %v13001_v58 = vld [vmem:[%s15713_s13 + $0xdcc] sm:$0xf] }
 0x532   : > { %v11954_v28 = vld [vmem:[%s15713_s13 + $0xbc8] sm:$0xf]  ;;  %v10707_v23 = vor.u32 %v12629_v61, %v10706_v2  ;;  %9206 = vmatpush.bf16.msra.mxu0 %v10519_v43  ;;  %v12212_v57 = vld [vmem:[%s15713_s13 + $0xde8] sm:$0xf0]  ;;  %v11671_v2 = vor.u32 %v12865_v34, %v11668_v36 }
 0x533   : > { %v12941_v33 = vld [vmem:[%s15713_s13 + $0xbe4] sm:$0xf0]  ;;  %9230 = vmatpush.bf16.msra.mxu2 %v11095_v30  ;;  %v10964_v30 = vld [vmem:[%s15713_s13 + $0x428] sm:$0xf0]  ;;  %v12215_v51 = vor.u32 %v13001_v58, %v12212_v57 }
 0x534   : > { %v12402_v55 = vld [vmem:[%s15713_s13 + $0xf48] sm:$0xf]  ;;  %v11955_v4 = vor.u32 %v12941_v33, %v11954_v28  ;;  %9189 = vmatpush.bf16.msrb.mxu3 %v12435_v3  ;;  %9117 = vmatpush.bf16.msra.mxu1 %v10707_v23  ;;  %v10967_v61 = vor.u32 %v12689_v46, %v10964_v30  ;;  %v12857_v28 = vld [vmem:[%s15713_s13 + $0x94c] sm:$0xf] }
 0x535   : > { %v13053_v0 = vld [vmem:[%s15713_s13 + $0xf64] sm:$0xf0]  ;;  %v11636_v33 = vld [vmem:[%s15713_s13 + $0x968] sm:$0xf0] }
 0x536   : > { %v12403_v44 = vor.u32 %v13053_v0, %v12402_v55  ;;  %v11922_v54 = vld [vmem:[%s15713_s13 + $0xb88] sm:$0xf]  ;;  %9207 = vmatpush.bf16.msra.mxu0 %v10487_v20  ;;  %v12180_v55 = vld [vmem:[%s15713_s13 + $0xda8] sm:$0xf0]  ;;  %v11639_v26 = vor.u32 %v12857_v28, %v11636_v33 }
 0x537   : > { %v12933_v63 = vld [vmem:[%s15713_s13 + $0xba4] sm:$0xf0]  ;;  %9231 = vmatpush.bf16.msra.mxu2 %v11063_v8  ;;  %9118 = vmatmul.bf16.vlgmr.msra.gmra.mxu1 %v16400_v1  ;;  %v12183_v20 = vor.u32 %v12993_v15, %v12180_v55  ;;  %v12833_v58 = vld [vmem:[%s15713_s13 + $0x88c] sm:$0xf] }
 0x538   : > { %v12370_v18 = vld [vmem:[%s15713_s13 + $0xf08] sm:$0xf]  ;;  %9162 = vmatpush.bf16.msrb.mxu1 %v11955_v4  ;;  %v11923_v56 = vor.u32 %v12933_v63, %v11922_v54  ;;  %9190 = vmatpush.bf16.msrb.mxu3 %v12403_v44  ;;  %v12849_v44 = vld [vmem:[%s15713_s13 + $0x90c] sm:$0xf]  ;;  %v8950_v54 = vpop.f32.mrf.mxu0 }
 0x539   : > { %v13045_v13 = vld [vmem:[%s15713_s13 + $0xf24] sm:$0xf0]  ;;  %v11607_v62 = vor.u32 %v12849_v44, %v11604_v21  ;;  %v12825_v15 = vld [vmem:[%s15713_s13 + $0x84c] sm:$0xf] }
 0x53a   : > { %v12371_v52 = vor.u32 %v13045_v13, %v12370_v18  ;;  %v11890_v37 = vld [vmem:[%s15713_s13 + $0xb48] sm:$0xf]  ;;  %9208 = vmatpush.bf16.msra.mxu0 %v10455_v38  ;;  %v12148_v18 = vld [vmem:[%s15713_s13 + $0xd68] sm:$0xf0]  ;;  %v17568_v13 = vadd.f32 %v8950_v54, %v16838_v49 }
 0x53b   : > { %v12925_v10 = vld [vmem:[%s15713_s13 + $0xb64] sm:$0xf0]  ;;  %9232 = vmatpush.bf16.msra.mxu2 %v11031_v17  ;;  %v12985_v17 = vld [vmem:[%s15713_s13 + $0xd4c] sm:$0xf] }
 0x53c   : > { %v12338_v59 = vld [vmem:[%s15713_s13 + $0xec8] sm:$0xf]  ;;  %9163 = vmatpush.bf16.msrb.mxu1 %v11923_v56  ;;  %v11891_v60 = vor.u32 %v12925_v10, %v11890_v37  ;;  %9191 = vmatpush.bf16.msrb.mxu3 %v12371_v52  ;;  %v12841_v52 = vld [vmem:[%s15713_s13 + $0x8cc] sm:$0xf]  ;;  %v12151_v37 = vor.u32 %v12985_v17, %v12148_v18 }
 0x53d   : > { %v13037_v19 = vld [vmem:[%s15713_s13 + $0xee4] sm:$0xf0]  ;;  %9209 = vmatmul.bf16.vlgmr.msra.gmra.mxu0 %v16297_v9  ;;  %v11572_v10 = vld [vmem:[%s15713_s13 + $0x8e8] sm:$0xf0] }
 0x53e   : > { %v12339_v16 = vor.u32 %v13037_v19, %v12338_v59  ;;  %v11858_v11 = vld [vmem:[%s15713_s13 + $0xb08] sm:$0xf]  ;;  %9253 = vmatpush.bf16.msrb.mxu0 %v11703_v42  ;;  %v12809_v42 = vld [vmem:[%s15713_s13 + $0x7cc] sm:$0xf]  ;;  %v11575_v30 = vor.u32 %v12841_v52, %v11572_v10  ;;  %v10682_v52 = vld [vmem:[%s15713_s13 + $0x1d0] sm:$0xf] }
 0x53f   : > { %v12917_v22 = vld [vmem:[%s15713_s13 + $0xb24] sm:$0xf0]  ;;  %9233 = vmatpush.bf16.msra.mxu2 %v10999_v25  ;;  %v11444_v49 = vld [vmem:[%s15713_s13 + $0x7e8] sm:$0xf0]  ;;  %v12622_v10 = vld [vmem:[%s15713_s13 + $0x1ec] sm:$0xf0] }
 0x540   : > { %v12306_v43 = vld [vmem:[%s15713_s13 + $0xe88] sm:$0xf]  ;;  %9164 = vmatpush.bf16.msrb.mxu1 %v11891_v60  ;;  %v11859_v8 = vor.u32 %v12917_v22, %v11858_v11  ;;  %9192 = vmatpush.bf16.msrb.mxu3 %v12339_v16  ;;  %v12977_v59 = vld [vmem:[%s15713_s13 + $0xd0c] sm:$0xf]  ;;  %v11447_v60 = vor.u32 %v12809_v42, %v11444_v49 }
 0x541   : > { %v13029_v3 = vld [vmem:[%s15713_s13 + $0xea4] sm:$0xf0]  ;;  %v12116_v19 = vld [vmem:[%s15713_s13 + $0xd28] sm:$0xf0] }
 0x542   : > { %v12307_v0 = vor.u32 %v13029_v3, %v12306_v43  ;;  %v11826_v23 = vld [vmem:[%s15713_s13 + $0xac8] sm:$0xf]  ;;  %9254 = vmatpush.bf16.msrb.mxu0 %v11671_v2  ;;  %v12119_v57 = vor.u32 %v12977_v59, %v12116_v19  ;;  %v11540_v16 = vld [vmem:[%s15713_s13 + $0x8a8] sm:$0xf0]  ;;  %v8952_v2 = vpop.f32.mrf.mxu0 }
 0x543   : > { %v12909_v32 = vld [vmem:[%s15713_s13 + $0xae4] sm:$0xf0]  ;;  %9234 = vmatpush.bf16.msra.mxu2 %v10967_v61  ;;  %v12801_v11 = vld [vmem:[%s15713_s13 + $0x78c] sm:$0xf]  ;;  %v11543_v33 = vor.u32 %v12833_v58, %v11540_v16 }
 0x544   : > { %v12274_v4 = vld [vmem:[%s15713_s13 + $0xe48] sm:$0xf]  ;;  %9165 = vmatpush.bf16.msrb.mxu1 %v11859_v8  ;;  %v11827_v63 = vor.u32 %v12909_v32, %v11826_v23  ;;  %9193 = vmatpush.bf16.msrb.mxu3 %v12307_v0  ;;  %v11412_v22 = vld [vmem:[%s15713_s13 + $0x7a8] sm:$0xf0] }
 0x545   : > { %v13021_v50 = vld [vmem:[%s15713_s13 + $0xe64] sm:$0xf0]  ;;  %v12969_v43 = vld [vmem:[%s15713_s13 + $0xccc] sm:$0xf]  ;;  %v11415_v8 = vor.u32 %v12801_v11, %v11412_v22  ;;  %v12614_v11 = vld [vmem:[%s15713_s13 + $0x1ac] sm:$0xf0] }
 0x546   : > { %9235 = vmatmul.bf16.vlgmr.msra.gmra.mxu2 %v16122_v39  ;;  %v12275_v35 = vor.u32 %v13021_v50, %v12274_v4  ;;  %v11794_v45 = vld [vmem:[%s15713_s13 + $0xa88] sm:$0xf]  ;;  %9255 = vmatpush.bf16.msrb.mxu0 %v11639_v26  ;;  %v12084_v3 = vld [vmem:[%s15713_s13 + $0xce8] sm:$0xf0]  ;;  %v17597_v50 = vpop.f32.mrf.mxu2 }
 0x547   : > { %9279 = vmatpush.bf16.msrb.mxu2 %v12215_v51  ;;  %v12901_v7 = vld [vmem:[%s15713_s13 + $0xaa4] sm:$0xf0]  ;;  %v12681_v55 = vld [vmem:[%s15713_s13 + $0x3cc] sm:$0xf]  ;;  %v12087_v23 = vor.u32 %v12969_v43, %v12084_v3  ;;  %v11194_v43 = vld [vmem:[%s15713_s13 + $0x5d0] sm:$0xf] }
 0x548   : > { %v12242_v56 = vld [vmem:[%s15713_s13 + $0xe08] sm:$0xf]  ;;  %9166 = vmatpush.bf16.msrb.mxu1 %v11827_v63  ;;  %v11795_v25 = vor.u32 %v12901_v7, %v11794_v45  ;;  %9194 = vmatpush.bf16.msrb.mxu3 %v12275_v35  ;;  %v10932_v0 = vld [vmem:[%s15713_s13 + $0x3e8] sm:$0xf0]  ;;  %v12750_v3 = vld [vmem:[%s15713_s13 + $0x5ec] sm:$0xf0] }
 0x549   : > { %v13013_v38 = vld [vmem:[%s15713_s13 + $0xe24] sm:$0xf0]  ;;  %v11508_v32 = vld [vmem:[%s15713_s13 + $0x868] sm:$0xf0]  ;;  %v10935_v54 = vor.u32 %v12681_v55, %v10932_v0 }
 0x54a   : > { %v12243_v34 = vor.u32 %v13013_v38, %v12242_v56  ;;  %v11762_v36 = vld [vmem:[%s15713_s13 + $0xa48] sm:$0xf]  ;;  %9256 = vmatpush.bf16.msrb.mxu0 %v11607_v62  ;;  %v12793_v26 = vld [vmem:[%s15713_s13 + $0x74c] sm:$0xf]  ;;  %v11511_v17 = vor.u32 %v12825_v15, %v11508_v32  ;;  %v11195_v32 = vor.u32 %v12750_v3, %v11194_v43 }
 0x54b   : > { %9280 = vmatpush.bf16.msrb.mxu2 %v12183_v20  ;;  %v12893_v46 = vld [vmem:[%s15713_s13 + $0xa64] sm:$0xf0]  ;;  %v11380_v4 = vld [vmem:[%s15713_s13 + $0x768] sm:$0xf0] }
 0x54c   : > { %9167 = vmatpush.bf16.msrb.mxu1 %v11795_v25  ;;  %v11763_v61 = vor.u32 %v12893_v46, %v11762_v36  ;;  %9195 = vmatpush.bf16.msrb.mxu3 %v12243_v34  ;;  %v11730_v51 = vld [vmem:[%s15713_s13 + $0xa08] sm:$0xf]  ;;  %v12961_v44 = vld [vmem:[%s15713_s13 + $0xc8c] sm:$0xf]  ;;  %v11383_v18 = vor.u32 %v12793_v26, %v11380_v4  ;;  %v10683_v46 = vor.u32 %v12622_v10, %v10682_v52  ;;  %v10618_v26 = vld [vmem:[%s15713_s13 + $0x150] sm:$0xf] }
 0x54d   : > { %v12885_v28 = vld [vmem:[%s15713_s13 + $0xa24] sm:$0xf0]  ;;  %v12052_v21 = vld [vmem:[%s15713_s13 + $0xca8] sm:$0xf0]  ;;  %v12606_v4 = vld [vmem:[%s15713_s13 + $0x16c] sm:$0xf0] }
 0x54e   : > { %9257 = vmatpush.bf16.msrb.mxu0 %v11575_v30  ;;  %v11731_v20 = vor.u32 %v12885_v28, %v11730_v51  ;;  %v12817_v63 = vld [vmem:[%s15713_s13 + $0x80c] sm:$0xf]  ;;  %v12055_v62 = vor.u32 %v12961_v44, %v12052_v21  ;;  %v8978_v16 = vpop.f32.mrf.mxu2  ;;  %v11162_v44 = vld [vmem:[%s15713_s13 + $0x590] sm:$0xf] }
 0x54f   : > { %9281 = vmatpush.bf16.msrb.mxu2 %v12151_v37  ;;  %9196 = vmatmul.bf16.vlgmr.msrb.gmra.mxu3 %v17362_v6  ;;  %v11476_v35 = vld [vmem:[%s15713_s13 + $0x828] sm:$0xf0]  ;;  %v17608_v37 = vpop.f32.mrf.mxu0  ;;  %v12742_v21 = vld [vmem:[%s15713_s13 + $0x5ac] sm:$0xf0] }
 0x550   : > { %9240 = vmatpush.bf16.msra.mxu3 %v11447_v60  ;;  %9168 = vmatpush.bf16.msrb.mxu1 %v11763_v61  ;;  %v12673_v45 = vld [vmem:[%s15713_s13 + $0x38c] sm:$0xf]  ;;  %v11479_v59 = vor.u32 %v12817_v63, %v11476_v35  ;;  %v11130_v10 = vld [vmem:[%s15713_s13 + $0x550] sm:$0xf] }
 0x551   : > { %v10900_v7 = vld [vmem:[%s15713_s13 + $0x3a8] sm:$0xf0] }
 0x552   : > { %9258 = vmatpush.bf16.msrb.mxu0 %v11543_v33  ;;  %v12785_v56 = vld [vmem:[%s15713_s13 + $0x70c] sm:$0xf]  ;;  %v10903_v25 = vor.u32 %v12673_v45, %v10900_v7 }
 0x553   : > { %9282 = vmatpush.bf16.msrb.mxu2 %v12119_v57  ;;  %v11348_v38 = vld [vmem:[%s15713_s13 + $0x728] sm:$0xf0]  ;;  %v10650_v57 = vld [vmem:[%s15713_s13 + $0x190] sm:$0xf] }
 0x554   : > { %9241 = vmatpush.bf16.msra.mxu3 %v11415_v8  ;;  %9169 = vmatpush.bf16.msrb.mxu1 %v11731_v20  ;;  %v12953_v42 = vld [vmem:[%s15713_s13 + $0xc4c] sm:$0xf]  ;;  %v11351_v19 = vor.u32 %v12785_v56, %v11348_v38  ;;  %v10651_v8 = vor.u32 %v12614_v11, %v10650_v57  ;;  %v10586_v56 = vld [vmem:[%s15713_s13 + $0x110] sm:$0xf] }
 0x555   : > { %v12020_v49 = vld [vmem:[%s15713_s13 + $0xc68] sm:$0xf0]  ;;  %v12598_v38 = vld [vmem:[%s15713_s13 + $0x12c] sm:$0xf0] }
 0x556   : > { %9259 = vmatpush.bf16.msrb.mxu0 %v11511_v17  ;;  %v12665_v34 = vld [vmem:[%s15713_s13 + $0x34c] sm:$0xf]  ;;  %v12023_v30 = vor.u32 %v12953_v42, %v12020_v49  ;;  %v17637_v7 = vpop.f32.mrf.mxu2  ;;  %v12734_v42 = vld [vmem:[%s15713_s13 + $0x56c] sm:$0xf0] }
 0x557   : > { %9283 = vmatpush.bf16.msrb.mxu2 %v12087_v23  ;;  %v10868_v36 = vld [vmem:[%s15713_s13 + $0x368] sm:$0xf0]  ;;  %9170 = vmatmul.bf16.vlgmr.msrb.gmra.mxu1 %v17392_v14  ;;  %v9004_v23 = vpop.f32.mrf.mxu0 }
 0x558   : > { %9214 = vmatpush.bf16.msra.mxu1 %v10935_v54  ;;  %9242 = vmatpush.bf16.msra.mxu3 %v11383_v18  ;;  %v12777_v60 = vld [vmem:[%s15713_s13 + $0x6cc] sm:$0xf]  ;;  %v10871_v61 = vor.u32 %v12665_v34, %v10868_v36  ;;  %v10619_v18 = vor.u32 %v12606_v4, %v10618_v26  ;;  %v11066_v26 = vld [vmem:[%s15713_s13 + $0x4d0] sm:$0xf] }
 0x559   : > { %v11316_v58 = vld [vmem:[%s15713_s13 + $0x6e8] sm:$0xf0]  ;;  %v12718_v4 = vld [vmem:[%s15713_s13 + $0x4ec] sm:$0xf0] }
 0x55a   : > { %v12945_v22 = vld [vmem:[%s15713_s13 + $0xc0c] sm:$0xf]  ;;  %9260 = vmatpush.bf16.msrb.mxu0 %v11479_v59  ;;  %v11319_v51 = vor.u32 %v12777_v60, %v11316_v58  ;;  %v11131_v60 = vor.u32 %v12734_v42, %v11130_v10  ;;  %v12590_v58 = vld [vmem:[%s15713_s13 + $0xec] sm:$0xf0] }
 0x55b   : > { %9284 = vmatpush.bf16.msrb.mxu2 %v12055_v62  ;;  %v11988_v2 = vld [vmem:[%s15713_s13 + $0xc28] sm:$0xf0]  ;;  %v11163_v62 = vor.u32 %v12742_v21, %v11162_v44  ;;  %v11034_v10 = vld [vmem:[%s15713_s13 + $0x490] sm:$0xf] }
 0x55c   : > { %9215 = vmatpush.bf16.msra.mxu1 %v10903_v25  ;;  %9243 = vmatpush.bf16.msra.mxu3 %v11351_v19  ;;  %v12657_v28 = vld [vmem:[%s15713_s13 + $0x30c] sm:$0xf]  ;;  %v11991_v15 = vor.u32 %v12945_v22, %v11988_v2  ;;  %v10587_v19 = vor.u32 %v12598_v38, %v10586_v56  ;;  %v11098_v22 = vld [vmem:[%s15713_s13 + $0x510] sm:$0xf] }
 0x55d   : > { %v10836_v33 = vld [vmem:[%s15713_s13 + $0x328] sm:$0xf0]  ;;  %9261 = vmatmul.bf16.vlgmr.msrb.gmra.mxu0 %v17231_v24  ;;  %v12726_v2 = vld [vmem:[%s15713_s13 + $0x52c] sm:$0xf0] }
 0x55e   : > { %9305 = vmatpush.bf16.msra.mxu0 %v10683_v46  ;;  %v12769_v55 = vld [vmem:[%s15713_s13 + $0x68c] sm:$0xf]  ;;  %v10839_v20 = vor.u32 %v12657_v28, %v10836_v33  ;;  %v10554_v46 = vld [vmem:[%s15713_s13 + $0xd0] sm:$0xf] }
 0x55f   : > { %9285 = vmatpush.bf16.msrb.mxu2 %v12023_v30  ;;  %v11284_v0 = vld [vmem:[%s15713_s13 + $0x6a8] sm:$0xf0]  ;;  %v17649_v30 = vpop.f32.mrf.mxu0  ;;  %v10522_v33 = vld [vmem:[%s15713_s13 + $0x90] sm:$0xf] }
 0x560   : > { %9216 = vmatpush.bf16.msra.mxu1 %v10871_v61  ;;  %9244 = vmatpush.bf16.msra.mxu3 %v11319_v51  ;;  %v11287_v54 = vor.u32 %v12769_v55, %v11284_v0  ;;  %v12649_v63 = vld [vmem:[%s15713_s13 + $0x2cc] sm:$0xf]  ;;  %v10555_v51 = vor.u32 %v12590_v58, %v10554_v46  ;;  %v12582_v55 = vld [vmem:[%s15713_s13 + $0xac] sm:$0xf0] }
 0x561   : > { %v10804_v17 = vld [vmem:[%s15713_s13 + $0x2e8] sm:$0xf0]  ;;  %v10523_v21 = vor.u32 %v12582_v55, %v10522_v33  ;;  %v12710_v42 = vld [vmem:[%s15713_s13 + $0x4ac] sm:$0xf0] }
 0x562   : > { %9306 = vmatpush.bf16.msra.mxu0 %v10651_v8  ;;  %v12761_v35 = vld [vmem:[%s15713_s13 + $0x64c] sm:$0xf]  ;;  %v10807_v52 = vor.u32 %v12649_v63, %v10804_v17  ;;  %v9030_v8 = vpop.f32.mrf.mxu2  ;;  %v10490_v63 = vld [vmem:[%s15713_s13 + $0x50] sm:$0xf]  ;;  %v11035_v58 = vor.u32 %v12710_v42, %v11034_v10 }
 0x563   : > { %9286 = vmatpush.bf16.msrb.mxu2 %v11991_v15  ;;  %v11252_v45 = vld [vmem:[%s15713_s13 + $0x668] sm:$0xf0]  ;;  %v11099_v15 = vor.u32 %v12726_v2, %v11098_v22  ;;  %v12878_v22 = vld [vmem:[%s15713_s13 + $0x9ec] sm:$0xf0] }
 0x564   : > { %9217 = vmatpush.bf16.msra.mxu1 %v10839_v20  ;;  %9245 = vmatpush.bf16.msra.mxu3 %v11287_v54  ;;  %v11255_v49 = vor.u32 %v12761_v35, %v11252_v45  ;;  %v12641_v25 = vld [vmem:[%s15713_s13 + $0x28c] sm:$0xf]  ;;  %v11067_v45 = vor.u32 %v12718_v4, %v11066_v26  ;;  %v11002_v2 = vld [vmem:[%s15713_s13 + $0x450] sm:$0xf] }
 0x565   : > { %v10772_v59 = vld [vmem:[%s15713_s13 + $0x2a8] sm:$0xf0]  ;;  %v10970_v26 = vld [vmem:[%s15713_s13 + $0x410] sm:$0xf] }
 0x566   : > { %9287 = vmatmul.bf16.vlgmr.msrb.gmra.mxu2 %v17257_v53  ;;  %9307 = vmatpush.bf16.msra.mxu0 %v10619_v18  ;;  %v12753_v34 = vld [vmem:[%s15713_s13 + $0x60c] sm:$0xf]  ;;  %v10775_v11 = vor.u32 %v12641_v25, %v10772_v59  ;;  %v10458_v25 = vld [vmem:[%s15713_s13 + $0x10] sm:$0xf] }
 0x567   : > { %9331 = vmatpush.bf16.msra.mxu2 %v11195_v32  ;;  %v11220_v36 = vld [vmem:[%s15713_s13 + $0x628] sm:$0xf0]  ;;  %v9056_v35 = vpop.f32.mrf.mxu0  ;;  %v12694_v4 = vld [vmem:[%s15713_s13 + $0x42c] sm:$0xf0] }
 0x568   : > { %v13065_v57 = vld [vmem:[%s15713_s13 + $0xfcc] sm:$0xf]  ;;  %9218 = vmatpush.bf16.msra.mxu1 %v10807_v52  ;;  %9246 = vmatpush.bf16.msra.mxu3 %v11255_v49  ;;  %v11223_v61 = vor.u32 %v12753_v34, %v11220_v36  ;;  %v12566_v34 = vld [vmem:[%s15713_s13 + $0x2c] sm:$0xf0] }
 0x569   : > { %v12468_v16 = vld [vmem:[%s15713_s13 + $0xfe8] sm:$0xf0]  ;;  %v11642_v10 = vld [vmem:[%s15713_s13 + $0x950] sm:$0xf] }
 0x56a   : > { %v12633_v43 = vld [vmem:[%s15713_s13 + $0x24c] sm:$0xf]  ;;  %9308 = vmatpush.bf16.msra.mxu0 %v10587_v19  ;;  %v12471_v28 = vor.u32 %v13065_v57, %v12468_v16  ;;  %v12862_v42 = vld [vmem:[%s15713_s13 + $0x96c] sm:$0xf0] }
 0x56b   : > { %9332 = vmatpush.bf16.msra.mxu2 %v11163_v62  ;;  %v10740_v3 = vld [vmem:[%s15713_s13 + $0x268] sm:$0xf0]  ;;  %v12574_v62 = vld [vmem:[%s15713_s13 + $0x6c] sm:$0xf0] }
 0x56c   : > { %v13057_v0 = vld [vmem:[%s15713_s13 + $0xf8c] sm:$0xf]  ;;  %9219 = vmatpush.bf16.msra.mxu1 %v10775_v11  ;;  %v10743_v32 = vor.u32 %v12633_v43, %v10740_v3  ;;  %9247 = vmatpush.bf16.msra.mxu3 %v11223_v61  ;;  %v10491_v59 = vor.u32 %v12574_v62, %v10490_v63  ;;  %v11706_v11 = vld [vmem:[%s15713_s13 + $0x9d0] sm:$0xf]  ;;  %v10459_v3 = vor.u32 %v12566_v34, %v10458_v25 }
 0x56d   : > { %v12436_v23 = vld [vmem:[%s15713_s13 + $0xfa8] sm:$0xf0]  ;;  %v12702_v61 = vld [vmem:[%s15713_s13 + $0x46c] sm:$0xf0]  ;;  %v11707_v8 = vor.u32 %v12878_v22, %v11706_v11  ;;  %v10971_v62 = vor.u32 %v12694_v4, %v10970_v26 }
 0x56e   : > { %v12625_v20 = vld [vmem:[%s15713_s13 + $0x20c] sm:$0xf]  ;;  %9309 = vmatpush.bf16.msra.mxu0 %v10555_v51  ;;  %v12439_v54 = vor.u32 %v13057_v0, %v12436_v23  ;;  %v11674_v23 = vld [vmem:[%s15713_s13 + $0x990] sm:$0xf] }
 0x56f   : > { %9333 = vmatpush.bf16.msra.mxu2 %v11131_v60  ;;  %v10708_v44 = vld [vmem:[%s15713_s13 + $0x228] sm:$0xf0]  ;;  %9248 = vmatmul.bf16.vlgmr.msra.gmra.mxu3 %v16341_v48  ;;  %v17679_v60 = vpop.f32.mrf.mxu2 }
 0x570   : > { %9292 = vmatpush.bf16.msrb.mxu3 %v12471_v28  ;;  %v12937_v17 = vld [vmem:[%s15713_s13 + $0xbcc] sm:$0xf]  ;;  %9220 = vmatpush.bf16.msra.mxu1 %v10743_v32  ;;  %v10711_v52 = vor.u32 %v12625_v20, %v10708_v44  ;;  %v12870_v32 = vld [vmem:[%s15713_s13 + $0x9ac] sm:$0xf0] }
 0x571   : > { %v11956_v18 = vld [vmem:[%s15713_s13 + $0xbe8] sm:$0xf0]  ;;  %v12218_v44 = vld [vmem:[%s15713_s13 + $0xdd0] sm:$0xf] }
 0x572   : > { %v13049_v56 = vld [vmem:[%s15713_s13 + $0xf4c] sm:$0xf]  ;;  %v11959_v49 = vor.u32 %v12937_v17, %v11956_v18  ;;  %9310 = vmatpush.bf16.msra.mxu0 %v10523_v21  ;;  %v13006_v21 = vld [vmem:[%s15713_s13 + $0xdec] sm:$0xf0]  ;;  %v8989_v18 = vpop.f32.mrf.mxu3 }
 0x573   : > { %9334 = vmatpush.bf16.msra.mxu2 %v11099_v15  ;;  %v12404_v38 = vld [vmem:[%s15713_s13 + $0xf68] sm:$0xf0]  ;;  %v11003_v15 = vor.u32 %v12702_v61, %v11002_v2  ;;  %v11610_v61 = vld [vmem:[%s15713_s13 + $0x910] sm:$0xf] }
 0x574   : > { %9293 = vmatpush.bf16.msrb.mxu3 %v12439_v54  ;;  %v12407_v19 = vor.u32 %v13049_v56, %v12404_v38  ;;  %v12929_v36 = vld [vmem:[%s15713_s13 + $0xb8c] sm:$0xf]  ;;  %9221 = vmatpush.bf16.msra.mxu1 %v10711_v52  ;;  %v12219_v52 = vor.u32 %v13006_v21, %v12218_v44  ;;  %v11450_v44 = vld [vmem:[%s15713_s13 + $0x7d0] sm:$0xf] }
 0x575   : > { %v11924_v46 = vld [vmem:[%s15713_s13 + $0xba8] sm:$0xf0]  ;;  %v12814_v21 = vld [vmem:[%s15713_s13 + $0x7ec] sm:$0xf0] }
 0x576   : > { %v13041_v57 = vld [vmem:[%s15713_s13 + $0xf0c] sm:$0xf]  ;;  %v11927_v43 = vor.u32 %v12929_v36, %v11924_v46  ;;  %9311 = vmatpush.bf16.msra.mxu0 %v10491_v59  ;;  %v12186_v59 = vld [vmem:[%s15713_s13 + $0xd90] sm:$0xf] }
 0x577   : > { %9335 = vmatpush.bf16.msra.mxu2 %v11067_v45  ;;  %v12372_v16 = vld [vmem:[%s15713_s13 + $0xf28] sm:$0xf0]  ;;  %9222 = vmatmul.bf16.vlgmr.msra.gmra.mxu1 %v16400_v1  ;;  %v9082_v35 = vpop.f32.mrf.mxu2  ;;  %v11675_v45 = vor.u32 %v12870_v32, %v11674_v23  ;;  %v11578_v32 = vld [vmem:[%s15713_s13 + $0x8d0] sm:$0xf] }
 0x578   : > { %9266 = vmatpush.bf16.msrb.mxu1 %v11959_v49  ;;  %9294 = vmatpush.bf16.msrb.mxu3 %v12407_v19  ;;  %v12375_v51 = vor.u32 %v13041_v57, %v12372_v16  ;;  %v12921_v28 = vld [vmem:[%s15713_s13 + $0xb4c] sm:$0xf]  ;;  %v8963_v49 = vpop.f32.mrf.mxu1  ;;  %v12998_v19 = vld [vmem:[%s15713_s13 + $0xdac] sm:$0xf0]  ;;  %v11643_v57 = vor.u32 %v12862_v42, %v11642_v10 }
 0x579   : > { %v11892_v33 = vld [vmem:[%s15713_s13 + $0xb68] sm:$0xf0]  ;;  %v8964_v34 = vadd.f32 %v8963_v49, %v17568_v13  ;;  %v12187_v2 = vor.u32 %v12998_v19, %v12186_v59  ;;  %v12854_v13 = vld [vmem:[%s15713_s13 + $0x92c] sm:$0xf0] }
 0x57a   : > { %v13033_v55 = vld [vmem:[%s15713_s13 + $0xecc] sm:$0xf]  ;;  %v11895_v20 = vor.u32 %v12921_v28, %v11892_v33  ;;  %9312 = vmatpush.bf16.msra.mxu0 %v10459_v3  ;;  %v12154_v3 = vld [vmem:[%s15713_s13 + $0xd50] sm:$0xf]  ;;  %v17725_v26 = vpop.f32.mrf.mxu0 }
 0x57b   : > { %9336 = vmatpush.bf16.msra.mxu2 %v11035_v58  ;;  %v12340_v0 = vld [vmem:[%s15713_s13 + $0xee8] sm:$0xf0]  ;;  %v8977_v22 = vadd.f32 %v17597_v50, %v8964_v34  ;;  %v12838_v42 = vld [vmem:[%s15713_s13 + $0x8ac] sm:$0xf0] }
 0x57c   : > { %9267 = vmatpush.bf16.msrb.mxu1 %v11927_v43  ;;  %9295 = vmatpush.bf16.msrb.mxu3 %v12375_v51  ;;  %v12343_v54 = vor.u32 %v13033_v55, %v12340_v0  ;;  %v12913_v63 = vld [vmem:[%s15713_s13 + $0xb0c] sm:$0xf]  ;;  %v12990_v51 = vld [vmem:[%s15713_s13 + $0xd6c] sm:$0xf0]  ;;  %v11611_v55 = vor.u32 %v12854_v13, %v11610_v61 }
 0x57d   : > { %v11860_v17 = vld [vmem:[%s15713_s13 + $0xb28] sm:$0xf0]  ;;  %9313 = vmatmul.bf16.vlgmr.msra.gmra.mxu0 %v16297_v9  ;;  %v17717_v28 = vadd.f32 %v8989_v18, %v8977_v22  ;;  %v12155_v4 = vor.u32 %v12990_v51, %v12154_v3  ;;  %v12982_v18 = vld [vmem:[%s15713_s13 + $0xd2c] sm:$0xf0] }
 0x57e   : > { %9357 = vmatpush.bf16.msrb.mxu0 %v11707_v8  ;;  %v13025_v56 = vld [vmem:[%s15713_s13 + $0xe8c] sm:$0xf]  ;;  %v11863_v25 = vor.u32 %v12913_v63, %v11860_v17  ;;  %v12122_v17 = vld [vmem:[%s15713_s13 + $0xd10] sm:$0xf] }
 0x57f   : > { %9337 = vmatpush.bf16.msra.mxu2 %v11003_v15  ;;  %v12308_v38 = vld [vmem:[%s15713_s13 + $0xea8] sm:$0xf0]  ;;  %v8991_v15 = vpop.f32.mrf.mxu3  ;;  %v12123_v10 = vor.u32 %v12982_v18, %v12122_v17  ;;  %v11418_v49 = vld [vmem:[%s15713_s13 + $0x790] sm:$0xf] }
 0x580   : > { %9268 = vmatpush.bf16.msrb.mxu1 %v11895_v20  ;;  %9296 = vmatpush.bf16.msrb.mxu3 %v12343_v54  ;;  %v12311_v36 = vor.u32 %v13025_v56, %v12308_v38  ;;  %v12905_v46 = vld [vmem:[%s15713_s13 + $0xacc] sm:$0xf]  ;;  %v12846_v20 = vld [vmem:[%s15713_s13 + $0x8ec] sm:$0xf0]  ;;  %v8965_v54 = vpop.f32.mrf.mxu1  ;;  %v11451_v38 = vor.u32 %v12814_v21, %v11450_v44 }
 0x581   : > { %v11828_v58 = vld [vmem:[%s15713_s13 + $0xae8] sm:$0xf0]  ;;  %v11579_v56 = vor.u32 %v12846_v20, %v11578_v32  ;;  %v12090_v19 = vld [vmem:[%s15713_s13 + $0xcd0] sm:$0xf] }
 0x582   : > { %9358 = vmatpush.bf16.msrb.mxu0 %v11675_v45  ;;  %v13017_v16 = vld [vmem:[%s15713_s13 + $0xe4c] sm:$0xf]  ;;  %v11831_v43 = vor.u32 %v12905_v46, %v11828_v58  ;;  %v12974_v34 = vld [vmem:[%s15713_s13 + $0xcec] sm:$0xf0]  ;;  %v9108_v61 = vpop.f32.mrf.mxu0 }
 0x583   : > { %9338 = vmatpush.bf16.msra.mxu2 %v10971_v62  ;;  %v12276_v11 = vld [vmem:[%s15713_s13 + $0xe68] sm:$0xf0]  ;;  %v10938_v22 = vld [vmem:[%s15713_s13 + $0x3d0] sm:$0xf]  ;;  %v12091_v13 = vor.u32 %v12974_v34, %v12090_v19  ;;  %v12746_v61 = vld [vmem:[%s15713_s13 + $0x5d4] sm:$0xf] }
 0x584   : > { %9269 = vmatpush.bf16.msrb.mxu1 %v11863_v25  ;;  %9297 = vmatpush.bf16.msrb.mxu3 %v12311_v36  ;;  %v12279_v50 = vor.u32 %v13017_v16, %v12276_v11  ;;  %v12897_v33 = vld [vmem:[%s15713_s13 + $0xa8c] sm:$0xf]  ;;  %v12806_v25 = vld [vmem:[%s15713_s13 + $0x7ac] sm:$0xf0] }
 0x585   : > { %v11796_v8 = vld [vmem:[%s15713_s13 + $0xaa8] sm:$0xf0]  ;;  %v11419_v16 = vor.u32 %v12806_v25, %v11418_v49  ;;  %v11514_v11 = vld [vmem:[%s15713_s13 + $0x850] sm:$0xf] }
 0x586   : > { %9339 = vmatmul.bf16.vlgmr.msra.gmra.mxu2 %v16122_v39  ;;  %9359 = vmatpush.bf16.msrb.mxu0 %v11643_v57  ;;  %v13009_v0 = vld [vmem:[%s15713_s13 + $0xe0c] sm:$0xf]  ;;  %v11799_v63 = vor.u32 %v12897_v33, %v11796_v8  ;;  %v11386_v3 = vld [vmem:[%s15713_s13 + $0x750] sm:$0xf] }
 0x587   : > { %9383 = vmatpush.bf16.msrb.mxu2 %v12219_v52  ;;  %v12244_v23 = vld [vmem:[%s15713_s13 + $0xe28] sm:$0xf0]  ;;  %v11546_v52 = vld [vmem:[%s15713_s13 + $0x890] sm:$0xf]  ;;  %v9041_v58 = vpop.f32.mrf.mxu3 }
 0x588   : > { %9270 = vmatpush.bf16.msrb.mxu1 %v11831_v43  ;;  %9298 = vmatpush.bf16.msrb.mxu3 %v12279_v50  ;;  %v12247_v35 = vor.u32 %v13009_v0, %v12244_v23  ;;  %v12889_v45 = vld [vmem:[%s15713_s13 + $0xa4c] sm:$0xf]  ;;  %v11547_v57 = vor.u32 %v12838_v42, %v11546_v52  ;;  %v12830_v43 = vld [vmem:[%s15713_s13 + $0x86c] sm:$0xf0]  ;;  %v9015_v50 = vpop.f32.mrf.mxu1 }
 0x589   : > { %v11764_v62 = vld [vmem:[%s15713_s13 + $0xa68] sm:$0xf0]  ;;  %v12798_v51 = vld [vmem:[%s15713_s13 + $0x76c] sm:$0xf0]  ;;  %v11515_v32 = vor.u32 %v12830_v43, %v11514_v11 }
 0x58a   : > { %9360 = vmatpush.bf16.msrb.mxu0 %v11611_v55  ;;  %v11767_v59 = vor.u32 %v12889_v45, %v11764_v62  ;;  %v12881_v36 = vld [vmem:[%s15713_s13 + $0xa0c] sm:$0xf]  ;;  %v12058_v8 = vld [vmem:[%s15713_s13 + $0xc90] sm:$0xf]  ;;  %v9016_v55 = vadd.f32 %v9015_v50, %v17608_v37  ;;  %v12618_v37 = vld [vmem:[%s15713_s13 + $0x1d4] sm:$0xf] }
 0x58b   : > { %9384 = vmatpush.bf16.msrb.mxu2 %v12187_v2  ;;  %v11732_v46 = vld [vmem:[%s15713_s13 + $0xa28] sm:$0xf0]  ;;  %v12686_v2 = vld [vmem:[%s15713_s13 + $0x3ec] sm:$0xf0]  ;;  %v10684_v45 = vld [vmem:[%s15713_s13 + $0x1f0] sm:$0xf0] }
 0x58c   : > { %9271 = vmatpush.bf16.msrb.mxu1 %v11799_v63  ;;  %9299 = vmatpush.bf16.msrb.mxu3 %v12247_v35  ;;  %v11735_v33 = vor.u32 %v12881_v36, %v11732_v46  ;;  %v12966_v15 = vld [vmem:[%s15713_s13 + $0xcac] sm:$0xf0]  ;;  %v10939_v0 = vor.u32 %v12686_v2, %v10938_v22  ;;  %v9029_v54 = vadd.f32 %v17637_v7, %v9016_v55  ;;  %v17760_v35 = vpop.f32.mrf.mxu2  ;;  %v12610_v46 = vld [vmem:[%s15713_s13 + $0x194] sm:$0xf] }
 0x58d   : > { %v11482_v23 = vld [vmem:[%s15713_s13 + $0x810] sm:$0xf]  ;;  %v12059_v63 = vor.u32 %v12966_v15, %v12058_v8 }
 0x58e   : > { %9361 = vmatpush.bf16.msrb.mxu0 %v11579_v56  ;;  %v12822_v20 = vld [vmem:[%s15713_s13 + $0x82c] sm:$0xf0]  ;;  %v9042_v52 = vadd.f32 %v9041_v58, %v9029_v54 }
 0x58f   : > { %9385 = vmatpush.bf16.msrb.mxu2 %v12155_v4  ;;  %9300 = vmatmul.bf16.vlgmr.msrb.gmra.mxu3 %v17362_v6  ;;  %v11387_v4 = vor.u32 %v12798_v51, %v11386_v3  ;;  %v10906_v44 = vld [vmem:[%s15713_s13 + $0x390] sm:$0xf]  ;;  %v9043_v7 = vpop.f32.mrf.mxu3 }
 0x590   : > { %9344 = vmatpush.bf16.msra.mxu3 %v11451_v38  ;;  %9272 = vmatpush.bf16.msrb.mxu1 %v11767_v59  ;;  %v12678_v21 = vld [vmem:[%s15713_s13 + $0x3ac] sm:$0xf0]  ;;  %v10687_v59 = vor.u32 %v12618_v37, %v10684_v45  ;;  %v9055_v58 = vadd.f32 %v17649_v30, %v9042_v52 }
 0x591   : > { %v11354_v17 = vld [vmem:[%s15713_s13 + $0x710] sm:$0xf]  ;;  %v10907_v38 = vor.u32 %v12678_v21, %v10906_v44 }
 0x592   : > { %9362 = vmatpush.bf16.msrb.mxu0 %v11547_v57  ;;  %v12790_v18 = vld [vmem:[%s15713_s13 + $0x72c] sm:$0xf0]  ;;  %v9017_v57 = vpop.f32.mrf.mxu1 }
 0x593   : > { %9386 = vmatpush.bf16.msrb.mxu2 %v12123_v10  ;;  %v12026_v62 = vld [vmem:[%s15713_s13 + $0xc50] sm:$0xf]  ;;  %v11483_v10 = vor.u32 %v12822_v20, %v11482_v23  ;;  %v11355_v42 = vor.u32 %v12790_v18, %v11354_v17  ;;  %v10620_v23 = vld [vmem:[%s15713_s13 + $0x170] sm:$0xf0] }
 0x594   : > { %9345 = vmatpush.bf16.msra.mxu3 %v11419_v16  ;;  %9273 = vmatpush.bf16.msrb.mxu1 %v11735_v33  ;;  %v12958_v56 = vld [vmem:[%s15713_s13 + $0xc6c] sm:$0xf0]  ;;  %v10652_v16 = vld [vmem:[%s15713_s13 + $0x1b0] sm:$0xf0]  ;;  %v9134_v15 = vpop.f32.mrf.mxu2 }
 0x595   : > { %v10874_v49 = vld [vmem:[%s15713_s13 + $0x350] sm:$0xf]  ;;  %v12027_v19 = vor.u32 %v12958_v56, %v12026_v62  ;;  %v10655_v30 = vor.u32 %v12610_v46, %v10652_v16  ;;  %v11164_v20 = vld [vmem:[%s15713_s13 + $0x5b0] sm:$0xf0] }
 0x596   : > { %9363 = vmatpush.bf16.msrb.mxu0 %v11515_v32  ;;  %v12670_v25 = vld [vmem:[%s15713_s13 + $0x36c] sm:$0xf0]  ;;  %v12594_v56 = vld [vmem:[%s15713_s13 + $0x114] sm:$0xf] }
 0x597   : > { %9387 = vmatpush.bf16.msrb.mxu2 %v12091_v13  ;;  %9274 = vmatmul.bf16.vlgmr.msrb.gmra.mxu1 %v17392_v14  ;;  %v11322_v34 = vld [vmem:[%s15713_s13 + $0x6d0] sm:$0xf]  ;;  %v10875_v2 = vor.u32 %v12670_v25, %v10874_v49  ;;  %v11196_v13 = vld [vmem:[%s15713_s13 + $0x5f0] sm:$0xf0]  ;;  %v9093_v44 = vpop.f32.mrf.mxu3 }
 0x598   : > { %9318 = vmatpush.bf16.msra.mxu1 %v10939_v0  ;;  %9346 = vmatpush.bf16.msra.mxu3 %v11387_v4  ;;  %v12782_v36 = vld [vmem:[%s15713_s13 + $0x6ec] sm:$0xf0]  ;;  %v11199_v55 = vor.u32 %v12746_v61, %v11196_v13  ;;  %v12602_v0 = vld [vmem:[%s15713_s13 + $0x154] sm:$0xf] }
 0x599   : > { %v11994_v11 = vld [vmem:[%s15713_s13 + $0xc10] sm:$0xf]  ;;  %v11323_v43 = vor.u32 %v12782_v36, %v11322_v34  ;;  %v12738_v4 = vld [vmem:[%s15713_s13 + $0x594] sm:$0xf]  ;;  %v10623_v17 = vor.u32 %v12602_v0, %v10620_v23 }
 0x59a   : > { %v12950_v22 = vld [vmem:[%s15713_s13 + $0xc2c] sm:$0xf0]  ;;  %9364 = vmatpush.bf16.msrb.mxu0 %v11483_v10  ;;  %v9067_v45 = vpop.f32.mrf.mxu1  ;;  %v11167_v62 = vor.u32 %v12738_v4, %v11164_v20  ;;  %v12730_v10 = vld [vmem:[%s15713_s13 + $0x554] sm:$0xf]  ;;  %v17804_v61 = vpop.f32.mrf.mxu0 }
 0x59b   : > { %9388 = vmatpush.bf16.msrb.mxu2 %v12059_v63  ;;  %v10842_v3 = vld [vmem:[%s15713_s13 + $0x310] sm:$0xf]  ;;  %v11995_v50 = vor.u32 %v12950_v22, %v11994_v11  ;;  %v9068_v52 = vadd.f32 %v9067_v45, %v9055_v58  ;;  %v12586_v58 = vld [vmem:[%s15713_s13 + $0xd4] sm:$0xf] }
 0x59c   : > { %9319 = vmatpush.bf16.msra.mxu1 %v10907_v38  ;;  %9347 = vmatpush.bf16.msra.mxu3 %v11355_v42  ;;  %v12662_v51 = vld [vmem:[%s15713_s13 + $0x32c] sm:$0xf0]  ;;  %v10588_v38 = vld [vmem:[%s15713_s13 + $0x130] sm:$0xf0] }
 0x59d   : > { %v11290_v33 = vld [vmem:[%s15713_s13 + $0x690] sm:$0xf]  ;;  %9365 = vmatmul.bf16.vlgmr.msrb.gmra.mxu0 %v17231_v24  ;;  %v10843_v32 = vor.u32 %v12662_v51, %v10842_v3  ;;  %v11132_v42 = vld [vmem:[%s15713_s13 + $0x570] sm:$0xf0]  ;;  %v10591_v34 = vor.u32 %v12594_v56, %v10588_v38 }
 0x59e   : > { %9409 = vmatpush.bf16.msra.mxu0 %v10687_v59  ;;  %v12774_v8 = vld [vmem:[%s15713_s13 + $0x6ac] sm:$0xf0]  ;;  %v11135_v57 = vor.u32 %v12730_v10, %v11132_v42  ;;  %v10556_v16 = vld [vmem:[%s15713_s13 + $0xf0] sm:$0xf0] }
 0x59f   : > { %9389 = vmatpush.bf16.msrb.mxu2 %v12027_v19  ;;  %v11291_v21 = vor.u32 %v12774_v8, %v11290_v33  ;;  %v10810_v54 = vld [vmem:[%s15713_s13 + $0x2d0] sm:$0xf]  ;;  %v9081_v19 = vadd.f32 %v17679_v60, %v9068_v52  ;;  %v12722_v60 = vld [vmem:[%s15713_s13 + $0x514] sm:$0xf]  ;;  %v9095_v3 = vpop.f32.mrf.mxu3  ;;  %v10559_v8 = vor.u32 %v12586_v58, %v10556_v16 }
 0x5a0   : > { %9320 = vmatpush.bf16.msra.mxu1 %v10875_v2  ;;  %9348 = vmatpush.bf16.msra.mxu3 %v11323_v43  ;;  %v12654_v63 = vld [vmem:[%s15713_s13 + $0x2ec] sm:$0xf0]  ;;  %v11100_v43 = vld [vmem:[%s15713_s13 + $0x530] sm:$0xf0] }
 0x5a1   : > { %v11258_v18 = vld [vmem:[%s15713_s13 + $0x650] sm:$0xf]  ;;  %v10811_v7 = vor.u32 %v12654_v63, %v10810_v54  ;;  %v9094_v2 = vadd.f32 %v9093_v44, %v9081_v19  ;;  %v11103_v23 = vor.u32 %v12722_v60, %v11100_v43  ;;  %v12714_v54 = vld [vmem:[%s15713_s13 + $0x4d4] sm:$0xf] }
 0x5a2   : > { %9410 = vmatpush.bf16.msra.mxu0 %v10655_v30  ;;  %v12766_v37 = vld [vmem:[%s15713_s13 + $0x66c] sm:$0xf0]  ;;  %v9069_v0 = vpop.f32.mrf.mxu1  ;;  %v11068_v63 = vld [vmem:[%s15713_s13 + $0x4f0] sm:$0xf0]  ;;  %v9160_v42 = vpop.f32.mrf.mxu0 }
 0x5a3   : > { %9390 = vmatpush.bf16.msrb.mxu2 %v11995_v50  ;;  %v11259_v49 = vor.u32 %v12766_v37, %v11258_v18  ;;  %v10778_v25 = vld [vmem:[%s15713_s13 + $0x290] sm:$0xf]  ;;  %v9729_v33 = vrot.slane %v9094_v2, 6  ;;  %v11071_v38 = vor.u32 %v12714_v54, %v11068_v63  ;;  %v10492_v52 = vld [vmem:[%s15713_s13 + $0x70] sm:$0xf0] }
 0x5a4   : > { %9321 = vmatpush.bf16.msra.mxu1 %v10843_v32  ;;  %9349 = vmatpush.bf16.msra.mxu3 %v11291_v21  ;;  %v12646_v59 = vld [vmem:[%s15713_s13 + $0x2ac] sm:$0xf0]  ;;  %v10524_v32 = vld [vmem:[%s15713_s13 + $0xb0] sm:$0xf0] }
 0x5a5   : > { %v11226_v36 = vld [vmem:[%s15713_s13 + $0x610] sm:$0xf]  ;;  %v10779_v13 = vor.u32 %v12646_v59, %v10778_v25  ;;  %v17816_v44 = vsel %vm9735_vm7, %v17717_v28, %v9729_v33  ;;  %v12706_v25 = vld [vmem:[%s15713_s13 + $0x494] sm:$0xf] }
 0x5a6   : > { %9391 = vmatmul.bf16.vlgmr.msrb.gmra.mxu2 %v17257_v53  ;;  %9411 = vmatpush.bf16.msra.mxu0 %v10623_v17  ;;  %v12758_v46 = vld [vmem:[%s15713_s13 + $0x62c] sm:$0xf0]  ;;  %v11036_v59 = vld [vmem:[%s15713_s13 + $0x4b0] sm:$0xf0] }
 0x5a7   : > { %9435 = vmatpush.bf16.msra.mxu2 %v11199_v55  ;;  %v12474_v11 = vld [vmem:[%s15713_s13 + $0xfd0] sm:$0xf]  ;;  %v11227_v51 = vor.u32 %v12758_v46, %v11226_v36  ;;  %v12578_v55 = vld [vmem:[%s15713_s13 + $0x94] sm:$0xf] }
 0x5a8   : > { %v13070_v22 = vld [vmem:[%s15713_s13 + $0xfec] sm:$0xf0]  ;;  %9322 = vmatpush.bf16.msra.mxu1 %v10811_v7  ;;  %9350 = vmatpush.bf16.msra.mxu3 %v11259_v49  ;;  %v10527_v37 = vor.u32 %v12578_v55, %v10524_v32  ;;  %v10460_v58 = vld [vmem:[%s15713_s13 + $0x30] sm:$0xf0] }
 0x5a9   : > { %v10746_v30 = vld [vmem:[%s15713_s13 + $0x250] sm:$0xf]  ;;  %v12475_v15 = vor.u32 %v13070_v22, %v12474_v11  ;;  %v11039_v11 = vor.u32 %v12706_v25, %v11036_v59  ;;  %v17838_v60 = vpop.f32.mrf.mxu2  ;;  %v11708_v43 = vld [vmem:[%s15713_s13 + $0x9f0] sm:$0xf0] }
 0x5aa   : > { %v12638_v50 = vld [vmem:[%s15713_s13 + $0x26c] sm:$0xf0]  ;;  %9412 = vmatpush.bf16.msra.mxu0 %v10591_v34  ;;  %v12562_v34 = vld [vmem:[%s15713_s13 + $0x14] sm:$0xf] }
 0x5ab   : > { %9436 = vmatpush.bf16.msra.mxu2 %v11167_v62  ;;  %v12442_v4 = vld [vmem:[%s15713_s13 + $0xf90] sm:$0xf]  ;;  %v10747_v21 = vor.u32 %v12638_v50, %v10746_v30  ;;  %v12570_v62 = vld [vmem:[%s15713_s13 + $0x54] sm:$0xf]  ;;  %v10463_v50 = vor.u32 %v12562_v34, %v10460_v58 }
 0x5ac   : > { %v13062_v20 = vld [vmem:[%s15713_s13 + $0xfac] sm:$0xf0]  ;;  %9323 = vmatpush.bf16.msra.mxu1 %v10779_v13  ;;  %9351 = vmatpush.bf16.msra.mxu3 %v11227_v51  ;;  %v10495_v36 = vor.u32 %v12570_v62, %v10492_v52  ;;  %v12874_v13 = vld [vmem:[%s15713_s13 + $0x9d4] sm:$0xf] }
 0x5ad   : > { %v10714_v17 = vld [vmem:[%s15713_s13 + $0x210] sm:$0xf]  ;;  %v12443_v45 = vor.u32 %v13062_v20, %v12442_v4  ;;  %v12698_v3 = vld [vmem:[%s15713_s13 + $0x454] sm:$0xf]  ;;  %v11711_v55 = vor.u32 %v12874_v13, %v11708_v43 }
 0x5ae   : > { %v12630_v18 = vld [vmem:[%s15713_s13 + $0x22c] sm:$0xf0]  ;;  %9413 = vmatpush.bf16.msra.mxu0 %v10559_v8  ;;  %v11004_v51 = vld [vmem:[%s15713_s13 + $0x470] sm:$0xf0] }
 0x5af   : > { %9437 = vmatpush.bf16.msra.mxu2 %v11135_v57  ;;  %v11962_v28 = vld [vmem:[%s15713_s13 + $0xbd0] sm:$0xf]  ;;  %9352 = vmatmul.bf16.vlgmr.msra.gmra.mxu3 %v16341_v48  ;;  %v10715_v49 = vor.u32 %v12630_v18, %v10714_v17  ;;  %v11007_v0 = vor.u32 %v12698_v3, %v11004_v51  ;;  %v12866_v4 = vld [vmem:[%s15713_s13 + $0x994] sm:$0xf] }
 0x5b0   : > { %9396 = vmatpush.bf16.msrb.mxu3 %v12475_v15  ;;  %v12942_v56 = vld [vmem:[%s15713_s13 + $0xbec] sm:$0xf0]  ;;  %9324 = vmatpush.bf16.msra.mxu1 %v10747_v21  ;;  %v11676_v20 = vld [vmem:[%s15713_s13 + $0x9b0] sm:$0xf0] }
 0x5b1   : > { %v12410_v7 = vld [vmem:[%s15713_s13 + $0xf50] sm:$0xf]  ;;  %v11963_v19 = vor.u32 %v12942_v56, %v11962_v28  ;;  %v12690_v21 = vld [vmem:[%s15713_s13 + $0x414] sm:$0xf]  ;;  %v11679_v28 = vor.u32 %v12866_v4, %v11676_v20 }
 0x5b2   : > { %v13054_v10 = vld [vmem:[%s15713_s13 + $0xf6c] sm:$0xf0]  ;;  %9414 = vmatpush.bf16.msra.mxu0 %v10527_v37  ;;  %v10972_v54 = vld [vmem:[%s15713_s13 + $0x430] sm:$0xf0]  ;;  %v17865_v58 = vpop.f32.mrf.mxu3 }
 0x5b3   : > { %9438 = vmatpush.bf16.msra.mxu2 %v11103_v23  ;;  %v12411_v46 = vor.u32 %v13054_v10, %v12410_v7  ;;  %v11930_v57 = vld [vmem:[%s15713_s13 + $0xb90] sm:$0xf]  ;;  %v13002_v17 = vld [vmem:[%s15713_s13 + $0xdd4] sm:$0xf]  ;;  %v10975_v56 = vor.u32 %v12690_v21, %v10972_v54  ;;  %v9186_v7 = vpop.f32.mrf.mxu2 }
 0x5b4   : > { %9397 = vmatpush.bf16.msrb.mxu3 %v12443_v45  ;;  %v12934_v16 = vld [vmem:[%s15713_s13 + $0xbac] sm:$0xf0]  ;;  %9325 = vmatpush.bf16.msra.mxu1 %v10715_v49  ;;  %v12220_v18 = vld [vmem:[%s15713_s13 + $0xdf0] sm:$0xf0] }
 0x5b5   : > { %v12378_v22 = vld [vmem:[%s15713_s13 + $0xf10] sm:$0xf]  ;;  %v11931_v30 = vor.u32 %v12934_v16, %v11930_v57  ;;  %v12223_v10 = vor.u32 %v13002_v17, %v12220_v18  ;;  %v12858_v42 = vld [vmem:[%s15713_s13 + $0x954] sm:$0xf] }
 0x5b6   : > { %v13046_v2 = vld [vmem:[%s15713_s13 + $0xf2c] sm:$0xf0]  ;;  %9415 = vmatpush.bf16.msra.mxu0 %v10495_v36  ;;  %v11644_v49 = vld [vmem:[%s15713_s13 + $0x970] sm:$0xf0] }
 0x5b7   : > { %9439 = vmatpush.bf16.msra.mxu2 %v11071_v38  ;;  %v12379_v33 = vor.u32 %v13046_v2, %v12378_v22  ;;  %v11898_v8 = vld [vmem:[%s15713_s13 + $0xb50] sm:$0xf]  ;;  %9326 = vmatmul.bf16.vlgmr.msra.gmra.mxu1 %v16400_v1  ;;  %v12994_v59 = vld [vmem:[%s15713_s13 + $0xd94] sm:$0xf]  ;;  %v11647_v57 = vor.u32 %v12858_v42, %v11644_v49  ;;  %v17869_v22 = vpop.f32.mrf.mxu1 }
 0x5b8   : > { %9370 = vmatpush.bf16.msrb.mxu1 %v11963_v19  ;;  %9398 = vmatpush.bf16.msrb.mxu3 %v12411_v46  ;;  %v12926_v15 = vld [vmem:[%s15713_s13 + $0xb6c] sm:$0xf0]  ;;  %v12188_v19 = vld [vmem:[%s15713_s13 + $0xdb0] sm:$0xf0] }
 0x5b9   : > { %v12346_v23 = vld [vmem:[%s15713_s13 + $0xed0] sm:$0xf]  ;;  %v11899_v63 = vor.u32 %v12926_v15, %v11898_v8  ;;  %v12191_v2 = vor.u32 %v12994_v59, %v12188_v19  ;;  %v12850_v13 = vld [vmem:[%s15713_s13 + $0x914] sm:$0xf] }
 0x5ba   : > { %v13038_v32 = vld [vmem:[%s15713_s13 + $0xeec] sm:$0xf0]  ;;  %9416 = vmatpush.bf16.msra.mxu0 %v10463_v50  ;;  %v11612_v43 = vld [vmem:[%s15713_s13 + $0x930] sm:$0xf0]  ;;  %v17886_v18 = vpop.f32.mrf.mxu0 }
 0x5bb   : > { %9440 = vmatpush.bf16.msra.mxu2 %v11039_v11  ;;  %v12347_v37 = vor.u32 %v13038_v32, %v12346_v23  ;;  %v11866_v45 = vld [vmem:[%s15713_s13 + $0xb10] sm:$0xf]  ;;  %v12986_v51 = vld [vmem:[%s15713_s13 + $0xd54] sm:$0xf]  ;;  %v11615_v15 = vor.u32 %v12850_v13, %v11612_v43 }
 0x5bc   : > { %9371 = vmatpush.bf16.msrb.mxu1 %v11931_v30  ;;  %9399 = vmatpush.bf16.msrb.mxu3 %v12379_v33  ;;  %v12918_v62 = vld [vmem:[%s15713_s13 + $0xb2c] sm:$0xf0]  ;;  %v12156_v30 = vld [vmem:[%s15713_s13 + $0xd70] sm:$0xf0] }
 0x5bd   : > { %v12314_v38 = vld [vmem:[%s15713_s13 + $0xe90] sm:$0xf]  ;;  %9417 = vmatmul.bf16.vlgmr.msra.gmra.mxu0 %v16297_v9  ;;  %v11867_v25 = vor.u32 %v12918_v62, %v11866_v45  ;;  %v12842_v23 = vld [vmem:[%s15713_s13 + $0x8d4] sm:$0xf]  ;;  %v12159_v32 = vor.u32 %v12986_v51, %v12156_v30 }
 0x5be   : > { %9461 = vmatpush.bf16.msrb.mxu0 %v11711_v55  ;;  %v13030_v52 = vld [vmem:[%s15713_s13 + $0xeac] sm:$0xf0]  ;;  %v11580_v4 = vld [vmem:[%s15713_s13 + $0x8f0] sm:$0xf0] }
 0x5bf   : > { %9441 = vmatpush.bf16.msra.mxu2 %v11007_v0  ;;  %v12315_v34 = vor.u32 %v13030_v52, %v12314_v38  ;;  %v11834_v36 = vld [vmem:[%s15713_s13 + $0xad0] sm:$0xf]  ;;  %v12810_v20 = vld [vmem:[%s15713_s13 + $0x7d4] sm:$0xf]  ;;  %v9121_v7 = vpop.f32.mrf.mxu1 }
 0x5c0   : > { %9372 = vmatpush.bf16.msrb.mxu1 %v11899_v63  ;;  %9400 = vmatpush.bf16.msrb.mxu3 %v12347_v37  ;;  %v12910_v46 = vld [vmem:[%s15713_s13 + $0xaec] sm:$0xf0]  ;;  %v11452_v21 = vld [vmem:[%s15713_s13 + $0x7f0] sm:$0xf0] }
 0x5c1   : > { %v12282_v16 = vld [vmem:[%s15713_s13 + $0xe50] sm:$0xf]  ;;  %v11835_v3 = vor.u32 %v12910_v46, %v11834_v36  ;;  %v12978_v63 = vld [vmem:[%s15713_s13 + $0xd14] sm:$0xf]  ;;  %v11455_v38 = vor.u32 %v12810_v20, %v11452_v21 }
 0x5c2   : > { %9462 = vmatpush.bf16.msrb.mxu0 %v11679_v28  ;;  %v13022_v11 = vld [vmem:[%s15713_s13 + $0xe6c] sm:$0xf0]  ;;  %v12124_v17 = vld [vmem:[%s15713_s13 + $0xd30] sm:$0xf0]  ;;  %v9147_v28 = vpop.f32.mrf.mxu3 }
 0x5c3   : > { %9442 = vmatpush.bf16.msra.mxu2 %v10975_v56  ;;  %v12283_v50 = vor.u32 %v13022_v11, %v12282_v16  ;;  %v11802_v33 = vld [vmem:[%s15713_s13 + $0xa90] sm:$0xf]  ;;  %v11583_v56 = vor.u32 %v12842_v23, %v11580_v4  ;;  %v12834_v52 = vld [vmem:[%s15713_s13 + $0x894] sm:$0xf] }
 0x5c4   : > { %9373 = vmatpush.bf16.msrb.mxu1 %v11867_v25  ;;  %9401 = vmatpush.bf16.msrb.mxu3 %v12315_v34  ;;  %v12902_v8 = vld [vmem:[%s15713_s13 + $0xaac] sm:$0xf0]  ;;  %v11548_v42 = vld [vmem:[%s15713_s13 + $0x8b0] sm:$0xf0] }
 0x5c5   : > { %v12250_v55 = vld [vmem:[%s15713_s13 + $0xe10] sm:$0xf]  ;;  %v11803_v54 = vor.u32 %v12902_v8, %v11802_v33  ;;  %v12802_v49 = vld [vmem:[%s15713_s13 + $0x794] sm:$0xf] }
 0x5c6   : > { %9443 = vmatmul.bf16.vlgmr.msra.gmra.mxu2 %v16122_v39  ;;  %9463 = vmatpush.bf16.msrb.mxu0 %v11647_v57  ;;  %v13014_v0 = vld [vmem:[%s15713_s13 + $0xe2c] sm:$0xf0]  ;;  %v11420_v25 = vld [vmem:[%s15713_s13 + $0x7b0] sm:$0xf0]  ;;  %v11551_v57 = vor.u32 %v12834_v52, %v11548_v42 }
 0x5c7   : > { %9487 = vmatpush.bf16.msrb.mxu2 %v12223_v10  ;;  %v12251_v37 = vor.u32 %v13014_v0, %v12250_v55  ;;  %v11770_v45 = vld [vmem:[%s15713_s13 + $0xa50] sm:$0xf]  ;;  %v12127_v10 = vor.u32 %v12978_v63, %v12124_v17  ;;  %v12970_v19 = vld [vmem:[%s15713_s13 + $0xcd4] sm:$0xf]  ;;  %v11423_v16 = vor.u32 %v12802_v49, %v11420_v25 }
 0x5c8   : > { %9374 = vmatpush.bf16.msrb.mxu1 %v11835_v3  ;;  %9402 = vmatpush.bf16.msrb.mxu3 %v12283_v50  ;;  %v12894_v62 = vld [vmem:[%s15713_s13 + $0xa6c] sm:$0xf0]  ;;  %v12092_v34 = vld [vmem:[%s15713_s13 + $0xcf0] sm:$0xf0] }
 0x5c9   : > { %v11771_v59 = vor.u32 %v12894_v62, %v11770_v45  ;;  %v11738_v36 = vld [vmem:[%s15713_s13 + $0xa10] sm:$0xf]  ;;  %v12826_v11 = vld [vmem:[%s15713_s13 + $0x854] sm:$0xf]  ;;  %v12095_v43 = vor.u32 %v12970_v19, %v12092_v34  ;;  %v17914_v45 = vpop.f32.mrf.mxu2  ;;  %v12623_v62 = vld [vmem:[%s15713_s13 + $0x1f4] sm:$0xf0] }
 0x5ca   : > { %9464 = vmatpush.bf16.msrb.mxu0 %v11615_v15  ;;  %v12886_v46 = vld [vmem:[%s15713_s13 + $0xa2c] sm:$0xf0]  ;;  %v10940_v13 = vld [vmem:[%s15713_s13 + $0x3f0] sm:$0xf0]  ;;  %v9212_v15 = vpop.f32.mrf.mxu0  ;;  %v10658_v34 = vld [vmem:[%s15713_s13 + $0x198] sm:$0xf] }
 0x5cb   : > { %9488 = vmatpush.bf16.msrb.mxu2 %v12191_v2  ;;  %v12682_v2 = vld [vmem:[%s15713_s13 + $0x3d4] sm:$0xf]  ;;  %v11739_v50 = vor.u32 %v12886_v46, %v11738_v36  ;;  %v12615_v36 = vld [vmem:[%s15713_s13 + $0x1b4] sm:$0xf0] }
 0x5cc   : > { %9375 = vmatpush.bf16.msrb.mxu1 %v11803_v54  ;;  %9403 = vmatpush.bf16.msrb.mxu3 %v12251_v37  ;;  %v11516_v3 = vld [vmem:[%s15713_s13 + $0x870] sm:$0xf0]  ;;  %v10943_v55 = vor.u32 %v12682_v2, %v10940_v13  ;;  %v10690_v37 = vld [vmem:[%s15713_s13 + $0x1d8] sm:$0xf] }
 0x5cd   : > { %v12794_v51 = vld [vmem:[%s15713_s13 + $0x754] sm:$0xf]  ;;  %v11519_v23 = vor.u32 %v12826_v11, %v11516_v3  ;;  %v10691_v49 = vor.u32 %v12623_v62, %v10690_v37  ;;  %v11202_v11 = vld [vmem:[%s15713_s13 + $0x5d8] sm:$0xf] }
 0x5ce   : > { %9465 = vmatpush.bf16.msrb.mxu0 %v11583_v56  ;;  %v11388_v30 = vld [vmem:[%s15713_s13 + $0x770] sm:$0xf0]  ;;  %v12751_v2 = vld [vmem:[%s15713_s13 + $0x5f4] sm:$0xf0] }
 0x5cf   : > { %9489 = vmatpush.bf16.msrb.mxu2 %v12159_v32  ;;  %9404 = vmatmul.bf16.vlgmr.msrb.gmra.mxu3 %v17362_v6  ;;  %v12962_v33 = vld [vmem:[%s15713_s13 + $0xc94] sm:$0xf]  ;;  %v11391_v32 = vor.u32 %v12794_v51, %v11388_v30  ;;  %v10659_v51 = vor.u32 %v12615_v36, %v10658_v34  ;;  %v11203_v15 = vor.u32 %v12751_v2, %v11202_v11 }
 0x5d0   : > { %9448 = vmatpush.bf16.msra.mxu3 %v11455_v38  ;;  %9376 = vmatpush.bf16.msrb.mxu1 %v11771_v59  ;;  %v12060_v8 = vld [vmem:[%s15713_s13 + $0xcb0] sm:$0xf0] }
 0x5d1   : > { %v12818_v0 = vld [vmem:[%s15713_s13 + $0x814] sm:$0xf]  ;;  %v12063_v54 = vor.u32 %v12962_v33, %v12060_v8  ;;  %v9238_v8 = vpop.f32.mrf.mxu2 }
 0x5d2   : > { %9466 = vmatpush.bf16.msrb.mxu0 %v11551_v57  ;;  %v11484_v4 = vld [vmem:[%s15713_s13 + $0x830] sm:$0xf0] }
 0x5d3   : > { %9490 = vmatpush.bf16.msrb.mxu2 %v12127_v10  ;;  %v12674_v20 = vld [vmem:[%s15713_s13 + $0x394] sm:$0xf]  ;;  %v11487_v52 = vor.u32 %v12818_v0, %v11484_v4  ;;  %v12607_v0 = vld [vmem:[%s15713_s13 + $0x174] sm:$0xf0] }
 0x5d4   : > { %9449 = vmatpush.bf16.msra.mxu3 %v11423_v16  ;;  %v10908_v21 = vld [vmem:[%s15713_s13 + $0x3b0] sm:$0xf0]  ;;  %9377 = vmatpush.bf16.msrb.mxu1 %v11739_v50  ;;  %v12743_v4 = vld [vmem:[%s15713_s13 + $0x5b4] sm:$0xf0] }
 0x5d5   : > { %v12786_v63 = vld [vmem:[%s15713_s13 + $0x714] sm:$0xf]  ;;  %v10911_v38 = vor.u32 %v12674_v20, %v10908_v21 }
 0x5d6   : > { %v11356_v17 = vld [vmem:[%s15713_s13 + $0x730] sm:$0xf0]  ;;  %9467 = vmatpush.bf16.msrb.mxu0 %v11519_v23 }
 0x5d7   : > { %9491 = vmatpush.bf16.msrb.mxu2 %v12095_v43  ;;  %v12954_v28 = vld [vmem:[%s15713_s13 + $0xc54] sm:$0xf]  ;;  %v11359_v7 = vor.u32 %v12786_v63, %v11356_v17  ;;  %9378 = vmatmul.bf16.vlgmr.msrb.gmra.mxu1 %v17392_v14  ;;  %v17941_v63 = vpop.f32.mrf.mxu3 }
 0x5d8   : > { %v12028_v56 = vld [vmem:[%s15713_s13 + $0xc70] sm:$0xf0]  ;;  %9422 = vmatpush.bf16.msra.mxu1 %v10943_v55  ;;  %9450 = vmatpush.bf16.msra.mxu3 %v11391_v32  ;;  %v10626_v55 = vld [vmem:[%s15713_s13 + $0x158] sm:$0xf] }
 0x5d9   : > { %v12666_v10 = vld [vmem:[%s15713_s13 + $0x354] sm:$0xf]  ;;  %v12031_v25 = vor.u32 %v12954_v28, %v12028_v56  ;;  %v11170_v32 = vld [vmem:[%s15713_s13 + $0x598] sm:$0xf]  ;;  %v10627_v17 = vor.u32 %v12607_v0, %v10626_v55  ;;  %v17945_v28 = vpop.f32.mrf.mxu1 }
 0x5da   : > { %v10876_v42 = vld [vmem:[%s15713_s13 + $0x370] sm:$0xf0]  ;;  %9468 = vmatpush.bf16.msrb.mxu0 %v11487_v52  ;;  %v11171_v56 = vor.u32 %v12743_v4, %v11170_v32  ;;  %v12599_v52 = vld [vmem:[%s15713_s13 + $0x134] sm:$0xf0] }
 0x5db   : > { %9492 = vmatpush.bf16.msrb.mxu2 %v12063_v54  ;;  %v12778_v59 = vld [vmem:[%s15713_s13 + $0x6d4] sm:$0xf]  ;;  %v10879_v16 = vor.u32 %v12666_v10, %v10876_v42  ;;  %v11138_v10 = vld [vmem:[%s15713_s13 + $0x558] sm:$0xf] }
 0x5dc   : > { %v11324_v19 = vld [vmem:[%s15713_s13 + $0x6f0] sm:$0xf0]  ;;  %9423 = vmatpush.bf16.msra.mxu1 %v10911_v38  ;;  %9451 = vmatpush.bf16.msra.mxu3 %v11359_v7  ;;  %v10594_v38 = vld [vmem:[%s15713_s13 + $0x118] sm:$0xf] }
 0x5dd   : > { %v12946_v46 = vld [vmem:[%s15713_s13 + $0xc14] sm:$0xf]  ;;  %v11327_v13 = vor.u32 %v12778_v59, %v11324_v19  ;;  %9469 = vmatmul.bf16.vlgmr.msrb.gmra.mxu0 %v17231_v24  ;;  %v12735_v42 = vld [vmem:[%s15713_s13 + $0x574] sm:$0xf0]  ;;  %v10595_v19 = vor.u32 %v12599_v52, %v10594_v38 }
 0x5de   : > { %v11996_v57 = vld [vmem:[%s15713_s13 + $0xc30] sm:$0xf0]  ;;  %9513 = vmatpush.bf16.msra.mxu0 %v10691_v49  ;;  %v10530_v0 = vld [vmem:[%s15713_s13 + $0x98] sm:$0xf] }
 0x5df   : > { %v12658_v43 = vld [vmem:[%s15713_s13 + $0x314] sm:$0xf]  ;;  %9493 = vmatpush.bf16.msrb.mxu2 %v12031_v25  ;;  %v11999_v30 = vor.u32 %v12946_v46, %v11996_v57  ;;  %v10562_v46 = vld [vmem:[%s15713_s13 + $0xd8] sm:$0xf]  ;;  %v11139_v57 = vor.u32 %v12735_v42, %v11138_v10  ;;  %v9199_v8 = vpop.f32.mrf.mxu3 }
 0x5e0   : > { %v10844_v3 = vld [vmem:[%s15713_s13 + $0x330] sm:$0xf0]  ;;  %9424 = vmatpush.bf16.msra.mxu1 %v10879_v16  ;;  %9452 = vmatpush.bf16.msra.mxu3 %v11327_v13  ;;  %v12591_v16 = vld [vmem:[%s15713_s13 + $0xf4] sm:$0xf0] }
 0x5e1   : > { %v12770_v50 = vld [vmem:[%s15713_s13 + $0x694] sm:$0xf]  ;;  %v10847_v23 = vor.u32 %v12658_v43, %v10844_v3  ;;  %v11106_v43 = vld [vmem:[%s15713_s13 + $0x518] sm:$0xf] }
 0x5e2   : > { %v11292_v33 = vld [vmem:[%s15713_s13 + $0x6b0] sm:$0xf0]  ;;  %9514 = vmatpush.bf16.msra.mxu0 %v10659_v51  ;;  %v12727_v3 = vld [vmem:[%s15713_s13 + $0x534] sm:$0xf0]  ;;  %v17962_v51 = vpop.f32.mrf.mxu0 }
 0x5e3   : > { %v11295_v20 = vor.u32 %v12770_v50, %v11292_v33  ;;  %v12650_v21 = vld [vmem:[%s15713_s13 + $0x2d4] sm:$0xf]  ;;  %9494 = vmatpush.bf16.msrb.mxu2 %v11999_v30  ;;  %v11107_v32 = vor.u32 %v12727_v3, %v11106_v43  ;;  %v12583_v4 = vld [vmem:[%s15713_s13 + $0xb4] sm:$0xf0] }
 0x5e4   : > { %v10812_v54 = vld [vmem:[%s15713_s13 + $0x2f0] sm:$0xf0]  ;;  %9425 = vmatpush.bf16.msra.mxu1 %v10847_v23  ;;  %v9173_v23 = vpop.f32.mrf.mxu1  ;;  %v10531_v38 = vor.u32 %v12583_v4, %v10530_v0  ;;  %v12567_v43 = vld [vmem:[%s15713_s13 + $0x34] sm:$0xf0] }
 0x5e5   : > { %v12762_v37 = vld [vmem:[%s15713_s13 + $0x654] sm:$0xf]  ;;  %v10815_v7 = vor.u32 %v12650_v21, %v10812_v54  ;;  %9453 = vmatpush.bf16.msra.mxu3 %v11295_v20  ;;  %v12879_v0 = vld [vmem:[%s15713_s13 + $0x9f4] sm:$0xf0] }
 0x5e6   : > { %v11260_v62 = vld [vmem:[%s15713_s13 + $0x670] sm:$0xf0]  ;;  %9495 = vmatmul.bf16.vlgmr.msrb.gmra.mxu2 %v17257_v53  ;;  %9515 = vmatpush.bf16.msra.mxu0 %v10627_v17  ;;  %v11074_v17 = vld [vmem:[%s15713_s13 + $0x4d8] sm:$0xf] }
 0x5e7   : > { %9539 = vmatpush.bf16.msra.mxu2 %v11203_v15  ;;  %v11263_v49 = vor.u32 %v12762_v37, %v11260_v62  ;;  %v12642_v25 = vld [vmem:[%s15713_s13 + $0x294] sm:$0xf]  ;;  %v10563_v15 = vor.u32 %v12591_v16, %v10562_v46  ;;  %v12719_v37 = vld [vmem:[%s15713_s13 + $0x4f4] sm:$0xf0] }
 0x5e8   : > { %v10780_v59 = vld [vmem:[%s15713_s13 + $0x2b0] sm:$0xf0]  ;;  %9426 = vmatpush.bf16.msra.mxu1 %v10815_v7  ;;  %v10498_v7 = vld [vmem:[%s15713_s13 + $0x58] sm:$0xf] }
 0x5e9   : > { %v12754_v34 = vld [vmem:[%s15713_s13 + $0x614] sm:$0xf]  ;;  %v10783_v13 = vor.u32 %v12642_v25, %v10780_v59  ;;  %9454 = vmatpush.bf16.msra.mxu3 %v11263_v49  ;;  %v11075_v49 = vor.u32 %v12719_v37, %v11074_v17  ;;  %v12575_v25 = vld [vmem:[%s15713_s13 + $0x74] sm:$0xf0] }
 0x5ea   : > { %v11228_v36 = vld [vmem:[%s15713_s13 + $0x630] sm:$0xf0]  ;;  %9516 = vmatpush.bf16.msra.mxu0 %v10595_v19  ;;  %v12711_v46 = vld [vmem:[%s15713_s13 + $0x4b4] sm:$0xf0] }
 0x5eb   : > { %9540 = vmatpush.bf16.msra.mxu2 %v11171_v56  ;;  %v13066_v11 = vld [vmem:[%s15713_s13 + $0xfd4] sm:$0xf]  ;;  %v11231_v30 = vor.u32 %v12754_v34, %v11228_v36  ;;  %v11042_v36 = vld [vmem:[%s15713_s13 + $0x498] sm:$0xf] }
 0x5ec   : > { %v12476_v2 = vld [vmem:[%s15713_s13 + $0xff0] sm:$0xf0]  ;;  %9427 = vmatpush.bf16.msra.mxu1 %v10783_v13  ;;  %v11010_v23 = vld [vmem:[%s15713_s13 + $0x458] sm:$0xf] }
 0x5ed   : > { %v12634_v50 = vld [vmem:[%s15713_s13 + $0x254] sm:$0xf]  ;;  %v12479_v55 = vor.u32 %v13066_v11, %v12476_v2  ;;  %9455 = vmatpush.bf16.msra.mxu3 %v11231_v30  ;;  %v10466_v11 = vld [vmem:[%s15713_s13 + $0x18] sm:$0xf]  ;;  %v10499_v2 = vor.u32 %v12575_v25, %v10498_v7 }
 0x5ee   : > { %v10748_v33 = vld [vmem:[%s15713_s13 + $0x270] sm:$0xf0]  ;;  %9517 = vmatpush.bf16.msra.mxu0 %v10563_v15  ;;  %v11714_v15 = vld [vmem:[%s15713_s13 + $0x9d8] sm:$0xf] }
 0x5ef   : > { %9541 = vmatpush.bf16.msra.mxu2 %v11139_v57  ;;  %v13058_v20 = vld [vmem:[%s15713_s13 + $0xf94] sm:$0xf]  ;;  %v10751_v54 = vor.u32 %v12634_v50, %v10748_v33  ;;  %v9264_v57 = vpop.f32.mrf.mxu0  ;;  %v11043_v50 = vor.u32 %v12711_v46, %v11042_v36  ;;  %v11715_v37 = vor.u32 %v12879_v0, %v11714_v15  ;;  %v12871_v7 = vld [vmem:[%s15713_s13 + $0x9b4] sm:$0xf0] }
 0x5f0   : > { %v12444_v21 = vld [vmem:[%s15713_s13 + $0xfb0] sm:$0xf0]  ;;  %9456 = vmatmul.bf16.vlgmr.msra.gmra.mxu3 %v16341_v48  ;;  %v12226_v25 = vld [vmem:[%s15713_s13 + $0xdd8] sm:$0xf] }
 0x5f1   : > { %v12626_v62 = vld [vmem:[%s15713_s13 + $0x214] sm:$0xf]  ;;  %9500 = vmatpush.bf16.msrb.mxu3 %v12479_v55  ;;  %v12447_v52 = vor.u32 %v13058_v20, %v12444_v21  ;;  %9428 = vmatpush.bf16.msra.mxu1 %v10751_v54  ;;  %v17990_v55 = vpop.f32.mrf.mxu2  ;;  %v10467_v20 = vor.u32 %v12567_v43, %v10466_v11  ;;  %v11650_v43 = vld [vmem:[%s15713_s13 + $0x958] sm:$0xf] }
 0x5f2   : > { %v10716_v56 = vld [vmem:[%s15713_s13 + $0x230] sm:$0xf0]  ;;  %9518 = vmatpush.bf16.msra.mxu0 %v10531_v38 }
 0x5f3   : > { %v12938_v10 = vld [vmem:[%s15713_s13 + $0xbd4] sm:$0xf]  ;;  %9542 = vmatpush.bf16.msra.mxu2 %v11107_v32  ;;  %v10719_v34 = vor.u32 %v12626_v62, %v10716_v56  ;;  %v12703_v32 = vld [vmem:[%s15713_s13 + $0x474] sm:$0xf0] }
 0x5f4   : > { %v11964_v42 = vld [vmem:[%s15713_s13 + $0xbf0] sm:$0xf0]  ;;  %v11011_v62 = vor.u32 %v12703_v32, %v11010_v23  ;;  %v18017_v23 = vpop.f32.mrf.mxu3 }
 0x5f5   : > { %v13050_v59 = vld [vmem:[%s15713_s13 + $0xf54] sm:$0xf]  ;;  %v11967_v16 = vor.u32 %v12938_v10, %v11964_v42  ;;  %9501 = vmatpush.bf16.msrb.mxu3 %v12447_v52  ;;  %9429 = vmatpush.bf16.msra.mxu1 %v10719_v34  ;;  %v11682_v52 = vld [vmem:[%s15713_s13 + $0x998] sm:$0xf] }
 0x5f6   : > { %v12412_v19 = vld [vmem:[%s15713_s13 + $0xf70] sm:$0xf0]  ;;  %9519 = vmatpush.bf16.msra.mxu0 %v10499_v2  ;;  %v10978_v10 = vld [vmem:[%s15713_s13 + $0x418] sm:$0xf]  ;;  %v11683_v46 = vor.u32 %v12871_v7, %v11682_v52 }
 0x5f7   : > { %v12415_v13 = vor.u32 %v13050_v59, %v12412_v19  ;;  %v12930_v3 = vld [vmem:[%s15713_s13 + $0xb94] sm:$0xf]  ;;  %9543 = vmatpush.bf16.msra.mxu2 %v11075_v49  ;;  %v12695_v42 = vld [vmem:[%s15713_s13 + $0x434] sm:$0xf0] }
 0x5f8   : > { %v11932_v30 = vld [vmem:[%s15713_s13 + $0xbb0] sm:$0xf0]  ;;  %9430 = vmatmul.bf16.vlgmr.msra.gmra.mxu1 %v16400_v1  ;;  %v13007_v59 = vld [vmem:[%s15713_s13 + $0xdf4] sm:$0xf0]  ;;  %v10979_v57 = vor.u32 %v12695_v42, %v10978_v10 }
 0x5f9   : > { %v13042_v33 = vld [vmem:[%s15713_s13 + $0xf14] sm:$0xf]  ;;  %9474 = vmatpush.bf16.msrb.mxu1 %v11967_v16  ;;  %v11935_v4 = vor.u32 %v12930_v3, %v11932_v30  ;;  %9502 = vmatpush.bf16.msrb.mxu3 %v12415_v13  ;;  %v9290_v2 = vpop.f32.mrf.mxu2  ;;  %v12227_v13 = vor.u32 %v13007_v59, %v12226_v25  ;;  %v12863_v3 = vld [vmem:[%s15713_s13 + $0x974] sm:$0xf0] }
 0x5fa   : > { %v12380_v8 = vld [vmem:[%s15713_s13 + $0xf30] sm:$0xf0]  ;;  %9520 = vmatpush.bf16.msra.mxu0 %v10467_v20  ;;  %v11651_v32 = vor.u32 %v12863_v3, %v11650_v43  ;;  %v12991_v52 = vld [vmem:[%s15713_s13 + $0xd74] sm:$0xf0]  ;;  %v18040_v2 = vpop.f32.mrf.mxu0 }
 0x5fb   : > { %v12383_v21 = vor.u32 %v13042_v33, %v12380_v8  ;;  %v12922_v54 = vld [vmem:[%s15713_s13 + $0xb54] sm:$0xf]  ;;  %9544 = vmatpush.bf16.msra.mxu2 %v11043_v50  ;;  %v12194_v50 = vld [vmem:[%s15713_s13 + $0xd98] sm:$0xf] }
 0x5fc   : > { %v11900_v17 = vld [vmem:[%s15713_s13 + $0xb70] sm:$0xf0]  ;;  %v12999_v33 = vld [vmem:[%s15713_s13 + $0xdb4] sm:$0xf0] }
 0x5fd   : > { %v13034_v56 = vld [vmem:[%s15713_s13 + $0xed4] sm:$0xf]  ;;  %9475 = vmatpush.bf16.msrb.mxu1 %v11935_v4  ;;  %v11903_v49 = vor.u32 %v12922_v54, %v11900_v17  ;;  %9503 = vmatpush.bf16.msrb.mxu3 %v12383_v21  ;;  %v9223_v21 = vpop.f32.mrf.mxu1  ;;  %v12195_v54 = vor.u32 %v12999_v33, %v12194_v50  ;;  %v11618_v17 = vld [vmem:[%s15713_s13 + $0x918] sm:$0xf] }
 0x5fe   : > { %v12348_v38 = vld [vmem:[%s15713_s13 + $0xef0] sm:$0xf0]  ;;  %9565 = vmatpush.bf16.msrb.mxu0 %v11715_v37  ;;  %v12855_v37 = vld [vmem:[%s15713_s13 + $0x934] sm:$0xf0] }
 0x5ff   : > { %v12351_v19 = vor.u32 %v13034_v56, %v12348_v38  ;;  %v12914_v34 = vld [vmem:[%s15713_s13 + $0xb14] sm:$0xf]  ;;  %9545 = vmatpush.bf16.msra.mxu2 %v11011_v62  ;;  %9521 = vmatmul.bf16.vlgmr.msra.gmra.mxu0 %v16297_v9  ;;  %v9224_v62 = vadd.f32 %v9223_v21, %v17886_v18  ;;  %v12162_v38 = vld [vmem:[%s15713_s13 + $0xd58] sm:$0xf]  ;;  %v11619_v18 = vor.u32 %v12855_v37, %v11618_v17 }
 0x600   : > { %v11868_v36 = vld [vmem:[%s15713_s13 + $0xb30] sm:$0xf0]  ;;  %v9120_v21 = vadd.f32 %v17869_v22, %v17725_v26  ;;  %v12098_v17 = vld [vmem:[%s15713_s13 + $0xcd8] sm:$0xf] }
 0x601   : > { %v13026_v16 = vld [vmem:[%s15713_s13 + $0xe94] sm:$0xf]  ;;  %9476 = vmatpush.bf16.msrb.mxu1 %v11903_v49  ;;  %v11871_v30 = vor.u32 %v12914_v34, %v11868_v36  ;;  %9504 = vmatpush.bf16.msrb.mxu3 %v12351_v19  ;;  %v18030_v49 = vadd.f32 %v17914_v45, %v9224_v62  ;;  %v11586_v19 = vld [vmem:[%s15713_s13 + $0x8d8] sm:$0xf]  ;;  %v12163_v34 = vor.u32 %v12991_v52, %v12162_v38 }
 0x602   : > { %v12316_v11 = vld [vmem:[%s15713_s13 + $0xeb0] sm:$0xf0]  ;;  %9566 = vmatpush.bf16.msrb.mxu0 %v11683_v46  ;;  %v12847_v36 = vld [vmem:[%s15713_s13 + $0x8f4] sm:$0xf0] }
 0x603   : > { %v12319_v8 = vor.u32 %v13026_v16, %v12316_v11  ;;  %v12906_v15 = vld [vmem:[%s15713_s13 + $0xad4] sm:$0xf]  ;;  %9546 = vmatpush.bf16.msra.mxu2 %v10979_v57  ;;  %v11458_v46 = vld [vmem:[%s15713_s13 + $0x7d8] sm:$0xf]  ;;  %v11587_v50 = vor.u32 %v12847_v36, %v11586_v19 }
 0x604   : > { %v11836_v0 = vld [vmem:[%s15713_s13 + $0xaf0] sm:$0xf0]  ;;  %v12815_v57 = vld [vmem:[%s15713_s13 + $0x7f4] sm:$0xf0] }
 0x605   : > { %v13018_v4 = vld [vmem:[%s15713_s13 + $0xe54] sm:$0xf]  ;;  %9477 = vmatpush.bf16.msrb.mxu1 %v11871_v30  ;;  %v11839_v56 = vor.u32 %v12906_v15, %v11836_v0  ;;  %9505 = vmatpush.bf16.msrb.mxu3 %v12319_v8  ;;  %v12130_v11 = vld [vmem:[%s15713_s13 + $0xd18] sm:$0xf]  ;;  %v9251_v30 = vpop.f32.mrf.mxu3  ;;  %v11459_v33 = vor.u32 %v12815_v57, %v11458_v46  ;;  %v9225_v15 = vpop.f32.mrf.mxu1 }
 0x606   : > { %v12284_v20 = vld [vmem:[%s15713_s13 + $0xe70] sm:$0xf0]  ;;  %9547 = vmatmul.bf16.vlgmr.msra.gmra.mxu2 %v16122_v39  ;;  %9567 = vmatpush.bf16.msrb.mxu0 %v11651_v32  ;;  %v12983_v45 = vld [vmem:[%s15713_s13 + $0xd34] sm:$0xf0]  ;;  %v9316_v46 = vpop.f32.mrf.mxu0 }
 0x607   : > { %9591 = vmatpush.bf16.msrb.mxu2 %v12227_v13  ;;  %v12287_v7 = vor.u32 %v13018_v4, %v12284_v20  ;;  %v12898_v10 = vld [vmem:[%s15713_s13 + $0xa94] sm:$0xf]  ;;  %v11554_v8 = vld [vmem:[%s15713_s13 + $0x898] sm:$0xf]  ;;  %v12131_v0 = vor.u32 %v12983_v45, %v12130_v11 }
 0x608   : > { %v11804_v42 = vld [vmem:[%s15713_s13 + $0xab0] sm:$0xf0]  ;;  %v12839_v32 = vld [vmem:[%s15713_s13 + $0x8b4] sm:$0xf0] }
 0x609   : > { %v13010_v25 = vld [vmem:[%s15713_s13 + $0xe14] sm:$0xf]  ;;  %9478 = vmatpush.bf16.msrb.mxu1 %v11839_v56  ;;  %v11807_v16 = vor.u32 %v12898_v10, %v11804_v42  ;;  %9506 = vmatpush.bf16.msrb.mxu3 %v12287_v7  ;;  %v11426_v4 = vld [vmem:[%s15713_s13 + $0x798] sm:$0xf]  ;;  %v11555_v38 = vor.u32 %v12839_v32, %v11554_v8  ;;  %v18072_v15 = vpop.f32.mrf.mxu2 }
 0x60a   : > { %v12252_v59 = vld [vmem:[%s15713_s13 + $0xe30] sm:$0xf0]  ;;  %9568 = vmatpush.bf16.msrb.mxu0 %v11619_v18  ;;  %v12807_v20 = vld [vmem:[%s15713_s13 + $0x7b4] sm:$0xf0] }
 0x60b   : > { %9592 = vmatpush.bf16.msrb.mxu2 %v12195_v54  ;;  %v12255_v13 = vor.u32 %v13010_v25, %v12252_v59  ;;  %v12890_v43 = vld [vmem:[%s15713_s13 + $0xa54] sm:$0xf]  ;;  %v12975_v37 = vld [vmem:[%s15713_s13 + $0xcf4] sm:$0xf0]  ;;  %v11427_v52 = vor.u32 %v12807_v20, %v11426_v4  ;;  %v9133_v59 = vadd.f32 %v17760_v35, %v9120_v21 }
 0x60c   : > { %v11772_v3 = vld [vmem:[%s15713_s13 + $0xa70] sm:$0xf0]  ;;  %v11522_v7 = vld [vmem:[%s15713_s13 + $0x858] sm:$0xf]  ;;  %v12099_v22 = vor.u32 %v12975_v37, %v12098_v17 }
 0x60d   : > { %9479 = vmatpush.bf16.msrb.mxu1 %v11807_v16  ;;  %v11775_v54 = vor.u32 %v12890_v43, %v11772_v3  ;;  %9507 = vmatpush.bf16.msrb.mxu3 %v12255_v13  ;;  %v12882_v62 = vld [vmem:[%s15713_s13 + $0xa14] sm:$0xf]  ;;  %v10946_v10 = vld [vmem:[%s15713_s13 + $0x3d8] sm:$0xf]  ;;  %v9146_v8 = vadd.f32 %v17865_v58, %v9133_v59 }
 0x60e   : > { %v11740_v56 = vld [vmem:[%s15713_s13 + $0xa30] sm:$0xf0]  ;;  %9569 = vmatpush.bf16.msrb.mxu0 %v11587_v50  ;;  %v12687_v26 = vld [vmem:[%s15713_s13 + $0x3f4] sm:$0xf0] }
 0x60f   : > { %9593 = vmatpush.bf16.msrb.mxu2 %v12163_v34  ;;  %v12831_v42 = vld [vmem:[%s15713_s13 + $0x874] sm:$0xf0]  ;;  %v11743_v19 = vor.u32 %v12882_v62, %v11740_v56  ;;  %v10947_v57 = vor.u32 %v12687_v26, %v10946_v10  ;;  %v10660_v10 = vld [vmem:[%s15713_s13 + $0x1b8] sm:$0xf0] }
 0x610   : > { %v11394_v18 = vld [vmem:[%s15713_s13 + $0x758] sm:$0xf]  ;;  %9508 = vmatmul.bf16.vlgmr.msrb.gmra.mxu3 %v17362_v6  ;;  %v11523_v11 = vor.u32 %v12831_v42, %v11522_v7  ;;  %v9159_v7 = vadd.f32 %v17804_v61, %v9146_v8 }
 0x611   : > { %9552 = vmatpush.bf16.msra.mxu3 %v11459_v33  ;;  %v12799_v25 = vld [vmem:[%s15713_s13 + $0x774] sm:$0xf0]  ;;  %9480 = vmatpush.bf16.msrb.mxu1 %v11775_v54  ;;  %v12619_v33 = vld [vmem:[%s15713_s13 + $0x1dc] sm:$0xf] }
 0x612   : > { %v12066_v34 = vld [vmem:[%s15713_s13 + $0xc98] sm:$0xf]  ;;  %9570 = vmatpush.bf16.msrb.mxu0 %v11555_v38  ;;  %v11395_v45 = vor.u32 %v12799_v25, %v11394_v18  ;;  %v12747_v18 = vld [vmem:[%s15713_s13 + $0x5dc] sm:$0xf]  ;;  %v9172_v59 = vadd.f32 %v17945_v28, %v9159_v7  ;;  %v9342_v28 = vpop.f32.mrf.mxu2  ;;  %v9301_v8 = vpop.f32.mrf.mxu3 }
 0x613   : > { %9594 = vmatpush.bf16.msrb.mxu2 %v12131_v0  ;;  %v12967_v36 = vld [vmem:[%s15713_s13 + $0xcb4] sm:$0xf0]  ;;  %v10692_v0 = vld [vmem:[%s15713_s13 + $0x1f8] sm:$0xf0] }
 0x614   : > { %v11490_v16 = vld [vmem:[%s15713_s13 + $0x818] sm:$0xf]  ;;  %v12067_v3 = vor.u32 %v12967_v36, %v12066_v34  ;;  %v10695_v37 = vor.u32 %v12619_v33, %v10692_v0  ;;  %v11204_v25 = vld [vmem:[%s15713_s13 + $0x5f8] sm:$0xf0] }
 0x615   : > { %9553 = vmatpush.bf16.msra.mxu3 %v11427_v52  ;;  %v12823_v35 = vld [vmem:[%s15713_s13 + $0x834] sm:$0xf0]  ;;  %9481 = vmatpush.bf16.msrb.mxu1 %v11743_v19  ;;  %v12611_v52 = vld [vmem:[%s15713_s13 + $0x19c] sm:$0xf] }
 0x616   : > { %v10914_v13 = vld [vmem:[%s15713_s13 + $0x398] sm:$0xf]  ;;  %9571 = vmatpush.bf16.msrb.mxu0 %v11523_v11  ;;  %v11491_v21 = vor.u32 %v12823_v35, %v11490_v16  ;;  %v10663_v61 = vor.u32 %v12611_v52, %v10660_v10  ;;  %v12603_v35 = vld [vmem:[%s15713_s13 + $0x15c] sm:$0xf] }
 0x617   : > { %v12679_v43 = vld [vmem:[%s15713_s13 + $0x3b4] sm:$0xf0]  ;;  %9595 = vmatpush.bf16.msrb.mxu2 %v12099_v22 }
 0x618   : > { %v11362_v30 = vld [vmem:[%s15713_s13 + $0x718] sm:$0xf]  ;;  %v10915_v20 = vor.u32 %v12679_v43, %v10914_v13  ;;  %9482 = vmatmul.bf16.vlgmr.msrb.gmra.mxu1 %v17392_v14  ;;  %v10628_v13 = vld [vmem:[%s15713_s13 + $0x178] sm:$0xf0] }
 0x619   : > { %v12791_v50 = vld [vmem:[%s15713_s13 + $0x734] sm:$0xf0]  ;;  %9526 = vmatpush.bf16.msra.mxu1 %v10947_v57  ;;  %9554 = vmatpush.bf16.msra.mxu3 %v11395_v45  ;;  %v9250_v57 = vadd.f32 %v18017_v23, %v18030_v49  ;;  %v11207_v45 = vor.u32 %v12747_v18, %v11204_v25  ;;  %v12587_v18 = vld [vmem:[%s15713_s13 + $0xdc] sm:$0xf] }
 0x61a   : > { %v12034_v32 = vld [vmem:[%s15713_s13 + $0xc58] sm:$0xf]  ;;  %v11363_v54 = vor.u32 %v12791_v50, %v11362_v30  ;;  %9572 = vmatpush.bf16.msrb.mxu0 %v11491_v21  ;;  %v11172_v30 = vld [vmem:[%s15713_s13 + $0x5b8] sm:$0xf0]  ;;  %v9185_v50 = vadd.f32 %v17838_v60, %v9172_v59  ;;  %v9275_v21 = vpop.f32.mrf.mxu1 }
 0x61b   : > { %v12959_v4 = vld [vmem:[%s15713_s13 + $0xc74] sm:$0xf0]  ;;  %9596 = vmatpush.bf16.msrb.mxu2 %v12067_v3  ;;  %v12739_v3 = vld [vmem:[%s15713_s13 + $0x59c] sm:$0xf]  ;;  %v9263_v0 = vadd.f32 %v17962_v51, %v9250_v57 }
 0x61c   : > { %v10882_v58 = vld [vmem:[%s15713_s13 + $0x358] sm:$0xf]  ;;  %v12035_v62 = vor.u32 %v12959_v4, %v12034_v32  ;;  %v10631_v32 = vor.u32 %v12603_v35, %v10628_v13  ;;  %v11175_v60 = vor.u32 %v12739_v3, %v11172_v30  ;;  %v9198_v51 = vadd.f32 %v17941_v63, %v9185_v50  ;;  %v10564_v25 = vld [vmem:[%s15713_s13 + $0xf8] sm:$0xf0]  ;;  %v9303_v35 = vpop.f32.mrf.mxu3 }
 0x61d   : > { %v12671_v17 = vld [vmem:[%s15713_s13 + $0x374] sm:$0xf0]  ;;  %9527 = vmatpush.bf16.msra.mxu1 %v10915_v20  ;;  %9555 = vmatpush.bf16.msra.mxu3 %v11363_v54  ;;  %v12595_v54 = vld [vmem:[%s15713_s13 + $0x11c] sm:$0xf]  ;;  %v10567_v13 = vor.u32 %v12587_v18, %v10564_v25 }
 0x61e   : > { %v11330_v56 = vld [vmem:[%s15713_s13 + $0x6d8] sm:$0xf]  ;;  %v10883_v42 = vor.u32 %v12671_v17, %v10882_v58  ;;  %9617 = vmatpush.bf16.msra.mxu0 %v10695_v37  ;;  %v10596_v58 = vld [vmem:[%s15713_s13 + $0x138] sm:$0xf0]  ;;  %v9276_v17 = vadd.f32 %v9275_v21, %v9263_v0  ;;  %v9730_v57 = vrot.slane %v9198_v51, 4 }
 0x61f   : > { %v12783_v38 = vld [vmem:[%s15713_s13 + $0x6f4] sm:$0xf0]  ;;  %9597 = vmatpush.bf16.msrb.mxu2 %v12035_v62  ;;  %9573 = vmatmul.bf16.vlgmr.msrb.gmra.mxu0 %v17231_v24  ;;  %v12731_v62 = vld [vmem:[%s15713_s13 + $0x55c] sm:$0xf] }
 0x620   : > { %v12002_v26 = vld [vmem:[%s15713_s13 + $0xc18] sm:$0xf]  ;;  %v11331_v19 = vor.u32 %v12783_v38, %v11330_v56  ;;  %v11140_v56 = vld [vmem:[%s15713_s13 + $0x578] sm:$0xf0]  ;;  %v9289_v10 = vadd.f32 %v17990_v55, %v9276_v17  ;;  %v18124_v55 = vpop.f32.mrf.mxu0 }
 0x621   : > { %v12951_v22 = vld [vmem:[%s15713_s13 + $0xc34] sm:$0xf0]  ;;  %9528 = vmatpush.bf16.msra.mxu1 %v10883_v42  ;;  %v11143_v63 = vor.u32 %v12731_v62, %v11140_v56  ;;  %v12579_v3 = vld [vmem:[%s15713_s13 + $0x9c] sm:$0xf] }
 0x622   : > { %v10850_v34 = vld [vmem:[%s15713_s13 + $0x318] sm:$0xf]  ;;  %v12003_v46 = vor.u32 %v12951_v22, %v12002_v26  ;;  %9556 = vmatpush.bf16.msra.mxu3 %v11331_v19  ;;  %9618 = vmatpush.bf16.msra.mxu0 %v10663_v61  ;;  %v10599_v26 = vor.u32 %v12595_v54, %v10596_v58  ;;  %v12723_v61 = vld [vmem:[%s15713_s13 + $0x51c] sm:$0xf]  ;;  %v9277_v30 = vpop.f32.mrf.mxu1 }
 0x623   : > { %v12663_v36 = vld [vmem:[%s15713_s13 + $0x334] sm:$0xf0]  ;;  %v12571_v54 = vld [vmem:[%s15713_s13 + $0x5c] sm:$0xf] }
 0x624   : > { %v11298_v16 = vld [vmem:[%s15713_s13 + $0x698] sm:$0xf]  ;;  %v10851_v43 = vor.u32 %v12663_v36, %v10850_v34  ;;  %9598 = vmatpush.bf16.msrb.mxu2 %v12003_v46  ;;  %v9302_v34 = vadd.f32 %v9301_v8, %v9289_v10  ;;  %v11108_v46 = vld [vmem:[%s15713_s13 + $0x538] sm:$0xf0] }
 0x625   : > { %v12775_v11 = vld [vmem:[%s15713_s13 + $0x6b4] sm:$0xf0]  ;;  %v11111_v50 = vor.u32 %v12723_v61, %v11108_v46  ;;  %v10500_v51 = vld [vmem:[%s15713_s13 + $0x78] sm:$0xf0] }
 0x626   : > { %v11299_v23 = vor.u32 %v12775_v11, %v11298_v16  ;;  %v10818_v49 = vld [vmem:[%s15713_s13 + $0x2d8] sm:$0xf]  ;;  %9529 = vmatpush.bf16.msra.mxu1 %v10851_v43  ;;  %9619 = vmatpush.bf16.msra.mxu0 %v10631_v32  ;;  %v12715_v32 = vld [vmem:[%s15713_s13 + $0x4dc] sm:$0xf]  ;;  %v10503_v18 = vor.u32 %v12571_v54, %v10500_v51 }
 0x627   : > { %v12655_v33 = vld [vmem:[%s15713_s13 + $0x2f4] sm:$0xf0]  ;;  %9599 = vmatmul.bf16.vlgmr.msrb.gmra.mxu2 %v17257_v53  ;;  %v11044_v10 = vld [vmem:[%s15713_s13 + $0x4b8] sm:$0xf0] }
 0x628   : > { %v11266_v4 = vld [vmem:[%s15713_s13 + $0x658] sm:$0xf]  ;;  %9643 = vmatpush.bf16.msra.mxu2 %v11207_v45  ;;  %v10819_v37 = vor.u32 %v12655_v33, %v10818_v49  ;;  %9557 = vmatpush.bf16.msra.mxu3 %v11299_v23  ;;  %v9731_v45 = vrot.slane %v9302_v34, 2  ;;  %v10532_v23 = vld [vmem:[%s15713_s13 + $0xb8] sm:$0xf0] }
 0x629   : > { %v12767_v20 = vld [vmem:[%s15713_s13 + $0x674] sm:$0xf0]  ;;  %v10535_v58 = vor.u32 %v12579_v3, %v10532_v23  ;;  %v10468_v25 = vld [vmem:[%s15713_s13 + $0x38] sm:$0xf0] }
 0x62a   : > { %v11267_v38 = vor.u32 %v12767_v20, %v11266_v4  ;;  %v10786_v52 = vld [vmem:[%s15713_s13 + $0x298] sm:$0xf]  ;;  %9530 = vmatpush.bf16.msra.mxu1 %v10819_v37  ;;  %9620 = vmatpush.bf16.msra.mxu0 %v10599_v26  ;;  %v9738_v8 = vsel %vm9737_vm8, %v9730_v57, %v9731_v45  ;;  %v11076_v4 = vld [vmem:[%s15713_s13 + $0x4f8] sm:$0xf0]  ;;  %v9368_v26 = vpop.f32.mrf.mxu0  ;;  %v18155_v57 = vpop.f32.mrf.mxu2 }
 0x62b   : > { %v12647_v7 = vld [vmem:[%s15713_s13 + $0x2b4] sm:$0xf0]  ;;  %v9740_v20 = vsel %vm9739_vm14, %v17816_v44, %v9738_v8  ;;  %v11079_v56 = vor.u32 %v12715_v32, %v11076_v4  ;;  %v12875_v46 = vld [vmem:[%s15713_s13 + $0x9dc] sm:$0xf] }
 0x62c   : > { %v11234_v22 = vld [vmem:[%s15713_s13 + $0x618] sm:$0xf]  ;;  %9644 = vmatpush.bf16.msra.mxu2 %v11175_v60  ;;  %v10787_v36 = vor.u32 %v12647_v7, %v10786_v52  ;;  %9558 = vmatpush.bf16.msra.mxu3 %v11267_v38  ;;  %9789 = vst [vmem:[#allocation1] ss:$4 sm:$0xff] %v9740_v20  ;;  %v12707_v7 = vld [vmem:[%s15713_s13 + $0x49c] sm:$0xf] }
 0x62d   : > { %v12759_v42 = vld [vmem:[%s15713_s13 + $0x634] sm:$0xf0]  ;;  %v11047_v34 = vor.u32 %v12707_v7, %v11044_v10  ;;  %v11684_v8 = vld [vmem:[%s15713_s13 + $0x9b8] sm:$0xf0] }
 0x62e   : > { %v12482_v59 = vld [vmem:[%s15713_s13 + $0xfd8] sm:$0xf]  ;;  %v11235_v16 = vor.u32 %v12759_v42, %v11234_v22  ;;  %9531 = vmatpush.bf16.msra.mxu1 %v10787_v36  ;;  %9621 = vmatpush.bf16.msra.mxu0 %v10567_v13  ;;  %v12563_v42 = vld [vmem:[%s15713_s13 + $0x1c] sm:$0xf] }
 0x62f   : > { %v13071_v19 = vld [vmem:[%s15713_s13 + $0xff4] sm:$0xf0]  ;;  %v10471_v35 = vor.u32 %v12563_v42, %v10468_v25  ;;  %v10980_v32 = vld [vmem:[%s15713_s13 + $0x438] sm:$0xf0] }
 0x630   : > { %v10754_v11 = vld [vmem:[%s15713_s13 + $0x258] sm:$0xf]  ;;  %v12483_v43 = vor.u32 %v13071_v19, %v12482_v59  ;;  %9645 = vmatpush.bf16.msra.mxu2 %v11143_v63  ;;  %9559 = vmatpush.bf16.msra.mxu3 %v11235_v16  ;;  %v11716_v16 = vld [vmem:[%s15713_s13 + $0x9f8] sm:$0xf0] }
 0x631   : > { %v12639_v28 = vld [vmem:[%s15713_s13 + $0x274] sm:$0xf0]  ;;  %v11719_v30 = vor.u32 %v12875_v46, %v11716_v16  ;;  %v13003_v20 = vld [vmem:[%s15713_s13 + $0xddc] sm:$0xf] }
 0x632   : > { %v12450_v49 = vld [vmem:[%s15713_s13 + $0xf98] sm:$0xf]  ;;  %v10755_v0 = vor.u32 %v12639_v28, %v10754_v11  ;;  %9622 = vmatpush.bf16.msra.mxu0 %v10535_v58  ;;  %v12699_v11 = vld [vmem:[%s15713_s13 + $0x45c] sm:$0xf]  ;;  %v9394_v51 = vpop.f32.mrf.mxu2 }
 0x633   : > { %v13063_v33 = vld [vmem:[%s15713_s13 + $0xfb4] sm:$0xf0]  ;;  %9560 = vmatmul.bf16.vlgmr.msra.gmra.mxu3 %v16341_v48  ;;  %v11012_v28 = vld [vmem:[%s15713_s13 + $0x478] sm:$0xf0] }
 0x634   : > { %v10722_v21 = vld [vmem:[%s15713_s13 + $0x218] sm:$0xf]  ;;  %9604 = vmatpush.bf16.msrb.mxu3 %v12483_v43  ;;  %v12451_v17 = vor.u32 %v13063_v33, %v12450_v49  ;;  %9646 = vmatpush.bf16.msra.mxu2 %v11111_v50  ;;  %v11015_v50 = vor.u32 %v12699_v11, %v11012_v28  ;;  %v12867_v33 = vld [vmem:[%s15713_s13 + $0x99c] sm:$0xf] }
 0x635   : > { %v12631_v60 = vld [vmem:[%s15713_s13 + $0x234] sm:$0xf0]  ;;  %9532 = vmatpush.bf16.msra.mxu1 %v10755_v0  ;;  %v12691_v0 = vld [vmem:[%s15713_s13 + $0x41c] sm:$0xf] }
 0x636   : > { %v11970_v37 = vld [vmem:[%s15713_s13 + $0xbd8] sm:$0xf]  ;;  %v10723_v52 = vor.u32 %v12631_v60, %v10722_v21  ;;  %9623 = vmatpush.bf16.msra.mxu0 %v10503_v18  ;;  %v12228_v21 = vld [vmem:[%s15713_s13 + $0xdf8] sm:$0xf0] }
 0x637   : > { %v12943_v62 = vld [vmem:[%s15713_s13 + $0xbf4] sm:$0xf0]  ;;  %v12995_v10 = vld [vmem:[%s15713_s13 + $0xd9c] sm:$0xf] }
 0x638   : > { %v12418_v44 = vld [vmem:[%s15713_s13 + $0xf58] sm:$0xf]  ;;  %v11971_v22 = vor.u32 %v12943_v62, %v11970_v37  ;;  %9605 = vmatpush.bf16.msrb.mxu3 %v12451_v17  ;;  %9647 = vmatpush.bf16.msra.mxu2 %v11079_v56  ;;  %v11687_v17 = vor.u32 %v12867_v33, %v11684_v8  ;;  %v10983_v37 = vor.u32 %v12691_v0, %v10980_v32  ;;  %v12196_v26 = vld [vmem:[%s15713_s13 + $0xdb8] sm:$0xf0] }
 0x639   : > { %v13055_v38 = vld [vmem:[%s15713_s13 + $0xf74] sm:$0xf0]  ;;  %9533 = vmatpush.bf16.msra.mxu1 %v10723_v52  ;;  %v11652_v52 = vld [vmem:[%s15713_s13 + $0x978] sm:$0xf0] }
 0x63a   : > { %v12419_v63 = vor.u32 %v13055_v38, %v12418_v44  ;;  %v11938_v59 = vld [vmem:[%s15713_s13 + $0xb98] sm:$0xf]  ;;  %9624 = vmatpush.bf16.msra.mxu0 %v10471_v35  ;;  %v12231_v44 = vor.u32 %v13003_v20, %v12228_v21  ;;  %v12859_v38 = vld [vmem:[%s15713_s13 + $0x95c] sm:$0xf] }
 0x63b   : > { %v12935_v19 = vld [vmem:[%s15713_s13 + $0xbb4] sm:$0xf0]  ;;  %v11655_v25 = vor.u32 %v12859_v38, %v11652_v52  ;;  %v12987_v11 = vld [vmem:[%s15713_s13 + $0xd5c] sm:$0xf] }
 0x63c   : > { %v12386_v36 = vld [vmem:[%s15713_s13 + $0xf18] sm:$0xf]  ;;  %v11939_v45 = vor.u32 %v12935_v19, %v11938_v59  ;;  %9606 = vmatpush.bf16.msrb.mxu3 %v12419_v63  ;;  %9648 = vmatpush.bf16.msra.mxu2 %v11047_v34  ;;  %v9353_v63 = vpop.f32.mrf.mxu3  ;;  %v9327_v19 = vpop.f32.mrf.mxu1  ;;  %v12199_v34 = vor.u32 %v12995_v10, %v12196_v26  ;;  %v12164_v28 = vld [vmem:[%s15713_s13 + $0xd78] sm:$0xf0] }
 0x63d   : > { %v13047_v61 = vld [vmem:[%s15713_s13 + $0xf34] sm:$0xf0]  ;;  %9578 = vmatpush.bf16.msrb.mxu1 %v11971_v22  ;;  %9625 = vmatmul.bf16.vlgmr.msra.gmra.mxu0 %v16297_v9  ;;  %v9328_v46 = vadd.f32 %v9327_v19, %v18040_v2  ;;  %v12811_v33 = vld [vmem:[%s15713_s13 + $0x7dc] sm:$0xf] }
 0x63e   : > { %v12387_v13 = vor.u32 %v13047_v61, %v12386_v36  ;;  %v11906_v43 = vld [vmem:[%s15713_s13 + $0xb58] sm:$0xf]  ;;  %9534 = vmatmul.bf16.vlgmr.msra.gmra.mxu1 %v16400_v1  ;;  %9669 = vmatpush.bf16.msrb.mxu0 %v11719_v30  ;;  %v12851_v36 = vld [vmem:[%s15713_s13 + $0x91c] sm:$0xf] }
 0x63f   : > { %v12927_v3 = vld [vmem:[%s15713_s13 + $0xb74] sm:$0xf0]  ;;  %v11620_v61 = vld [vmem:[%s15713_s13 + $0x938] sm:$0xf0] }
 0x640   : > { %v12354_v23 = vld [vmem:[%s15713_s13 + $0xed8] sm:$0xf]  ;;  %v11907_v4 = vor.u32 %v12927_v3, %v11906_v43  ;;  %9607 = vmatpush.bf16.msrb.mxu3 %v12387_v13  ;;  %9649 = vmatpush.bf16.msra.mxu2 %v11015_v50  ;;  %v9341_v43 = vadd.f32 %v18072_v15, %v9328_v46  ;;  %v11623_v3 = vor.u32 %v12851_v36, %v11620_v61  ;;  %v12843_v50 = vld [vmem:[%s15713_s13 + $0x8dc] sm:$0xf]  ;;  %v18201_v15 = vpop.f32.mrf.mxu0 }
 0x641   : > { %v13039_v49 = vld [vmem:[%s15713_s13 + $0xef4] sm:$0xf0]  ;;  %9579 = vmatpush.bf16.msrb.mxu1 %v11939_v45  ;;  %v12979_v0 = vld [vmem:[%s15713_s13 + $0xd1c] sm:$0xf] }
 0x642   : > { %v12355_v60 = vor.u32 %v13039_v49, %v12354_v23  ;;  %v11874_v54 = vld [vmem:[%s15713_s13 + $0xb18] sm:$0xf]  ;;  %9670 = vmatpush.bf16.msrb.mxu0 %v11687_v17  ;;  %v12167_v23 = vor.u32 %v12987_v11, %v12164_v28  ;;  %v11588_v49 = vld [vmem:[%s15713_s13 + $0x8f8] sm:$0xf0] }
 0x643   : > { %v12919_v58 = vld [vmem:[%s15713_s13 + $0xb34] sm:$0xf0]  ;;  %v12132_v32 = vld [vmem:[%s15713_s13 + $0xd38] sm:$0xf0] }
 0x644   : > { %v12322_v62 = vld [vmem:[%s15713_s13 + $0xe98] sm:$0xf]  ;;  %v11875_v7 = vor.u32 %v12919_v58, %v11874_v54  ;;  %9608 = vmatpush.bf16.msrb.mxu3 %v12355_v60  ;;  %9650 = vmatpush.bf16.msra.mxu2 %v10983_v37  ;;  %v9355_v54 = vpop.f32.mrf.mxu3  ;;  %v11591_v58 = vor.u32 %v12843_v50, %v11588_v49  ;;  %v12835_v37 = vld [vmem:[%s15713_s13 + $0x89c] sm:$0xf]  ;;  %v12135_v51 = vor.u32 %v12979_v0, %v12132_v32 }
 0x645   : > { %v13031_v56 = vld [vmem:[%s15713_s13 + $0xeb4] sm:$0xf0]  ;;  %9580 = vmatpush.bf16.msrb.mxu1 %v11907_v4  ;;  %v9354_v4 = vadd.f32 %v9353_v63, %v9341_v43  ;;  %v12803_v38 = vld [vmem:[%s15713_s13 + $0x79c] sm:$0xf] }
 0x646   : > { %v12323_v22 = vor.u32 %v13031_v56, %v12322_v62  ;;  %v11842_v42 = vld [vmem:[%s15713_s13 + $0xad8] sm:$0xf]  ;;  %9671 = vmatpush.bf16.msrb.mxu0 %v11655_v25  ;;  %v9329_v56 = vpop.f32.mrf.mxu1  ;;  %v11428_v52 = vld [vmem:[%s15713_s13 + $0x7b8] sm:$0xf0] }
 0x647   : > { %v12911_v18 = vld [vmem:[%s15713_s13 + $0xaf4] sm:$0xf0]  ;;  %9651 = vmatmul.bf16.vlgmr.msra.gmra.mxu2 %v16122_v39  ;;  %v11460_v39 = vld [vmem:[%s15713_s13 + $0x7f8] sm:$0xf0]  ;;  %v18207_v62 = vadd.f32 %v18124_v55, %v9354_v4 }
 0x648   : > { %v12290_v59 = vld [vmem:[%s15713_s13 + $0xe58] sm:$0xf]  ;;  %9695 = vmatpush.bf16.msrb.mxu2 %v12231_v44  ;;  %v11843_v16 = vor.u32 %v12911_v18, %v11842_v42  ;;  %9609 = vmatpush.bf16.msrb.mxu3 %v12323_v22  ;;  %v11463_v17 = vor.u32 %v12811_v33, %v11460_v39  ;;  %v11556_v44 = vld [vmem:[%s15713_s13 + $0x8b8] sm:$0xf0]  ;;  %v11431_v18 = vor.u32 %v12803_v38, %v11428_v52  ;;  %v9420_v11 = vpop.f32.mrf.mxu0 }
 0x649   : > { %v13023_v9 = vld [vmem:[%s15713_s13 + $0xe74] sm:$0xf0]  ;;  %9581 = vmatpush.bf16.msrb.mxu1 %v11875_v7  ;;  %v12971_v10 = vld [vmem:[%s15713_s13 + $0xcdc] sm:$0xf]  ;;  %v11559_v42 = vor.u32 %v12835_v37, %v11556_v44  ;;  %v18231_v49 = vpop.f32.mrf.mxu2  ;;  %v18821_v37 = vld [vmem:[#allocation8_spill] sm:$0xff] }
 0x64a   : > { %v12291_v45 = vor.u32 %v13023_v9, %v12290_v59  ;;  %v11810_v35 = vld [vmem:[%s15713_s13 + $0xa98] sm:$0xf]  ;;  %9672 = vmatpush.bf16.msrb.mxu0 %v11623_v3  ;;  %v12100_v26 = vld [vmem:[%s15713_s13 + $0xcf8] sm:$0xf0]  ;;  %v3171_v56 = vmul.f32 %v16570_v41, %v18821_v37 }
 0x64b   : > { %v12903_v13 = vld [vmem:[%s15713_s13 + $0xab4] sm:$0xf0]  ;;  %v12827_v63 = vld [vmem:[%s15713_s13 + $0x85c] sm:$0xf]  ;;  %v12103_v9 = vor.u32 %v12971_v10, %v12100_v26 }
 0x64c   : > { %v12258_v2 = vld [vmem:[%s15713_s13 + $0xe18] sm:$0xf]  ;;  %9696 = vmatpush.bf16.msrb.mxu2 %v12199_v34  ;;  %v11811_v8 = vor.u32 %v12903_v13, %v11810_v35  ;;  %9610 = vmatpush.bf16.msrb.mxu3 %v12291_v45  ;;  %v12683_v25 = vld [vmem:[%s15713_s13 + $0x3dc] sm:$0xf] }
 0x64d   : > { %v13015_v30 = vld [vmem:[%s15713_s13 + $0xe34] sm:$0xf0]  ;;  %9582 = vmatpush.bf16.msrb.mxu1 %v11843_v16  ;;  %v10948_v59 = vld [vmem:[%s15713_s13 + $0x3f8] sm:$0xf0] }
 0x64e   : > { %v12259_v20 = vor.u32 %v13015_v30, %v12258_v2  ;;  %v11778_v21 = vld [vmem:[%s15713_s13 + $0xa58] sm:$0xf]  ;;  %9673 = vmatpush.bf16.msrb.mxu0 %v11591_v58  ;;  %v11524_v19 = vld [vmem:[%s15713_s13 + $0x878] sm:$0xf0]  ;;  %v10951_v28 = vor.u32 %v12683_v25, %v10948_v59 }
 0x64f   : > { %v12895_v60 = vld [vmem:[%s15713_s13 + $0xa74] sm:$0xf0]  ;;  %v12795_v34 = vld [vmem:[%s15713_s13 + $0x75c] sm:$0xf]  ;;  %v11527_v45 = vor.u32 %v12827_v63, %v11524_v19 }
 0x650   : > { %9697 = vmatpush.bf16.msrb.mxu2 %v12167_v23  ;;  %v11779_v7 = vor.u32 %v12895_v60, %v11778_v21  ;;  %9611 = vmatpush.bf16.msrb.mxu3 %v12259_v20  ;;  %v11746_v22 = vld [vmem:[%s15713_s13 + $0xa18] sm:$0xf]  ;;  %v11396_v36 = vld [vmem:[%s15713_s13 + $0x778] sm:$0xf0] }
 0x651   : > { %9583 = vmatpush.bf16.msrb.mxu1 %v11811_v8  ;;  %v12887_v55 = vld [vmem:[%s15713_s13 + $0xa34] sm:$0xf0]  ;;  %v12963_v46 = vld [vmem:[%s15713_s13 + $0xc9c] sm:$0xf]  ;;  %v11399_v35 = vor.u32 %v12795_v34, %v11396_v36 }
 0x652   : > { %v11747_v61 = vor.u32 %v12887_v55, %v11746_v22  ;;  %v12068_v16 = vld [vmem:[%s15713_s13 + $0xcb8] sm:$0xf0]  ;;  %9674 = vmatpush.bf16.msrb.mxu0 %v11559_v42  ;;  %v9446_v22 = vpop.f32.mrf.mxu2 }
 0x653   : > { %9612 = vmatmul.bf16.vlgmr.msrb.gmra.mxu3 %v17362_v6  ;;  %v12819_v13 = vld [vmem:[%s15713_s13 + $0x81c] sm:$0xf]  ;;  %v12071_v2 = vor.u32 %v12963_v46, %v12068_v16 }
 0x654   : > { %9656 = vmatpush.bf16.msra.mxu3 %v11463_v17  ;;  %9698 = vmatpush.bf16.msrb.mxu2 %v12135_v51  ;;  %v12675_v43 = vld [vmem:[%s15713_s13 + $0x39c] sm:$0xf] }
 0x655   : > { %9584 = vmatpush.bf16.msrb.mxu1 %v11779_v7  ;;  %v10916_v3 = vld [vmem:[%s15713_s13 + $0x3b8] sm:$0xf0] }
 0x656   : > { %v11492_v30 = vld [vmem:[%s15713_s13 + $0x838] sm:$0xf0]  ;;  %v10919_v8 = vor.u32 %v12675_v43, %v10916_v3  ;;  %9675 = vmatpush.bf16.msrb.mxu0 %v11527_v45  ;;  %v18824_v43 = vld [vmem:[#allocation5_spill] sm:$0xff] }
 0x657   : > { %v12787_v50 = vld [vmem:[%s15713_s13 + $0x71c] sm:$0xf]  ;;  %v11495_v0 = vor.u32 %v12819_v13, %v11492_v30  ;;  %v18826_v30 = vld [vmem:[#allocation26_spill] sm:$0xff] }
 0x658   : > { %9657 = vmatpush.bf16.msra.mxu3 %v11431_v18  ;;  %9699 = vmatpush.bf16.msrb.mxu2 %v12103_v9  ;;  %v11364_v23 = vld [vmem:[%s15713_s13 + $0x738] sm:$0xf0]  ;;  %v3173_v18 = vmul.f32 %v16520_v40, %v18821_v37  ;;  %v9405_v9 = vpop.f32.mrf.mxu3 }
 0x659   : > { %9585 = vmatpush.bf16.msrb.mxu1 %v11747_v61  ;;  %v12955_v33 = vld [vmem:[%s15713_s13 + $0xc5c] sm:$0xf]  ;;  %v11367_v32 = vor.u32 %v12787_v50, %v11364_v23  ;;  %v18827_v50 = vld [vmem:[#allocation74_spill] sm:$0xff] }
 0x65a   : > { %v12036_v39 = vld [vmem:[%s15713_s13 + $0xc78] sm:$0xf0]  ;;  %9676 = vmatpush.bf16.msrb.mxu0 %v11495_v0  ;;  %v3175_v23 = vmul.f32 %v18827_v50, %v18821_v37  ;;  %v18835_v50 = vld [vmem:[#allocation22_spill] sm:$0xff] }
 0x65b   : > { %v12667_v4 = vld [vmem:[%s15713_s13 + $0x35c] sm:$0xf]  ;;  %v12039_v21 = vor.u32 %v12955_v33, %v12036_v39  ;;  %v18278_v33 = vpop.f32.mrf.mxu0 }
 0x65c   : > { %9658 = vmatpush.bf16.msra.mxu3 %v11399_v35  ;;  %v10884_v20 = vld [vmem:[%s15713_s13 + $0x378] sm:$0xf0]  ;;  %9700 = vmatpush.bf16.msrb.mxu2 %v12071_v2 }
 0x65d   : > { %9630 = vmatpush.bf16.msra.mxu1 %v10951_v28  ;;  %v12779_v60 = vld [vmem:[%s15713_s13 + $0x6dc] sm:$0xf]  ;;  %v10887_v51 = vor.u32 %v12667_v4, %v10884_v20  ;;  %9677 = vmatmul.bf16.vlgmr.msrb.gmra.mxu0 %v17231_v24  ;;  %v18823_v24 = vld [vmem:[#allocation6_spill] sm:$0xff] }
 0x65e   : > { %9586 = vmatmul.bf16.vlgmr.msrb.gmra.mxu1 %v17392_v14  ;;  %v11332_v54 = vld [vmem:[%s15713_s13 + $0x6f8] sm:$0xf0]  ;;  %9820 = vmatpush.xpose.msra.mxu0 %v3171_v56  ;;  %v3155_v36 = vmul.f32 %v16512_v31, %v18823_v24 }
 0x65f   : > { %v12947_v58 = vld [vmem:[%s15713_s13 + $0xc1c] sm:$0xf]  ;;  %v11335_v44 = vor.u32 %v12779_v60, %v11332_v54 }
 0x660   : > { %v12004_v17 = vld [vmem:[%s15713_s13 + $0xc38] sm:$0xf0]  ;;  %9659 = vmatpush.bf16.msra.mxu3 %v11367_v32  ;;  %9701 = vmatpush.bf16.msrb.mxu2 %v12039_v21 }
 0x661   : > { %9631 = vmatpush.bf16.msra.mxu1 %v10919_v8  ;;  %v12659_v38 = vld [vmem:[%s15713_s13 + $0x31c] sm:$0xf]  ;;  %v12007_v7 = vor.u32 %v12947_v58, %v12004_v17  ;;  %v9407_v8 = vpop.f32.mrf.mxu3 }
 0x662   : > { %v10852_v52 = vld [vmem:[%s15713_s13 + $0x338] sm:$0xf0] }
 0x663   : > { %v12771_v10 = vld [vmem:[%s15713_s13 + $0x69c] sm:$0xf]  ;;  %v10855_v42 = vor.u32 %v12659_v38, %v10852_v52 }
 0x664   : > { %v11300_v26 = vld [vmem:[%s15713_s13 + $0x6b8] sm:$0xf0]  ;;  %9660 = vmatpush.bf16.msra.mxu3 %v11335_v44  ;;  %9702 = vmatpush.bf16.msrb.mxu2 %v12007_v7 }
 0x665   : > { %v18822_v55 = vld [vmem:[#allocation7_spill] sm:$0xff]  ;;  %9632 = vmatpush.bf16.msra.mxu1 %v10887_v51  ;;  %v11303_v63 = vor.u32 %v12771_v10, %v11300_v26  ;;  %v9792_v51 = vld.sshfl [vmem:[#allocation1] sm:$0xff pattern:$0x73625140]  ;;  %v18830_v10 = vld [vmem:[#allocation25_spill] sm:$0xff] }
 0x666   : > { %v3163_v41 = vmul.f32 %v16534_v47, %v18822_v55  ;;  %v12651_v25 = vld [vmem:[%s15713_s13 + $0x2dc] sm:$0xf]  ;;  %v9379_v47 = vpop.f32.mrf.mxu1  ;;  %v3165_v46 = vmul.f32 %v16487_v29, %v18822_v55  ;;  %v3177_v26 = vmul.f32 %v18830_v10, %v18821_v37 }
 0x667   : > { %v10820_v59 = vld [vmem:[%s15713_s13 + $0x2f8] sm:$0xf0]  ;;  %v9380_v40 = vadd.f32 %v9379_v47, %v18207_v62  ;;  %9703 = vmatmul.bf16.vlgmr.msrb.gmra.mxu2 %v17257_v53 }
 0x668   : > { %9821 = vmatpush.xpose.msra.mxu0 %v3163_v41  ;;  %v12763_v19 = vld [vmem:[%s15713_s13 + $0x65c] sm:$0xf]  ;;  %9860 = vmatpush.xpose.msra.mxu2 %v3173_v18  ;;  %v10823_v61 = vor.u32 %v12651_v25, %v10820_v59  ;;  %v9472_v59 = vpop.f32.mrf.mxu0 }
 0x669   : > { %v11268_v34 = vld [vmem:[%s15713_s13 + $0x678] sm:$0xf0]  ;;  %9633 = vmatpush.bf16.msra.mxu1 %v10855_v42  ;;  %9661 = vmatpush.bf16.msra.mxu3 %v11303_v63  ;;  %v9393_v45 = vadd.f32 %v18155_v57, %v9380_v40  ;;  %v3157_v57 = vmul.f32 %v18826_v30, %v18823_v24  ;;  %v18831_v63 = vld [vmem:[#allocation50_spill] sm:$0xff] }
 0x66a   : > { %v11271_v16 = vor.u32 %v12763_v19, %v11268_v34  ;;  %v12643_v11 = vld [vmem:[%s15713_s13 + $0x29c] sm:$0xf]  ;;  %v3159_v25 = vmul.f32 %v18831_v63, %v18823_v24  ;;  %v18832_v34 = vld [vmem:[#allocation24_spill] sm:$0xff] }
 0x66b   : > { %v10788_v28 = vld [vmem:[%s15713_s13 + $0x2b8] sm:$0xf0]  ;;  %v18272_v29 = vadd.f32 %v9405_v9, %v9393_v45  ;;  %v3169_v47 = vmul.f32 %v18832_v34, %v18822_v55  ;;  %v9794_v45 = vld.sshfl [vmem:[#allocation1 + $0x10] sm:$0xff pattern:$0x73625140]  ;;  %v18836_v34 = vld [vmem:[#allocation53_spill] sm:$0xff] }
 0x66c   : > { %9822 = vmatpush.xpose.msra.mxu0 %v3155_v36  ;;  %v12755_v35 = vld [vmem:[%s15713_s13 + $0x61c] sm:$0xf]  ;;  %9861 = vmatpush.xpose.msra.mxu2 %v3165_v46  ;;  %v10791_v53 = vor.u32 %v12643_v11, %v10788_v28  ;;  %v18833_v11 = vld [vmem:[#allocation38_spill] sm:$0xff] }
 0x66d   : > { %v11236_v13 = vld [vmem:[%s15713_s13 + $0x638] sm:$0xf0]  ;;  %9634 = vmatpush.bf16.msra.mxu1 %v10823_v61  ;;  %9662 = vmatpush.bf16.msra.mxu3 %v11271_v16  ;;  %v18303_v61 = vpop.f32.mrf.mxu2  ;;  %v3151_v28 = vmul.f32 %v18833_v11, %v18824_v43 }
 0x66e   : > { %v13067_v31 = vld [vmem:[%s15713_s13 + $0xfdc] sm:$0xf]  ;;  %v11239_v39 = vor.u32 %v12755_v35, %v11236_v13  ;;  %v9381_v20 = vpop.f32.mrf.mxu1 }
 0x66f   : > { %v12484_v62 = vld [vmem:[%s15713_s13 + $0xff8] sm:$0xf0] }
 0x670   : > { %v18825_v3 = vld [vmem:[#allocation31_spill] sm:$0xff]  ;;  %v12487_v0 = vor.u32 %v13067_v31, %v12484_v62  ;;  %9862 = vmatpush.xpose.msra.mxu2 %v3157_v57 }
 0x671   : > { %v3147_v2 = vmul.f32 %v18825_v3, %v18824_v43  ;;  %v12635_v32 = vld [vmem:[%s15713_s13 + $0x25c] sm:$0xf]  ;;  %9635 = vmatpush.bf16.msra.mxu1 %v10791_v53  ;;  %9663 = vmatpush.bf16.msra.mxu3 %v11239_v39 }
 0x672   : > { %v10756_v4 = vld [vmem:[%s15713_s13 + $0x278] sm:$0xf0] }
 0x673   : > { %9823 = vmatpush.xpose.msra.mxu0 %v3147_v2  ;;  %v13059_v21 = vld [vmem:[%s15713_s13 + $0xf9c] sm:$0xf]  ;;  %v10759_v44 = vor.u32 %v12635_v32, %v10756_v4 }
 0x674   : > { %v12452_v60 = vld [vmem:[%s15713_s13 + $0xfb8] sm:$0xf0]  ;;  %9664 = vmatmul.bf16.vlgmr.msra.gmra.mxu3 %v16341_v48 }
 0x675   : > { %v18828_v54 = vld [vmem:[#allocation27_spill] sm:$0xff]  ;;  %9708 = vmatpush.bf16.msrb.mxu3 %v12487_v0  ;;  %v12455_v38 = vor.u32 %v13059_v21, %v12452_v60  ;;  %9636 = vmatpush.bf16.msra.mxu1 %v10759_v44  ;;  %v9498_v32 = vpop.f32.mrf.mxu2  ;;  %v9457_v21 = vpop.f32.mrf.mxu3 }
 0x676   : > { %v3149_v58 = vmul.f32 %v18828_v54, %v18824_v43  ;;  %v18829_v17 = vld [vmem:[#allocation47_spill] sm:$0xff]  ;;  %9824 = vmatmul.f32.vlgmr.msra.gmra.mxu0 %v9792_v51 }
 0x677   : > { %9900 = vmatpush.xpose.msrb.mxu0 %v3175_v23  ;;  %v3167_v56 = vmul.f32 %v18829_v17, %v18822_v55  ;;  %v12627_v52 = vld [vmem:[%s15713_s13 + $0x21c] sm:$0xf]  ;;  %v3153_v23 = vmul.f32 %v18835_v50, %v18824_v43  ;;  %v9431_v17 = vpop.f32.mrf.mxu1 }
 0x678   : > { %v10724_v7 = vld [vmem:[%s15713_s13 + $0x238] sm:$0xf0]  ;;  %9863 = vmatpush.xpose.msra.mxu2 %v3149_v58  ;;  %v9432_v44 = vadd.f32 %v9431_v17, %v18201_v15 }
 0x679   : > { %v12939_v22 = vld [vmem:[%s15713_s13 + $0xbdc] sm:$0xf]  ;;  %v10727_v9 = vor.u32 %v12627_v52, %v10724_v7  ;;  %9709 = vmatpush.bf16.msrb.mxu3 %v12455_v38 }
 0x67a   : > { %v11972_v41 = vld [vmem:[%s15713_s13 + $0xbf8] sm:$0xf0]  ;;  %v9445_v52 = vadd.f32 %v18231_v49, %v9432_v44 }
 0x67b   : > { %9901 = vmatpush.xpose.msrb.mxu0 %v3167_v56  ;;  %v13051_v42 = vld [vmem:[%s15713_s13 + $0xf5c] sm:$0xf]  ;;  %v11975_v19 = vor.u32 %v12939_v22, %v11972_v41  ;;  %9637 = vmatpush.bf16.msra.mxu1 %v10727_v9 }
 0x67c   : > { %v12420_v18 = vld [vmem:[%s15713_s13 + $0xf78] sm:$0xf0]  ;;  %9940 = vmatpush.xpose.msrb.mxu2 %v3177_v26 }
 0x67d   : > { %v12423_v36 = vor.u32 %v13051_v42, %v12420_v18  ;;  %v12931_v40 = vld [vmem:[%s15713_s13 + $0xb9c] sm:$0xf]  ;;  %9864 = vmatmul.f32.vlgmr.msra.gmra.mxu2 %v9794_v45  ;;  %v9458_v42 = vadd.f32 %v9457_v21, %v9445_v52  ;;  %v18332_v18 = vpop.f32.mrf.mxu0  ;;  %v9459_v15 = vpop.f32.mrf.mxu3  ;;  %v18847_v52 = vld [vmem:[#allocation64_spill] sm:$0xff] }
 0x67e   : > { %v11940_v48 = vld [vmem:[%s15713_s13 + $0xbb8] sm:$0xf0]  ;;  %9638 = vmatmul.bf16.vlgmr.msra.gmra.mxu1 %v16400_v1 }
 0x67f   : > { %9902 = vmatpush.xpose.msrb.mxu0 %v3159_v25  ;;  %v13043_v46 = vld [vmem:[%s15713_s13 + $0xf1c] sm:$0xf]  ;;  %9682 = vmatpush.bf16.msrb.mxu1 %v11975_v19  ;;  %v11943_v35 = vor.u32 %v12931_v40, %v11940_v48  ;;  %v9471_v49 = vadd.f32 %v18278_v33, %v9458_v42  ;;  %v9433_v19 = vpop.f32.mrf.mxu1  ;;  %v18838_v33 = vld [vmem:[#allocation42_spill] sm:$0xff] }
 0x680   : > { %v12388_v16 = vld [vmem:[%s15713_s13 + $0xf38] sm:$0xf0]  ;;  %9941 = vmatpush.xpose.msrb.mxu2 %v3169_v47  ;;  %9710 = vmatpush.bf16.msrb.mxu3 %v12423_v36  ;;  %v3174_v47 = vmul.f32 %v18836_v34, %v18821_v37  ;;  %v3172_v45 = vmul.f32 %v18838_v33, %v18821_v37 }
 0x681   : > { %v18834_v13 = vld [vmem:[#allocation35_spill] sm:$0xff]  ;;  %v12391_v62 = vor.u32 %v13043_v46, %v12388_v16  ;;  %v18837_v46 = vld [vmem:[#allocation34_spill] sm:$0xff] }
 0x682   : > { %v3161_v31 = vmul.f32 %v18834_v13, %v18823_v24  ;;  %v12923_v3 = vld [vmem:[%s15713_s13 + $0xb5c] sm:$0xf]  ;;  %v3166_v16 = vmul.f32 %v18837_v46, %v18822_v55  ;;  %v18839_v13 = vld [vmem:[#allocation21_spill] sm:$0xff] }
 0x683   : > { %9903 = vmatpush.xpose.msrb.mxu0 %v3151_v28  ;;  %v11908_v2 = vld [vmem:[%s15713_s13 + $0xb78] sm:$0xf0]  ;;  %9683 = vmatpush.bf16.msrb.mxu1 %v11943_v35 }
 0x684   : > { %v13035_v53 = vld [vmem:[%s15713_s13 + $0xedc] sm:$0xf]  ;;  %9942 = vmatpush.xpose.msrb.mxu2 %v3161_v31  ;;  %v11911_v57 = vor.u32 %v12923_v3, %v11908_v2  ;;  %9711 = vmatpush.bf16.msrb.mxu3 %v12391_v62  ;;  %v3158_v31 = vmul.f32 %v18839_v13, %v18823_v24  ;;  %v18840_v62 = vld [vmem:[#allocation69_spill] sm:$0xff] }
 0x685   : > { %v12356_v30 = vld [vmem:[%s15713_s13 + $0xef8] sm:$0xf0]  ;;  %v9524_v11 = vpop.f32.mrf.mxu0  ;;  %v3164_v3 = vmul.f32 %v18840_v62, %v18822_v55 }
 0x686   : > { %v12359_v39 = vor.u32 %v13035_v53, %v12356_v30  ;;  %v12915_v8 = vld [vmem:[%s15713_s13 + $0xb1c] sm:$0xf]  ;;  %v3178_v53 = vmul.f32 %v16763_v12, %v18821_v37  ;;  %v3176_v12 = vmul.f32 %v16795_v5, %v18821_v37  ;;  %v9793_v37 = vld.sshfl [vmem:[#allocation1 + $0x8] sm:$0xff pattern:$0x73625140] }
 0x687   : > { %v11876_v0 = vld [vmem:[%s15713_s13 + $0xb38] sm:$0xf0]  ;;  %9684 = vmatpush.bf16.msrb.mxu1 %v11911_v57 }
 0x688   : > { %v13027_v4 = vld [vmem:[%s15713_s13 + $0xe9c] sm:$0xf]  ;;  %9943 = vmatpush.xpose.msrb.mxu2 %v3153_v23  ;;  %v11879_v1 = vor.u32 %v12915_v8, %v11876_v0  ;;  %9712 = vmatpush.bf16.msrb.mxu3 %v12359_v39  ;;  %v18843_v23 = vld [vmem:[#allocation28_spill] sm:$0xff] }
 0x689   : > { %v12324_v20 = vld [vmem:[%s15713_s13 + $0xeb8] sm:$0xf0]  ;;  %v9548_v35 = vpop.f32.mrf.mxu2  ;;  %v3170_v39 = vmul.f32 %v18843_v23, %v18822_v55 }
 0x68a   : > { %v12327_v60 = vor.u32 %v13027_v4, %v12324_v20  ;;  %v12907_v54 = vld [vmem:[%s15713_s13 + $0xadc] sm:$0xf] }
 0x68b   : > { %v11844_v58 = vld [vmem:[%s15713_s13 + $0xaf8] sm:$0xf0]  ;;  %9685 = vmatpush.bf16.msrb.mxu1 %v11879_v1  ;;  %v18845_v1 = vld [vmem:[#allocation46_spill] sm:$0xff] }
 0x68c   : > { %v13019_v56 = vld [vmem:[%s15713_s13 + $0xe5c] sm:$0xf]  ;;  %v11847_v38 = vor.u32 %v12907_v54, %v11844_v58  ;;  %9713 = vmatpush.bf16.msrb.mxu3 %v12327_v60  ;;  %v3162_v21 = vmul.f32 %v18845_v1, %v18823_v24  ;;  %v3168_v54 = vmul.f32 %v16771_v27, %v18822_v55 }
 0x68d   : > { %v12292_v51 = vld [vmem:[%s15713_s13 + $0xe78] sm:$0xf0] }
 0x68e   : > { %v12295_v7 = vor.u32 %v13019_v56, %v12292_v51  ;;  %v12899_v10 = vld [vmem:[%s15713_s13 + $0xa9c] sm:$0xf] }
 0x68f   : > { %v11812_v26 = vld [vmem:[%s15713_s13 + $0xab8] sm:$0xf0]  ;;  %9686 = vmatpush.bf16.msrb.mxu1 %v11847_v38 }
 0x690   : > { %v13011_v22 = vld [vmem:[%s15713_s13 + $0xe1c] sm:$0xf]  ;;  %v11815_v63 = vor.u32 %v12899_v10, %v11812_v26  ;;  %9714 = vmatpush.bf16.msrb.mxu3 %v12295_v7 }
 0x691   : > { %v12260_v41 = vld [vmem:[%s15713_s13 + $0xe38] sm:$0xf0]  ;;  %v9550_v50 = vpop.f32.mrf.mxu2 }
 0x692   : > { %v12263_v25 = vor.u32 %v13011_v22, %v12260_v41  ;;  %v12891_v59 = vld [vmem:[%s15713_s13 + $0xa5c] sm:$0xf] }
 0x693   : > { %v11780_v9 = vld [vmem:[%s15713_s13 + $0xa78] sm:$0xf0]  ;;  %9687 = vmatpush.bf16.msrb.mxu1 %v11815_v63  ;;  %v9509_v8 = vpop.f32.mrf.mxu3 }
 0x694   : > { %v11783_v36 = vor.u32 %v12891_v59, %v11780_v9  ;;  %9715 = vmatpush.bf16.msrb.mxu3 %v12263_v25  ;;  %v12883_v40 = vld [vmem:[%s15713_s13 + $0xa1c] sm:$0xf] }
 0x695   : > { %v11748_v48 = vld [vmem:[%s15713_s13 + $0xa38] sm:$0xf0]  ;;  %v9483_v4 = vpop.f32.mrf.mxu1 }
 0x696   : > { %v11751_v28 = vor.u32 %v12883_v40, %v11748_v48  ;;  %v18842_v30 = vld [vmem:[#allocation39_spill] sm:$0xff]  ;;  %v9484_v20 = vadd.f32 %v9483_v4, %v9471_v49 }
 0x697   : > { %9716 = vmatmul.bf16.vlgmr.msrb.gmra.mxu3 %v17362_v6  ;;  %9688 = vmatpush.bf16.msrb.mxu1 %v11783_v36  ;;  %v18841_v6 = vld [vmem:[#allocation30_spill] sm:$0xff]  ;;  %v3156_v57 = vmul.f32 %v18842_v30, %v18823_v24  ;;  %v9795_v32 = vld.sshfl [vmem:[#allocation1 + $0x18] sm:$0xff pattern:$0x73625140] }
 0x698   : > { %9880 = vmatpush.xpose.msra.mxu3 %v3174_v47  ;;  %v3150_v2 = vmul.f32 %v18841_v6, %v18824_v43  ;;  %v9497_v60 = vadd.f32 %v18303_v61, %v9484_v20  ;;  %v18846_v17 = vld [vmem:[#allocation43_spill] sm:$0xff]  ;;  %v3160_v61 = vmul.f32 %v18847_v52, %v18823_v24 }
 0x699   : > { %v3154_v56 = vmul.f32 %v18846_v17, %v18824_v43  ;;  %v18848_v27 = vld [vmem:[#allocation71_spill] sm:$0xff]  ;;  %v9968_v17 = vld [vmem:[%s18417_s5] sm:$0xff] }
 0x69a   : > { %v9510_v58 = vadd.f32 %v9509_v8, %v9497_v60  ;;  %v3152_v55 = vmul.f32 %v18848_v27, %v18824_v43  ;;  %v9971_v60 = vld [vmem:[%s18417_s5 + $0x18] sm:$0xff] }
 0x69b   : > { %9689 = vmatpush.bf16.msrb.mxu1 %v11751_v28  ;;  %v9511_v5 = vpop.f32.mrf.mxu3  ;;  %9988 = vmatpush.msra.mxu0 %v9971_v60 }
 0x69c   : > { %9881 = vmatpush.xpose.msra.mxu3 %v3166_v16  ;;  %v9574_v51 = vpop.f32.mrf.mxu0  ;;  %v9732_v44 = vrot.slane %v9510_v58, 6  ;;  %v9969_v58 = vld [vmem:[%s18417_s5 + $0x8] sm:$0xff] }
 0x69d   : > { %v9485_v38 = vpop.f32.mrf.mxu1 }
 0x69e   : > { %9690 = vmatmul.bf16.vlgmr.msrb.gmra.mxu1 %v17392_v14  ;;  %v18844_v14 = vld [vmem:[#allocation67_spill] sm:$0xff]  ;;  %v9741_v7 = vsel %vm9735_vm7, %v18272_v29, %v9732_v44 }
 0x69f   : > { %9840 = vmatpush.xpose.msra.mxu1 %v3172_v45  ;;  %v3148_v0 = vmul.f32 %v18844_v14, %v18824_v43 }
 0x6a0   : > { %9882 = vmatpush.xpose.msra.mxu3 %v3158_v31 }
 0x6a3   : > { %9841 = vmatpush.xpose.msra.mxu1 %v3164_v3 }
 0x6a4   : > { %9883 = vmatpush.xpose.msra.mxu3 %v3150_v2  ;;  %v9576_v10 = vpop.f32.mrf.mxu0 }
 0x6a7   : > { %9842 = vmatpush.xpose.msra.mxu1 %v3156_v57  ;;  %9884 = vmatmul.f32.vlgmr.msra.gmra.mxu3 %v9795_v32 }
 0x6a8   : > { %9960 = vmatpush.xpose.msrb.mxu3 %v3178_v53 }
 0x6aa   : > { %v9600_v26 = vpop.f32.mrf.mxu2 }
 0x6ab   : > { %9843 = vmatpush.xpose.msra.mxu1 %v3148_v0 }
 0x6ac   : > { %9961 = vmatpush.xpose.msrb.mxu3 %v3170_v39 }
 0x6ae   : > { %9844 = vmatmul.f32.vlgmr.msra.gmra.mxu1 %v9793_v37 }
 0x6af   : > { %9920 = vmatpush.xpose.msrb.mxu1 %v3176_v12 }
 0x6b0   : > { %9962 = vmatpush.xpose.msrb.mxu3 %v3162_v21 }
 0x6b2   : > { %v9602_v22 = vpop.f32.mrf.mxu2 }
 0x6b3   : > { %9921 = vmatpush.xpose.msrb.mxu1 %v3168_v54  ;;  %v9970_v54 = vld [vmem:[%s18417_s5 + $0x10] sm:$0xff] }
 0x6b4   : > { %9963 = vmatpush.xpose.msrb.mxu3 %v3154_v56  ;;  %9989 = vmatpush.msra.mxu0 %v9970_v54 }
 0x6b6   : > { %v9561_v41 = vpop.f32.mrf.mxu3  ;;  %9990 = vmatpush.msra.mxu0 %v9969_v58 }
 0x6b7   : > { %9922 = vmatpush.xpose.msrb.mxu1 %v3160_v61 }
 0x6b8   : > { %9991 = vmatpush.msra.mxu0 %v9968_v17 }
 0x6ba   : > { %v9626_v59 = vpop.f32.mrf.mxu0 }
 0x6bb   : > { %9923 = vmatpush.xpose.msrb.mxu1 %v3152_v55  ;;  %v9535_v42 = vpop.f32.mrf.mxu1 }
 0x6bc   : > { %v9536_v63 = vadd.f32 %v9535_v42, %v18332_v18 }
 0x6be   : > { %v9549_v15 = vadd.f32 %v9548_v35, %v9536_v63  ;;  %v9563_v9 = vpop.f32.mrf.mxu3 }
 0x6c0   : > { %v9562_v25 = vadd.f32 %v9561_v41, %v9549_v15 }
 0x6c2   : > { %v9575_v24 = vadd.f32 %v9574_v51, %v9562_v25  ;;  %v9628_v19 = vpop.f32.mrf.mxu0 }
 0x6c3   : > { %v9537_v49 = vpop.f32.mrf.mxu1 }
 0x6ca   : > { %v9652_v29 = vpop.f32.mrf.mxu2 }
 0x6d2   : > { %v9654_v34 = vpop.f32.mrf.mxu2 }
 0x6d6   : > { %v9613_v47 = vpop.f32.mrf.mxu3 }
 0x6da   : > { %v9678_v46 = vpop.f32.mrf.mxu0 }
 0x6db   : > { %v9587_v36 = vpop.f32.mrf.mxu1 }
 0x6dc   : > { %v9588_v43 = vadd.f32 %v9587_v36, %v9575_v24 }
 0x6de   : > { %v9601_v40 = vadd.f32 %v9600_v26, %v9588_v43  ;;  %v9615_v16 = vpop.f32.mrf.mxu3 }
 0x6e0   : > { %v9614_v48 = vadd.f32 %v9613_v47, %v9601_v40 }
 0x6e2   : > { %v9680_v28 = vpop.f32.mrf.mxu0  ;;  %v9733_v39 = vrot.slane %v9614_v48, 4 }
 0x6e3   : > { %v9589_v11 = vpop.f32.mrf.mxu1 }
 0x6ea   : > { %v9704_v33 = vpop.f32.mrf.mxu2 }
 0x6f2   : > { %v9706_v18 = vpop.f32.mrf.mxu2 }
 0x6f3   : > { %v9825_v51 = vpop.f32.mrf.mxu0 }
 0x6f7   : > { %v9665_v45 = vpop.f32.mrf.mxu3 }
 0x6fb   : > { %v9639_v35 = vpop.f32.mrf.mxu1 }
 0x6fc   : > { %v9640_v13 = vadd.f32 %v9639_v35, %v9626_v59 }
 0x6fe   : > { %v9653_v31 = vadd.f32 %v9652_v29, %v9640_v13 }
 0x6ff   : > { %v9667_v62 = vpop.f32.mrf.mxu3 }
 0x700   : > { %v9666_v6 = vadd.f32 %v9665_v45, %v9653_v31  ;;  %v9865_v5 = vpop.f32.mrf.mxu2 }
 0x702   : > { %v9679_v53 = vadd.f32 %v9678_v46, %v9666_v6 }
 0x703   : > { %v9641_v3 = vpop.f32.mrf.mxu1 }
 0x71a   : > { %v9717_v2 = vpop.f32.mrf.mxu3 }
 0x71b   : > { %v9691_v30 = vpop.f32.mrf.mxu1 }
 0x71c   : > { %v9692_v57 = vadd.f32 %v9691_v30, %v9679_v53 }
 0x71e   : > { %v9705_v50 = vadd.f32 %v9704_v33, %v9692_v57 }
 0x720   : > { %v9718_v23 = vadd.f32 %v9717_v2, %v9705_v50 }
 0x722   : > { %v9734_v8 = vrot.slane %v9718_v23, 2  ;;  %v9719_v14 = vpop.f32.mrf.mxu3 }
 0x723   : > { %v9693_v0 = vpop.f32.mrf.mxu1 }
 0x724   : > { %v9742_v32 = vsel %vm9737_vm8, %v9733_v39, %v9734_v8 }
 0x725   : > { %v9743_v4 = vsel %vm9739_vm14, %v9741_v7, %v9742_v32 }
 0x726   : > { %9791 = vst [vmem:[#allocation1 + $0x20] ss:$4 sm:$0xff] %v9743_v4 }
 0x72a   : > { %v9885_v38 = vpop.f32.mrf.mxu3 }
 0x72b   : > { %v9845_v56 = vpop.f32.mrf.mxu1 }
 0x72c   : > { %v9846_v44 = vadd.f32 %v9845_v56, %v9825_v51 }
 0x72d   : > { %v9796_v12 = vld.sshfl [vmem:[#allocation1 + $0x20] sm:$0xff pattern:$0x73625140]  ;;  %v9797_v20 = vld.sshfl [vmem:[#allocation1 + $0x28] sm:$0xff pattern:$0x73625140] }
 0x72e   : > { %9904 = vmatmul.f32.vlgmr.msrb.gmra.mxu0 %v9796_v12  ;;  %9924 = vmatmul.f32.vlgmr.msrb.gmra.mxu1 %v9797_v20  ;;  %v9798_v1 = vld.sshfl [vmem:[#allocation1 + $0x30] sm:$0xff pattern:$0x73625140]  ;;  %v9799_v21 = vld.sshfl [vmem:[#allocation1 + $0x38] sm:$0xff pattern:$0x73625140]  ;;  %v9866_v37 = vadd.f32 %v9865_v5, %v9846_v44 }
 0x72f   : > { %9944 = vmatmul.f32.vlgmr.msrb.gmra.mxu2 %v9798_v1  ;;  %9964 = vmatmul.f32.vlgmr.msrb.gmra.mxu3 %v9799_v21 }
 0x730   : > { %v9886_v52 = vadd.f32 %v9885_v38, %v9866_v37 }
 0x7ab   : > { %v9905_v61 = vpop.f32.mrf.mxu0  ;;  %v9925_v27 = vpop.f32.mrf.mxu1 }
 0x7ac   : > { %v9906_v7 = vadd.f32 %v9905_v61, %v9886_v52 }
 0x7ae   : > { %v9926_v55 = vadd.f32 %v9925_v27, %v9906_v7 }
 0x7b2   : > { %v9945_v10 = vpop.f32.mrf.mxu2  ;;  %v9965_v22 = vpop.f32.mrf.mxu3 }
 0x7b3   : > { %v9946_v26 = vadd.f32 %v9945_v10, %v9926_v55 }
 0x7b5   : > { %v9966_v41 = vadd.f32 %v9965_v22, %v9946_v26 }
 0x7b7   : > { %12488 = vmatmul.msk.f32.vlgmr.msra.gmra.mxu0 %vm1898_vm0, %v9966_v41 }
 0x834   : > { %v9993_v42 = vpop.f32.mrf.mxu0 }
 0x835   : > { %9997 = vst.msk [vmem:[%s1889_s7] sm:$0x3] %vm9996_vm5, %v9993_v42 }
 0x836 PF: > { %s16_s25 = sadd.s32 1, %s13210_s25   ;;  %s18849_s21 = smov %s13198_s22 }
 0x837   : > { %p13_p13 = scmp.ge.s32.totalorder %s16_s25, 4   ;;  %s18850_s22 = smov %s13298_s29 }
 0x838   : > { %s18851_s23 = smov %s13206_s24  ;;  %s18852_s24 = smov %s18854_s26 }
 0x839   :  { %15 = sbr.rel (!%p13_p13) target bundleno = 3 (0x3), region = 141 }

</bundles_post_ra>
